<compile_context>
chip_gen: v7x
topology: tpu7x:2x2x1
jax: 0.10.0
libtpu: 0.0.40
codegen_flags: <defaults>
</compile_context>

<pallas_src>
import numpy as np

import jax
import jax.numpy as jnp
from jax.experimental import pallas as pl
from jax.experimental.pallas import tpu as pltpu


_IMAGENET_MEAN = jnp.array([0.485, 0.456, 0.406], jnp.float32)
_IMAGENET_STD = jnp.array([0.229, 0.224, 0.225], jnp.float32)


# -----------------------------------------------------------------------------
# Fused kernel: one batch image pair per grid step.
# -----------------------------------------------------------------------------
def _fused_perceptual_kernel(norm_ref, mask_ref, x_ref, y_ref,
                             w1_ref, b1_ref, w2_ref, b2_ref,
                             o_ref, xin_ref, h1_ref, feat_ref):
    # norm_ref: (4, 1, 1, 3) f32   [scale_in, off_in, scale_tgt, off_tgt]
    # mask_ref: (L, 1)       f32   1.0 on real pixel columns (1..W) of padded rows
    # x_ref/y_ref: (1, H, W, 3) bf16 raw images (NHWC block)
    # w*_ref: HWIO bf16 weights, b*_ref: (1, C) f32 biases
    # o_ref: (1, 1, C2) f32 lane-wide partial SSE for this image pair
    # xin_ref:  (H+4, Wp, 3) f32 zero-padded input scratch (1 guard row each side)
    # h1_ref:   ((H+4)*Wp, C1) f32 zero-padded conv1-output scratch (flat layout)
    # feat_ref: (H*Wp, C2) f32 parking spot for the input image's features
    H, W = x_ref.shape[1], x_ref.shape[2]
    Wp = xin_ref.shape[1]            # padded width, multiple of 8
    L = H * Wp                       # rows of the computed conv blocks
    G = 2 * Wp                       # flat scratch offset of block row 0
    T = xin_ref.shape[0] * Wp        # total flat rows of the input scratch

    # Zero the padded scratches once per step: borders/guards must read as the
    # conv's zero padding (interiors are fully overwritten below).
    xin_ref[...] = jnp.zeros_like(xin_ref)
    h1_ref[...] = jnp.zeros_like(h1_ref)

    mask = mask_ref[...]             # (L, 1) f32
    nm = norm_ref[...]               # (4, 1, 1, 3) f32

    def conv3x3(get_window, w_ref, b_ref):
        # 3x3 "same" conv on the flat padded layout: 9 shifted-window matmuls.
        # Windows are sublane-offset loads (no reshape copies); bf16 operands,
        # f32 accumulation, fused bias + ReLU.
        # TODO(synk): a K=9*Cin im2col matmul would raise MXU utilization further.
        cout = w_ref.shape[-1]
        acc = jnp.zeros((L, cout), jnp.float32)
        for ky in range(3):
            for kx in range(3):
                off = (ky - 1) * Wp + (kx - 1)
                acc += jnp.dot(get_window(off), w_ref[ky, kx],
                               preferred_element_type=jnp.float32)
        return jnp.maximum(acc + b_ref[0][None, :], 0.0)

    def features(img_ref, scale, offset):
        # In-kernel min-max + ImageNet normalization (folded affine) and
        # zero-halo placement -- no normalized / padded HBM copies.
        img = img_ref[0].astype(jnp.float32) * scale + offset      # (H, W, 3)
        xin_ref[2:H + 2, 1:W + 1, :] = img
        xflat = xin_ref[...].reshape(T, 3)       # layout-free: Wp % 8 == 0

        h1 = conv3x3(
            lambda off: xflat[G + off:G + off + L, :].astype(jnp.bfloat16),
            w1_ref, b1_ref)
        # Zero the horizontal-padding columns, park in the padded h1 scratch so
        # conv2's taps are plain window loads of this ref.
        h1_ref[G:G + L, :] = h1 * mask
        return conv3x3(
            lambda off: h1_ref[G + off:G + off + L, :].astype(jnp.bfloat16),
            w2_ref, b2_ref)

    feat_ref[...] = features(x_ref, nm[0], nm[1])
    fy = features(y_ref, nm[2], nm[3])

    d = fy - feat_ref[...]
    # Lane-wide partial SSE (invalid padded columns masked out); the scalar
    # reduction / mean happens in the wrapper so this grid axis stays parallel.
    c2 = o_ref.shape[-1]
    o_ref[...] = jnp.sum(d * d * mask, axis=0, keepdims=True).reshape(1, 1, c2)


# -----------------------------------------------------------------------------
# Public wrapper: NCHW inputs (PyTorch convention).
# -----------------------------------------------------------------------------
def perceptual_loss(inp_nchw, tgt_nchw, params):
    """inp/tgt: (N, 3, H, W) float32.  params: (w1, b1, w2, b2) in HWIO."""
    w1, b1, w2, b2 = params
    N, C, H, W = inp_nchw.shape
    C1 = w1.shape[-1]
    C2 = w2.shape[-1]

    # Fold global min-max + per-channel ImageNet normalize into one affine
    # (scale, offset) per channel per tensor; applied in-kernel.
    # NOTE: like the PyTorch original, a constant tensor gives max==min -> inf.
    def affine(v):
        lo = v.min()
        hi = v.max()
        s = 1.0 / ((hi - lo) * _IMAGENET_STD)
        o = (-lo / (hi - lo) - _IMAGENET_MEAN) / _IMAGENET_STD
        return s, o

    sx, ox = affine(inp_nchw)
    sy, oy = affine(tgt_nchw)
    norm = jnp.stack([sx, ox, sy, oy]).reshape(4, 1, 1, 3).astype(jnp.float32)

    # NCHW -> NHWC (channels on the lane axis) + bf16: halves input HBM reads.
    x = jnp.transpose(inp_nchw, (0, 2, 3, 1)).astype(jnp.bfloat16)
    y = jnp.transpose(tgt_nchw, (0, 2, 3, 1)).astype(jnp.bfloat16)

    # Padded geometry: width padded to a multiple of 8 so the in-kernel
    # (rows, Wp, C) -> (rows*Wp, C) flatten is layout-free.
    Wp = ((W + 2 + 7) // 8) * 8
    L = H * Wp
    n_rows = (H + 4) * Wp            # flat padded rows incl. 1 guard row per side

    # Static column-validity mask (1.0 on real pixel columns 1..W).
    col = np.arange(L) % Wp
    mask = jnp.asarray(((col >= 1) & (col <= W)).astype(np.float32).reshape(L, 1))

    out = pl.pallas_call(
        _fused_perceptual_kernel,
        out_shape=jax.ShapeDtypeStruct((N, 1, C2), jnp.float32),
        grid_spec=pltpu.PrefetchScalarGridSpec(
            num_scalar_prefetch=0,
            grid=(N,),
            in_specs=[
                pl.BlockSpec((4, 1, 1, 3), lambda n: (0, 0, 0, 0)),   # norm
                pl.BlockSpec((L, 1), lambda n: (0, 0)),               # mask
                pl.BlockSpec((1, H, W, 3), lambda n: (n, 0, 0, 0)),   # input
                pl.BlockSpec((1, H, W, 3), lambda n: (n, 0, 0, 0)),   # target
                pl.BlockSpec((3, 3, 3, C1), lambda n: (0, 0, 0, 0)),  # w1
                pl.BlockSpec((1, C1), lambda n: (0, 0)),              # b1
                pl.BlockSpec((3, 3, C1, C2), lambda n: (0, 0, 0, 0)), # w2
                pl.BlockSpec((1, C2), lambda n: (0, 0)),              # b2
            ],
            out_specs=pl.BlockSpec((1, 1, C2), lambda n: (n, 0, 0)),
            scratch_shapes=[
                pltpu.VMEM((H + 4, Wp, 3), jnp.float32),   # padded input image
                pltpu.VMEM((n_rows, C1), jnp.float32),     # padded conv1 output
                pltpu.VMEM((L, C2), jnp.float32),          # input-image features
            ],
        ),
        compiler_params=pltpu.CompilerParams(
            dimension_semantics=("parallel",),       # batch across TCs (v7x megacore)
            vmem_limit_bytes=48 * 1024 * 1024,
        ),
        # TODO(synk): for real resolutions (>=224 px) add an H-tile grid axis with a
        # 2-row halo handoff between conv1 and conv2 so tiles fit v7x's 64 MiB VMEM;
        # the small test sizes fit a whole image per grid step.
    )(norm, mask, x, y,
      w1.astype(jnp.bfloat16), b1.reshape(1, C1).astype(jnp.float32),
      w2.astype(jnp.bfloat16), b2.reshape(1, C2).astype(jnp.float32))

    return jnp.sum(out) / jnp.float32(N * H * W * C2)


# -----------------------------------------------------------------------------
# Pure-JAX f32 reference (sanity check of the Pallas pipeline).
# -----------------------------------------------------------------------------
def _ref_conv3x3_relu(x, w, b):
    out = jax.lax.conv_general_dilated(
        x, w, window_strides=(1, 1), padding="SAME",
        dimension_numbers=("NHWC", "HWIO", "NHWC"))
    return jnp.maximum(out + b[None, None, None, :], 0.0)


def _ref_perceptual_loss(inp_nchw, tgt_nchw, params):
    w1, b1, w2, b2 = params

    def prep(v):
        v = (v - v.min()) / (v.max() - v.min())
        v = (v - _IMAGENET_MEAN[None, :, None, None]) / \
            _IMAGENET_STD[None, :, None, None]
        return jnp.transpose(v, (0, 2, 3, 1))

    x, y = prep(inp_nchw), prep(tgt_nchw)
    x = _ref_conv3x3_relu(x, w1, b1)
    y = _ref_conv3x3_relu(y, w1, b1)
    x = _ref_conv3x3_relu(x, w2, b2)
    y = _ref_conv3x3_relu(y, w2, b2)
    return jnp.mean((x - y) ** 2)


if __name__ == "__main__":
    key = jax.random.PRNGKey(0)
    k_in, k_tg, k_w1, k_b1, k_w2, k_b2 = jax.random.split(key, 6)

    N, C, H, W = 2, 3, 16, 16
    C1 = 64                                   # VGG16 first block width

    inp = jax.random.uniform(k_in, (N, C, H, W), jnp.float32)
    tgt = jax.random.uniform(k_tg, (N, C, H, W), jnp.float32)

    # Deterministic synthetic "VGG" weights (HWIO), matching VGG16 shapes.
    # TODO(synk): real PerceptualLoss uses pretrained VGG16 weights (no in-script load).
    w1 = 0.05 * jax.random.normal(k_w1, (3, 3, C, C1), jnp.float32)
    b1 = 0.01 * jax.random.normal(k_b1, (C1,), jnp.float32)
    w2 = 0.05 * jax.random.normal(k_w2, (3, 3, C1, C1), jnp.float32)
    b2 = 0.01 * jax.random.normal(k_b2, (C1,), jnp.float32)
    params = (w1, b1, w2, b2)

    loss = jax.block_until_ready(jax.jit(perceptual_loss)(inp, tgt, params))
    ref = jax.block_until_ready(_ref_perceptual_loss(inp, tgt, params))

    assert jnp.allclose(loss, ref, rtol=2e-2, atol=1e-4), (loss, ref)
    print("KERNEL_OK")
</pallas_src>

<mosaic_0001>
module attributes {stable_mosaic.version = 11 : i64} {
  func.func @_fused_perceptual_kernel(%arg0: i32, %arg1: memref<4x1x1x3xf32, #tpu.memory_space<vmem>>, %arg2: memref<384x1xf32, #tpu.memory_space<vmem>>, %arg3: memref<1x16x16x3xbf16, #tpu.memory_space<vmem>>, %arg4: memref<1x16x16x3xbf16, #tpu.memory_space<vmem>>, %arg5: memref<3x3x3x64xbf16, #tpu.memory_space<vmem>>, %arg6: memref<1x64xf32, #tpu.memory_space<vmem>>, %arg7: memref<3x3x64x64xbf16, #tpu.memory_space<vmem>>, %arg8: memref<1x64xf32, #tpu.memory_space<vmem>>, %arg9: memref<1x1x64xf32, #tpu.memory_space<vmem>>, %arg10: memref<20x24x3xf32, #tpu.memory_space<vmem>>, %arg11: memref<480x64xf32, #tpu.memory_space<vmem>>, %arg12: memref<384x64xf32, #tpu.memory_space<vmem>>) attributes {dimension_semantics = [#tpu.dimension_semantics<parallel>], iteration_bounds = array<i64: 2>, scalar_prefetch = 0 : i64, scratch_operands = 3 : i64, tpu.core_type = #tpu.core_type<tc>, window_params = [{pipeline_mode = #tpu.pipeline_mode<synchronous>, transform_indices = @transform_0, window_bounds = array<i64: 4, 1, 1, 3>}, {pipeline_mode = #tpu.pipeline_mode<synchronous>, transform_indices = @transform_1, window_bounds = array<i64: 384, 1>}, {transform_indices = @transform_2, window_bounds = array<i64: 1, 16, 16, 3>}, {transform_indices = @transform_3, window_bounds = array<i64: 1, 16, 16, 3>}, {pipeline_mode = #tpu.pipeline_mode<synchronous>, transform_indices = @transform_4, window_bounds = array<i64: 3, 3, 3, 64>}, {pipeline_mode = #tpu.pipeline_mode<synchronous>, transform_indices = @transform_5, window_bounds = array<i64: 1, 64>}, {pipeline_mode = #tpu.pipeline_mode<synchronous>, transform_indices = @transform_6, window_bounds = array<i64: 3, 3, 64, 64>}, {pipeline_mode = #tpu.pipeline_mode<synchronous>, transform_indices = @transform_7, window_bounds = array<i64: 1, 64>}, {transform_indices = @transform_8, window_bounds = array<i64: 1, 1, 64>}]} {
    %cst = arith.constant 0.000000e+00 : f32
    %0 = vector.broadcast %cst : f32 to vector<20x24x3xf32>
    %c0 = arith.constant 0 : index
    %c0_0 = arith.constant 0 : index
    %c0_1 = arith.constant 0 : index
    %1 = vector.load %arg10[%c0, %c0_0, %c0_1] : memref<20x24x3xf32, #tpu.memory_space<vmem>>, vector<20x24x3xf32>
    tpu.vector_store %arg10[%c0, %c0_0, %c0_1], %0 {strides = array<i32>} : memref<20x24x3xf32, #tpu.memory_space<vmem>>, vector<20x24x3xf32>,
    %cst_2 = arith.constant 0.000000e+00 : f32
    %2 = vector.broadcast %cst_2 : f32 to vector<480x64xf32>
    %c0_3 = arith.constant 0 : index
    %c0_4 = arith.constant 0 : index
    %3 = vector.load %arg11[%c0_3, %c0_4] : memref<480x64xf32, #tpu.memory_space<vmem>>, vector<480x64xf32>
    tpu.vector_store %arg11[%c0_3, %c0_4], %2 {strides = array<i32>} : memref<480x64xf32, #tpu.memory_space<vmem>>, vector<480x64xf32>,
    %c0_5 = arith.constant 0 : index
    %c0_6 = arith.constant 0 : index
    %4 = vector.load %arg2[%c0_5, %c0_6] : memref<384x1xf32, #tpu.memory_space<vmem>>, vector<384x1xf32>
    %c0_7 = arith.constant 0 : index
    %c0_8 = arith.constant 0 : index
    %c0_9 = arith.constant 0 : index
    %c0_10 = arith.constant 0 : index
    %5 = vector.load %arg1[%c0_7, %c0_8, %c0_9, %c0_10] : memref<4x1x1x3xf32, #tpu.memory_space<vmem>>, vector<4x1x1x3xf32>
    %6 = vector.extract_strided_slice %5 {offsets = [0, 0, 0, 0], sizes = [1, 1, 1, 3], strides = [1, 1, 1, 1]} : vector<4x1x1x3xf32> to vector<1x1x1x3xf32>
    %7 = vector.shape_cast %6 : vector<1x1x1x3xf32> to vector<1x1x3xf32>
    %8 = vector.extract_strided_slice %5 {offsets = [1, 0, 0, 0], sizes = [1, 1, 1, 3], strides = [1, 1, 1, 1]} : vector<4x1x1x3xf32> to vector<1x1x1x3xf32>
    %9 = vector.shape_cast %8 : vector<1x1x1x3xf32> to vector<1x1x3xf32>
    %c0_11 = arith.constant 0 : index
    %c0_12 = arith.constant 0 : index
    %c0_13 = arith.constant 0 : index
    %c0_14 = arith.constant 0 : index
    %10 = vector.load %arg3[%c0_11, %c0_12, %c0_13, %c0_14] : memref<1x16x16x3xbf16, #tpu.memory_space<vmem>>, vector<1x16x16x3xbf16>
    %11 = vector.shape_cast %10 : vector<1x16x16x3xbf16> to vector<16x16x3xbf16>
    %12 = arith.extf %11 : vector<16x16x3xbf16> to vector<16x16x3xf32>
    %13 = vector.broadcast %7 : vector<1x1x3xf32> to vector<16x16x3xf32>
    %14 = arith.mulf %12, %13 : vector<16x16x3xf32>
    %15 = vector.broadcast %9 : vector<1x1x3xf32> to vector<16x16x3xf32>
    %16 = arith.addf %14, %15 : vector<16x16x3xf32>
    %c2 = arith.constant 2 : index
    %c1 = arith.constant 1 : index
    %c0_15 = arith.constant 0 : index
    %17 = vector.load %arg10[%c2, %c1, %c0_15] : memref<20x24x3xf32, #tpu.memory_space<vmem>>, vector<16x16x3xf32>
    tpu.vector_store %arg10[%c2, %c1, %c0_15], %16 {strides = array<i32>} : memref<20x24x3xf32, #tpu.memory_space<vmem>>, vector<16x16x3xf32>,
    %c0_16 = arith.constant 0 : index
    %c0_17 = arith.constant 0 : index
    %c0_18 = arith.constant 0 : index
    %18 = vector.load %arg10[%c0_16, %c0_17, %c0_18] : memref<20x24x3xf32, #tpu.memory_space<vmem>>, vector<20x24x3xf32>
    %19 = vector.shape_cast %18 : vector<20x24x3xf32> to vector<480x3xf32>
    %cst_19 = arith.constant 0.000000e+00 : f32
    %20 = vector.broadcast %cst_19 : f32 to vector<384x64xf32>
    %21 = vector.extract_strided_slice %19 {offsets = [23, 0], sizes = [384, 3], strides = [1, 1]} : vector<480x3xf32> to vector<384x3xf32>
    %22 = arith.truncf %21 : vector<384x3xf32> to vector<384x3xbf16>
    %c0_20 = arith.constant 0 : index
    %c0_21 = arith.constant 0 : index
    %c0_22 = arith.constant 0 : index
    %c0_23 = arith.constant 0 : index
    %23 = vector.load %arg5[%c0_20, %c0_21, %c0_22, %c0_23] : memref<3x3x3x64xbf16, #tpu.memory_space<vmem>>, vector<1x1x3x64xbf16>
    %24 = vector.shape_cast %23 : vector<1x1x3x64xbf16> to vector<3x64xbf16>
    %cst_24 = arith.constant dense<0.000000e+00> : vector<384x64xf32>
    %25 = tpu.matmul %22, %24, %cst_24 {dimension_numbers = #tpu.dot_dimension_numbers<[1], [0], [0], [1], [0, 0, 1, 1], [], []>} : vector<384x3xbf16>, vector<3x64xbf16>, vector<384x64xf32> -> vector<384x64xf32>
    %26 = arith.addf %20, %25 : vector<384x64xf32>
    %27 = vector.extract_strided_slice %19 {offsets = [24, 0], sizes = [384, 3], strides = [1, 1]} : vector<480x3xf32> to vector<384x3xf32>
    %28 = arith.truncf %27 : vector<384x3xf32> to vector<384x3xbf16>
    %c0_25 = arith.constant 0 : index
    %c1_26 = arith.constant 1 : index
    %c0_27 = arith.constant 0 : index
    %c0_28 = arith.constant 0 : index
    %29 = vector.load %arg5[%c0_25, %c1_26, %c0_27, %c0_28] : memref<3x3x3x64xbf16, #tpu.memory_space<vmem>>, vector<1x1x3x64xbf16>
    %30 = vector.shape_cast %29 : vector<1x1x3x64xbf16> to vector<3x64xbf16>
    %cst_29 = arith.constant dense<0.000000e+00> : vector<384x64xf32>
    %31 = tpu.matmul %28, %30, %cst_29 {dimension_numbers = #tpu.dot_dimension_numbers<[1], [0], [0], [1], [0, 0, 1, 1], [], []>} : vector<384x3xbf16>, vector<3x64xbf16>, vector<384x64xf32> -> vector<384x64xf32>
    %32 = arith.addf %26, %31 : vector<384x64xf32>
    %33 = vector.extract_strided_slice %19 {offsets = [25, 0], sizes = [384, 3], strides = [1, 1]} : vector<480x3xf32> to vector<384x3xf32>
    %34 = arith.truncf %33 : vector<384x3xf32> to vector<384x3xbf16>
    %c0_30 = arith.constant 0 : index
    %c2_31 = arith.constant 2 : index
    %c0_32 = arith.constant 0 : index
    %c0_33 = arith.constant 0 : index
    %35 = vector.load %arg5[%c0_30, %c2_31, %c0_32, %c0_33] : memref<3x3x3x64xbf16, #tpu.memory_space<vmem>>, vector<1x1x3x64xbf16>
    %36 = vector.shape_cast %35 : vector<1x1x3x64xbf16> to vector<3x64xbf16>
    %cst_34 = arith.constant dense<0.000000e+00> : vector<384x64xf32>
    %37 = tpu.matmul %34, %36, %cst_34 {dimension_numbers = #tpu.dot_dimension_numbers<[1], [0], [0], [1], [0, 0, 1, 1], [], []>} : vector<384x3xbf16>, vector<3x64xbf16>, vector<384x64xf32> -> vector<384x64xf32>
    %38 = arith.addf %32, %37 : vector<384x64xf32>
    %39 = vector.extract_strided_slice %19 {offsets = [47, 0], sizes = [384, 3], strides = [1, 1]} : vector<480x3xf32> to vector<384x3xf32>
    %40 = arith.truncf %39 : vector<384x3xf32> to vector<384x3xbf16>
    %c1_35 = arith.constant 1 : index
    %c0_36 = arith.constant 0 : index
    %c0_37 = arith.constant 0 : index
    %c0_38 = arith.constant 0 : index
    %41 = vector.load %arg5[%c1_35, %c0_36, %c0_37, %c0_38] : memref<3x3x3x64xbf16, #tpu.memory_space<vmem>>, vector<1x1x3x64xbf16>
    %42 = vector.shape_cast %41 : vector<1x1x3x64xbf16> to vector<3x64xbf16>
    %cst_39 = arith.constant dense<0.000000e+00> : vector<384x64xf32>
    %43 = tpu.matmul %40, %42, %cst_39 {dimension_numbers = #tpu.dot_dimension_numbers<[1], [0], [0], [1], [0, 0, 1, 1], [], []>} : vector<384x3xbf16>, vector<3x64xbf16>, vector<384x64xf32> -> vector<384x64xf32>
    %44 = arith.addf %38, %43 : vector<384x64xf32>
    %45 = vector.extract_strided_slice %19 {offsets = [48, 0], sizes = [384, 3], strides = [1, 1]} : vector<480x3xf32> to vector<384x3xf32>
    %46 = arith.truncf %45 : vector<384x3xf32> to vector<384x3xbf16>
    %c1_40 = arith.constant 1 : index
    %c1_41 = arith.constant 1 : index
    %c0_42 = arith.constant 0 : index
    %c0_43 = arith.constant 0 : index
    %47 = vector.load %arg5[%c1_40, %c1_41, %c0_42, %c0_43] : memref<3x3x3x64xbf16, #tpu.memory_space<vmem>>, vector<1x1x3x64xbf16>
    %48 = vector.shape_cast %47 : vector<1x1x3x64xbf16> to vector<3x64xbf16>
    %cst_44 = arith.constant dense<0.000000e+00> : vector<384x64xf32>
    %49 = tpu.matmul %46, %48, %cst_44 {dimension_numbers = #tpu.dot_dimension_numbers<[1], [0], [0], [1], [0, 0, 1, 1], [], []>} : vector<384x3xbf16>, vector<3x64xbf16>, vector<384x64xf32> -> vector<384x64xf32>
    %50 = arith.addf %44, %49 : vector<384x64xf32>
    %51 = vector.extract_strided_slice %19 {offsets = [49, 0], sizes = [384, 3], strides = [1, 1]} : vector<480x3xf32> to vector<384x3xf32>
    %52 = arith.truncf %51 : vector<384x3xf32> to vector<384x3xbf16>
    %c1_45 = arith.constant 1 : index
    %c2_46 = arith.constant 2 : index
    %c0_47 = arith.constant 0 : index
    %c0_48 = arith.constant 0 : index
    %53 = vector.load %arg5[%c1_45, %c2_46, %c0_47, %c0_48] : memref<3x3x3x64xbf16, #tpu.memory_space<vmem>>, vector<1x1x3x64xbf16>
    %54 = vector.shape_cast %53 : vector<1x1x3x64xbf16> to vector<3x64xbf16>
    %cst_49 = arith.constant dense<0.000000e+00> : vector<384x64xf32>
    %55 = tpu.matmul %52, %54, %cst_49 {dimension_numbers = #tpu.dot_dimension_numbers<[1], [0], [0], [1], [0, 0, 1, 1], [], []>} : vector<384x3xbf16>, vector<3x64xbf16>, vector<384x64xf32> -> vector<384x64xf32>
    %56 = arith.addf %50, %55 : vector<384x64xf32>
    %57 = vector.extract_strided_slice %19 {offsets = [71, 0], sizes = [384, 3], strides = [1, 1]} : vector<480x3xf32> to vector<384x3xf32>
    %58 = arith.truncf %57 : vector<384x3xf32> to vector<384x3xbf16>
    %c2_50 = arith.constant 2 : index
    %c0_51 = arith.constant 0 : index
    %c0_52 = arith.constant 0 : index
    %c0_53 = arith.constant 0 : index
    %59 = vector.load %arg5[%c2_50, %c0_51, %c0_52, %c0_53] : memref<3x3x3x64xbf16, #tpu.memory_space<vmem>>, vector<1x1x3x64xbf16>
    %60 = vector.shape_cast %59 : vector<1x1x3x64xbf16> to vector<3x64xbf16>
    %cst_54 = arith.constant dense<0.000000e+00> : vector<384x64xf32>
    %61 = tpu.matmul %58, %60, %cst_54 {dimension_numbers = #tpu.dot_dimension_numbers<[1], [0], [0], [1], [0, 0, 1, 1], [], []>} : vector<384x3xbf16>, vector<3x64xbf16>, vector<384x64xf32> -> vector<384x64xf32>
    %62 = arith.addf %56, %61 : vector<384x64xf32>
    %63 = vector.extract_strided_slice %19 {offsets = [72, 0], sizes = [384, 3], strides = [1, 1]} : vector<480x3xf32> to vector<384x3xf32>
    %64 = arith.truncf %63 : vector<384x3xf32> to vector<384x3xbf16>
    %c2_55 = arith.constant 2 : index
    %c1_56 = arith.constant 1 : index
    %c0_57 = arith.constant 0 : index
    %c0_58 = arith.constant 0 : index
    %65 = vector.load %arg5[%c2_55, %c1_56, %c0_57, %c0_58] : memref<3x3x3x64xbf16, #tpu.memory_space<vmem>>, vector<1x1x3x64xbf16>
    %66 = vector.shape_cast %65 : vector<1x1x3x64xbf16> to vector<3x64xbf16>
    %cst_59 = arith.constant dense<0.000000e+00> : vector<384x64xf32>
    %67 = tpu.matmul %64, %66, %cst_59 {dimension_numbers = #tpu.dot_dimension_numbers<[1], [0], [0], [1], [0, 0, 1, 1], [], []>} : vector<384x3xbf16>, vector<3x64xbf16>, vector<384x64xf32> -> vector<384x64xf32>
    %68 = arith.addf %62, %67 : vector<384x64xf32>
    %69 = vector.extract_strided_slice %19 {offsets = [73, 0], sizes = [384, 3], strides = [1, 1]} : vector<480x3xf32> to vector<384x3xf32>
    %70 = arith.truncf %69 : vector<384x3xf32> to vector<384x3xbf16>
    %c2_60 = arith.constant 2 : index
    %c2_61 = arith.constant 2 : index
    %c0_62 = arith.constant 0 : index
    %c0_63 = arith.constant 0 : index
    %71 = vector.load %arg5[%c2_60, %c2_61, %c0_62, %c0_63] : memref<3x3x3x64xbf16, #tpu.memory_space<vmem>>, vector<1x1x3x64xbf16>
    %72 = vector.shape_cast %71 : vector<1x1x3x64xbf16> to vector<3x64xbf16>
    %cst_64 = arith.constant dense<0.000000e+00> : vector<384x64xf32>
    %73 = tpu.matmul %70, %72, %cst_64 {dimension_numbers = #tpu.dot_dimension_numbers<[1], [0], [0], [1], [0, 0, 1, 1], [], []>} : vector<384x3xbf16>, vector<3x64xbf16>, vector<384x64xf32> -> vector<384x64xf32>
    %74 = arith.addf %68, %73 : vector<384x64xf32>
    %c0_65 = arith.constant 0 : index
    %c0_66 = arith.constant 0 : index
    %75 = vector.load %arg6[%c0_65, %c0_66] : memref<1x64xf32, #tpu.memory_space<vmem>>, vector<1x64xf32>
    %76 = vector.shape_cast %75 : vector<1x64xf32> to vector<64xf32>
    %77 = vector.shape_cast %76 : vector<64xf32> to vector<1x64xf32>
    %78 = vector.broadcast %77 : vector<1x64xf32> to vector<384x64xf32>
    %79 = arith.addf %74, %78 : vector<384x64xf32>
    %cst_67 = arith.constant 0.000000e+00 : f32
    %80 = vector.broadcast %cst_67 : f32 to vector<384x64xf32>
    %81 = arith.maximumf %79, %80 : vector<384x64xf32>
    %82 = vector.broadcast %4 : vector<384x1xf32> to vector<384x64xf32>
    %83 = arith.mulf %81, %82 : vector<384x64xf32>
    %c48 = arith.constant 48 : index
    %c0_68 = arith.constant 0 : index
    %84 = vector.load %arg11[%c48, %c0_68] : memref<480x64xf32, #tpu.memory_space<vmem>>, vector<384x64xf32>
    tpu.vector_store %arg11[%c48, %c0_68], %83 {strides = array<i32>} : memref<480x64xf32, #tpu.memory_space<vmem>>, vector<384x64xf32>,
    %cst_69 = arith.constant 0.000000e+00 : f32
    %85 = vector.broadcast %cst_69 : f32 to vector<384x64xf32>
    %c23 = arith.constant 23 : index
    %c0_70 = arith.constant 0 : index
    %86 = vector.load %arg11[%c23, %c0_70] : memref<480x64xf32, #tpu.memory_space<vmem>>, vector<384x64xf32>
    %87 = arith.truncf %86 : vector<384x64xf32> to vector<384x64xbf16>
    %c0_71 = arith.constant 0 : index
    %c0_72 = arith.constant 0 : index
    %c0_73 = arith.constant 0 : index
    %c0_74 = arith.constant 0 : index
    %88 = vector.load %arg7[%c0_71, %c0_72, %c0_73, %c0_74] : memref<3x3x64x64xbf16, #tpu.memory_space<vmem>>, vector<1x1x64x64xbf16>
    %89 = vector.shape_cast %88 : vector<1x1x64x64xbf16> to vector<64x64xbf16>
    %cst_75 = arith.constant dense<0.000000e+00> : vector<384x64xf32>
    %90 = tpu.matmul %87, %89, %cst_75 {dimension_numbers = #tpu.dot_dimension_numbers<[1], [0], [0], [1], [0, 0, 1, 1], [], []>} : vector<384x64xbf16>, vector<64x64xbf16>, vector<384x64xf32> -> vector<384x64xf32>
    %91 = arith.addf %85, %90 : vector<384x64xf32>
    %c24 = arith.constant 24 : index
    %c0_76 = arith.constant 0 : index
    %92 = vector.load %arg11[%c24, %c0_76] : memref<480x64xf32, #tpu.memory_space<vmem>>, vector<384x64xf32>
    %93 = arith.truncf %92 : vector<384x64xf32> to vector<384x64xbf16>
    %c0_77 = arith.constant 0 : index
    %c1_78 = arith.constant 1 : index
    %c0_79 = arith.constant 0 : index
    %c0_80 = arith.constant 0 : index
    %94 = vector.load %arg7[%c0_77, %c1_78, %c0_79, %c0_80] : memref<3x3x64x64xbf16, #tpu.memory_space<vmem>>, vector<1x1x64x64xbf16>
    %95 = vector.shape_cast %94 : vector<1x1x64x64xbf16> to vector<64x64xbf16>
    %cst_81 = arith.constant dense<0.000000e+00> : vector<384x64xf32>
    %96 = tpu.matmul %93, %95, %cst_81 {dimension_numbers = #tpu.dot_dimension_numbers<[1], [0], [0], [1], [0, 0, 1, 1], [], []>} : vector<384x64xbf16>, vector<64x64xbf16>, vector<384x64xf32> -> vector<384x64xf32>
    %97 = arith.addf %91, %96 : vector<384x64xf32>
    %c25 = arith.constant 25 : index
    %c0_82 = arith.constant 0 : index
    %98 = vector.load %arg11[%c25, %c0_82] : memref<480x64xf32, #tpu.memory_space<vmem>>, vector<384x64xf32>
    %99 = arith.truncf %98 : vector<384x64xf32> to vector<384x64xbf16>
    %c0_83 = arith.constant 0 : index
    %c2_84 = arith.constant 2 : index
    %c0_85 = arith.constant 0 : index
    %c0_86 = arith.constant 0 : index
    %100 = vector.load %arg7[%c0_83, %c2_84, %c0_85, %c0_86] : memref<3x3x64x64xbf16, #tpu.memory_space<vmem>>, vector<1x1x64x64xbf16>
    %101 = vector.shape_cast %100 : vector<1x1x64x64xbf16> to vector<64x64xbf16>
    %cst_87 = arith.constant dense<0.000000e+00> : vector<384x64xf32>
    %102 = tpu.matmul %99, %101, %cst_87 {dimension_numbers = #tpu.dot_dimension_numbers<[1], [0], [0], [1], [0, 0, 1, 1], [], []>} : vector<384x64xbf16>, vector<64x64xbf16>, vector<384x64xf32> -> vector<384x64xf32>
    %103 = arith.addf %97, %102 : vector<384x64xf32>
    %c47 = arith.constant 47 : index
    %c0_88 = arith.constant 0 : index
    %104 = vector.load %arg11[%c47, %c0_88] : memref<480x64xf32, #tpu.memory_space<vmem>>, vector<384x64xf32>
    %105 = arith.truncf %104 : vector<384x64xf32> to vector<384x64xbf16>
    %c1_89 = arith.constant 1 : index
    %c0_90 = arith.constant 0 : index
    %c0_91 = arith.constant 0 : index
    %c0_92 = arith.constant 0 : index
    %106 = vector.load %arg7[%c1_89, %c0_90, %c0_91, %c0_92] : memref<3x3x64x64xbf16, #tpu.memory_space<vmem>>, vector<1x1x64x64xbf16>
    %107 = vector.shape_cast %106 : vector<1x1x64x64xbf16> to vector<64x64xbf16>
    %cst_93 = arith.constant dense<0.000000e+00> : vector<384x64xf32>
    %108 = tpu.matmul %105, %107, %cst_93 {dimension_numbers = #tpu.dot_dimension_numbers<[1], [0], [0], [1], [0, 0, 1, 1], [], []>} : vector<384x64xbf16>, vector<64x64xbf16>, vector<384x64xf32> -> vector<384x64xf32>
    %109 = arith.addf %103, %108 : vector<384x64xf32>
    %c48_94 = arith.constant 48 : index
    %c0_95 = arith.constant 0 : index
    %110 = vector.load %arg11[%c48_94, %c0_95] : memref<480x64xf32, #tpu.memory_space<vmem>>, vector<384x64xf32>
    %111 = arith.truncf %110 : vector<384x64xf32> to vector<384x64xbf16>
    %c1_96 = arith.constant 1 : index
    %c1_97 = arith.constant 1 : index
    %c0_98 = arith.constant 0 : index
    %c0_99 = arith.constant 0 : index
    %112 = vector.load %arg7[%c1_96, %c1_97, %c0_98, %c0_99] : memref<3x3x64x64xbf16, #tpu.memory_space<vmem>>, vector<1x1x64x64xbf16>
    %113 = vector.shape_cast %112 : vector<1x1x64x64xbf16> to vector<64x64xbf16>
    %cst_100 = arith.constant dense<0.000000e+00> : vector<384x64xf32>
    %114 = tpu.matmul %111, %113, %cst_100 {dimension_numbers = #tpu.dot_dimension_numbers<[1], [0], [0], [1], [0, 0, 1, 1], [], []>} : vector<384x64xbf16>, vector<64x64xbf16>, vector<384x64xf32> -> vector<384x64xf32>
    %115 = arith.addf %109, %114 : vector<384x64xf32>
    %c49 = arith.constant 49 : index
    %c0_101 = arith.constant 0 : index
    %116 = vector.load %arg11[%c49, %c0_101] : memref<480x64xf32, #tpu.memory_space<vmem>>, vector<384x64xf32>
    %117 = arith.truncf %116 : vector<384x64xf32> to vector<384x64xbf16>
    %c1_102 = arith.constant 1 : index
    %c2_103 = arith.constant 2 : index
    %c0_104 = arith.constant 0 : index
    %c0_105 = arith.constant 0 : index
    %118 = vector.load %arg7[%c1_102, %c2_103, %c0_104, %c0_105] : memref<3x3x64x64xbf16, #tpu.memory_space<vmem>>, vector<1x1x64x64xbf16>
    %119 = vector.shape_cast %118 : vector<1x1x64x64xbf16> to vector<64x64xbf16>
    %cst_106 = arith.constant dense<0.000000e+00> : vector<384x64xf32>
    %120 = tpu.matmul %117, %119, %cst_106 {dimension_numbers = #tpu.dot_dimension_numbers<[1], [0], [0], [1], [0, 0, 1, 1], [], []>} : vector<384x64xbf16>, vector<64x64xbf16>, vector<384x64xf32> -> vector<384x64xf32>
    %121 = arith.addf %115, %120 : vector<384x64xf32>
    %c71 = arith.constant 71 : index
    %c0_107 = arith.constant 0 : index
    %122 = vector.load %arg11[%c71, %c0_107] : memref<480x64xf32, #tpu.memory_space<vmem>>, vector<384x64xf32>
    %123 = arith.truncf %122 : vector<384x64xf32> to vector<384x64xbf16>
    %c2_108 = arith.constant 2 : index
    %c0_109 = arith.constant 0 : index
    %c0_110 = arith.constant 0 : index
    %c0_111 = arith.constant 0 : index
    %124 = vector.load %arg7[%c2_108, %c0_109, %c0_110, %c0_111] : memref<3x3x64x64xbf16, #tpu.memory_space<vmem>>, vector<1x1x64x64xbf16>
    %125 = vector.shape_cast %124 : vector<1x1x64x64xbf16> to vector<64x64xbf16>
    %cst_112 = arith.constant dense<0.000000e+00> : vector<384x64xf32>
    %126 = tpu.matmul %123, %125, %cst_112 {dimension_numbers = #tpu.dot_dimension_numbers<[1], [0], [0], [1], [0, 0, 1, 1], [], []>} : vector<384x64xbf16>, vector<64x64xbf16>, vector<384x64xf32> -> vector<384x64xf32>
    %127 = arith.addf %121, %126 : vector<384x64xf32>
    %c72 = arith.constant 72 : index
    %c0_113 = arith.constant 0 : index
    %128 = vector.load %arg11[%c72, %c0_113] : memref<480x64xf32, #tpu.memory_space<vmem>>, vector<384x64xf32>
    %129 = arith.truncf %128 : vector<384x64xf32> to vector<384x64xbf16>
    %c2_114 = arith.constant 2 : index
    %c1_115 = arith.constant 1 : index
    %c0_116 = arith.constant 0 : index
    %c0_117 = arith.constant 0 : index
    %130 = vector.load %arg7[%c2_114, %c1_115, %c0_116, %c0_117] : memref<3x3x64x64xbf16, #tpu.memory_space<vmem>>, vector<1x1x64x64xbf16>
    %131 = vector.shape_cast %130 : vector<1x1x64x64xbf16> to vector<64x64xbf16>
    %cst_118 = arith.constant dense<0.000000e+00> : vector<384x64xf32>
    %132 = tpu.matmul %129, %131, %cst_118 {dimension_numbers = #tpu.dot_dimension_numbers<[1], [0], [0], [1], [0, 0, 1, 1], [], []>} : vector<384x64xbf16>, vector<64x64xbf16>, vector<384x64xf32> -> vector<384x64xf32>
    %133 = arith.addf %127, %132 : vector<384x64xf32>
    %c73 = arith.constant 73 : index
    %c0_119 = arith.constant 0 : index
    %134 = vector.load %arg11[%c73, %c0_119] : memref<480x64xf32, #tpu.memory_space<vmem>>, vector<384x64xf32>
    %135 = arith.truncf %134 : vector<384x64xf32> to vector<384x64xbf16>
    %c2_120 = arith.constant 2 : index
    %c2_121 = arith.constant 2 : index
    %c0_122 = arith.constant 0 : index
    %c0_123 = arith.constant 0 : index
    %136 = vector.load %arg7[%c2_120, %c2_121, %c0_122, %c0_123] : memref<3x3x64x64xbf16, #tpu.memory_space<vmem>>, vector<1x1x64x64xbf16>
    %137 = vector.shape_cast %136 : vector<1x1x64x64xbf16> to vector<64x64xbf16>
    %cst_124 = arith.constant dense<0.000000e+00> : vector<384x64xf32>
    %138 = tpu.matmul %135, %137, %cst_124 {dimension_numbers = #tpu.dot_dimension_numbers<[1], [0], [0], [1], [0, 0, 1, 1], [], []>} : vector<384x64xbf16>, vector<64x64xbf16>, vector<384x64xf32> -> vector<384x64xf32>
    %139 = arith.addf %133, %138 : vector<384x64xf32>
    %c0_125 = arith.constant 0 : index
    %c0_126 = arith.constant 0 : index
    %140 = vector.load %arg8[%c0_125, %c0_126] : memref<1x64xf32, #tpu.memory_space<vmem>>, vector<1x64xf32>
    %141 = vector.shape_cast %140 : vector<1x64xf32> to vector<64xf32>
    %142 = vector.shape_cast %141 : vector<64xf32> to vector<1x64xf32>
    %143 = vector.broadcast %142 : vector<1x64xf32> to vector<384x64xf32>
    %144 = arith.addf %139, %143 : vector<384x64xf32>
    %cst_127 = arith.constant 0.000000e+00 : f32
    %145 = vector.broadcast %cst_127 : f32 to vector<384x64xf32>
    %146 = arith.maximumf %144, %145 : vector<384x64xf32>
    %c0_128 = arith.constant 0 : index
    %c0_129 = arith.constant 0 : index
    %147 = vector.load %arg12[%c0_128, %c0_129] : memref<384x64xf32, #tpu.memory_space<vmem>>, vector<384x64xf32>
    tpu.vector_store %arg12[%c0_128, %c0_129], %146 {strides = array<i32>} : memref<384x64xf32, #tpu.memory_space<vmem>>, vector<384x64xf32>,
    %148 = vector.extract_strided_slice %5 {offsets = [2, 0, 0, 0], sizes = [1, 1, 1, 3], strides = [1, 1, 1, 1]} : vector<4x1x1x3xf32> to vector<1x1x1x3xf32>
    %149 = vector.shape_cast %148 : vector<1x1x1x3xf32> to vector<1x1x3xf32>
    %150 = vector.extract_strided_slice %5 {offsets = [3, 0, 0, 0], sizes = [1, 1, 1, 3], strides = [1, 1, 1, 1]} : vector<4x1x1x3xf32> to vector<1x1x1x3xf32>
    %151 = vector.shape_cast %150 : vector<1x1x1x3xf32> to vector<1x1x3xf32>
    %c0_130 = arith.constant 0 : index
    %c0_131 = arith.constant 0 : index
    %c0_132 = arith.constant 0 : index
    %c0_133 = arith.constant 0 : index
    %152 = vector.load %arg4[%c0_130, %c0_131, %c0_132, %c0_133] : memref<1x16x16x3xbf16, #tpu.memory_space<vmem>>, vector<1x16x16x3xbf16>
    %153 = vector.shape_cast %152 : vector<1x16x16x3xbf16> to vector<16x16x3xbf16>
    %154 = arith.extf %153 : vector<16x16x3xbf16> to vector<16x16x3xf32>
    %155 = vector.broadcast %149 : vector<1x1x3xf32> to vector<16x16x3xf32>
    %156 = arith.mulf %154, %155 : vector<16x16x3xf32>
    %157 = vector.broadcast %151 : vector<1x1x3xf32> to vector<16x16x3xf32>
    %158 = arith.addf %156, %157 : vector<16x16x3xf32>
    %c2_134 = arith.constant 2 : index
    %c1_135 = arith.constant 1 : index
    %c0_136 = arith.constant 0 : index
    %159 = vector.load %arg10[%c2_134, %c1_135, %c0_136] : memref<20x24x3xf32, #tpu.memory_space<vmem>>, vector<16x16x3xf32>
    tpu.vector_store %arg10[%c2_134, %c1_135, %c0_136], %158 {strides = array<i32>} : memref<20x24x3xf32, #tpu.memory_space<vmem>>, vector<16x16x3xf32>,
    %c0_137 = arith.constant 0 : index
    %c0_138 = arith.constant 0 : index
    %c0_139 = arith.constant 0 : index
    %160 = vector.load %arg10[%c0_137, %c0_138, %c0_139] : memref<20x24x3xf32, #tpu.memory_space<vmem>>, vector<20x24x3xf32>
    %161 = vector.shape_cast %160 : vector<20x24x3xf32> to vector<480x3xf32>
    %cst_140 = arith.constant 0.000000e+00 : f32
    %162 = vector.broadcast %cst_140 : f32 to vector<384x64xf32>
    %163 = vector.extract_strided_slice %161 {offsets = [23, 0], sizes = [384, 3], strides = [1, 1]} : vector<480x3xf32> to vector<384x3xf32>
    %164 = arith.truncf %163 : vector<384x3xf32> to vector<384x3xbf16>
    %c0_141 = arith.constant 0 : index
    %c0_142 = arith.constant 0 : index
    %c0_143 = arith.constant 0 : index
    %c0_144 = arith.constant 0 : index
    %165 = vector.load %arg5[%c0_141, %c0_142, %c0_143, %c0_144] : memref<3x3x3x64xbf16, #tpu.memory_space<vmem>>, vector<1x1x3x64xbf16>
    %166 = vector.shape_cast %165 : vector<1x1x3x64xbf16> to vector<3x64xbf16>
    %cst_145 = arith.constant dense<0.000000e+00> : vector<384x64xf32>
    %167 = tpu.matmul %164, %166, %cst_145 {dimension_numbers = #tpu.dot_dimension_numbers<[1], [0], [0], [1], [0, 0, 1, 1], [], []>} : vector<384x3xbf16>, vector<3x64xbf16>, vector<384x64xf32> -> vector<384x64xf32>
    %168 = arith.addf %162, %167 : vector<384x64xf32>
    %169 = vector.extract_strided_slice %161 {offsets = [24, 0], sizes = [384, 3], strides = [1, 1]} : vector<480x3xf32> to vector<384x3xf32>
    %170 = arith.truncf %169 : vector<384x3xf32> to vector<384x3xbf16>
    %c0_146 = arith.constant 0 : index
    %c1_147 = arith.constant 1 : index
    %c0_148 = arith.constant 0 : index
    %c0_149 = arith.constant 0 : index
    %171 = vector.load %arg5[%c0_146, %c1_147, %c0_148, %c0_149] : memref<3x3x3x64xbf16, #tpu.memory_space<vmem>>, vector<1x1x3x64xbf16>
    %172 = vector.shape_cast %171 : vector<1x1x3x64xbf16> to vector<3x64xbf16>
    %cst_150 = arith.constant dense<0.000000e+00> : vector<384x64xf32>
    %173 = tpu.matmul %170, %172, %cst_150 {dimension_numbers = #tpu.dot_dimension_numbers<[1], [0], [0], [1], [0, 0, 1, 1], [], []>} : vector<384x3xbf16>, vector<3x64xbf16>, vector<384x64xf32> -> vector<384x64xf32>
    %174 = arith.addf %168, %173 : vector<384x64xf32>
    %175 = vector.extract_strided_slice %161 {offsets = [25, 0], sizes = [384, 3], strides = [1, 1]} : vector<480x3xf32> to vector<384x3xf32>
    %176 = arith.truncf %175 : vector<384x3xf32> to vector<384x3xbf16>
    %c0_151 = arith.constant 0 : index
    %c2_152 = arith.constant 2 : index
    %c0_153 = arith.constant 0 : index
    %c0_154 = arith.constant 0 : index
    %177 = vector.load %arg5[%c0_151, %c2_152, %c0_153, %c0_154] : memref<3x3x3x64xbf16, #tpu.memory_space<vmem>>, vector<1x1x3x64xbf16>
    %178 = vector.shape_cast %177 : vector<1x1x3x64xbf16> to vector<3x64xbf16>
    %cst_155 = arith.constant dense<0.000000e+00> : vector<384x64xf32>
    %179 = tpu.matmul %176, %178, %cst_155 {dimension_numbers = #tpu.dot_dimension_numbers<[1], [0], [0], [1], [0, 0, 1, 1], [], []>} : vector<384x3xbf16>, vector<3x64xbf16>, vector<384x64xf32> -> vector<384x64xf32>
    %180 = arith.addf %174, %179 : vector<384x64xf32>
    %181 = vector.extract_strided_slice %161 {offsets = [47, 0], sizes = [384, 3], strides = [1, 1]} : vector<480x3xf32> to vector<384x3xf32>
    %182 = arith.truncf %181 : vector<384x3xf32> to vector<384x3xbf16>
    %c1_156 = arith.constant 1 : index
    %c0_157 = arith.constant 0 : index
    %c0_158 = arith.constant 0 : index
    %c0_159 = arith.constant 0 : index
    %183 = vector.load %arg5[%c1_156, %c0_157, %c0_158, %c0_159] : memref<3x3x3x64xbf16, #tpu.memory_space<vmem>>, vector<1x1x3x64xbf16>
    %184 = vector.shape_cast %183 : vector<1x1x3x64xbf16> to vector<3x64xbf16>
    %cst_160 = arith.constant dense<0.000000e+00> : vector<384x64xf32>
    %185 = tpu.matmul %182, %184, %cst_160 {dimension_numbers = #tpu.dot_dimension_numbers<[1], [0], [0], [1], [0, 0, 1, 1], [], []>} : vector<384x3xbf16>, vector<3x64xbf16>, vector<384x64xf32> -> vector<384x64xf32>
    %186 = arith.addf %180, %185 : vector<384x64xf32>
    %187 = vector.extract_strided_slice %161 {offsets = [48, 0], sizes = [384, 3], strides = [1, 1]} : vector<480x3xf32> to vector<384x3xf32>
    %188 = arith.truncf %187 : vector<384x3xf32> to vector<384x3xbf16>
    %c1_161 = arith.constant 1 : index
    %c1_162 = arith.constant 1 : index
    %c0_163 = arith.constant 0 : index
    %c0_164 = arith.constant 0 : index
    %189 = vector.load %arg5[%c1_161, %c1_162, %c0_163, %c0_164] : memref<3x3x3x64xbf16, #tpu.memory_space<vmem>>, vector<1x1x3x64xbf16>
    %190 = vector.shape_cast %189 : vector<1x1x3x64xbf16> to vector<3x64xbf16>
    %cst_165 = arith.constant dense<0.000000e+00> : vector<384x64xf32>
    %191 = tpu.matmul %188, %190, %cst_165 {dimension_numbers = #tpu.dot_dimension_numbers<[1], [0], [0], [1], [0, 0, 1, 1], [], []>} : vector<384x3xbf16>, vector<3x64xbf16>, vector<384x64xf32> -> vector<384x64xf32>
    %192 = arith.addf %186, %191 : vector<384x64xf32>
    %193 = vector.extract_strided_slice %161 {offsets = [49, 0], sizes = [384, 3], strides = [1, 1]} : vector<480x3xf32> to vector<384x3xf32>
    %194 = arith.truncf %193 : vector<384x3xf32> to vector<384x3xbf16>
    %c1_166 = arith.constant 1 : index
    %c2_167 = arith.constant 2 : index
    %c0_168 = arith.constant 0 : index
    %c0_169 = arith.constant 0 : index
    %195 = vector.load %arg5[%c1_166, %c2_167, %c0_168, %c0_169] : memref<3x3x3x64xbf16, #tpu.memory_space<vmem>>, vector<1x1x3x64xbf16>
    %196 = vector.shape_cast %195 : vector<1x1x3x64xbf16> to vector<3x64xbf16>
    %cst_170 = arith.constant dense<0.000000e+00> : vector<384x64xf32>
    %197 = tpu.matmul %194, %196, %cst_170 {dimension_numbers = #tpu.dot_dimension_numbers<[1], [0], [0], [1], [0, 0, 1, 1], [], []>} : vector<384x3xbf16>, vector<3x64xbf16>, vector<384x64xf32> -> vector<384x64xf32>
    %198 = arith.addf %192, %197 : vector<384x64xf32>
    %199 = vector.extract_strided_slice %161 {offsets = [71, 0], sizes = [384, 3], strides = [1, 1]} : vector<480x3xf32> to vector<384x3xf32>
    %200 = arith.truncf %199 : vector<384x3xf32> to vector<384x3xbf16>
    %c2_171 = arith.constant 2 : index
    %c0_172 = arith.constant 0 : index
    %c0_173 = arith.constant 0 : index
    %c0_174 = arith.constant 0 : index
    %201 = vector.load %arg5[%c2_171, %c0_172, %c0_173, %c0_174] : memref<3x3x3x64xbf16, #tpu.memory_space<vmem>>, vector<1x1x3x64xbf16>
    %202 = vector.shape_cast %201 : vector<1x1x3x64xbf16> to vector<3x64xbf16>
    %cst_175 = arith.constant dense<0.000000e+00> : vector<384x64xf32>
    %203 = tpu.matmul %200, %202, %cst_175 {dimension_numbers = #tpu.dot_dimension_numbers<[1], [0], [0], [1], [0, 0, 1, 1], [], []>} : vector<384x3xbf16>, vector<3x64xbf16>, vector<384x64xf32> -> vector<384x64xf32>
    %204 = arith.addf %198, %203 : vector<384x64xf32>
    %205 = vector.extract_strided_slice %161 {offsets = [72, 0], sizes = [384, 3], strides = [1, 1]} : vector<480x3xf32> to vector<384x3xf32>
    %206 = arith.truncf %205 : vector<384x3xf32> to vector<384x3xbf16>
    %c2_176 = arith.constant 2 : index
    %c1_177 = arith.constant 1 : index
    %c0_178 = arith.constant 0 : index
    %c0_179 = arith.constant 0 : index
    %207 = vector.load %arg5[%c2_176, %c1_177, %c0_178, %c0_179] : memref<3x3x3x64xbf16, #tpu.memory_space<vmem>>, vector<1x1x3x64xbf16>
    %208 = vector.shape_cast %207 : vector<1x1x3x64xbf16> to vector<3x64xbf16>
    %cst_180 = arith.constant dense<0.000000e+00> : vector<384x64xf32>
    %209 = tpu.matmul %206, %208, %cst_180 {dimension_numbers = #tpu.dot_dimension_numbers<[1], [0], [0], [1], [0, 0, 1, 1], [], []>} : vector<384x3xbf16>, vector<3x64xbf16>, vector<384x64xf32> -> vector<384x64xf32>
    %210 = arith.addf %204, %209 : vector<384x64xf32>
    %211 = vector.extract_strided_slice %161 {offsets = [73, 0], sizes = [384, 3], strides = [1, 1]} : vector<480x3xf32> to vector<384x3xf32>
    %212 = arith.truncf %211 : vector<384x3xf32> to vector<384x3xbf16>
    %c2_181 = arith.constant 2 : index
    %c2_182 = arith.constant 2 : index
    %c0_183 = arith.constant 0 : index
    %c0_184 = arith.constant 0 : index
    %213 = vector.load %arg5[%c2_181, %c2_182, %c0_183, %c0_184] : memref<3x3x3x64xbf16, #tpu.memory_space<vmem>>, vector<1x1x3x64xbf16>
    %214 = vector.shape_cast %213 : vector<1x1x3x64xbf16> to vector<3x64xbf16>
    %cst_185 = arith.constant dense<0.000000e+00> : vector<384x64xf32>
    %215 = tpu.matmul %212, %214, %cst_185 {dimension_numbers = #tpu.dot_dimension_numbers<[1], [0], [0], [1], [0, 0, 1, 1], [], []>} : vector<384x3xbf16>, vector<3x64xbf16>, vector<384x64xf32> -> vector<384x64xf32>
    %216 = arith.addf %210, %215 : vector<384x64xf32>
    %c0_186 = arith.constant 0 : index
    %c0_187 = arith.constant 0 : index
    %217 = vector.load %arg6[%c0_186, %c0_187] : memref<1x64xf32, #tpu.memory_space<vmem>>, vector<1x64xf32>
    %218 = vector.shape_cast %217 : vector<1x64xf32> to vector<64xf32>
    %219 = vector.shape_cast %218 : vector<64xf32> to vector<1x64xf32>
    %220 = vector.broadcast %219 : vector<1x64xf32> to vector<384x64xf32>
    %221 = arith.addf %216, %220 : vector<384x64xf32>
    %cst_188 = arith.constant 0.000000e+00 : f32
    %222 = vector.broadcast %cst_188 : f32 to vector<384x64xf32>
    %223 = arith.maximumf %221, %222 : vector<384x64xf32>
    %224 = vector.broadcast %4 : vector<384x1xf32> to vector<384x64xf32>
    %225 = arith.mulf %223, %224 : vector<384x64xf32>
    %c48_189 = arith.constant 48 : index
    %c0_190 = arith.constant 0 : index
    %226 = vector.load %arg11[%c48_189, %c0_190] : memref<480x64xf32, #tpu.memory_space<vmem>>, vector<384x64xf32>
    tpu.vector_store %arg11[%c48_189, %c0_190], %225 {strides = array<i32>} : memref<480x64xf32, #tpu.memory_space<vmem>>, vector<384x64xf32>,
    %cst_191 = arith.constant 0.000000e+00 : f32
    %227 = vector.broadcast %cst_191 : f32 to vector<384x64xf32>
    %c23_192 = arith.constant 23 : index
    %c0_193 = arith.constant 0 : index
    %228 = vector.load %arg11[%c23_192, %c0_193] : memref<480x64xf32, #tpu.memory_space<vmem>>, vector<384x64xf32>
    %229 = arith.truncf %228 : vector<384x64xf32> to vector<384x64xbf16>
    %c0_194 = arith.constant 0 : index
    %c0_195 = arith.constant 0 : index
    %c0_196 = arith.constant 0 : index
    %c0_197 = arith.constant 0 : index
    %230 = vector.load %arg7[%c0_194, %c0_195, %c0_196, %c0_197] : memref<3x3x64x64xbf16, #tpu.memory_space<vmem>>, vector<1x1x64x64xbf16>
    %231 = vector.shape_cast %230 : vector<1x1x64x64xbf16> to vector<64x64xbf16>
    %cst_198 = arith.constant dense<0.000000e+00> : vector<384x64xf32>
    %232 = tpu.matmul %229, %231, %cst_198 {dimension_numbers = #tpu.dot_dimension_numbers<[1], [0], [0], [1], [0, 0, 1, 1], [], []>} : vector<384x64xbf16>, vector<64x64xbf16>, vector<384x64xf32> -> vector<384x64xf32>
    %233 = arith.addf %227, %232 : vector<384x64xf32>
    %c24_199 = arith.constant 24 : index
    %c0_200 = arith.constant 0 : index
    %234 = vector.load %arg11[%c24_199, %c0_200] : memref<480x64xf32, #tpu.memory_space<vmem>>, vector<384x64xf32>
    %235 = arith.truncf %234 : vector<384x64xf32> to vector<384x64xbf16>
    %c0_201 = arith.constant 0 : index
    %c1_202 = arith.constant 1 : index
    %c0_203 = arith.constant 0 : index
    %c0_204 = arith.constant 0 : index
    %236 = vector.load %arg7[%c0_201, %c1_202, %c0_203, %c0_204] : memref<3x3x64x64xbf16, #tpu.memory_space<vmem>>, vector<1x1x64x64xbf16>
    %237 = vector.shape_cast %236 : vector<1x1x64x64xbf16> to vector<64x64xbf16>
    %cst_205 = arith.constant dense<0.000000e+00> : vector<384x64xf32>
    %238 = tpu.matmul %235, %237, %cst_205 {dimension_numbers = #tpu.dot_dimension_numbers<[1], [0], [0], [1], [0, 0, 1, 1], [], []>} : vector<384x64xbf16>, vector<64x64xbf16>, vector<384x64xf32> -> vector<384x64xf32>
    %239 = arith.addf %233, %238 : vector<384x64xf32>
    %c25_206 = arith.constant 25 : index
    %c0_207 = arith.constant 0 : index
    %240 = vector.load %arg11[%c25_206, %c0_207] : memref<480x64xf32, #tpu.memory_space<vmem>>, vector<384x64xf32>
    %241 = arith.truncf %240 : vector<384x64xf32> to vector<384x64xbf16>
    %c0_208 = arith.constant 0 : index
    %c2_209 = arith.constant 2 : index
    %c0_210 = arith.constant 0 : index
    %c0_211 = arith.constant 0 : index
    %242 = vector.load %arg7[%c0_208, %c2_209, %c0_210, %c0_211] : memref<3x3x64x64xbf16, #tpu.memory_space<vmem>>, vector<1x1x64x64xbf16>
    %243 = vector.shape_cast %242 : vector<1x1x64x64xbf16> to vector<64x64xbf16>
    %cst_212 = arith.constant dense<0.000000e+00> : vector<384x64xf32>
    %244 = tpu.matmul %241, %243, %cst_212 {dimension_numbers = #tpu.dot_dimension_numbers<[1], [0], [0], [1], [0, 0, 1, 1], [], []>} : vector<384x64xbf16>, vector<64x64xbf16>, vector<384x64xf32> -> vector<384x64xf32>
    %245 = arith.addf %239, %244 : vector<384x64xf32>
    %c47_213 = arith.constant 47 : index
    %c0_214 = arith.constant 0 : index
    %246 = vector.load %arg11[%c47_213, %c0_214] : memref<480x64xf32, #tpu.memory_space<vmem>>, vector<384x64xf32>
    %247 = arith.truncf %246 : vector<384x64xf32> to vector<384x64xbf16>
    %c1_215 = arith.constant 1 : index
    %c0_216 = arith.constant 0 : index
    %c0_217 = arith.constant 0 : index
    %c0_218 = arith.constant 0 : index
    %248 = vector.load %arg7[%c1_215, %c0_216, %c0_217, %c0_218] : memref<3x3x64x64xbf16, #tpu.memory_space<vmem>>, vector<1x1x64x64xbf16>
    %249 = vector.shape_cast %248 : vector<1x1x64x64xbf16> to vector<64x64xbf16>
    %cst_219 = arith.constant dense<0.000000e+00> : vector<384x64xf32>
    %250 = tpu.matmul %247, %249, %cst_219 {dimension_numbers = #tpu.dot_dimension_numbers<[1], [0], [0], [1], [0, 0, 1, 1], [], []>} : vector<384x64xbf16>, vector<64x64xbf16>, vector<384x64xf32> -> vector<384x64xf32>
    %251 = arith.addf %245, %250 : vector<384x64xf32>
    %c48_220 = arith.constant 48 : index
    %c0_221 = arith.constant 0 : index
    %252 = vector.load %arg11[%c48_220, %c0_221] : memref<480x64xf32, #tpu.memory_space<vmem>>, vector<384x64xf32>
    %253 = arith.truncf %252 : vector<384x64xf32> to vector<384x64xbf16>
    %c1_222 = arith.constant 1 : index
    %c1_223 = arith.constant 1 : index
    %c0_224 = arith.constant 0 : index
    %c0_225 = arith.constant 0 : index
    %254 = vector.load %arg7[%c1_222, %c1_223, %c0_224, %c0_225] : memref<3x3x64x64xbf16, #tpu.memory_space<vmem>>, vector<1x1x64x64xbf16>
    %255 = vector.shape_cast %254 : vector<1x1x64x64xbf16> to vector<64x64xbf16>
    %cst_226 = arith.constant dense<0.000000e+00> : vector<384x64xf32>
    %256 = tpu.matmul %253, %255, %cst_226 {dimension_numbers = #tpu.dot_dimension_numbers<[1], [0], [0], [1], [0, 0, 1, 1], [], []>} : vector<384x64xbf16>, vector<64x64xbf16>, vector<384x64xf32> -> vector<384x64xf32>
    %257 = arith.addf %251, %256 : vector<384x64xf32>
    %c49_227 = arith.constant 49 : index
    %c0_228 = arith.constant 0 : index
    %258 = vector.load %arg11[%c49_227, %c0_228] : memref<480x64xf32, #tpu.memory_space<vmem>>, vector<384x64xf32>
    %259 = arith.truncf %258 : vector<384x64xf32> to vector<384x64xbf16>
    %c1_229 = arith.constant 1 : index
    %c2_230 = arith.constant 2 : index
    %c0_231 = arith.constant 0 : index
    %c0_232 = arith.constant 0 : index
    %260 = vector.load %arg7[%c1_229, %c2_230, %c0_231, %c0_232] : memref<3x3x64x64xbf16, #tpu.memory_space<vmem>>, vector<1x1x64x64xbf16>
    %261 = vector.shape_cast %260 : vector<1x1x64x64xbf16> to vector<64x64xbf16>
    %cst_233 = arith.constant dense<0.000000e+00> : vector<384x64xf32>
    %262 = tpu.matmul %259, %261, %cst_233 {dimension_numbers = #tpu.dot_dimension_numbers<[1], [0], [0], [1], [0, 0, 1, 1], [], []>} : vector<384x64xbf16>, vector<64x64xbf16>, vector<384x64xf32> -> vector<384x64xf32>
    %263 = arith.addf %257, %262 : vector<384x64xf32>
    %c71_234 = arith.constant 71 : index
    %c0_235 = arith.constant 0 : index
    %264 = vector.load %arg11[%c71_234, %c0_235] : memref<480x64xf32, #tpu.memory_space<vmem>>, vector<384x64xf32>
    %265 = arith.truncf %264 : vector<384x64xf32> to vector<384x64xbf16>
    %c2_236 = arith.constant 2 : index
    %c0_237 = arith.constant 0 : index
    %c0_238 = arith.constant 0 : index
    %c0_239 = arith.constant 0 : index
    %266 = vector.load %arg7[%c2_236, %c0_237, %c0_238, %c0_239] : memref<3x3x64x64xbf16, #tpu.memory_space<vmem>>, vector<1x1x64x64xbf16>
    %267 = vector.shape_cast %266 : vector<1x1x64x64xbf16> to vector<64x64xbf16>
    %cst_240 = arith.constant dense<0.000000e+00> : vector<384x64xf32>
    %268 = tpu.matmul %265, %267, %cst_240 {dimension_numbers = #tpu.dot_dimension_numbers<[1], [0], [0], [1], [0, 0, 1, 1], [], []>} : vector<384x64xbf16>, vector<64x64xbf16>, vector<384x64xf32> -> vector<384x64xf32>
    %269 = arith.addf %263, %268 : vector<384x64xf32>
    %c72_241 = arith.constant 72 : index
    %c0_242 = arith.constant 0 : index
    %270 = vector.load %arg11[%c72_241, %c0_242] : memref<480x64xf32, #tpu.memory_space<vmem>>, vector<384x64xf32>
    %271 = arith.truncf %270 : vector<384x64xf32> to vector<384x64xbf16>
    %c2_243 = arith.constant 2 : index
    %c1_244 = arith.constant 1 : index
    %c0_245 = arith.constant 0 : index
    %c0_246 = arith.constant 0 : index
    %272 = vector.load %arg7[%c2_243, %c1_244, %c0_245, %c0_246] : memref<3x3x64x64xbf16, #tpu.memory_space<vmem>>, vector<1x1x64x64xbf16>
    %273 = vector.shape_cast %272 : vector<1x1x64x64xbf16> to vector<64x64xbf16>
    %cst_247 = arith.constant dense<0.000000e+00> : vector<384x64xf32>
    %274 = tpu.matmul %271, %273, %cst_247 {dimension_numbers = #tpu.dot_dimension_numbers<[1], [0], [0], [1], [0, 0, 1, 1], [], []>} : vector<384x64xbf16>, vector<64x64xbf16>, vector<384x64xf32> -> vector<384x64xf32>
    %275 = arith.addf %269, %274 : vector<384x64xf32>
    %c73_248 = arith.constant 73 : index
    %c0_249 = arith.constant 0 : index
    %276 = vector.load %arg11[%c73_248, %c0_249] : memref<480x64xf32, #tpu.memory_space<vmem>>, vector<384x64xf32>
    %277 = arith.truncf %276 : vector<384x64xf32> to vector<384x64xbf16>
    %c2_250 = arith.constant 2 : index
    %c2_251 = arith.constant 2 : index
    %c0_252 = arith.constant 0 : index
    %c0_253 = arith.constant 0 : index
    %278 = vector.load %arg7[%c2_250, %c2_251, %c0_252, %c0_253] : memref<3x3x64x64xbf16, #tpu.memory_space<vmem>>, vector<1x1x64x64xbf16>
    %279 = vector.shape_cast %278 : vector<1x1x64x64xbf16> to vector<64x64xbf16>
    %cst_254 = arith.constant dense<0.000000e+00> : vector<384x64xf32>
    %280 = tpu.matmul %277, %279, %cst_254 {dimension_numbers = #tpu.dot_dimension_numbers<[1], [0], [0], [1], [0, 0, 1, 1], [], []>} : vector<384x64xbf16>, vector<64x64xbf16>, vector<384x64xf32> -> vector<384x64xf32>
    %281 = arith.addf %275, %280 : vector<384x64xf32>
    %c0_255 = arith.constant 0 : index
    %c0_256 = arith.constant 0 : index
    %282 = vector.load %arg8[%c0_255, %c0_256] : memref<1x64xf32, #tpu.memory_space<vmem>>, vector<1x64xf32>
    %283 = vector.shape_cast %282 : vector<1x64xf32> to vector<64xf32>
    %284 = vector.shape_cast %283 : vector<64xf32> to vector<1x64xf32>
    %285 = vector.broadcast %284 : vector<1x64xf32> to vector<384x64xf32>
    %286 = arith.addf %281, %285 : vector<384x64xf32>
    %cst_257 = arith.constant 0.000000e+00 : f32
    %287 = vector.broadcast %cst_257 : f32 to vector<384x64xf32>
    %288 = arith.maximumf %286, %287 : vector<384x64xf32>
    %c0_258 = arith.constant 0 : index
    %c0_259 = arith.constant 0 : index
    %289 = vector.load %arg12[%c0_258, %c0_259] : memref<384x64xf32, #tpu.memory_space<vmem>>, vector<384x64xf32>
    %290 = arith.subf %288, %289 : vector<384x64xf32>
    %291 = arith.mulf %290, %290 : vector<384x64xf32>
    %292 = vector.broadcast %4 : vector<384x1xf32> to vector<384x64xf32>
    %293 = arith.mulf %291, %292 : vector<384x64xf32>
    %cst_260 = arith.constant dense<0.000000e+00> : vector<64xf32>
    %294 = vector.multi_reduction <add>, %293, %cst_260 [0] : vector<384x64xf32> to vector<64xf32>
    %295 = vector.shape_cast %294 : vector<64xf32> to vector<1x64xf32>
    %296 = vector.shape_cast %295 : vector<1x64xf32> to vector<1x1x64xf32>
    %c0_261 = arith.constant 0 : index
    %c0_262 = arith.constant 0 : index
    %c0_263 = arith.constant 0 : index
    %297 = vector.load %arg9[%c0_261, %c0_262, %c0_263] : memref<1x1x64xf32, #tpu.memory_space<vmem>>, vector<1x1x64xf32>
    tpu.vector_store %arg9[%c0_261, %c0_262, %c0_263], %296 {strides = array<i32>} : memref<1x1x64xf32, #tpu.memory_space<vmem>>, vector<1x1x64xf32>,
    return
  }
  func.func @transform_0(%arg0: i32) -> (i32, i32, i32, i32) {
    %c0_i32 = arith.constant 0 : i32
    %c0_i32_0 = arith.constant 0 : i32
    %c0_i32_1 = arith.constant 0 : i32
    %c0_i32_2 = arith.constant 0 : i32
    %c0_i32_3 = arith.constant 0 : i32
    return %c0_i32, %c0_i32_0, %c0_i32_1, %c0_i32_2 : i32, i32, i32, i32
  }
  func.func @transform_1(%arg0: i32) -> (i32, i32) {
    %c0_i32 = arith.constant 0 : i32
    %c0_i32_0 = arith.constant 0 : i32
    %c0_i32_1 = arith.constant 0 : i32
    return %c0_i32, %c0_i32_0 : i32, i32
  }
  func.func @transform_2(%arg0: i32) -> (i32, i32, i32, i32) {
    %c0_i32 = arith.constant 0 : i32
    %c0_i32_0 = arith.constant 0 : i32
    %c0_i32_1 = arith.constant 0 : i32
    %c0_i32_2 = arith.constant 0 : i32
    return %arg0, %c0_i32, %c0_i32_0, %c0_i32_1 : i32, i32, i32, i32
  }
  func.func @transform_3(%arg0: i32) -> (i32, i32, i32, i32) {
    %c0_i32 = arith.constant 0 : i32
    %c0_i32_0 = arith.constant 0 : i32
    %c0_i32_1 = arith.constant 0 : i32
    %c0_i32_2 = arith.constant 0 : i32
    return %arg0, %c0_i32, %c0_i32_0, %c0_i32_1 : i32, i32, i32, i32
  }
  func.func @transform_4(%arg0: i32) -> (i32, i32, i32, i32) {
    %c0_i32 = arith.constant 0 : i32
    %c0_i32_0 = arith.constant 0 : i32
    %c0_i32_1 = arith.constant 0 : i32
    %c0_i32_2 = arith.constant 0 : i32
    %c0_i32_3 = arith.constant 0 : i32
    return %c0_i32, %c0_i32_0, %c0_i32_1, %c0_i32_2 : i32, i32, i32, i32
  }
  func.func @transform_5(%arg0: i32) -> (i32, i32) {
    %c0_i32 = arith.constant 0 : i32
    %c0_i32_0 = arith.constant 0 : i32
    %c0_i32_1 = arith.constant 0 : i32
    return %c0_i32, %c0_i32_0 : i32, i32
  }
  func.func @transform_6(%arg0: i32) -> (i32, i32, i32, i32) {
    %c0_i32 = arith.constant 0 : i32
    %c0_i32_0 = arith.constant 0 : i32
    %c0_i32_1 = arith.constant 0 : i32
    %c0_i32_2 = arith.constant 0 : i32
    %c0_i32_3 = arith.constant 0 : i32
    return %c0_i32, %c0_i32_0, %c0_i32_1, %c0_i32_2 : i32, i32, i32, i32
  }
  func.func @transform_7(%arg0: i32) -> (i32, i32) {
    %c0_i32 = arith.constant 0 : i32
    %c0_i32_0 = arith.constant 0 : i32
    %c0_i32_1 = arith.constant 0 : i32
    return %c0_i32, %c0_i32_0 : i32, i32
  }
  func.func @transform_8(%arg0: i32) -> (i32, i32, i32) {
    %c0_i32 = arith.constant 0 : i32
    %c0_i32_0 = arith.constant 0 : i32
    %c0_i32_1 = arith.constant 0 : i32
    return %arg0, %c0_i32, %c0_i32_0 : i32, i32, i32
  }
}

</mosaic_0001>

<bundles_post_ra>
// kernel: perceptual_loss.1
= control target key start
LH: loop header
LB: loop body
LE: loop exit
PB: predicated region body
PF: predicated region fallthrough
CT: control target
= control target key end

     0   :  { %s23044_s27 = smov 0   ;;  %s29178_s0 = inlined_call_operand.vmem [shape: f32[4,1,1,3], index: 0, kind: input, shape index: {}]   ;;  %s29179_s1 = inlined_call_operand.vmem [shape: f32[384,1], index: 1, kind: input, shape index: {}]   ;;  %s29180_s2 = inlined_call_operand.vmem [shape: bf16[2,16,16,3], index: 2, kind: input, shape index: {}]   ;;  %s29181_s3 = inlined_call_operand.vmem [shape: bf16[2,16,16,3], index: 3, kind: input, shape index: {}]   ;;  %s29182_s4 = inlined_call_operand.vmem [shape: bf16[3,3,3,64], index: 4, kind: input, shape index: {}]   ;;  %s29183_s5 = inlined_call_operand.vmem [shape: f32[1,64], index: 5, kind: input, shape index: {}]   ;;  %s29184_s6 = inlined_call_operand.vmem [shape: bf16[3,3,64,64], index: 6, kind: input, shape index: {}]   ;;  %s29185_s7 = inlined_call_operand.vmem [shape: f32[1,64], index: 7, kind: input, shape index: {}]   ;;  %s29186_s8 = inlined_call_operand.vmem [shape: f32[2,1,64], index: 8, kind: output, shape index: {}]  }
   0x1 LB: > { %s17184_s28 = sadd.s32 4294967295, %s22994_s27   ;;  %p17188_p0 = scmp.ge.s32.totalorder %s22994_s27, 1  ;;  %s22994_s27 = sphi %s23044_s27, %s18_s27  }
   0x2   : > { %p272_p1 = scmp.lt.s32.totalorder %s22994_s27, 3 }
   0x4   : > { %p273_p2 = pnand %p17188_p0, %p272_p1 }
   0x6   : > { %276 = sbr.rel (%p273_p2) target bundleno = 3018 (0xbca), region = 52 }
   0xd   : > { %v23055_v0 = vld [vmem:[%s29182_s4 + $0x2] sm:$0x3]  ;;  %vm850_vm0 = vcmask 1040384   ;;  %vm851_vm1 = vcmask 1041408   ;;  %vm323_vm2 = vcmask 23552   ;;  %v22996_v1 = vmov 65535  }
   0xe   : > { %v852_v2 = vsel %vm850_vm0, 4294967295, %v22996_v1  ;;  %v751_v3 = vld [vmem:[%s29182_s4] sm:$0x3]  ;;  %p23062_p3 = scmp.lt.s32.totalorder %s17184_s28, 1  ;;  %v29187_v5 = vmov 0.0   ;;  %vm384_vm5 = vcmask 523264  }
   0xf   : > { %v23066_v4 = vsel %vm851_vm1, %v852_v2, 0  ;;  %326 = vst.msk [vmem:[#allocation2 + $0x10] sm:$0xff] %vm323_vm2, %v29187_v5  ;;  %327 = vst.msk [vmem:[#allocation2 + $0x18] sm:$0xff] %vm323_vm2, %v29187_v5  ;;  %v23195_v8 = vld [vmem:[%s29178_s0] ss:$0 sm:$0xff]  ;;  %vm17123_vm6 = vcmask 516096  }
  0x10   : > { %328 = vst.msk [vmem:[#allocation2 + $0x20] sm:$0xff] %vm323_vm2, %v29187_v5  ;;  %329 = vst.msk [vmem:[#allocation2 + $0x28] sm:$0xff] %vm323_vm2, %v29187_v5  ;;  %v855_v6 = vand.u32 %v23055_v0, %v23066_v4  ;;  %v23183_v7 = vand.u32 %v23066_v4, %v751_v3  ;;  %s30881_s28 = smov (!%p23062_p3, %s17184_s28), 1  ;;  %v23220_v25 = vld [vmem:[%s29178_s0 + $0x1] ss:$0 sm:$0xff] }
  0x11   : > { %330 = vst.msk [vmem:[#allocation2 + $0x30] sm:$0xff] %vm323_vm2, %v29187_v5  ;;  %331 = vst.msk [vmem:[#allocation2 + $0x38] sm:$0xff] %vm323_vm2, %v29187_v5  ;;  %s18283_s12 = sshll.u32 %s30881_s28, 7  ;;  %v23230_v29 = vld [vmem:[%s29178_s0 + $0x2] ss:$0 sm:$0xff]  ;;  %s321_s19 = scalar_lea.vmem %s29186_s8, %s30881_s28 }
  0x12   : > { %332 = vst.msk [vmem:[#allocation2 + $0x40] sm:$0xff] %vm323_vm2, %v29187_v5  ;;  %333 = vst.msk [vmem:[#allocation2 + $0x48] sm:$0xff] %vm323_vm2, %v29187_v5  ;;  %19397 = vmatprep.subr.bf16.mxu0 %v855_v6  ;;  %s23200_s17 = scalar_lea.vmem %s29180_s2, %s18283_s12  ;;  %s23205_s20 = scalar_lea.vmem %s29181_s3, %s18283_s12  ;;  %v17244_v32 = vld [vmem:[%s29182_s4 + $0x4] sm:$0x3]  ;;  %v23256_v47 = vld [vmem:[%s29178_s0 + $0x3] ss:$0 sm:$0xff] }
  0x13   : > { %334 = vst.msk [vmem:[#allocation2 + $0x50] sm:$0xff] %vm323_vm2, %v29187_v5  ;;  %335 = vst.msk [vmem:[#allocation2 + $0x58] sm:$0xff] %vm323_vm2, %v29187_v5  ;;  %19398 = vmatpush3.bf16.msra.mxu0 %v855_v6  ;;  %v18286_v9 = vld [vmem:[%s23200_s17] sm:$0xff]   ;;  %v18413_v11 = vld [vmem:[%s23200_s17 + $0x8] sm:$0xff]   ;;  %v23245_v43 = vand.u32 %v17244_v32, %v23066_v4  ;;  %vm1082_vm3 = vsmask.f32 4352 }
  0x14   : > { %336 = vst.msk [vmem:[#allocation2 + $0x60] sm:$0xff] %vm323_vm2, %v29187_v5  ;;  %337 = vst.msk [vmem:[#allocation2 + $0x68] sm:$0xff] %vm323_vm2, %v29187_v5  ;;  %19447 = vmatprep.subr.bf16.mxu0 %v23183_v7  ;;  %v18350_v10 = vld [vmem:[%s23205_s20] sm:$0xff]   ;;  %v18287_v12 = vunpack.c.l.bf16 %v18286_v9  ;;  %v18288_v13 = vunpack.c.h.bf16 %v18286_v9  ;;  %v18428_v14 = vld [vmem:[%s23205_s20 + $0x8] sm:$0xff]   ;;  %v18291_v21 = vunpack.c.l.bf16 %v18413_v11  ;;  %v18292_v30 = vunpack.c.h.bf16 %v18413_v11 }
  0x15   : > { %338 = vst.msk [vmem:[#allocation2 + $0x70] sm:$0xff] %vm323_vm2, %v29187_v5  ;;  %339 = vst.msk [vmem:[#allocation2 + $0x78] sm:$0xff] %vm323_vm2, %v29187_v5  ;;  %v18414_v15 = vld [vmem:[%s23200_s17 + $0x10] sm:$0xff]   ;;  %v18351_v19 = vunpack.c.l.bf16 %v18350_v10  ;;  %v18352_v20 = vunpack.c.h.bf16 %v18350_v10  ;;  %v18355_v31 = vunpack.c.l.bf16 %v18428_v14  ;;  %v18415_v49 = vld [vmem:[%s23200_s17 + $0x18] sm:$0xff]   ;;  %v18356_v53 = vunpack.c.h.bf16 %v18428_v14 }
  0x16   : > { %340 = vst.msk [vmem:[#allocation2 + $0x80] sm:$0xff] %vm323_vm2, %v29187_v5  ;;  %341 = vst.msk [vmem:[#allocation2 + $0x88] sm:$0xff] %vm323_vm2, %v29187_v5  ;;  %v670_v16 = vld [vmem:[#allocation2 + $0x10] sm:$0xff]  ;;  %v671_v17 = vld [vmem:[#allocation2 + $0x18] sm:$0xff]  ;;  %v567_v26 = vmul.f32 %v18287_v12, %v23195_v8  ;;  %v568_v27 = vmul.f32 %v18288_v13, %v23195_v8  ;;  %v569_v35 = vmul.f32 %v18291_v21, %v23195_v8  ;;  %v18295_v36 = vunpack.c.l.bf16 %v18414_v15 }
  0x17   : > { %342 = vst.msk [vmem:[#allocation2 + $0x90] sm:$0xff] %vm323_vm2, %v29187_v5  ;;  %343 = vst.msk [vmem:[#allocation2 + $0x98] sm:$0xff] %vm323_vm2, %v29187_v5  ;;  %v672_v18 = vld [vmem:[#allocation2 + $0x20] sm:$0xff]  ;;  %v23213_v22 = vld [vmem:[#allocation2 + $0x28] sm:$0xff]  ;;  %v726_v23 = vpack.c.bf16 %v671_v17, %v670_v16  ;;  %v8889_v40 = vmul.f32 %v18351_v19, %v23230_v29  ;;  %v8890_v41 = vmul.f32 %v18352_v20, %v23230_v29  ;;  %v18296_v55 = vunpack.c.h.bf16 %v18414_v15 }
  0x18   : > { %344 = vst.msk [vmem:[#allocation2 + $0xa0] sm:$0xff] %vm323_vm2, %v29187_v5  ;;  %345 = vst.msk [vmem:[#allocation2 + $0xa8] sm:$0xff] %vm323_vm2, %v29187_v5  ;;  %v23215_v24 = vpack.c.bf16 %v672_v18, %v671_v17  ;;  %v23225_v28 = vpack.c.bf16 %v23213_v22, %v672_v18  ;;  %v605_v37 = vadd.f32 %v23220_v25, %v567_v26  ;;  %v18429_v42 = vld [vmem:[%s23205_s20 + $0x10] sm:$0xff]   ;;  %v18430_v58 = vld [vmem:[%s23205_s20 + $0x18] sm:$0xff]   ;;  %v18299_v63 = vunpack.c.l.bf16 %v18415_v49 }
  0x19   : > { %346 = vst.msk [vmem:[#allocation2 + $0xb0] sm:$0xff] %vm323_vm2, %v29187_v5  ;;  %347 = vst.msk [vmem:[#allocation2 + $0xb8] sm:$0xff] %vm323_vm2, %v29187_v5  ;;  %v1084_v33 = vshrl.u32 %v726_v23, 16  ;;  %v1087_v34 = vshll.u32 %v726_v23, 16  ;;  %v606_v38 = vadd.f32 %v23220_v25, %v568_v27  ;;  %v570_v48 = vmul.f32 %v18292_v30, %v23195_v8  ;;  %v18416_v59 = vld [vmem:[%s23200_s17 + $0x20] sm:$0xff]   ;;  %v18417_v13 = vld [vmem:[%s23200_s17 + $0x28] sm:$0xff]  }
  0x1a   : > { %348 = vst.msk [vmem:[#allocation2 + $0xc0] sm:$0xff] %vm323_vm2, %v29187_v5  ;;  %349 = vst.msk [vmem:[#allocation2 + $0xc8] sm:$0xff] %vm323_vm2, %v29187_v5  ;;  %19399 = vmatprep.mubr.msk.bf16.mxu0 %vm323_vm2, %v23215_v24  ;;  %v1092_v39 = vshrl.u32 %v23225_v28, 16  ;;  %v1095_v46 = vshll.u32 %v23225_v28, 16  ;;  %v607_v50 = vadd.f32 %v23220_v25, %v569_v35  ;;  %v8891_v51 = vmul.f32 %v18355_v31, %v23230_v29  ;;  %v18431_v12 = vld [vmem:[%s23205_s20 + $0x20] sm:$0xff]  }
  0x1b   : > { %350 = vst.msk [vmem:[#allocation2 + $0xd0] sm:$0xff] %vm323_vm2, %v29187_v5  ;;  %351 = vst.msk [vmem:[#allocation2 + $0xd8] sm:$0xff] %vm323_vm2, %v29187_v5  ;;  %v23247_v44 = vrot.slane %v1084_v33, 3  ;;  %v23249_v45 = vrot.slane %v1087_v34, 4  ;;  %v571_v52 = vmul.f32 %v18295_v36, %v23195_v8  ;;  %v608_v54 = vadd.f32 %v23220_v25, %v570_v48  ;;  %v18432_v36 = vld [vmem:[%s23205_s20 + $0x28] sm:$0xff]  }
  0x1c   : > { %352 = vst.msk [vmem:[#allocation2 + $0xe0] sm:$0xff] %vm323_vm2, %v29187_v5  ;;  %353 = vst.msk [vmem:[#allocation2 + $0xe8] sm:$0xff] %vm323_vm2, %v29187_v5  ;;  %v18359_v56 = vunpack.c.l.bf16 %v18429_v42  ;;  %v18360_v57 = vunpack.c.h.bf16 %v18429_v42  ;;  %v8927_v60 = vadd.f32 %v23256_v47, %v8889_v40  ;;  %v8892_v62 = vmul.f32 %v18356_v53, %v23230_v29 }
  0x1d   : > { %354 = vst.msk [vmem:[#allocation2 + $0xf0] sm:$0xff] %vm323_vm2, %v29187_v5  ;;  %355 = vst.msk [vmem:[#allocation2 + $0xf8] sm:$0xff] %vm323_vm2, %v29187_v5  ;;  %v609_v61 = vadd.f32 %v23220_v25, %v571_v52  ;;  %v8928_v0 = vadd.f32 %v23256_v47, %v8890_v41  ;;  %v8929_v1 = vadd.f32 %v23256_v47, %v8891_v51  ;;  %v18300_v3 = vunpack.c.h.bf16 %v18415_v49 }
  0x1e   : > { %356 = vst.msk [vmem:[#allocation2 + $0x100] sm:$0xff] %vm323_vm2, %v29187_v5  ;;  %357 = vst.msk [vmem:[#allocation2 + $0x108] sm:$0xff] %vm323_vm2, %v29187_v5  ;;  %v572_v2 = vmul.f32 %v18296_v55, %v23195_v8  ;;  %v8893_v6 = vmul.f32 %v18359_v56, %v23230_v29  ;;  %v573_v9 = vmul.f32 %v18299_v63, %v23195_v8  ;;  %v18363_v10 = vunpack.c.l.bf16 %v18430_v58 }
  0x1f   : > { %358 = vst.msk [vmem:[#allocation2 + $0x110] sm:$0xff] %vm323_vm2, %v29187_v5  ;;  %359 = vst.msk [vmem:[#allocation2 + $0x118] sm:$0xff] %vm323_vm2, %v29187_v5  ;;  %v18303_v11 = vunpack.c.l.bf16 %v18416_v59  ;;  %v8930_v14 = vadd.f32 %v23256_v47, %v8892_v62  ;;  %v8894_v16 = vmul.f32 %v18360_v57, %v23230_v29  ;;  %v574_v17 = vmul.f32 %v18300_v3, %v23195_v8 }
  0x20   : > { %360 = vst.msk [vmem:[#allocation2 + $0x120] sm:$0xff] %vm323_vm2, %v29187_v5  ;;  %361 = vst.msk [vmem:[#allocation2 + $0x128] sm:$0xff] %vm323_vm2, %v29187_v5  ;;  %v610_v15 = vadd.f32 %v23220_v25, %v572_v2  ;;  %v611_v21 = vadd.f32 %v23220_v25, %v573_v9  ;;  %v8895_v23 = vmul.f32 %v18363_v10, %v23230_v29  ;;  %v18364_v27 = vunpack.c.h.bf16 %v18430_v58 }
  0x21   : > { %362 = vst.msk [vmem:[#allocation2 + $0x130] sm:$0xff] %vm323_vm2, %v29187_v5  ;;  %363 = vst.msk [vmem:[#allocation2 + $0x138] sm:$0xff] %vm323_vm2, %v29187_v5  ;;  %v575_v26 = vmul.f32 %v18303_v11, %v23195_v8  ;;  %v612_v33 = vadd.f32 %v23220_v25, %v574_v17  ;;  %v8931_v40 = vadd.f32 %v23256_v47, %v8893_v6  ;;  %v18367_v41 = vunpack.c.l.bf16 %v18431_v12 }
  0x22   : > { %364 = vst.msk [vmem:[#allocation2 + $0x140] sm:$0xff] %vm323_vm2, %v29187_v5  ;;  %365 = vst.msk [vmem:[#allocation2 + $0x148] sm:$0xff] %vm323_vm2, %v29187_v5  ;;  %v8896_v35 = vmul.f32 %v18364_v27, %v23230_v29  ;;  %v18368_v42 = vunpack.c.h.bf16 %v18431_v12  ;;  %v18307_v48 = vunpack.c.l.bf16 %v18417_v13  ;;  %v8932_v52 = vadd.f32 %v23256_v47, %v8894_v16 }
  0x23   : > { %366 = vst.msk [vmem:[#allocation2 + $0x150] sm:$0xff] %vm323_vm2, %v29187_v5  ;;  %367 = vst.msk [vmem:[#allocation2 + $0x158] sm:$0xff] %vm323_vm2, %v29187_v5  ;;  %v613_v34 = vadd.f32 %v23220_v25, %v575_v26  ;;  %v8933_v57 = vadd.f32 %v23256_v47, %v8895_v23  ;;  %v18371_v2 = vunpack.c.l.bf16 %v18432_v36  ;;  %v18372_v12 = vunpack.c.h.bf16 %v18432_v36 }
  0x24   : > { %368 = vst.msk [vmem:[#allocation2 + $0x160] sm:$0xff] %vm323_vm2, %v29187_v5  ;;  %369 = vst.msk [vmem:[#allocation2 + $0x168] sm:$0xff] %vm323_vm2, %v29187_v5  ;;  %v8934_v58 = vadd.f32 %v23256_v47, %v8896_v35  ;;  %v577_v62 = vmul.f32 %v18307_v48, %v23195_v8  ;;  %v23341_v16 = vrot.slane %v1092_v39, 3  ;;  %vm1610_vm4 = vsmask.f32 7424 }
  0x25   : > { %370 = vst.msk [vmem:[#allocation2 + $0x170] sm:$0xff] %vm323_vm2, %v29187_v5  ;;  %371 = vst.msk [vmem:[#allocation2 + $0x178] sm:$0xff] %vm323_vm2, %v29187_v5  ;;  %v8900_v39 = vmul.f32 %v18372_v12, %v23230_v29 }
  0x26   : > { %372 = vst.msk [vmem:[#allocation2 + $0x180] sm:$0xff] %vm323_vm2, %v29187_v5  ;;  %373 = vst.msk [vmem:[#allocation2 + $0x188] sm:$0xff] %vm323_vm2, %v29187_v5  ;;  %v615_v10 = vadd.f32 %v23220_v25, %v577_v62 }
  0x27   : > { %374 = vst.msk [vmem:[#allocation2 + $0x190] sm:$0xff] %vm323_vm2, %v29187_v5  ;;  %375 = vst.msk [vmem:[#allocation2 + $0x198] sm:$0xff] %vm323_vm2, %v29187_v5 }
  0x28   : > { %376 = vst.msk [vmem:[#allocation2 + $0x1a0] sm:$0xff] %vm323_vm2, %v29187_v5  ;;  %377 = vst.msk [vmem:[#allocation2 + $0x1a8] sm:$0xff] %vm323_vm2, %v29187_v5 }
  0x29   : > { %378 = vst.msk [vmem:[#allocation2 + $0x1b0] sm:$0xff] %vm323_vm2, %v29187_v5  ;;  %379 = vst.msk [vmem:[#allocation2 + $0x1b8] sm:$0xff] %vm323_vm2, %v29187_v5 }
  0x2a   : > { %380 = vst.msk [vmem:[#allocation2 + $0x1c0] sm:$0xff] %vm323_vm2, %v29187_v5  ;;  %381 = vst.msk [vmem:[#allocation2 + $0x1c8] sm:$0xff] %vm323_vm2, %v29187_v5 }
  0x2b   : > { %638 = vst.msk [vmem:[#allocation2 + $0x31] sm:$0xff] %vm323_vm2, %v605_v37  ;;  %639 = vst.msk [vmem:[#allocation2 + $0x39] sm:$0xff] %vm323_vm2, %v606_v38  ;;  %v18418_v37 = vld [vmem:[%s23200_s17 + $0x30] sm:$0xff]  }
  0x2c   : > { %640 = vst.msk [vmem:[#allocation2 + $0x49] sm:$0xff] %vm323_vm2, %v607_v50  ;;  %641 = vst.msk [vmem:[#allocation2 + $0x51] sm:$0xff] %vm323_vm2, %v608_v54  ;;  %v18308_v54 = vunpack.c.h.bf16 %v18417_v13  ;;  %v18311_v3 = vunpack.c.l.bf16 %v18418_v37  ;;  %v18312_v13 = vunpack.c.h.bf16 %v18418_v37  ;;  %v18420_v37 = vld [vmem:[%s23200_s17 + $0x40] sm:$0xff]  }
  0x2d   : > { %642 = vst.msk [vmem:[#allocation2 + $0x61] sm:$0xff] %vm323_vm2, %v609_v61  ;;  %643 = vst.msk [vmem:[#allocation2 + $0x69] sm:$0xff] %vm323_vm2, %v610_v15  ;;  %v8897_v61 = vmul.f32 %v18367_v41, %v23230_v29  ;;  %v23337_v15 = vld [vmem:[%s23205_s20 + $0x38] sm:$0xff]  }
  0x2e   : > { %644 = vst.msk [vmem:[#allocation2 + $0x79] sm:$0xff] %vm323_vm2, %v611_v21  ;;  %645 = vst.msk [vmem:[#allocation2 + $0x81] sm:$0xff] %vm323_vm2, %v612_v33  ;;  %v578_v63 = vmul.f32 %v18308_v54, %v23195_v8  ;;  %v580_v27 = vmul.f32 %v18312_v13, %v23195_v8  ;;  %v18319_v54 = vunpack.c.l.bf16 %v18420_v37 }
  0x2f   : > { %646 = vst.msk [vmem:[#allocation2 + $0x91] sm:$0xff] %vm323_vm2, %v613_v34  ;;  %648 = vst.msk [vmem:[#allocation2 + $0xa9] sm:$0xff] %vm323_vm2, %v615_v10  ;;  %v23359_v34 = vrot.slane %v1095_v46, 4 }
  0x30   : > { %v616_v11 = vadd.f32 %v23220_v25, %v578_v63  ;;  %v18320_v63 = vunpack.c.h.bf16 %v18420_v37 }
  0x32   : > { %v674_v18 = vld [vmem:[#allocation2 + $0x30] sm:$0xff]  ;;  %v675_v19 = vld [vmem:[#allocation2 + $0x38] sm:$0xff]  ;;  %v676_v20 = vld [vmem:[#allocation2 + $0x40] sm:$0xff]  ;;  %649 = vst.msk [vmem:[#allocation2 + $0xb1] sm:$0xff] %vm323_vm2, %v616_v11 }
  0x33   : > { %v23288_v30 = vpack.c.bf16 %v674_v18, %v23213_v22  ;;  %v23290_v31 = vpack.c.bf16 %v675_v19, %v674_v18  ;;  %v23292_v32 = vpack.c.bf16 %v676_v20, %v675_v19  ;;  %8959 = vst.msk [vmem:[#allocation2 + $0x31] sm:$0xff] %vm323_vm2, %v8927_v60  ;;  %8960 = vst.msk [vmem:[#allocation2 + $0x39] sm:$0xff] %vm323_vm2, %v8928_v0  ;;  %v18304_v22 = vunpack.c.h.bf16 %v18416_v59  ;;  %v677_v38 = vld [vmem:[#allocation2 + $0x48] sm:$0xff]  ;;  %v678_v49 = vld [vmem:[#allocation2 + $0x50] sm:$0xff] }
  0x34   : > { %v23310_v50 = vpack.c.bf16 %v677_v38, %v676_v20  ;;  %v679_v51 = vld [vmem:[#allocation2 + $0x58] sm:$0xff]  ;;  %v23315_v55 = vpack.c.bf16 %v678_v49, %v677_v38  ;;  %8961 = vst.msk [vmem:[#allocation2 + $0x49] sm:$0xff] %vm323_vm2, %v8929_v1  ;;  %v18433_v59 = vld [vmem:[%s23205_s20 + $0x30] sm:$0xff]   ;;  %v8898_v1 = vmul.f32 %v18368_v42, %v23230_v29  ;;  %v681_v6 = vld [vmem:[#allocation2 + $0x68] sm:$0xff]  ;;  %v8899_v19 = vmul.f32 %v18371_v2, %v23230_v29 }
  0x35   : > { %29805 = vst [vmem:[#allocation5_spill] sm:$0xff] %v23288_v30  ;;  %29806 = vst [vmem:[#allocation6_spill] sm:$0xff] %v23292_v32  ;;  %19400 = vmatmul.mubr.msk.bf16.vlgmr.msra.gmra.mrb[0].mxu0 %vm323_vm2, %v23288_v30  ;;  %v576_v53 = vmul.f32 %v18304_v22, %v23195_v8  ;;  %v23318_v56 = vpack.c.bf16 %v679_v51, %v678_v49  ;;  %v682_v9 = vld [vmem:[#allocation2 + $0x70] sm:$0xff]  ;;  %v683_v18 = vld [vmem:[#allocation2 + $0x78] sm:$0xff]  ;;  %v579_v20 = vmul.f32 %v18311_v3, %v23195_v8 }
  0x36   : > { %19448 = vmatpush3.bf16.msra.mxu0 %v23183_v7  ;;  %19403 = vmatprep.mubr.msk.bf16.mxu0 %vm323_vm2, %v23292_v32  ;;  %29807 = vst [vmem:[#allocation7_spill] sm:$0xff] %v23315_v55  ;;  %v680_v7 = vld [vmem:[#allocation2 + $0x60] sm:$0xff]  ;;  %8962 = vst.msk [vmem:[#allocation2 + $0x51] sm:$0xff] %vm323_vm2, %v8930_v14  ;;  %v18419_v14 = vld [vmem:[%s23200_s17 + $0x38] sm:$0xff]   ;;  %v23349_v23 = vpack.c.bf16 %v683_v18, %v682_v9  ;;  %v18375_v33 = vunpack.c.l.bf16 %v18433_v59  ;;  %v8935_v22 = vadd.f32 %v23256_v47, %v8897_v61 }
  0x37   : > { %19497 = vmatprep.subr.bf16.mxu0 %v23245_v43  ;;  %v614_v60 = vadd.f32 %v23220_v25, %v576_v53  ;;  %v23329_v0 = vpack.c.bf16 %v680_v7, %v679_v51  ;;  %v23343_v17 = vpack.c.bf16 %v681_v6, %v680_v7  ;;  %8963 = vst.msk [vmem:[#allocation2 + $0x61] sm:$0xff] %vm323_vm2, %v8931_v40  ;;  %8964 = vst.msk [vmem:[#allocation2 + $0x69] sm:$0xff] %vm323_vm2, %v8932_v52  ;;  %v684_v21 = vld [vmem:[#allocation2 + $0x80] sm:$0xff]  ;;  %v23351_v26 = vld [vmem:[#allocation2 + $0x88] sm:$0xff] }
  0x38   : > { %8965 = vst.msk [vmem:[#allocation2 + $0x79] sm:$0xff] %vm323_vm2, %v8933_v57  ;;  %v23365_v35 = vpack.c.bf16 %v23351_v26, %v684_v21  ;;  %8966 = vst.msk [vmem:[#allocation2 + $0x81] sm:$0xff] %vm323_vm2, %v8934_v58  ;;  %v617_v36 = vadd.f32 %v23220_v25, %v579_v20  ;;  %v8936_v28 = vadd.f32 %v23256_v47, %v8898_v1  ;;  %v18376_v40 = vunpack.c.h.bf16 %v18433_v59  ;;  %v686_v41 = vld [vmem:[#allocation2 + $0x90] sm:$0xff]  ;;  %v18435_v57 = vld [vmem:[%s23205_s20 + $0x40] sm:$0xff]  }
  0x39   : > { %29808 = vst [vmem:[#allocation8_spill] sm:$0xff] %v23329_v0  ;;  %647 = vst.msk [vmem:[#allocation2 + $0x99] sm:$0xff] %vm323_vm2, %v614_v60  ;;  %v8937_v46 = vadd.f32 %v23256_v47, %v8899_v19  ;;  %v618_v38 = vadd.f32 %v23220_v25, %v580_v27  ;;  %v8901_v42 = vmul.f32 %v18375_v33, %v23230_v29  ;;  %v18315_v48 = vunpack.c.l.bf16 %v18419_v14  ;;  %v18421_v1 = vld [vmem:[%s23200_s17 + $0x48] sm:$0xff]   ;;  %v23393_v3 = vld [vmem:[%s23200_s17 + $0x50] sm:$0xff]  }
  0x3a   : > { %650 = vst.msk [vmem:[#allocation2 + $0xc1] sm:$0xff] %vm323_vm2, %v617_v36  ;;  %v18316_v49 = vunpack.c.h.bf16 %v18419_v14  ;;  %v18379_v51 = vunpack.c.l.bf16 %v23337_v15  ;;  %v8938_v52 = vadd.f32 %v23256_v47, %v8900_v39  ;;  %v8902_v53 = vmul.f32 %v18376_v40, %v23230_v29  ;;  %v23390_v2 = vld [vmem:[%s23205_s20 + $0x48] sm:$0xff]   ;;  %v23405_v13 = vld [vmem:[#allocation2 + $0xb0] sm:$0xff]  ;;  %v23407_v14 = vld [vmem:[#allocation2 + $0xb8] sm:$0xff] }
  0x3b   : > { %651 = vst.msk [vmem:[#allocation2 + $0xc9] sm:$0xff] %vm323_vm2, %v618_v38  ;;  %v18380_v7 = vunpack.c.h.bf16 %v23337_v15  ;;  %v23384_v58 = vpack.c.bf16 %v682_v9, %v681_v6  ;;  %v581_v61 = vmul.f32 %v18315_v48, %v23195_v8  ;;  %v23395_v10 = vpack.c.bf16 %v684_v21, %v683_v18  ;;  %v23403_v12 = vld [vmem:[#allocation2 + $0xa8] sm:$0xff]  ;;  %v18437_v48 = vld [vmem:[%s23205_s20 + $0x50] sm:$0xff]  }
  0x3c   : > { %v582_v62 = vmul.f32 %v18316_v49, %v23195_v8  ;;  %v8939_v6 = vadd.f32 %v23256_v47, %v8901_v42  ;;  %v583_v9 = vmul.f32 %v18319_v54, %v23195_v8  ;;  %v8940_v15 = vadd.f32 %v23256_v47, %v8902_v53  ;;  %8969 = vst.msk [vmem:[#allocation2 + $0xa9] sm:$0xff] %vm323_vm2, %v8937_v46 }
  0x3d   : > { %19404 = vmatmul.mubr.msk.bf16.gmra.mrb[4].mxu0 %vm323_vm2, %v23315_v55  ;;  %29809 = vst [vmem:[#allocation9_spill] sm:$0xff] %v23384_v58  ;;  %29810 = vst [vmem:[#allocation10_spill] sm:$0xff] %v23395_v10  ;;  %v619_v18 = vadd.f32 %v23220_v25, %v581_v61  ;;  %v8903_v20 = vmul.f32 %v18379_v51, %v23230_v29  ;;  %v23419_v39 = vpack.c.bf16 %v23407_v14, %v23405_v13 }
  0x3e   : > { %19407 = vmatprep.mubr.msk.bf16.mxu0 %vm323_vm2, %v23329_v0  ;;  %v620_v19 = vadd.f32 %v23220_v25, %v582_v62  ;;  %8970 = vst.msk [vmem:[#allocation2 + $0xb1] sm:$0xff] %vm323_vm2, %v8938_v52  ;;  %v621_v27 = vadd.f32 %v23220_v25, %v583_v9  ;;  %v8904_v33 = vmul.f32 %v18380_v7, %v23230_v29  ;;  %v18383_v36 = vunpack.c.l.bf16 %v18435_v57 }
  0x3f   : > { %652 = vst.msk [vmem:[#allocation2 + $0xd9] sm:$0xff] %vm323_vm2, %v619_v18  ;;  %v18384_v37 = vunpack.c.h.bf16 %v18435_v57  ;;  %v18323_v46 = vunpack.c.l.bf16 %v18421_v1  ;;  %v18324_v38 = vunpack.c.h.bf16 %v18421_v1  ;;  %v18387_v40 = vunpack.c.l.bf16 %v23390_v2  ;;  %v18423_v57 = vld [vmem:[%s23200_s17 + $0x58] sm:$0xff]  }
  0x40   : > { %v687_v59 = vld [vmem:[#allocation2 + $0x98] sm:$0xff]  ;;  %v688_v60 = vld [vmem:[#allocation2 + $0xa0] sm:$0xff]  ;;  %653 = vst.msk [vmem:[#allocation2 + $0xe1] sm:$0xff] %vm323_vm2, %v620_v19  ;;  %654 = vst.msk [vmem:[#allocation2 + $0xf1] sm:$0xff] %vm323_vm2, %v621_v27  ;;  %v18327_v42 = vunpack.c.l.bf16 %v23393_v3  ;;  %v23438_v49 = vpack.c.bf16 %v686_v41, %v23351_v26  ;;  %v8941_v54 = vadd.f32 %v23256_v47, %v8903_v20  ;;  %v8942_v26 = vadd.f32 %v23256_v47, %v8904_v33 }
  0x41   : > { %v23397_v11 = vpack.c.bf16 %v687_v59, %v686_v41  ;;  %8967 = vst.msk [vmem:[#allocation2 + $0x91] sm:$0xff] %vm323_vm2, %v8935_v22  ;;  %8968 = vst.msk [vmem:[#allocation2 + $0x99] sm:$0xff] %vm323_vm2, %v8936_v28  ;;  %v23414_v21 = vpack.c.bf16 %v23403_v12, %v688_v60  ;;  %v584_v22 = vmul.f32 %v18320_v63, %v23195_v8  ;;  %v23431_v28 = vld [vmem:[#allocation2 + $0xc0] sm:$0xff]  ;;  %v18328_v18 = vunpack.c.h.bf16 %v23393_v3  ;;  %v18438_v19 = vld [vmem:[%s23205_s20 + $0x58] sm:$0xff]  }
  0x42   : > { %29811 = vst [vmem:[#allocation11_spill] sm:$0xff] %v23438_v49  ;;  %v23440_v51 = vpack.c.bf16 %v688_v60, %v687_v59  ;;  %v23442_v52 = vld [vmem:[#allocation2 + $0xc8] sm:$0xff]  ;;  %v23444_v53 = vld [vmem:[#allocation2 + $0xd0] sm:$0xff]  ;;  %v585_v41 = vmul.f32 %v18323_v46, %v23195_v8  ;;  %v586_v59 = vmul.f32 %v18324_v38, %v23195_v8  ;;  %v8905_v60 = vmul.f32 %v18383_v36, %v23230_v29 }
  0x43   : > { %v622_v7 = vadd.f32 %v23220_v25, %v584_v22  ;;  %v23451_v61 = vpack.c.bf16 %v23442_v52, %v23431_v28  ;;  %8971 = vst.msk [vmem:[#allocation2 + $0xc1] sm:$0xff] %vm323_vm2, %v8939_v6  ;;  %8972 = vst.msk [vmem:[#allocation2 + $0xc9] sm:$0xff] %vm323_vm2, %v8940_v15  ;;  %v8906_v62 = vmul.f32 %v18384_v37, %v23230_v29  ;;  %v18388_v15 = vunpack.c.h.bf16 %v23390_v2 }
  0x44   : > { %29812 = vst [vmem:[#allocation12_spill] sm:$0xff] %v23440_v51  ;;  %v8907_v63 = vmul.f32 %v18387_v40, %v23230_v29  ;;  %v587_v1 = vmul.f32 %v18327_v42, %v23195_v8  ;;  %v623_v6 = vadd.f32 %v23220_v25, %v585_v41  ;;  %v624_v9 = vadd.f32 %v23220_v25, %v586_v59 }
  0x45   : > { %19408 = vmatmul.mubr.msk.bf16.gmra.mrb[8].mxu0 %vm323_vm2, %v23384_v58  ;;  %655 = vst.msk [vmem:[#allocation2 + $0xf9] sm:$0xff] %vm323_vm2, %v622_v7  ;;  %v18391_v27 = vunpack.c.l.bf16 %v18437_v48  ;;  %v18392_v33 = vunpack.c.h.bf16 %v18437_v48  ;;  %v8908_v2 = vmul.f32 %v18388_v15, %v23230_v29  ;;  %v588_v3 = vmul.f32 %v18328_v18, %v23195_v8  ;;  %v18441_v58 = vld [vmem:[%s23205_s20 + $0x70] sm:$0xff]  }
  0x46   : > { %19411 = vmatprep.mubr.msk.bf16.mxu0 %vm323_vm2, %v23395_v10  ;;  %v625_v20 = vadd.f32 %v23220_v25, %v587_v1  ;;  %v23469_v22 = vld [vmem:[#allocation2 + $0xd8] sm:$0xff]  ;;  %656 = vst.msk [vmem:[#allocation2 + $0x109] sm:$0xff] %vm323_vm2, %v623_v6  ;;  %657 = vst.msk [vmem:[#allocation2 + $0x111] sm:$0xff] %vm323_vm2, %v624_v9  ;;  %v18331_v46 = vunpack.c.l.bf16 %v18423_v57  ;;  %v18332_v38 = vunpack.c.h.bf16 %v18423_v57  ;;  %v8943_v48 = vadd.f32 %v23256_v47, %v8905_v60  ;;  %v18424_v57 = vld [vmem:[%s23200_s17 + $0x60] sm:$0xff]  }
  0x47   : > { %v23471_v36 = vld [vmem:[#allocation2 + $0xe0] sm:$0xff]  ;;  %v23473_v37 = vld [vmem:[#allocation2 + $0xe8] sm:$0xff]  ;;  %v23483_v40 = vpack.c.bf16 %v23469_v22, %v23444_v53  ;;  %v8944_v7 = vadd.f32 %v23256_v47, %v8906_v62  ;;  %v23499_v41 = vpack.c.bf16 %v23405_v13, %v23403_v12  ;;  %v8945_v59 = vadd.f32 %v23256_v47, %v8907_v63 }
  0x48   : > { %8973 = vst.msk [vmem:[#allocation2 + $0xd9] sm:$0xff] %vm323_vm2, %v8941_v54  ;;  %v23488_v42 = vpack.c.bf16 %v23473_v37, %v23471_v36  ;;  %8974 = vst.msk [vmem:[#allocation2 + $0xe1] sm:$0xff] %vm323_vm2, %v8942_v26  ;;  %v23501_v54 = vld [vmem:[#allocation2 + $0xf0] sm:$0xff]  ;;  %v626_v26 = vadd.f32 %v23220_v25, %v588_v3  ;;  %v8909_v60 = vmul.f32 %v18391_v27, %v23230_v29  ;;  %v18439_v1 = vld [vmem:[%s23205_s20 + $0x60] sm:$0xff]   ;;  %v18395_v18 = vunpack.c.l.bf16 %v18438_v19 }
  0x49   : > { %658 = vst.msk [vmem:[#allocation2 + $0x121] sm:$0xff] %vm323_vm2, %v625_v20  ;;  %29813 = vst [vmem:[#allocation13_spill] sm:$0xff] %v23499_v41  ;;  %v18425_v62 = vld [vmem:[%s23200_s17 + $0x68] sm:$0xff]   ;;  %v8946_v6 = vadd.f32 %v23256_v47, %v8908_v2  ;;  %v589_v9 = vmul.f32 %v18331_v46, %v23195_v8  ;;  %v590_v15 = vmul.f32 %v18332_v38, %v23195_v8  ;;  %v18335_v63 = vunpack.c.l.bf16 %v18424_v57 }
  0x4a   : > { %659 = vst.msk [vmem:[#allocation2 + $0x129] sm:$0xff] %vm323_vm2, %v626_v26  ;;  %v8910_v13 = vmul.f32 %v18392_v33, %v23230_v29  ;;  %v18396_v27 = vunpack.c.h.bf16 %v18438_v19  ;;  %v18336_v3 = vunpack.c.h.bf16 %v18424_v57  ;;  %v23519_v2 = vpack.c.bf16 %v23431_v28, %v23407_v14  ;;  %v18440_v28 = vld [vmem:[%s23205_s20 + $0x68] sm:$0xff]  }
  0x4b   : > { %v627_v38 = vadd.f32 %v23220_v25, %v589_v9  ;;  %v628_v26 = vadd.f32 %v23220_v25, %v590_v15  ;;  %v8911_v33 = vmul.f32 %v18395_v18, %v23230_v29  ;;  %v591_v19 = vmul.f32 %v18335_v63, %v23195_v8 }
  0x4c   : > { %v23511_v20 = vld [vmem:[#allocation2 + $0xf8] sm:$0xff]  ;;  %v23513_v12 = vld [vmem:[#allocation2 + $0x100] sm:$0xff]  ;;  %29814 = vst [vmem:[#allocation14_spill] sm:$0xff] %v23519_v2  ;;  %v8912_v57 = vmul.f32 %v18396_v27, %v23230_v29  ;;  %v592_v14 = vmul.f32 %v18336_v3, %v23195_v8  ;;  %v18400_v9 = vunpack.c.h.bf16 %v18439_v1  ;;  %v18339_v15 = vunpack.c.l.bf16 %v18425_v62 }
  0x4d   : > { %19412 = vmatmul.mubr.msk.bf16.gmra.mrb[12].mxu0 %vm323_vm2, %v23438_v49  ;;  %v23523_v46 = vpack.c.bf16 %v23511_v20, %v23501_v54  ;;  %8975 = vst.msk [vmem:[#allocation2 + $0xf1] sm:$0xff] %vm323_vm2, %v8943_v48  ;;  %8976 = vst.msk [vmem:[#allocation2 + $0xf9] sm:$0xff] %vm323_vm2, %v8944_v7  ;;  %v23534_v5 = vld [vmem:[#allocation2 + $0x108] sm:$0xff]  ;;  %v23538_v48 = vld [vmem:[#allocation2 + $0x118] sm:$0xff]  ;;  %v18399_v7 = vunpack.c.l.bf16 %v18439_v1  ;;  %v18340_v18 = vunpack.c.h.bf16 %v18425_v62  ;;  %v8947_v3 = vadd.f32 %v23256_v47, %v8909_v60 }
  0x4e   : > { %19415 = vmatprep.mubr.msk.bf16.mxu0 %vm323_vm2, %v23440_v51  ;;  %v23536_v51 = vld [vmem:[#allocation2 + $0x110] sm:$0xff]  ;;  %660 = vst.msk [vmem:[#allocation2 + $0x139] sm:$0xff] %vm323_vm2, %v627_v38  ;;  %661 = vst.msk [vmem:[#allocation2 + $0x141] sm:$0xff] %vm323_vm2, %v628_v26  ;;  %v23544_v63 = vpack.c.bf16 %v23534_v5, %v23513_v12  ;;  %v8948_v38 = vadd.f32 %v23256_v47, %v8910_v13  ;;  %v8949_v26 = vadd.f32 %v23256_v47, %v8911_v33 }
  0x4f   : > { %8977 = vst.msk [vmem:[#allocation2 + $0x109] sm:$0xff] %vm323_vm2, %v8945_v59  ;;  %v23549_v27 = vpack.c.bf16 %v23538_v48, %v23536_v51  ;;  %8978 = vst.msk [vmem:[#allocation2 + $0x111] sm:$0xff] %vm323_vm2, %v8946_v6  ;;  %v18426_v1 = vld [vmem:[%s23200_s17 + $0x70] sm:$0xff]   ;;  %v629_v59 = vadd.f32 %v23220_v25, %v591_v19  ;;  %v8950_v49 = vadd.f32 %v23256_v47, %v8912_v57  ;;  %v18403_v19 = vunpack.c.l.bf16 %v18440_v28 }
  0x50   : > { %v23557_v62 = vld [vmem:[#allocation2 + $0x120] sm:$0xff]  ;;  %v630_v10 = vadd.f32 %v23220_v25, %v592_v14  ;;  %v8913_v60 = vmul.f32 %v18399_v7, %v23230_v29  ;;  %v8914_v6 = vmul.f32 %v18400_v9, %v23230_v29  ;;  %v593_v13 = vmul.f32 %v18339_v15, %v23195_v8 }
  0x51   : > { %v23570_v0 = vld [vmem:[#allocation2 + $0x128] sm:$0xff]  ;;  %v23572_v33 = vld [vmem:[#allocation2 + $0x130] sm:$0xff]  ;;  %662 = vst.msk [vmem:[#allocation2 + $0x151] sm:$0xff] %vm323_vm2, %v629_v59  ;;  %v18343_v57 = vunpack.c.l.bf16 %v18426_v1  ;;  %v18404_v14 = vunpack.c.h.bf16 %v18440_v28  ;;  %v23578_v7 = vpack.c.bf16 %v23444_v53, %v23442_v52  ;;  %v23582_v9 = vpack.c.bf16 %v23471_v36, %v23469_v22 }
  0x52   : > { %663 = vst.msk [vmem:[#allocation2 + $0x159] sm:$0xff] %vm323_vm2, %v630_v10  ;;  %v23586_v15 = vpack.c.bf16 %v23570_v0, %v23557_v62  ;;  %8979 = vst.msk [vmem:[#allocation2 + $0x121] sm:$0xff] %vm323_vm2, %v8947_v3  ;;  %v8951_v10 = vadd.f32 %v23256_v47, %v8913_v60  ;;  %v631_v28 = vadd.f32 %v23220_v25, %v593_v13  ;;  %v18407_v32 = vunpack.c.l.bf16 %v18441_v58 }
  0x53   : > { %8980 = vst.msk [vmem:[#allocation2 + $0x129] sm:$0xff] %vm323_vm2, %v8948_v38  ;;  %v595_v52 = vmul.f32 %v18343_v57, %v23195_v8  ;;  %v8952_v36 = vadd.f32 %v23256_v47, %v8914_v6  ;;  %v18408_v30 = vunpack.c.h.bf16 %v18441_v58  ;;  %v8916_v60 = vmul.f32 %v18404_v14, %v23230_v29 }
  0x54   : > { %664 = vst.msk [vmem:[#allocation2 + $0x169] sm:$0xff] %vm323_vm2, %v631_v28 }
  0x55   : > { %19416 = vmatmul.mubr.msk.bf16.gmra.mrb[16].mxu0 %vm323_vm2, %v23499_v41  ;;  %v594_v41 = vmul.f32 %v18340_v18, %v23195_v8  ;;  %v707_v53 = vld [vmem:[#allocation2 + $0x138] sm:$0xff]  ;;  %v709_v22 = vld [vmem:[#allocation2 + $0x148] sm:$0xff] }
  0x56   : > { %19419 = vmatprep.mubr.msk.bf16.mxu0 %vm323_vm2, %v23519_v2  ;;  %v18344_v2 = vunpack.c.h.bf16 %v18426_v1  ;;  %v708_v1 = vld [vmem:[#allocation2 + $0x140] sm:$0xff]  ;;  %v23597_v3 = vpack.c.bf16 %v707_v53, %v23572_v33 }
  0x57   : > { %v632_v18 = vadd.f32 %v23220_v25, %v594_v41  ;;  %8981 = vst.msk [vmem:[#allocation2 + $0x139] sm:$0xff] %vm323_vm2, %v8949_v26  ;;  %v23600_v38 = vpack.c.bf16 %v709_v22, %v708_v1  ;;  %8982 = vst.msk [vmem:[#allocation2 + $0x141] sm:$0xff] %vm323_vm2, %v8950_v49  ;;  %v8915_v41 = vmul.f32 %v18403_v19, %v23230_v29 }
  0x58   : > { %v596_v59 = vmul.f32 %v18344_v2, %v23195_v8  ;;  %v633_v8 = vadd.f32 %v23220_v25, %v595_v52  ;;  %v1090_v2 = vor.u32 %v23249_v45, %v23247_v44  ;;  %v23615_v49 = vor.u32 %v23359_v34, %v23341_v16  ;;  %v710_v26 = vld [vmem:[#allocation2 + $0x150] sm:$0xff] }
  0x59   : > { %665 = vst.msk [vmem:[#allocation2 + $0x171] sm:$0xff] %vm323_vm2, %v632_v18  ;;  %v711_v6 = vld [vmem:[#allocation2 + $0x158] sm:$0xff]  ;;  %v712_v13 = vld [vmem:[#allocation2 + $0x160] sm:$0xff]  ;;  %v8918_v19 = vmul.f32 %v18408_v30, %v23230_v29  ;;  %v8953_v44 = vadd.f32 %v23256_v47, %v8915_v41  ;;  %v8954_v45 = vadd.f32 %v23256_v47, %v8916_v60  ;;  %v23633_v34 = vpack.c.bf16 %v23501_v54, %v23473_v37 }
  0x5a   : > { %v634_v58 = vadd.f32 %v23220_v25, %v596_v59  ;;  %666 = vst.msk [vmem:[#allocation2 + $0x181] sm:$0xff] %vm323_vm2, %v633_v8  ;;  %v8917_v25 = vmul.f32 %v18407_v32, %v23230_v29  ;;  %v23623_v57 = vpack.c.bf16 %v711_v6, %v710_v26  ;;  %8983 = vst.msk [vmem:[#allocation2 + $0x151] sm:$0xff] %vm323_vm2, %v8951_v10 }
  0x5b   : > { %8984 = vst.msk [vmem:[#allocation2 + $0x159] sm:$0xff] %vm323_vm2, %v8952_v36  ;;  %v1099_v16 = vsel %vm1082_vm3, %v1090_v2, %v23615_v49  ;;  %v23637_v29 = vpack.c.bf16 %v23513_v12, %v23511_v20  ;;  %v713_v30 = vld [vmem:[#allocation2 + $0x168] sm:$0xff]  ;;  %v8956_v28 = vadd.f32 %v23256_v47, %v8918_v19  ;;  %v23663_v36 = vpack.c.bf16 %v23557_v62, %v23538_v48 }
  0x5c   : > { %667 = vst.msk [vmem:[#allocation2 + $0x189] sm:$0xff] %vm323_vm2, %v634_v58  ;;  %v8955_v10 = vadd.f32 %v23256_v47, %v8917_v25  ;;  %v23641_v18 = vpack.c.bf16 %v713_v30, %v712_v13  ;;  %v23659_v47 = vpack.c.bf16 %v23536_v51, %v23534_v5  ;;  %v23671_v59 = vpack.c.bf16 %v23572_v33, %v23570_v0 }
  0x5d   : > { %19420 = vmatmul.mubr.msk.bf16.gmra.mrb[20].mxu0 %vm323_vm2, %v23578_v7  ;;  %v23673_v41 = vpack.c.bf16 %v708_v1, %v707_v53  ;;  %v23679_v5 = vpack.c.bf16 %v710_v26, %v709_v22  ;;  %v23681_v51 = vpack.c.bf16 %v712_v13, %v711_v6  ;;  %v29229_v62 = vshrl.u32 %v23290_v31, 16 }
  0x5e   : > { %19423 = vmatprep.mubr.msk.bf16.mxu0 %vm323_vm2, %v23582_v9  ;;  %29815 = vst [vmem:[#allocation15_spill] sm:$0xff] %v23641_v18  ;;  %v29230_v33 = vshll.u32 %v23290_v31, 16  ;;  %v29222_v53 = vshrl.u32 %v23310_v50, 16  ;;  %v29227_v1 = vshll.u32 %v23310_v50, 16  ;;  %v29220_v6 = vshrl.u32 %v23318_v56, 16 }
  0x5f   : > { %v1103_v60 = vrot.slane %v29229_v62, 3  ;;  %v29225_v13 = vshll.u32 %v23318_v56, 16  ;;  %v29210_v19 = vshrl.u32 %v23343_v17, 16 }
  0x60   : > { %v714_v32 = vld [vmem:[#allocation2 + $0x170] sm:$0xff]  ;;  %v715_v14 = vld [vmem:[#allocation2 + $0x178] sm:$0xff]  ;;  %v1106_v8 = vrot.slane %v29230_v33, 4  ;;  %v1112_v58 = vrot.slane %v29222_v53, 3  ;;  %v1115_v2 = vrot.slane %v29227_v1, 4 }
  0x61   : > { %8985 = vst.msk [vmem:[#allocation2 + $0x169] sm:$0xff] %vm323_vm2, %v8953_v44  ;;  %v23644_v52 = vpack.c.bf16 %v715_v14, %v714_v32  ;;  %8986 = vst.msk [vmem:[#allocation2 + $0x171] sm:$0xff] %vm323_vm2, %v8954_v45  ;;  %v716_v37 = vld [vmem:[#allocation2 + $0x180] sm:$0xff]  ;;  %v23687_v0 = vpack.c.bf16 %v714_v32, %v713_v30  ;;  %v29216_v44 = vshll.u32 %v23343_v17, 16  ;;  %v1124_v32 = vrot.slane %v29225_v13, 4 }
  0x62   : > { %v23689_v48 = vpack.c.bf16 %v716_v37, %v715_v14  ;;  %v1107_v26 = vor.u32 %v1106_v8, %v1103_v60  ;;  %v1116_v25 = vor.u32 %v1115_v2, %v1112_v58  ;;  %v17269_v45 = vld [vmem:[%s29182_s4 + $0x6] sm:$0x3]  ;;  %v29213_v60 = vshll.u32 %v23349_v23, 16 }
  0x63   : > { %29816 = vst [vmem:[#allocation16_spill] sm:$0xff] %v23644_v52  ;;  %v717_v54 = vld [vmem:[#allocation2 + $0x188] sm:$0xff]  ;;  %v23649_v20 = vld [vmem:[#allocation2 + $0x190] sm:$0xff]  ;;  %v29208_v58 = vshrl.u32 %v23365_v35, 16  ;;  %v29209_v2 = vshll.u32 %v23365_v35, 16  ;;  %v29235_v13 = vshll.u32 %v23544_v63, 16 }
  0x64   : > { %29817 = vst [vmem:[#allocation17_spill] sm:$0xff] %v23649_v20  ;;  %v23653_v12 = vpack.c.bf16 %v717_v54, %v716_v37  ;;  %8987 = vst.msk [vmem:[#allocation2 + $0x181] sm:$0xff] %vm323_vm2, %v8955_v10  ;;  %v23700_v22 = vpack.c.bf16 %v23649_v20, %v717_v54  ;;  %v1108_v30 = vsel %vm1082_vm3, %v23615_v49, %v1107_v26  ;;  %v1130_v10 = vrot.slane %v29210_v19, 3 }
  0x65   : > { %19424 = vmatmul.mubr.msk.bf16.gmra.mrb[24].mxu0 %vm323_vm2, %v23633_v34  ;;  %8988 = vst.msk [vmem:[#allocation2 + $0x189] sm:$0xff] %vm323_vm2, %v8956_v28  ;;  %v1117_v14 = vsel %vm1082_vm3, %v1107_v26, %v1116_v25  ;;  %v1133_v28 = vrot.slane %v29216_v44, 4  ;;  %v23732_v37 = vand.u32 %v17269_v45, %v23066_v4  ;;  %v29207_v54 = vshrl.u32 %v23349_v23, 16 }
  0x66   : > { %19427 = vmatprep.mubr.msk.bf16.mxu0 %vm323_vm2, %v23637_v29  ;;  %29818 = vst [vmem:[#allocation18_spill] sm:$0xff] %v23653_v12  ;;  %v1142_v45 = vrot.slane %v29213_v60, 4  ;;  %v29221_v60 = vshll.u32 %v23451_v61, 16 }
  0x67   : > { %v1134_v8 = vor.u32 %v1133_v28, %v1130_v10  ;;  %v29212_v10 = vshll.u32 %v23397_v11, 16 }
  0x69   : > { %v1160_v19 = vrot.slane %v29212_v10, 4 }
  0x6d   : > { %19428 = vmatmul.mubr.msk.bf16.gmra.mrb[28].mxu0 %vm323_vm2, %v23659_v47 }
  0x6e   : > { %19431 = vmatprep.mubr.msk.bf16.mxu0 %vm323_vm2, %v23663_v36 }
  0x75   : > { %19432 = vmatmul.mubr.msk.bf16.gmra.mrb[32].mxu0 %vm323_vm2, %v23671_v59 }
  0x76   : > { %19435 = vmatprep.mubr.msk.bf16.mxu0 %vm323_vm2, %v23673_v41 }
  0x7d   : > { %19436 = vmatmul.mubr.msk.bf16.gmra.mrb[36].mxu0 %vm323_vm2, %v23679_v5 }
  0x7e   : > { %19439 = vmatprep.mubr.msk.bf16.mxu0 %vm323_vm2, %v23681_v51 }
  0x85   : > { %19440 = vmatmul.mubr.msk.bf16.gmra.mrb[40].mxu0 %vm323_vm2, %v23687_v0 }
  0x86   : > { %19443 = vmatprep.mubr.msk.bf16.mxu0 %vm323_vm2, %v23689_v48 }
  0x8d   : > { %19444 = vmatmul.mubr.msk.bf16.gmra.mrb[44].mxu0 %vm323_vm2, %v23700_v22 }
  0x8e   : > { %19449 = vmatprep.mubr.msk.bf16.mxu0 %vm323_vm2, %v1099_v16  ;;  %v1121_v16 = vrot.slane %v29220_v6, 3 }
  0x90   : > { %v1125_v49 = vor.u32 %v1124_v32, %v1121_v16  ;;  %v1148_v16 = vrot.slane %v29208_v58, 3  ;;  %v1151_v32 = vrot.slane %v29209_v2, 4 }
  0x92   : > { %v23743_v26 = vsel %vm1082_vm3, %v1116_v25, %v1125_v49  ;;  %v1152_v28 = vor.u32 %v1151_v32, %v1148_v16  ;;  %v29217_v32 = vshrl.u32 %v23419_v39, 16 }
  0x93   : > { %29819 = vst [vmem:[#allocation19_spill] sm:$0xff] %v23743_v26 }
  0x95   : > { %19450 = vmatmul.mubr.msk.bf16.vlgmr.msra.gmra.mrb[0].mxu0 %vm323_vm2, %v1108_v30  ;;  %v23750_v30 = vsel %vm1082_vm3, %v1125_v49, %v1134_v8  ;;  %v29214_v49 = vshrl.u32 %v23414_v21, 16 }
  0x96   : > { %19498 = vmatpush3.bf16.msra.mxu0 %v23245_v43  ;;  %19453 = vmatprep.mubr.msk.bf16.mxu0 %vm323_vm2, %v1117_v14  ;;  %v1139_v43 = vrot.slane %v29207_v54, 3  ;;  %29820 = vst [vmem:[#allocation20_spill] sm:$0xff] %v23750_v30  ;;  %v29211_v14 = vshrl.u32 %v23397_v11, 16  ;;  %v29215_v54 = vshll.u32 %v23414_v21, 16 }
  0x97   : > { %19547 = vmatprep.subr.bf16.mxu0 %v23732_v37 }
  0x98   : > { %v1143_v25 = vor.u32 %v1142_v45, %v1139_v43  ;;  %v1157_v2 = vrot.slane %v29211_v14, 3  ;;  %v1166_v45 = vrot.slane %v29214_v49, 3  ;;  %v1169_v16 = vrot.slane %v29215_v54, 4 }
  0x99   : > { %v29218_v14 = vshll.u32 %v23419_v39, 16  ;;  %v1175_v54 = vrot.slane %v29217_v32, 3  ;;  %v29224_v32 = vshll.u32 %v23483_v40, 16 }
  0x9a   : > { %v23765_v58 = vsel %vm1082_vm3, %v1134_v8, %v1143_v25  ;;  %v23772_v43 = vsel %vm1082_vm3, %v1143_v25, %v1152_v28  ;;  %v1161_v8 = vor.u32 %v1160_v19, %v1157_v2  ;;  %v1170_v10 = vor.u32 %v1169_v16, %v1166_v45 }
  0x9b   : > { %29821 = vst [vmem:[#allocation21_spill] sm:$0xff] %v23765_v58  ;;  %29822 = vst [vmem:[#allocation22_spill] sm:$0xff] %v23772_v43  ;;  %v29219_v25 = vshrl.u32 %v23451_v61, 16  ;;  %v1178_v44 = vrot.slane %v29218_v14, 4  ;;  %v1187_v45 = vrot.slane %v29221_v60, 4  ;;  %v29223_v16 = vshrl.u32 %v23483_v40, 16 }
  0x9c   : > { %v23787_v49 = vsel %vm1082_vm3, %v1152_v28, %v1161_v8  ;;  %v23794_v19 = vsel %vm1082_vm3, %v1161_v8, %v1170_v10  ;;  %v29226_v8 = vshrl.u32 %v23488_v42, 16  ;;  %v1196_v53 = vrot.slane %v29224_v32, 4 }
  0x9d   : > { %19454 = vmatmul.mubr.msk.bf16.gmra.mrb[4].mxu0 %vm323_vm2, %v23743_v26  ;;  %29823 = vst [vmem:[#allocation23_spill] sm:$0xff] %v23787_v49  ;;  %29824 = vst [vmem:[#allocation24_spill] sm:$0xff] %v23794_v19  ;;  %v1184_v2 = vrot.slane %v29219_v25, 3  ;;  %v1179_v28 = vor.u32 %v1178_v44, %v1175_v54  ;;  %v29228_v25 = vshll.u32 %v23488_v42, 16  ;;  %v1193_v60 = vrot.slane %v29223_v16, 3 }
  0x9e   : > { %19457 = vmatprep.mubr.msk.bf16.mxu0 %vm323_vm2, %v23750_v30  ;;  %v1202_v54 = vrot.slane %v29226_v8, 3  ;;  %v29233_v16 = vshll.u32 %v23523_v46, 16  ;;  %v18427_v8 = vld [vmem:[%s23200_s17 + $0x78] sm:$0xff]  }
  0x9f   : > { %v1188_v14 = vor.u32 %v1187_v45, %v1184_v2  ;;  %v23809_v6 = vsel %vm1082_vm3, %v1170_v10, %v1179_v28  ;;  %v1205_v2 = vrot.slane %v29228_v25, 4  ;;  %v1197_v10 = vor.u32 %v1196_v53, %v1193_v60  ;;  %v22926_v60 = vld [vmem:[%s29178_s0] ss:$0 sm:$0xff] }
  0xa0   : > { %29825 = vst [vmem:[#allocation25_spill] sm:$0xff] %v23809_v6  ;;  %v29231_v45 = vshrl.u32 %v23523_v46, 16  ;;  %v18347_v1 = vunpack.c.l.bf16 %v18427_v8  ;;  %v1214_v53 = vrot.slane %v29233_v16, 4  ;;  %v29239_v16 = vshll.u32 %v23549_v27, 16 }
  0xa1   : > { %v23816_v44 = vsel %vm1082_vm3, %v1179_v28, %v1188_v14  ;;  %v1206_v32 = vor.u32 %v1205_v2, %v1202_v54  ;;  %v29234_v28 = vshrl.u32 %v23544_v63, 16  ;;  %v23832_v25 = vsel %vm1082_vm3, %v1188_v14, %v1197_v10 }
  0xa2   : > { %29826 = vst [vmem:[#allocation26_spill] sm:$0xff] %v23816_v44  ;;  %29827 = vst [vmem:[#allocation27_spill] sm:$0xff] %v23832_v25  ;;  %v1211_v62 = vrot.slane %v29231_v45, 3  ;;  %v597_v54 = vmul.f32 %v22926_v60, %v18347_v1  ;;  %v1223_v14 = vrot.slane %v29235_v13, 4  ;;  %v22927_v45 = vld [vmem:[%s29178_s0 + $0x1] ss:$0 sm:$0xff] }
  0xa3   : > { %v23842_v2 = vsel %vm1082_vm3, %v1197_v10, %v1206_v32  ;;  %v1220_v33 = vrot.slane %v29234_v28, 3  ;;  %v29238_v10 = vshrl.u32 %v23549_v27, 16  ;;  %v29241_v13 = vshrl.u32 %v23586_v15, 16 }
  0xa4   : > { %29828 = vst [vmem:[#allocation28_spill] sm:$0xff] %v23842_v2  ;;  %v1215_v1 = vor.u32 %v1214_v53, %v1211_v62  ;;  %v1232_v62 = vrot.slane %v29239_v16, 4  ;;  %v18348_v16 = vunpack.c.h.bf16 %v18427_v8 }
  0xa5   : > { %19458 = vmatmul.mubr.msk.bf16.gmra.mrb[8].mxu0 %vm323_vm2, %v23765_v58  ;;  %v1224_v28 = vor.u32 %v1223_v14, %v1220_v33  ;;  %v29250_v14 = vshll.u32 %v23597_v3, 16 }
  0xa6   : > { %19461 = vmatprep.mubr.msk.bf16.mxu0 %vm323_vm2, %v23772_v43 }
  0xa7   : > { %v23868_v53 = vsel %vm1082_vm3, %v1215_v1, %v1224_v28  ;;  %v1250_v43 = vrot.slane %v29250_v14, 4  ;;  %v29257_v14 = vshll.u32 %v23641_v18, 16 }
  0xa8   : > { %29830 = vst [vmem:[#allocation30_spill] sm:$0xff] %v23868_v53 }
  0xad   : > { %19462 = vmatmul.mubr.msk.bf16.gmra.mrb[12].mxu0 %vm323_vm2, %v23787_v49 }
  0xae   : > { %19465 = vmatprep.mubr.msk.bf16.mxu0 %vm323_vm2, %v23794_v19  ;;  %v29251_v19 = vshrl.u32 %v23315_v55, 16 }
  0xb5   : > { %19466 = vmatmul.mubr.msk.bf16.gmra.mrb[16].mxu0 %vm323_vm2, %v23809_v6  ;;  %v29242_v6 = vshll.u32 %v23586_v15, 16 }
  0xb6   : > { %19469 = vmatprep.mubr.msk.bf16.mxu0 %vm323_vm2, %v23816_v44  ;;  %v635_v44 = vadd.f32 %v22927_v45, %v597_v54  ;;  %v23861_v54 = vsel %vm1082_vm3, %v1206_v32, %v1215_v1  ;;  %v29247_v32 = vshrl.u32 %v23597_v3, 16 }
  0xb7   : > { %29829 = vst [vmem:[#allocation29_spill] sm:$0xff] %v23861_v54  ;;  %v1241_v33 = vrot.slane %v29242_v6, 4  ;;  %v29252_v6 = vshll.u32 %v23315_v55, 16 }
  0xb8   : > { %668 = vst.msk [vmem:[#allocation2 + $0x199] sm:$0xff] %vm323_vm2, %v635_v44  ;;  %v1238_v44 = vrot.slane %v29241_v13, 3  ;;  %v29249_v13 = vshll.u32 %v23600_v38, 16  ;;  %v1247_v49 = vrot.slane %v29247_v32, 3  ;;  %v23907_v32 = vld [vmem:[%s23205_s20 + $0x78] sm:$0xff]  }
  0xb9   : > { %v2143_v8 = vrot.slane %v29252_v6, 4 }
  0xba   : > { %v1242_v1 = vor.u32 %v1241_v33, %v1238_v44 }
  0xbd   : > { %19470 = vmatmul.mubr.msk.bf16.gmra.mrb[20].mxu0 %vm323_vm2, %v23832_v25  ;;  %v1229_v25 = vrot.slane %v29238_v10, 3 }
  0xbe   : > { %19473 = vmatprep.mubr.msk.bf16.mxu0 %vm323_vm2, %v23842_v2  ;;  %v29248_v2 = vshrl.u32 %v23600_v38, 16 }
  0xbf   : > { %v1233_v10 = vor.u32 %v1232_v62, %v1229_v25  ;;  %v2142_v62 = vrot.slane %v29251_v19, 3  ;;  %v23920_v19 = vld [vmem:[%s29178_s0 + $0x2] ss:$0 sm:$0xff] }
  0xc1   : > { %v23889_v25 = vsel %vm1082_vm3, %v1224_v28, %v1233_v10  ;;  %v23896_v33 = vsel %vm1082_vm3, %v1233_v10, %v1242_v1  ;;  %v29253_v28 = vshrl.u32 %v23623_v57, 16  ;;  %v29256_v10 = vshll.u32 %v23623_v57, 16 }
  0xc2   : > { %29831 = vst [vmem:[#allocation31_spill] sm:$0xff] %v23889_v25  ;;  %29832 = vst [vmem:[#allocation32_spill] sm:$0xff] %v23896_v33 }
  0xc5   : > { %19474 = vmatmul.mubr.msk.bf16.gmra.mrb[24].mxu0 %vm323_vm2, %v23861_v54  ;;  %v598_v54 = vmul.f32 %v22926_v60, %v18348_v16  ;;  %v1256_v16 = vrot.slane %v29248_v2, 3  ;;  %v1259_v60 = vrot.slane %v29249_v13, 4  ;;  %v23913_v2 = vor.u32 %v2143_v8, %v2142_v62  ;;  %v23933_v62 = vld [vmem:[%s29178_s0 + $0x3] ss:$0 sm:$0xff] }
  0xc6   : > { %19477 = vmatprep.mubr.msk.bf16.mxu0 %vm323_vm2, %v23868_v53  ;;  %v1268_v8 = vrot.slane %v29256_v10, 4 }
  0xc7   : > { %v636_v44 = vadd.f32 %v22927_v45, %v598_v54  ;;  %v1251_v45 = vor.u32 %v1250_v43, %v1247_v49  ;;  %v18411_v54 = vunpack.c.l.bf16 %v23907_v32  ;;  %v1260_v13 = vor.u32 %v1259_v60, %v1256_v16 }
  0xc8   : > { %v1265_v43 = vrot.slane %v29253_v28, 3  ;;  %v23943_v28 = vld [vmem:[#allocation2 + $0x198] sm:$0xff] }
  0xc9   : > { %669 = vst.msk [vmem:[#allocation2 + $0x1a1] sm:$0xff] %vm323_vm2, %v636_v44  ;;  %v29255_v44 = vshrl.u32 %v23641_v18, 16  ;;  %v8919_v6 = vmul.f32 %v23920_v19, %v18411_v54  ;;  %v23924_v49 = vsel %vm1082_vm3, %v1242_v1, %v1251_v45  ;;  %v23937_v60 = vsel %vm1082_vm3, %v1251_v45, %v1260_v13 }
  0xca   : > { %29833 = vst [vmem:[#allocation33_spill] sm:$0xff] %v23924_v49  ;;  %29834 = vst [vmem:[#allocation34_spill] sm:$0xff] %v23937_v60  ;;  %v1277_v54 = vrot.slane %v29257_v14, 4  ;;  %v29261_v45 = vshrl.u32 %v23644_v52, 16  ;;  %v29265_v14 = vshrl.u32 %v23653_v12, 16 }
  0xcb   : > { %v8957_v16 = vadd.f32 %v23933_v62, %v8919_v6  ;;  %v1274_v1 = vrot.slane %v29255_v44, 3  ;;  %v1269_v6 = vor.u32 %v1268_v8, %v1265_v43  ;;  %v29262_v44 = vshll.u32 %v23644_v52, 16 }
  0xcc   : > { %v750_v43 = vpack.c.bf16 %v23649_v20, %v23649_v20 }
  0xcd   : > { %19478 = vmatmul.mubr.msk.bf16.gmra.mrb[28].mxu0 %vm323_vm2, %v23889_v25  ;;  %v1278_v10 = vor.u32 %v1277_v54, %v1274_v1  ;;  %v29267_v25 = vshll.u32 %v23653_v12, 16  ;;  %v23957_v53 = vsel %vm1082_vm3, %v1260_v13, %v1269_v6  ;;  %v1292_v1 = vrot.slane %v29265_v14, 3  ;;  %v29853_v12 = vld [vmem:[#allocation13_spill] sm:$0xff] }
  0xce   : > { %19481 = vmatprep.mubr.msk.bf16.mxu0 %vm323_vm2, %v23896_v33  ;;  %29835 = vst [vmem:[#allocation35_spill] sm:$0xff] %v23957_v53 }
  0xcf   : > { %v23966_v8 = vsel %vm1082_vm3, %v1269_v6, %v1278_v10  ;;  %v1295_v54 = vrot.slane %v29267_v25, 4  ;;  %v1611_v25 = vshrl.u32 %v23215_v24, 16 }
  0xd0   : > { %v23945_v33 = vld [vmem:[#allocation2 + $0x1a0] sm:$0xff]  ;;  %29836 = vst [vmem:[#allocation36_spill] sm:$0xff] %v23966_v8 }
  0xd1   : > { %8989 = vst.msk [vmem:[#allocation2 + $0x199] sm:$0xff] %vm323_vm2, %v8957_v16  ;;  %v1283_v16 = vrot.slane %v29261_v45, 3  ;;  %v1299_v45 = vshrl.u32 %v750_v43, 16  ;;  %v23977_v58 = vor.u32 %v1295_v54, %v1292_v1 }
  0xd3   : > { %29837 = vst [vmem:[#allocation37_spill] sm:$0xff] %v23977_v58  ;;  %v1301_v14 = vrot.slane %v1299_v45, 3 }
  0xd5   : > { %19482 = vmatmul.mubr.msk.bf16.gmra.mrb[32].mxu0 %vm323_vm2, %v23924_v49  ;;  %v1286_v49 = vrot.slane %v29262_v44, 4  ;;  %v1302_v44 = vshll.u32 %v750_v43, 16 }
  0xd6   : > { %19485 = vmatprep.mubr.msk.bf16.mxu0 %vm323_vm2, %v23937_v60  ;;  %v1613_v60 = vshll.u32 %v23215_v24, 16  ;;  %v29841_v24 = vld [vmem:[#allocation6_spill] sm:$0xff] }
  0xd7   : > { %v1287_v13 = vor.u32 %v1286_v49, %v1283_v16  ;;  %v1304_v30 = vrot.slane %v1302_v44, 4  ;;  %v29275_v54 = vshrl.u32 %v29841_v24, 16  ;;  %v29873_v52 = vshll.u32 %v29841_v24, 16 }
  0xd8   : > { %v1615_v26 = vrot.slane %v1613_v60, 1  ;;  %v29272_v60 = vshll.u32 %v29841_v24, 16 }
  0xd9   : > { %v23980_v6 = vsel %vm1082_vm3, %v1278_v10, %v1287_v13  ;;  %v1305_v16 = vor.u32 %v1304_v30, %v1301_v14  ;;  %v2139_v18 = vrot.slane %v29873_v52, 4 }
  0xda   : > { %29838 = vst [vmem:[#allocation38_spill] sm:$0xff] %v23980_v6  ;;  %v1616_v10 = vor.u32 %v1615_v26, %v1611_v25  ;;  %v1626_v26 = vrot.slane %v29272_v60, 1  ;;  %v29842_v25 = vshll.u32 %v23315_v55, 16 }
  0xdb   : > { %v1306_v45 = vsel %vm1082_vm3, %v23977_v58, %v1305_v16  ;;  %v17294_v16 = vld [vmem:[%s29182_s4 + $0x8] sm:$0x3] }
  0xdc   : > { %v1630_v14 = vor.u32 %v29275_v54, %v1626_v26 }
  0xdd   : > { %19486 = vmatmul.mubr.msk.bf16.gmra.mrb[36].mxu0 %vm323_vm2, %v23957_v53  ;;  %v23985_v53 = vsel %vm1082_vm3, %v1287_v13, %v23977_v58  ;;  %v1633_v13 = vrot.slane %v29842_v25, 1 }
  0xde   : > { %19489 = vmatprep.mubr.msk.bf16.mxu0 %vm323_vm2, %v23966_v8  ;;  %29839 = vst [vmem:[#allocation39_spill] sm:$0xff] %v23985_v53  ;;  %v29840_v8 = vld [vmem:[#allocation5_spill] sm:$0xff] }
  0xdf   : > { %v29271_v49 = vshll.u32 %v29840_v8, 16  ;;  %v29273_v43 = vshrl.u32 %v29840_v8, 16  ;;  %v1634_v60 = vsel %vm1610_vm4, %v1630_v14, %v1633_v13 }
  0xe1   : > { %v1619_v44 = vrot.slane %v29271_v49, 1 }
  0xe3   : > { %v1620_v1 = vsel %vm1610_vm4, %v1616_v10, %v1619_v44  ;;  %v1623_v30 = vor.u32 %v29273_v43, %v1619_v44  ;;  %v29843_v10 = vld [vmem:[#allocation8_spill] sm:$0xff]  ;;  %v29844_v43 = vld [vmem:[#allocation9_spill] sm:$0xff] }
  0xe4   : > { %v29279_v44 = vshrl.u32 %v29843_v10, 16  ;;  %v29875_v52 = vshrl.u32 %v29843_v10, 16 }
  0xe5   : > { %19490 = vmatmul.mubr.msk.bf16.gmra.mrb[40].mxu0 %vm323_vm2, %v23980_v6  ;;  %v1627_v49 = vsel %vm1610_vm4, %v1623_v30, %v1626_v26  ;;  %v29845_v26 = vshrl.u32 %v23315_v55, 16 }
  0xe6   : > { %19493 = vmatprep.mubr.msk.bf16.mxu0 %vm323_vm2, %v23985_v53  ;;  %v24019_v53 = vand.u32 %v17294_v16, %v23066_v4  ;;  %v29846_v16 = vld [vmem:[#allocation10_spill] sm:$0xff] }
  0xe7   : > { %v1637_v30 = vor.u32 %v29845_v26, %v1633_v13  ;;  %v29288_v13 = vshrl.u32 %v29846_v16, 16  ;;  %v29849_v26 = vld [vmem:[#allocation11_spill] sm:$0xff] }
  0xed   : > { %19494 = vmatmul.mubr.msk.bf16.gmra.mrb[44].mxu0 %vm323_vm2, %v1306_v45  ;;  %v29277_v45 = vshll.u32 %v29843_v10, 16 }
  0xee   : > { %19499 = vmatprep.mubr.msk.bf16.mxu0 %vm323_vm2, %v1620_v1  ;;  %v29278_v1 = vshll.u32 %v29844_v43, 16 }
  0xef   : > { %v1640_v25 = vrot.slane %v29277_v45, 1  ;;  %v29287_v45 = vshll.u32 %v29849_v26, 16 }
  0xf0   : > { %v1647_v54 = vrot.slane %v29278_v1, 1 }
  0xf1   : > { %v1644_v14 = vor.u32 %v29279_v44, %v1640_v25  ;;  %v24035_v58 = vsel %vm1610_vm4, %v1637_v30, %v1640_v25  ;;  %v29850_v44 = vld [vmem:[#allocation12_spill] sm:$0xff] }
  0xf2   : > { %29847 = vst [vmem:[#allocation5_spill] sm:$0xff] %v24035_v58  ;;  %v29292_v55 = vshll.u32 %v29850_v44, 16 }
  0xf5   : > { %19500 = vmatmul.mubr.msk.bf16.vlgmr.msra.gmra.mrb[0].mxu0 %vm323_vm2, %v1627_v49  ;;  %v29283_v49 = vshll.u32 %v29846_v16, 16 }
  0xf6   : > { %19548 = vmatpush3.bf16.msra.mxu0 %v23732_v37  ;;  %19503 = vmatprep.mubr.msk.bf16.mxu0 %vm323_vm2, %v1634_v60  ;;  %v29289_v37 = vshrl.u32 %v29844_v43, 16  ;;  %v24039_v60 = vsel %vm1610_vm4, %v1644_v14, %v1647_v54  ;;  %v1661_v14 = vrot.slane %v29287_v45, 1  ;;  %v1668_v45 = vrot.slane %v29292_v55, 1 }
  0xf7   : > { %19597 = vmatprep.subr.bf16.mxu0 %v24019_v53  ;;  %29848 = vst [vmem:[#allocation6_spill] sm:$0xff] %v24039_v60  ;;  %v1654_v1 = vrot.slane %v29283_v49, 1 }
  0xf8   : > { %v1651_v25 = vor.u32 %v29289_v37, %v1647_v54  ;;  %v29294_v54 = vshll.u32 %v29853_v12, 16 }
  0xf9   : > { %v1658_v30 = vor.u32 %v29288_v13, %v1654_v1  ;;  %v29854_v13 = vld [vmem:[#allocation14_spill] sm:$0xff] }
  0xfa   : > { %v24057_v6 = vsel %vm1610_vm4, %v1651_v25, %v1654_v1  ;;  %v29298_v37 = vshll.u32 %v29854_v13, 16 }
  0xfb   : > { %29851 = vst [vmem:[#allocation8_spill] sm:$0xff] %v24057_v6  ;;  %v24061_v49 = vsel %vm1610_vm4, %v1658_v30, %v1661_v14  ;;  %v1675_v30 = vrot.slane %v29294_v54, 1 }
  0xfc   : > { %29852 = vst [vmem:[#allocation9_spill] sm:$0xff] %v24061_v49  ;;  %v1682_v54 = vrot.slane %v29298_v37, 1 }
  0xfd   : > { %19504 = vmatmul.mubr.msk.bf16.gmra.mrb[4].mxu0 %vm323_vm2, %v24035_v58  ;;  %v29296_v58 = vshrl.u32 %v29849_v26, 16 }
  0xfe   : > { %19507 = vmatprep.mubr.msk.bf16.mxu0 %vm323_vm2, %v24039_v60  ;;  %v29295_v60 = vshrl.u32 %v29850_v44, 16 }
  0xff   : > { %v1665_v1 = vor.u32 %v29296_v58, %v1661_v14  ;;  %v29300_v14 = vshll.u32 %v23578_v7, 16 }
 0x100   : > { %v1672_v25 = vor.u32 %v29295_v60, %v1668_v45  ;;  %v29304_v60 = vshll.u32 %v23582_v9, 16 }
 0x101   : > { %v24079_v20 = vsel %vm1610_vm4, %v1665_v1, %v1668_v45 }
 0x102   : > { %29855 = vst [vmem:[#allocation10_spill] sm:$0xff] %v24079_v20  ;;  %v24083_v55 = vsel %vm1610_vm4, %v1672_v25, %v1675_v30  ;;  %v1689_v25 = vrot.slane %v29300_v14, 1  ;;  %v1696_v14 = vrot.slane %v29304_v60, 1 }
 0x103   : > { %29856 = vst [vmem:[#allocation11_spill] sm:$0xff] %v24083_v55 }
 0x105   : > { %19508 = vmatmul.mubr.msk.bf16.gmra.mrb[8].mxu0 %vm323_vm2, %v24057_v6  ;;  %v29302_v6 = vshrl.u32 %v29853_v12, 16 }
 0x106   : > { %19511 = vmatprep.mubr.msk.bf16.mxu0 %vm323_vm2, %v24061_v49  ;;  %v29301_v49 = vshrl.u32 %v29854_v13, 16 }
 0x107   : > { %v1679_v45 = vor.u32 %v29302_v6, %v1675_v30  ;;  %v29306_v30 = vshll.u32 %v23633_v34, 16 }
 0x108   : > { %v1686_v1 = vor.u32 %v29301_v49, %v1682_v54  ;;  %v29310_v49 = vshll.u32 %v23637_v29, 16 }
 0x109   : > { %v24101_v58 = vsel %vm1610_vm4, %v1679_v45, %v1682_v54 }
 0x10a   : > { %29857 = vst [vmem:[#allocation12_spill] sm:$0xff] %v24101_v58  ;;  %v24105_v37 = vsel %vm1610_vm4, %v1686_v1, %v1689_v25  ;;  %v1703_v1 = vrot.slane %v29306_v30, 1  ;;  %v1710_v30 = vrot.slane %v29310_v49, 1 }
 0x10b   : > { %29858 = vst [vmem:[#allocation13_spill] sm:$0xff] %v24105_v37 }
 0x10d   : > { %19512 = vmatmul.mubr.msk.bf16.gmra.mrb[12].mxu0 %vm323_vm2, %v24079_v20  ;;  %v29308_v20 = vshrl.u32 %v23578_v7, 16 }
 0x10e   : > { %19515 = vmatprep.mubr.msk.bf16.mxu0 %vm323_vm2, %v24083_v55  ;;  %v29307_v55 = vshrl.u32 %v23582_v9, 16 }
 0x10f   : > { %v1693_v54 = vor.u32 %v29308_v20, %v1689_v25  ;;  %v29312_v25 = vshll.u32 %v23659_v47, 16 }
 0x110   : > { %v1700_v45 = vor.u32 %v29307_v55, %v1696_v14  ;;  %v29316_v55 = vshll.u32 %v23663_v36, 16 }
 0x111   : > { %v24123_v6 = vsel %vm1610_vm4, %v1693_v54, %v1696_v14 }
 0x112   : > { %29859 = vst [vmem:[#allocation14_spill] sm:$0xff] %v24123_v6  ;;  %v24127_v60 = vsel %vm1610_vm4, %v1700_v45, %v1703_v1  ;;  %v1717_v45 = vrot.slane %v29312_v25, 1  ;;  %v1724_v25 = vrot.slane %v29316_v55, 1  ;;  %v29325_v55 = vshrl.u32 %v23671_v59, 16 }
 0x113   : > { %29860 = vst [vmem:[#allocation40_spill] sm:$0xff] %v24127_v60 }
 0x115   : > { %19516 = vmatmul.mubr.msk.bf16.gmra.mrb[16].mxu0 %vm323_vm2, %v24101_v58  ;;  %v29314_v58 = vshrl.u32 %v23633_v34, 16 }
 0x116   : > { %19519 = vmatprep.mubr.msk.bf16.mxu0 %vm323_vm2, %v24105_v37  ;;  %v29313_v37 = vshrl.u32 %v23637_v29, 16 }
 0x117   : > { %v1707_v14 = vor.u32 %v29314_v58, %v1703_v1  ;;  %v29319_v1 = vshll.u32 %v23671_v59, 16  ;;  %v18412_v58 = vunpack.c.h.bf16 %v23907_v32 }
 0x118   : > { %v1714_v54 = vor.u32 %v29313_v37, %v1710_v30  ;;  %v29322_v37 = vshll.u32 %v23673_v41, 16 }
 0x119   : > { %v24145_v20 = vsel %vm1610_vm4, %v1707_v14, %v1710_v30  ;;  %v8920_v32 = vmul.f32 %v23920_v19, %v18412_v58  ;;  %v29332_v19 = vshrl.u32 %v23679_v5, 16 }
 0x11a   : > { %29861 = vst [vmem:[#allocation41_spill] sm:$0xff] %v24145_v20  ;;  %v24149_v49 = vsel %vm1610_vm4, %v1714_v54, %v1717_v45  ;;  %v1731_v54 = vrot.slane %v29319_v1, 1  ;;  %v1738_v1 = vrot.slane %v29322_v37, 1  ;;  %v29326_v37 = vshll.u32 %v23681_v51, 16 }
 0x11b   : > { %29862 = vst [vmem:[#allocation42_spill] sm:$0xff] %v24149_v49 }
 0x11d   : > { %19520 = vmatmul.mubr.msk.bf16.gmra.mrb[20].mxu0 %vm323_vm2, %v24123_v6  ;;  %v29318_v6 = vshrl.u32 %v23659_v47, 16 }
 0x11e   : > { %19523 = vmatprep.mubr.msk.bf16.mxu0 %vm323_vm2, %v24127_v60  ;;  %v29320_v60 = vshrl.u32 %v23663_v36, 16 }
 0x11f   : > { %v1721_v30 = vor.u32 %v29318_v6, %v1717_v45  ;;  %v29323_v45 = vshrl.u32 %v23673_v41, 16  ;;  %v29324_v6 = vshll.u32 %v23679_v5, 16 }
 0x120   : > { %v1728_v14 = vor.u32 %v29320_v60, %v1724_v25  ;;  %v8958_v60 = vadd.f32 %v23933_v62, %v8920_v32  ;;  %v1752_v62 = vrot.slane %v29326_v37, 1  ;;  %v29335_v37 = vshrl.u32 %v23689_v48, 16 }
 0x125   : > { %19524 = vmatmul.mubr.msk.bf16.gmra.mrb[24].mxu0 %vm323_vm2, %v24145_v20  ;;  %v24168_v20 = vsel %vm1610_vm4, %v1721_v30, %v1724_v25  ;;  %v1735_v25 = vor.u32 %v29325_v55, %v1731_v54  ;;  %v1742_v30 = vor.u32 %v29323_v45, %v1738_v1  ;;  %v29331_v45 = vshrl.u32 %v23681_v51, 16 }
 0x126   : > { %19527 = vmatprep.mubr.msk.bf16.mxu0 %vm323_vm2, %v24149_v49  ;;  %29863 = vst [vmem:[#allocation43_spill] sm:$0xff] %v24168_v20  ;;  %v24172_v49 = vsel %vm1610_vm4, %v1728_v14, %v1731_v54  ;;  %v1745_v14 = vrot.slane %v29324_v6, 1  ;;  %v29329_v6 = vshll.u32 %v23687_v0, 16  ;;  %v29334_v55 = vshrl.u32 %v23687_v0, 16 }
 0x127   : > { %29864 = vst [vmem:[#allocation44_spill] sm:$0xff] %v24172_v49  ;;  %v24195_v58 = vsel %vm1610_vm4, %v1735_v25, %v1738_v1  ;;  %v1756_v1 = vor.u32 %v29331_v45, %v1752_v62  ;;  %v29330_v25 = vshll.u32 %v23689_v48, 16 }
 0x128   : > { %29865 = vst [vmem:[#allocation45_spill] sm:$0xff] %v24195_v58  ;;  %v24199_v54 = vsel %vm1610_vm4, %v1742_v30, %v1745_v14  ;;  %v1759_v32 = vrot.slane %v29329_v6, 1 }
 0x129   : > { %29866 = vst [vmem:[#allocation46_spill] sm:$0xff] %v24199_v54 }
 0x12d   : > { %19528 = vmatmul.mubr.msk.bf16.gmra.mrb[28].mxu0 %vm323_vm2, %v24168_v20  ;;  %v24190_v20 = vld [vmem:[#allocation2 + $0x1a8] sm:$0xff] }
 0x12e   : > { %19531 = vmatprep.mubr.msk.bf16.mxu0 %vm323_vm2, %v24172_v49  ;;  %8990 = vst.msk [vmem:[#allocation2 + $0x1a1] sm:$0xff] %vm323_vm2, %v8958_v60  ;;  %v1749_v60 = vor.u32 %v29332_v19, %v1745_v14  ;;  %v1766_v14 = vrot.slane %v29330_v25, 1  ;;  %v29343_v19 = vshrl.u32 %v23700_v22, 16 }
 0x130   : > { %v24217_v30 = vsel %vm1610_vm4, %v1749_v60, %v1752_v62  ;;  %v1763_v62 = vor.u32 %v29334_v55, %v1759_v32  ;;  %v1770_v60 = vor.u32 %v29335_v37, %v1766_v14  ;;  %v29871_v37 = vshll.u32 %v29840_v8, 16 }
 0x131   : > { %29867 = vst [vmem:[#allocation47_spill] sm:$0xff] %v24217_v30 }
 0x132   : > { %v24240_v25 = vsel %vm1610_vm4, %v1763_v62, %v1766_v14 }
 0x135   : > { %19532 = vmatmul.mubr.msk.bf16.gmra.mrb[32].mxu0 %vm323_vm2, %v24195_v58  ;;  %v24223_v58 = vsel %vm1610_vm4, %v1756_v1, %v1759_v32  ;;  %v1607_v1 = vpack.c.bf16 %v23943_v28, %v23943_v28  ;;  %v29870_v32 = vshrl.u32 %v29840_v8, 16 }
 0x136   : > { %19535 = vmatprep.mubr.msk.bf16.mxu0 %vm323_vm2, %v24199_v54  ;;  %v29337_v54 = vshll.u32 %v23700_v22, 16  ;;  %29868 = vst [vmem:[#allocation48_spill] sm:$0xff] %v24223_v58 }
 0x137   : > { %v2135_v55 = vrot.slane %v29870_v32, 3 }
 0x138   : > { %v1773_v6 = vrot.slane %v29337_v54, 1  ;;  %v29872_v54 = vshrl.u32 %v29841_v24, 16  ;;  %v2146_v24 = vrot.slane %v29875_v52, 3  ;;  %v29880_v52 = vshll.u32 %v29846_v16, 16 }
 0x13a   : > { %v24243_v45 = vsel %vm1610_vm4, %v1770_v60, %v1773_v6  ;;  %v2138_v49 = vrot.slane %v29872_v54, 3  ;;  %v24260_v14 = vor.u32 %v29343_v19, %v1773_v6 }
 0x13b   : > { %29869 = vst [vmem:[#allocation49_spill] sm:$0xff] %v24243_v45 }
 0x13c   : > { %29874 = vst [vmem:[#allocation50_spill] sm:$0xff] %v24260_v14  ;;  %v2140_v8 = vor.u32 %v2139_v18, %v2138_v49  ;;  %v29877_v49 = vshrl.u32 %v29844_v43, 16 }
 0x13d   : > { %19536 = vmatmul.mubr.msk.bf16.gmra.mrb[36].mxu0 %vm323_vm2, %v24217_v30  ;;  %v2136_v30 = vrot.slane %v29871_v37, 4 }
 0x13e   : > { %19539 = vmatprep.mubr.msk.bf16.mxu0 %vm323_vm2, %v24223_v58  ;;  %v1779_v58 = vshll.u32 %v1607_v1, 16  ;;  %v29876_v1 = vshll.u32 %v29843_v10, 16  ;;  %v2145_v18 = vsel %vm1082_vm3, %v2140_v8, %v23913_v2 }
 0x13f   : > { %v2137_v60 = vor.u32 %v2136_v30, %v2135_v55  ;;  %v17319_v55 = vld [vmem:[%s29182_s4 + $0xa] sm:$0x3]  ;;  %v29878_v30 = vshll.u32 %v29844_v43, 16 }
 0x140   : > { %v1781_v62 = vrot.slane %v1779_v58, 1  ;;  %v2147_v32 = vrot.slane %v29876_v1, 4  ;;  %v2150_v58 = vrot.slane %v29877_v49, 3  ;;  %v24287_v1 = vand.u32 %v17319_v55, %v23066_v4 }
 0x141   : > { %v2141_v54 = vsel %vm1082_vm3, %v2137_v60, %v2140_v8  ;;  %v29881_v49 = vshrl.u32 %v29849_v26, 16 }
 0x142   : > { %v1782_v37 = vsel %vm1610_vm4, %v24260_v14, %v1781_v62  ;;  %v2148_v6 = vor.u32 %v2147_v32, %v2146_v24  ;;  %v2151_v62 = vrot.slane %v29878_v30, 4  ;;  %v2155_v24 = vrot.slane %v29880_v52, 4 }
 0x143   : > { %v2158_v30 = vrot.slane %v29881_v49, 3  ;;  %v29886_v49 = vshll.u32 %v29853_v12, 16 }
 0x144   : > { %v2149_v60 = vsel %vm1082_vm3, %v23913_v2, %v2148_v6  ;;  %v2152_v8 = vor.u32 %v2151_v62, %v2150_v58 }
 0x145   : > { %19540 = vmatmul.mubr.msk.bf16.gmra.mrb[40].mxu0 %vm323_vm2, %v24240_v25 }
 0x146   : > { %19543 = vmatprep.mubr.msk.bf16.mxu0 %vm323_vm2, %v24243_v45  ;;  %v2153_v2 = vsel %vm1082_vm3, %v2148_v6, %v2152_v8 }
 0x14d   : > { %19544 = vmatmul.mubr.msk.bf16.gmra.mrb[44].mxu0 %vm323_vm2, %v1782_v37  ;;  %v29879_v37 = vshrl.u32 %v29846_v16, 16 }
 0x14e   : > { %19549 = vmatprep.mubr.msk.bf16.mxu0 %vm323_vm2, %v2141_v54 }
 0x14f   : > { %v2154_v54 = vrot.slane %v29879_v37, 3  ;;  %v29882_v37 = vshll.u32 %v29849_v26, 16 }
 0x151   : > { %v2156_v32 = vor.u32 %v2155_v24, %v2154_v54  ;;  %v2159_v52 = vrot.slane %v29882_v37, 4  ;;  %v29885_v54 = vshrl.u32 %v29853_v12, 16 }
 0x153   : > { %v2157_v55 = vsel %vm1082_vm3, %v2152_v8, %v2156_v32  ;;  %v2160_v58 = vor.u32 %v2159_v52, %v2158_v30  ;;  %v2166_v24 = vrot.slane %v29885_v54, 3  ;;  %v2167_v8 = vrot.slane %v29886_v49, 4 }
 0x154   : > { %v29889_v52 = vshrl.u32 %v23578_v7, 16  ;;  %v29891_v49 = vshrl.u32 %v23582_v9, 16 }
 0x155   : > { %19550 = vmatmul.mubr.msk.bf16.vlgmr.msra.gmra.mrb[0].mxu0 %vm323_vm2, %v2145_v18  ;;  %v29883_v18 = vshrl.u32 %v29850_v44, 16  ;;  %v2161_v62 = vsel %vm1082_vm3, %v2156_v32, %v2160_v58 }
 0x156   : > { %19598 = vmatpush3.bf16.msra.mxu0 %v24019_v53  ;;  %19553 = vmatprep.mubr.msk.bf16.mxu0 %vm323_vm2, %v2149_v60  ;;  %v29884_v53 = vshll.u32 %v29850_v44, 16 }
 0x157   : > { %19647 = vmatprep.subr.bf16.mxu0 %v24287_v1  ;;  %v2162_v19 = vrot.slane %v29883_v18, 3  ;;  %v29887_v18 = vshrl.u32 %v29854_v13, 16 }
 0x158   : > { %v2163_v60 = vrot.slane %v29884_v53, 4  ;;  %v29888_v53 = vshll.u32 %v29854_v13, 16 }
 0x159   : > { %v2170_v45 = vrot.slane %v29887_v18, 3  ;;  %v2178_v18 = vrot.slane %v29891_v49, 3 }
 0x15a   : > { %v2164_v6 = vor.u32 %v2163_v60, %v2162_v19  ;;  %v2168_v19 = vor.u32 %v2167_v8, %v2166_v24  ;;  %v29890_v60 = vshll.u32 %v23578_v7, 16  ;;  %v29893_v8 = vshrl.u32 %v23633_v34, 16 }
 0x15c   : > { %v2165_v37 = vsel %vm1082_vm3, %v2160_v58, %v2164_v6  ;;  %v2169_v30 = vsel %vm1082_vm3, %v2164_v6, %v2168_v19  ;;  %v2175_v58 = vrot.slane %v29890_v60, 4  ;;  %v29895_v60 = vshrl.u32 %v23637_v29, 16 }
 0x15d   : > { %19554 = vmatmul.mubr.msk.bf16.gmra.mrb[4].mxu0 %vm323_vm2, %v2153_v2  ;;  %v2171_v2 = vrot.slane %v29888_v53, 4  ;;  %v29892_v53 = vshll.u32 %v23582_v9, 16 }
 0x15e   : > { %19557 = vmatprep.mubr.msk.bf16.mxu0 %vm323_vm2, %v2157_v55  ;;  %v2174_v55 = vrot.slane %v29889_v52, 3  ;;  %v2186_v49 = vrot.slane %v29895_v60, 3 }
 0x15f   : > { %v2172_v32 = vor.u32 %v2171_v2, %v2170_v45  ;;  %v29894_v2 = vshll.u32 %v23633_v34, 16 }
 0x160   : > { %v2176_v45 = vor.u32 %v2175_v58, %v2174_v55 }
 0x161   : > { %v2173_v54 = vsel %vm1082_vm3, %v2168_v19, %v2172_v32  ;;  %v2183_v19 = vrot.slane %v29894_v2, 4  ;;  %v29899_v2 = vshrl.u32 %v23663_v36, 16 }
 0x162   : > { %v2177_v24 = vsel %vm1082_vm3, %v2172_v32, %v2176_v45 }
 0x163   : > { %v2194_v60 = vrot.slane %v29899_v2, 3 }
 0x165   : > { %19558 = vmatmul.mubr.msk.bf16.gmra.mrb[8].mxu0 %vm323_vm2, %v2161_v62  ;;  %v2179_v62 = vrot.slane %v29892_v53, 4  ;;  %v29896_v53 = vshll.u32 %v23637_v29, 16 }
 0x166   : > { %19561 = vmatprep.mubr.msk.bf16.mxu0 %vm323_vm2, %v2165_v37  ;;  %v2182_v37 = vrot.slane %v29893_v8, 3 }
 0x167   : > { %v2180_v6 = vor.u32 %v2179_v62, %v2178_v18  ;;  %v29898_v62 = vshll.u32 %v23659_v47, 16 }
 0x168   : > { %v2184_v55 = vor.u32 %v2183_v19, %v2182_v37 }
 0x169   : > { %v2181_v52 = vsel %vm1082_vm3, %v2176_v45, %v2180_v6  ;;  %v2191_v45 = vrot.slane %v29898_v62, 4  ;;  %v29903_v62 = vshrl.u32 %v23673_v41, 16 }
 0x16a   : > { %v2185_v58 = vsel %vm1082_vm3, %v2180_v6, %v2184_v55 }
 0x16b   : > { %v2202_v2 = vrot.slane %v29903_v62, 3 }
 0x16d   : > { %19562 = vmatmul.mubr.msk.bf16.gmra.mrb[12].mxu0 %vm323_vm2, %v2169_v30  ;;  %v2187_v30 = vrot.slane %v29896_v53, 4  ;;  %v29900_v53 = vshll.u32 %v23663_v36, 16 }
 0x16e   : > { %19565 = vmatprep.mubr.msk.bf16.mxu0 %vm323_vm2, %v2173_v54  ;;  %v29897_v54 = vshrl.u32 %v23659_v47, 16 }
 0x16f   : > { %v2188_v32 = vor.u32 %v2187_v30, %v2186_v49  ;;  %v29902_v30 = vshll.u32 %v23671_v59, 16 }
 0x170   : > { %v2190_v18 = vrot.slane %v29897_v54, 3 }
 0x171   : > { %v2189_v8 = vsel %vm1082_vm3, %v2184_v55, %v2188_v32  ;;  %v2199_v55 = vrot.slane %v29902_v30, 4  ;;  %v29907_v30 = vshrl.u32 %v23681_v51, 16 }
 0x172   : > { %v2192_v37 = vor.u32 %v2191_v45, %v2190_v18 }
 0x173   : > { %v2210_v62 = vrot.slane %v29907_v30, 3 }
 0x174   : > { %v2193_v19 = vsel %vm1082_vm3, %v2188_v32, %v2192_v37 }
 0x175   : > { %19566 = vmatmul.mubr.msk.bf16.gmra.mrb[16].mxu0 %vm323_vm2, %v2177_v24  ;;  %v2195_v24 = vrot.slane %v29900_v53, 4  ;;  %v29904_v53 = vshll.u32 %v23673_v41, 16 }
 0x176   : > { %19569 = vmatprep.mubr.msk.bf16.mxu0 %vm323_vm2, %v2181_v52  ;;  %v29901_v52 = vshrl.u32 %v23671_v59, 16 }
 0x177   : > { %v2196_v6 = vor.u32 %v2195_v24, %v2194_v60  ;;  %v29906_v24 = vshll.u32 %v23679_v5, 16 }
 0x178   : > { %v2198_v49 = vrot.slane %v29901_v52, 3 }
 0x179   : > { %v2197_v54 = vsel %vm1082_vm3, %v2192_v37, %v2196_v6  ;;  %v2207_v37 = vrot.slane %v29906_v24, 4  ;;  %v29911_v24 = vshrl.u32 %v23689_v48, 16 }
 0x17a   : > { %v2200_v18 = vor.u32 %v2199_v55, %v2198_v49 }
 0x17b   : > { %v2218_v30 = vrot.slane %v29911_v24, 3 }
 0x17c   : > { %v2201_v45 = vsel %vm1082_vm3, %v2196_v6, %v2200_v18 }
 0x17d   : > { %19570 = vmatmul.mubr.msk.bf16.gmra.mrb[20].mxu0 %vm323_vm2, %v2185_v58  ;;  %v2203_v58 = vrot.slane %v29904_v53, 4  ;;  %v29908_v53 = vshll.u32 %v23681_v51, 16 }
 0x17e   : > { %19573 = vmatprep.mubr.msk.bf16.mxu0 %vm323_vm2, %v2189_v8  ;;  %v29905_v8 = vshrl.u32 %v23679_v5, 16 }
 0x17f   : > { %v2204_v32 = vor.u32 %v2203_v58, %v2202_v2  ;;  %v29910_v58 = vshll.u32 %v23687_v0, 16 }
 0x180   : > { %v2206_v60 = vrot.slane %v29905_v8, 3 }
 0x181   : > { %v2205_v52 = vsel %vm1082_vm3, %v2200_v18, %v2204_v32  ;;  %v2215_v18 = vrot.slane %v29910_v58, 4  ;;  %v29914_v58 = vshll.u32 %v23700_v22, 16 }
 0x182   : > { %v2208_v49 = vor.u32 %v2207_v37, %v2206_v60  ;;  %v24389_v60 = vpack.c.bf16 %v23945_v33, %v23943_v28 }
 0x183   : > { %v2223_v24 = vrot.slane %v29914_v58, 4 }
 0x184   : > { %v2209_v55 = vsel %vm1082_vm3, %v2204_v32, %v2208_v49 }
 0x185   : > { %19574 = vmatmul.mubr.msk.bf16.gmra.mrb[24].mxu0 %vm323_vm2, %v2193_v19  ;;  %v2211_v19 = vrot.slane %v29908_v53, 4  ;;  %v29912_v53 = vshll.u32 %v23689_v48, 16 }
 0x186   : > { %19577 = vmatprep.mubr.msk.bf16.mxu0 %vm323_vm2, %v2197_v54  ;;  %v29909_v54 = vshrl.u32 %v23687_v0, 16 }
 0x187   : > { %v2212_v6 = vor.u32 %v2211_v19, %v2210_v62  ;;  %v29347_v62 = vshll.u32 %v24389_v60, 16 }
 0x188   : > { %v2214_v2 = vrot.slane %v29909_v54, 3 }
 0x189   : > { %v2213_v8 = vsel %vm1082_vm3, %v2208_v49, %v2212_v6  ;;  %v29913_v49 = vshrl.u32 %v23700_v22, 16 }
 0x18a   : > { %v2216_v32 = vor.u32 %v2215_v18, %v2214_v2  ;;  %v2232_v18 = vrot.slane %v29347_v62, 4 }
 0x18b   : > { %v2222_v54 = vrot.slane %v29913_v49, 3 }
 0x18c   : > { %v2217_v19 = vsel %vm1082_vm3, %v2212_v6, %v2216_v32 }
 0x18d   : > { %19578 = vmatmul.mubr.msk.bf16.gmra.mrb[28].mxu0 %vm323_vm2, %v2201_v45  ;;  %v2219_v45 = vrot.slane %v29912_v53, 4  ;;  %v2132_v53 = vpack.c.bf16 %v24190_v20, %v24190_v20  ;;  %v2224_v6 = vor.u32 %v2223_v24, %v2222_v54  ;;  %v29918_v54 = vshll.u32 %v23290_v31, 16 }
 0x18e   : > { %19581 = vmatprep.mubr.msk.bf16.mxu0 %vm323_vm2, %v2205_v52  ;;  %v29346_v52 = vshrl.u32 %v24389_v60, 16 }
 0x18f   : > { %v2220_v37 = vor.u32 %v2219_v45, %v2218_v30  ;;  %v2239_v30 = vshll.u32 %v2132_v53, 16  ;;  %v2925_v24 = vrot.slane %v29918_v54, 1 }
 0x190   : > { %v2229_v2 = vrot.slane %v29346_v52, 3 }
 0x191   : > { %v2225_v49 = vsel %vm1082_vm3, %v2220_v37, %v2224_v6  ;;  %v2241_v14 = vrot.slane %v2239_v30, 4  ;;  %v29922_v30 = vshll.u32 %v23318_v56, 16 }
 0x192   : > { %v2233_v45 = vor.u32 %v2232_v18, %v2229_v2  ;;  %v29921_v18 = vshll.u32 %v23310_v50, 16 }
 0x195   : > { %19582 = vmatmul.mubr.msk.bf16.gmra.mrb[32].mxu0 %vm323_vm2, %v2209_v55  ;;  %v2221_v55 = vsel %vm1082_vm3, %v2216_v32, %v2220_v37  ;;  %v2234_v32 = vsel %vm1082_vm3, %v2224_v6, %v2233_v45  ;;  %v17344_v37 = vld [vmem:[%s29182_s4 + $0xc] sm:$0x3]  ;;  %v2927_v6 = vrot.slane %v29921_v18, 1 }
 0x196   : > { %19585 = vmatprep.mubr.msk.bf16.mxu0 %vm323_vm2, %v2213_v8  ;;  %v2236_v8 = vshrl.u32 %v2132_v53, 16  ;;  %v29919_v53 = vld [vmem:[#allocation18_spill] sm:$0xff] }
 0x198   : > { %v2238_v58 = vrot.slane %v2236_v8, 3  ;;  %v24478_v8 = vpack.c.bf16 %v24190_v20, %v23945_v33 }
 0x19a   : > { %v2242_v52 = vor.u32 %v2241_v14, %v2238_v58  ;;  %v29915_v14 = vld [vmem:[#allocation15_spill] sm:$0xff] }
 0x19c   : > { %v2243_v62 = vsel %vm1082_vm3, %v2233_v45, %v2242_v52  ;;  %v29917_v52 = vld [vmem:[#allocation17_spill] sm:$0xff]  ;;  %v2930_v45 = vrot.slane %v29922_v30, 1  ;;  %v29929_v30 = vshll.u32 %v23365_v35, 16 }
 0x19d   : > { %19586 = vmatmul.mubr.msk.bf16.gmra.mrb[36].mxu0 %vm323_vm2, %v2217_v19  ;;  %v3400_v19 = vand.u32 %v17344_v37, %v23066_v4  ;;  %v29925_v37 = vshll.u32 %v23343_v17, 16 }
 0x19e   : > { %19589 = vmatprep.mubr.msk.bf16.mxu0 %vm323_vm2, %v2221_v55  ;;  %v29920_v55 = vshrl.u32 %v23290_v31, 16 }
 0x19f   : > { %v2933_v33 = vrot.slane %v29925_v37, 1 }
 0x1a0   : > { %v2926_v2 = vor.u32 %v2925_v24, %v29920_v55 }
 0x1a5   : > { %19590 = vmatmul.mubr.msk.bf16.gmra.mrb[40].mxu0 %vm323_vm2, %v2225_v49  ;;  %v29923_v49 = vshrl.u32 %v23310_v50, 16 }
 0x1a6   : > { %19593 = vmatprep.mubr.msk.bf16.mxu0 %vm323_vm2, %v2234_v32 }
 0x1a7   : > { %v2929_v58 = vor.u32 %v2927_v6, %v29923_v49 }
 0x1a9   : > { %v2931_v54 = vsel %vm1610_vm4, %v2929_v58, %v2930_v45 }
 0x1ad   : > { %19594 = vmatmul.mubr.msk.bf16.gmra.mrb[44].mxu0 %vm323_vm2, %v2243_v62  ;;  %v24464_v62 = vpack.c.bf16 %v23943_v28, %v29917_v52  ;;  %v2928_v28 = vsel %vm1610_vm4, %v2926_v2, %v2927_v6  ;;  %v17369_v52 = vld [vmem:[%s29182_s4 + $0xe] sm:$0x3]  ;;  %v29927_v2 = vshrl.u32 %v23343_v17, 16  ;;  %v29928_v6 = vshrl.u32 %v23349_v23, 16 }
 0x1ae   : > { %19599 = vmatprep.mubr.msk.bf16.mxu0 %vm323_vm2, %v23290_v31  ;;  %v29924_v31 = vshrl.u32 %v23318_v56, 16  ;;  %v24498_v55 = vand.u32 %v17369_v52, %v23066_v4 }
 0x1af   : > { %v2935_v18 = vor.u32 %v2933_v33, %v29927_v2 }
 0x1b0   : > { %v2932_v32 = vor.u32 %v2930_v45, %v29924_v31  ;;  %v2939_v45 = vrot.slane %v29929_v30, 1 }
 0x1b2   : > { %v2934_v24 = vsel %vm1610_vm4, %v2932_v32, %v2933_v33  ;;  %v29932_v32 = vshrl.u32 %v23397_v11, 16  ;;  %v29933_v33 = vshll.u32 %v23414_v21, 16 }
 0x1b4   : > { %v2945_v52 = vrot.slane %v29933_v33, 1  ;;  %v29942_v33 = vshll.u32 %v23523_v46, 16 }
 0x1b5   : > { %19600 = vmatmul.mubr.msk.bf16.vlgmr.msra.gmra.mrb[0].mxu0 %vm323_vm2, %v23310_v50  ;;  %v29926_v50 = vshll.u32 %v23349_v23, 16 }
 0x1b6   : > { %19648 = vmatpush3.bf16.msra.mxu0 %v24287_v1  ;;  %19603 = vmatprep.mubr.msk.bf16.mxu0 %vm323_vm2, %v23318_v56  ;;  %v29916_v1 = vld [vmem:[#allocation16_spill] sm:$0xff] }
 0x1b7   : > { %19697 = vmatprep.subr.bf16.mxu0 %v3400_v19  ;;  %v2936_v56 = vrot.slane %v29926_v50, 1  ;;  %v29934_v50 = vshll.u32 %v23419_v39, 16 }
 0x1b9   : > { %v2937_v49 = vsel %vm1610_vm4, %v2935_v18, %v2936_v56 }
 0x1bd   : > { %19604 = vmatmul.mubr.msk.bf16.gmra.mrb[4].mxu0 %vm323_vm2, %v23343_v17  ;;  %v29931_v17 = vshrl.u32 %v23365_v35, 16 }
 0x1be   : > { %19607 = vmatprep.mubr.msk.bf16.mxu0 %vm323_vm2, %v23349_v23 }
 0x1bf   : > { %v2941_v23 = vor.u32 %v2939_v45, %v29931_v17  ;;  %v29941_v17 = vshll.u32 %v23488_v42, 16 }
 0x1c5   : > { %19608 = vmatmul.mubr.msk.bf16.gmra.mrb[8].mxu0 %vm323_vm2, %v23365_v35  ;;  %v29935_v35 = vshrl.u32 %v23414_v21, 16 }
 0x1c6   : > { %19611 = vmatprep.mubr.msk.bf16.mxu0 %vm323_vm2, %v23397_v11 }
 0x1c7   : > { %v2947_v2 = vor.u32 %v2945_v52, %v29935_v35 }
 0x1cd   : > { %19612 = vmatmul.mubr.msk.bf16.gmra.mrb[12].mxu0 %vm323_vm2, %v23414_v21  ;;  %v29939_v21 = vshrl.u32 %v23451_v61, 16 }
 0x1ce   : > { %19615 = vmatprep.mubr.msk.bf16.mxu0 %vm323_vm2, %v23419_v39 }
 0x1d5   : > { %19616 = vmatmul.mubr.msk.bf16.gmra.mrb[16].mxu0 %vm323_vm2, %v23451_v61 }
 0x1d6   : > { %19619 = vmatprep.mubr.msk.bf16.mxu0 %vm323_vm2, %v23483_v40 }
 0x1dd   : > { %19620 = vmatmul.mubr.msk.bf16.gmra.mrb[20].mxu0 %vm323_vm2, %v23488_v42 }
 0x1de   : > { %19623 = vmatprep.mubr.msk.bf16.mxu0 %vm323_vm2, %v23523_v46 }
 0x1e5   : > { %19624 = vmatmul.mubr.msk.bf16.gmra.mrb[24].mxu0 %vm323_vm2, %v23544_v63 }
 0x1e6   : > { %19627 = vmatprep.mubr.msk.bf16.mxu0 %vm323_vm2, %v23549_v27 }
 0x1ed   : > { %19628 = vmatmul.mubr.msk.bf16.gmra.mrb[28].mxu0 %vm323_vm2, %v23586_v15 }
 0x1ee   : > { %19631 = vmatprep.mubr.msk.bf16.mxu0 %vm323_vm2, %v23597_v3 }
 0x1f5   : > { %19632 = vmatmul.mubr.msk.bf16.gmra.mrb[32].mxu0 %vm323_vm2, %v23600_v38 }
 0x1f6   : > { %19635 = vmatprep.mubr.msk.bf16.mxu0 %vm323_vm2, %v23623_v57 }
 0x1fd   : > { %19636 = vmatmul.mubr.msk.bf16.gmra.mrb[36].mxu0 %vm323_vm2, %v29915_v14 }
 0x1fe   : > { %19639 = vmatprep.mubr.msk.bf16.mxu0 %vm323_vm2, %v29916_v1 }
 0x205   : > { %19640 = vmatmul.mubr.msk.bf16.gmra.mrb[40].mxu0 %vm323_vm2, %v29919_v53 }
 0x206   : > { %19643 = vmatprep.mubr.msk.bf16.mxu0 %vm323_vm2, %v24464_v62 }
 0x20d   : > { %19644 = vmatmul.mubr.msk.bf16.gmra.mrb[44].mxu0 %vm323_vm2, %v24478_v8 }
 0x20e   : > { %19649 = vmatprep.mubr.msk.bf16.mxu0 %vm323_vm2, %v2928_v28  ;;  %v2938_v28 = vor.u32 %v2936_v56, %v29928_v6  ;;  %v2948_v56 = vrot.slane %v29934_v50, 1  ;;  %v29937_v6 = vshll.u32 %v23451_v61, 16  ;;  %v29943_v61 = vshrl.u32 %v23488_v42, 16 }
 0x20f   : > { %v29945_v50 = vshll.u32 %v23544_v63, 16  ;;  %v29947_v42 = vshrl.u32 %v23544_v63, 16  ;;  %v29951_v63 = vshrl.u32 %v23586_v15, 16 }
 0x210   : > { %v2940_v58 = vsel %vm1610_vm4, %v2938_v28, %v2939_v45  ;;  %v2951_v28 = vrot.slane %v29937_v6, 1  ;;  %v2949_v30 = vsel %vm1610_vm4, %v2947_v2, %v2948_v56 }
 0x215   : > { %19650 = vmatmul.mubr.msk.bf16.vlgmr.msra.gmra.mrb[0].mxu0 %vm323_vm2, %v2931_v54 }
 0x216   : > { %19698 = vmatpush3.bf16.msra.mxu0 %v3400_v19  ;;  %19653 = vmatprep.mubr.msk.bf16.mxu0 %vm323_vm2, %v2934_v24  ;;  %v29930_v19 = vshll.u32 %v23397_v11, 16  ;;  %v29936_v11 = vshrl.u32 %v23419_v39, 16  ;;  %v29940_v39 = vshrl.u32 %v23483_v40, 16 }
 0x217   : > { %19747 = vmatprep.subr.bf16.mxu0 %v24498_v55 }
 0x218   : > { %v2942_v31 = vrot.slane %v29930_v19, 1  ;;  %v2950_v18 = vor.u32 %v2948_v56, %v29936_v11  ;;  %v2953_v19 = vor.u32 %v2951_v28, %v29939_v21  ;;  %v2963_v56 = vrot.slane %v29945_v50, 1 }
 0x219   : > { %v29946_v11 = vshll.u32 %v23549_v27, 16  ;;  %v29950_v21 = vshll.u32 %v23597_v3, 16 }
 0x21a   : > { %v2944_v37 = vor.u32 %v2942_v31, %v29932_v32  ;;  %v2943_v54 = vsel %vm1610_vm4, %v2941_v23, %v2942_v31  ;;  %v2952_v45 = vsel %vm1610_vm4, %v2950_v18, %v2951_v28  ;;  %v2957_v23 = vrot.slane %v29941_v17, 1 }
 0x21b   : > { %v2966_v18 = vrot.slane %v29946_v11, 1  ;;  %v2965_v6 = vor.u32 %v2963_v56, %v29947_v42  ;;  %v29953_v17 = vshll.u32 %v23600_v38, 16  ;;  %v29961_v42 = vshll.u32 %v29919_v53, 16 }
 0x21c   : > { %v2946_v24 = vsel %vm1610_vm4, %v2944_v37, %v2945_v52  ;;  %v2960_v52 = vrot.slane %v29942_v33, 1  ;;  %v29954_v33 = vshll.u32 %v23623_v57, 16 }
 0x21d   : > { %19654 = vmatmul.mubr.msk.bf16.gmra.mrb[4].mxu0 %vm323_vm2, %v2937_v49  ;;  %v29938_v49 = vshll.u32 %v23483_v40, 16  ;;  %v29944_v40 = vshrl.u32 %v23523_v46, 16  ;;  %v29948_v46 = vshrl.u32 %v23549_v27, 16  ;;  %v29952_v27 = vshrl.u32 %v23597_v3, 16 }
 0x21e   : > { %19657 = vmatprep.mubr.msk.bf16.mxu0 %vm323_vm2, %v2940_v58  ;;  %v29956_v3 = vshrl.u32 %v23623_v57, 16  ;;  %v29960_v57 = vshrl.u32 %v29916_v1, 16 }
 0x21f   : > { %v2954_v58 = vrot.slane %v29938_v49, 1  ;;  %v2968_v28 = vor.u32 %v2966_v18, %v29948_v46  ;;  %v2967_v49 = vsel %vm1610_vm4, %v2965_v6, %v2966_v18  ;;  %v2987_v6 = vrot.slane %v29961_v42, 1  ;;  %v29979_v42 = vld [vmem:[#allocation35_spill] sm:$0xff] }
 0x220   : > { %v2990_v46 = vshll.u32 %v24464_v62, 16 }
 0x221   : > { %v2956_v31 = vor.u32 %v2954_v58, %v29940_v39  ;;  %v2955_v32 = vsel %vm1610_vm4, %v2953_v19, %v2954_v58  ;;  %v2972_v19 = vrot.slane %v29950_v21, 1 }
 0x223   : > { %v2958_v37 = vsel %vm1610_vm4, %v2956_v31, %v2957_v23  ;;  %v2974_v31 = vor.u32 %v2972_v19, %v29952_v27 }
 0x225   : > { %19658 = vmatmul.mubr.msk.bf16.gmra.mrb[8].mxu0 %vm323_vm2, %v2943_v54  ;;  %v2959_v54 = vor.u32 %v2957_v23, %v29943_v61  ;;  %v2975_v23 = vrot.slane %v29953_v17, 1 }
 0x226   : > { %19661 = vmatprep.mubr.msk.bf16.mxu0 %vm323_vm2, %v2946_v24  ;;  %v2962_v24 = vor.u32 %v2960_v52, %v29944_v40  ;;  %v29957_v40 = vshll.u32 %v29915_v14, 16 }
 0x227   : > { %v2961_v35 = vsel %vm1610_vm4, %v2959_v54, %v2960_v52  ;;  %v2978_v52 = vrot.slane %v29954_v33, 1 }
 0x228   : > { %v2964_v2 = vsel %vm1610_vm4, %v2962_v24, %v2963_v56  ;;  %v2981_v24 = vrot.slane %v29957_v40, 1  ;;  %v29969_v40 = vld [vmem:[#allocation25_spill] sm:$0xff] }
 0x229   : > { %v2980_v54 = vor.u32 %v2978_v52, %v29956_v3  ;;  %v29967_v3 = vld [vmem:[#allocation23_spill] sm:$0xff] }
 0x22b   : > { %v2982_v56 = vsel %vm1610_vm4, %v2980_v54, %v2981_v24  ;;  %v29968_v54 = vld [vmem:[#allocation24_spill] sm:$0xff] }
 0x22d   : > { %19662 = vmatmul.mubr.msk.bf16.gmra.mrb[12].mxu0 %vm323_vm2, %v2949_v30  ;;  %v29949_v30 = vshll.u32 %v23586_v15, 16  ;;  %v29955_v15 = vshrl.u32 %v23600_v38, 16  ;;  %v29959_v38 = vshrl.u32 %v29915_v14, 16  ;;  %v2992_v14 = vrot.slane %v2990_v46, 1 }
 0x22e   : > { %19665 = vmatprep.mubr.msk.bf16.mxu0 %vm323_vm2, %v2952_v45 }
 0x22f   : > { %v2969_v45 = vrot.slane %v29949_v30, 1  ;;  %v2977_v61 = vor.u32 %v2975_v23, %v29955_v15  ;;  %v2983_v11 = vor.u32 %v2981_v24, %v29959_v38  ;;  %v29965_v15 = vld [vmem:[#allocation21_spill] sm:$0xff]  ;;  %v29970_v24 = vld [vmem:[#allocation26_spill] sm:$0xff]  ;;  %v29976_v38 = vld [vmem:[#allocation32_spill] sm:$0xff] }
 0x231   : > { %v2970_v58 = vsel %vm1610_vm4, %v2968_v28, %v2969_v45  ;;  %v2971_v39 = vor.u32 %v2969_v45, %v29951_v63  ;;  %v2979_v50 = vsel %vm1610_vm4, %v2977_v61, %v2978_v52  ;;  %v2994_v45 = vshrl.u32 %v24464_v62, 16  ;;  %v29964_v52 = vld [vmem:[#allocation20_spill] sm:$0xff]  ;;  %v29966_v61 = vld [vmem:[#allocation22_spill] sm:$0xff] }
 0x232   : > { %v3001_v62 = vshrl.u32 %v24478_v8, 16 }
 0x233   : > { %v2996_v63 = vor.u32 %v2994_v45, %v2992_v14 }
 0x235   : > { %19666 = vmatmul.mubr.msk.bf16.gmra.mrb[16].mxu0 %vm323_vm2, %v2955_v32  ;;  %v2973_v32 = vsel %vm1610_vm4, %v2971_v39, %v2972_v19 }
 0x236   : > { %19669 = vmatprep.mubr.msk.bf16.mxu0 %vm323_vm2, %v2958_v37  ;;  %v2976_v37 = vsel %vm1610_vm4, %v2974_v31, %v2975_v23 }
 0x23d   : > { %19670 = vmatmul.mubr.msk.bf16.gmra.mrb[20].mxu0 %vm323_vm2, %v2961_v35  ;;  %v29958_v35 = vshll.u32 %v29916_v1, 16  ;;  %v29962_v1 = vshrl.u32 %v29919_v53, 16 }
 0x23e   : > { %19673 = vmatprep.mubr.msk.bf16.mxu0 %vm323_vm2, %v2964_v2 }
 0x23f   : > { %v2984_v2 = vrot.slane %v29958_v35, 1  ;;  %v2989_v21 = vor.u32 %v2987_v6, %v29962_v1  ;;  %v29974_v35 = vld [vmem:[#allocation30_spill] sm:$0xff] }
 0x241   : > { %v2986_v18 = vor.u32 %v2984_v2, %v29960_v57  ;;  %v2985_v28 = vsel %vm1610_vm4, %v2983_v11, %v2984_v2  ;;  %v2993_v27 = vsel %vm1610_vm4, %v2989_v21, %v2992_v14  ;;  %v29975_v2 = vld [vmem:[#allocation31_spill] sm:$0xff]  ;;  %v29977_v11 = vld [vmem:[#allocation33_spill] sm:$0xff]  ;;  %v29978_v57 = vld [vmem:[#allocation34_spill] sm:$0xff]  ;;  %v3362_v14 = vrot.slane %v2990_v46, 4 }
 0x242   : > { %v29980_v21 = vld [vmem:[#allocation36_spill] sm:$0xff] }
 0x243   : > { %v2988_v30 = vsel %vm1610_vm4, %v2986_v18, %v2987_v6  ;;  %v445_v18 = vld [vmem:[%s29179_s1] sm:$0xff]  ;;  %v22998_v6 = vmov 0  }
 0x244   : > { %22852 = vset.pattern.permute.xlu0 %v22998_v6  ;;  %22853 = vset.pattern.permute.xlu1 %v22998_v6  ;;  %v456_v6 = vld [vmem:[%s29179_s1 + $0x58] sm:$0xff] }
 0x245   : > { %19674 = vmatmul.mubr.msk.bf16.gmra.mrb[24].mxu0 %vm323_vm2, %v2967_v49  ;;  %v2997_v49 = vshll.u32 %v24478_v8, 16  ;;  %v17394_v8 = vld [vmem:[%s29182_s4 + $0x10] sm:$0x3]  ;;  %4381 = vperm.xlu0 %22852, %v445_v18  }
 0x246   : > { %19677 = vmatprep.mubr.msk.bf16.mxu0 %vm323_vm2, %v2970_v58  ;;  %v24612_v58 = vld [vmem:[#allocation2 + $0x1b0] sm:$0xff]  ;;  %v24633_v33 = vand.u32 %v17394_v8, %v23066_v4  ;;  %v29982_v8 = vld [vmem:[#allocation37_spill] sm:$0xff] }
 0x247   : > { %v2922_v19 = vpack.c.bf16 %v24612_v58, %v24612_v58  ;;  %v2999_v39 = vrot.slane %v2997_v49, 1  ;;  %v455_v18 = vld [vmem:[%s29179_s1 + $0x50] sm:$0xff] }
 0x249   : > { %v3005_v31 = vshll.u32 %v2922_v19, 16  ;;  %v3000_v17 = vsel %vm1610_vm4, %v2996_v63, %v2999_v39  ;;  %v3003_v23 = vor.u32 %v3001_v62, %v2999_v39  ;;  %v447_v19 = vld [vmem:[%s29179_s1 + $0x10] sm:$0xff]  ;;  %v446_v63 = vld [vmem:[%s29179_s1 + $0x8] sm:$0xff] }
 0x24a   : > { %v29981_v39 = vld [vmem:[#allocation38_spill] sm:$0xff]  ;;  %4391 = vperm.xlu1 %22853, %v447_v19   ;;  %4386 = vperm.xlu0 %22852, %v446_v63   ;;  %v29984_v19 = vld [vmem:[#allocation7_spill] sm:$0xff]  ;;  %v460_v63 = vld [vmem:[%s29179_s1 + $0x78] sm:$0xff] }
 0x24d   : > { %19678 = vmatmul.mubr.msk.bf16.gmra.mrb[28].mxu0 %vm323_vm2, %v2973_v32  ;;  %v3007_v32 = vrot.slane %v3005_v31, 1  ;;  %v24686_v31 = vld [vmem:[#allocation2 + $0x1c0] sm:$0xff] }
 0x24e   : > { %19681 = vmatprep.mubr.msk.bf16.mxu0 %vm323_vm2, %v2976_v37  ;;  %v29963_v37 = vld [vmem:[#allocation19_spill] sm:$0xff] }
 0x24f   : > { %v3008_v53 = vsel %vm1610_vm4, %v3003_v23, %v3007_v32  ;;  %v449_v23 = vld [vmem:[%s29179_s1 + $0x20] sm:$0xff]  ;;  %v3365_v32 = vrot.slane %v3001_v62, 3 }
 0x250   : > { %4401 = vperm.xlu0 %22852, %v449_v23   ;;  %v465_v23 = vld [vmem:[%s29179_s1 + $0xa0] sm:$0xff] }
 0x255   : > { %19682 = vmatmul.mubr.msk.bf16.gmra.mrb[32].mxu0 %vm323_vm2, %v2979_v50  ;;  %v29972_v50 = vld [vmem:[#allocation28_spill] sm:$0xff] }
 0x256   : > { %19685 = vmatprep.mubr.msk.bf16.mxu0 %vm323_vm2, %v2982_v56  ;;  %v29973_v56 = vld [vmem:[#allocation29_spill] sm:$0xff] }
 0x25d   : > { %19686 = vmatmul.mubr.msk.bf16.gmra.mrb[36].mxu0 %vm323_vm2, %v2985_v28  ;;  %v24672_v28 = vld [vmem:[#allocation2 + $0x1b8] sm:$0xff] }
 0x25e   : > { %19689 = vmatprep.mubr.msk.bf16.mxu0 %vm323_vm2, %v2988_v30  ;;  %v3361_v30 = vrot.slane %v2994_v45, 3  ;;  %v3357_v1 = vpack.c.bf16 %v24672_v28, %v24612_v58 }
 0x260   : > { %v3363_v45 = vor.u32 %v3362_v14, %v3361_v30  ;;  %v3370_v46 = vshrl.u32 %v3357_v1, 16  ;;  %v457_v30 = vld [vmem:[%s29179_s1 + $0x60] sm:$0xff] }
 0x265   : > { %19690 = vmatmul.mubr.msk.bf16.gmra.mrb[40].mxu0 %vm323_vm2, %v2993_v27  ;;  %v3373_v27 = vshll.u32 %v3357_v1, 16  ;;  %v458_v1 = vld [vmem:[%s29179_s1 + $0x68] sm:$0xff] }
 0x266   : > { %19693 = vmatprep.mubr.msk.bf16.mxu0 %vm323_vm2, %v3000_v17  ;;  %v448_v17 = vld [vmem:[%s29179_s1 + $0x18] sm:$0xff] }
 0x267   : > { %4396 = vperm.xlu1 %22853, %v448_v17   ;;  %v463_v17 = vld [vmem:[%s29179_s1 + $0x90] sm:$0xff] }
 0x26d   : > { %19694 = vmatmul.mubr.msk.bf16.gmra.mrb[44].mxu0 %vm323_vm2, %v3008_v53  ;;  %v3366_v53 = vrot.slane %v2997_v49, 4  ;;  %v451_v49 = vld [vmem:[%s29179_s1 + $0x30] sm:$0xff] }
 0x26e   : > { %19699 = vmatprep.mubr.msk.bf16.mxu0 %vm323_vm2, %v29963_v37  ;;  %v3358_v37 = vpack.c.bf16 %v24686_v31, %v24686_v31  ;;  %4411 = vperm.xlu0 %22852, %v451_v49   ;;  %v485_v49 = vld [vmem:[%s29179_s1 + $0x140] sm:$0xff] }
 0x26f   : > { %v3367_v62 = vor.u32 %v3366_v53, %v3365_v32  ;;  %v468_v32 = vld [vmem:[%s29179_s1 + $0xb8] sm:$0xff]  ;;  %v470_v53 = vld [vmem:[%s29179_s1 + $0xc8] sm:$0xff] }
 0x275   : > { %19700 = vmatmul.mubr.msk.bf16.vlgmr.msra.gmra.mrb[0].mxu0 %vm323_vm2, %v29964_v52  ;;  %v3364_v52 = vsel %vm1082_vm3, %v29982_v8, %v3363_v45  ;;  %v474_v8 = vld [vmem:[%s29179_s1 + $0xe8] sm:$0xff] }
 0x276   : > { %19748 = vmatpush3.bf16.msra.mxu0 %v24498_v55  ;;  %19703 = vmatprep.mubr.msk.bf16.mxu0 %vm323_vm2, %v29965_v15  ;;  %v29971_v55 = vld [vmem:[#allocation27_spill] sm:$0xff]  ;;  %v3372_v15 = vrot.slane %v3370_v46, 3 }
 0x277   : > { %19797 = vmatprep.subr.bf16.mxu0 %v24633_v33 }
 0x27d   : > { %19704 = vmatmul.mubr.msk.bf16.gmra.mrb[4].mxu0 %vm323_vm2, %v29966_v61  ;;  %v3375_v61 = vrot.slane %v3373_v27, 4  ;;  %v462_v27 = vld [vmem:[%s29179_s1 + $0x88] sm:$0xff] }
 0x27e   : > { %19707 = vmatprep.mubr.msk.bf16.mxu0 %vm323_vm2, %v29967_v3  ;;  %v29983_v3 = vld [vmem:[#allocation39_spill] sm:$0xff] }
 0x285   : > { %19708 = vmatmul.mubr.msk.bf16.gmra.mrb[8].mxu0 %vm323_vm2, %v29968_v54  ;;  %v450_v54 = vld [vmem:[%s29179_s1 + $0x28] sm:$0xff] }
 0x286   : > { %19711 = vmatprep.mubr.msk.bf16.mxu0 %vm323_vm2, %v29969_v40  ;;  %v3379_v40 = vshrl.u32 %v3358_v37, 16  ;;  %4406 = vperm.xlu1 %22853, %v450_v54   ;;  %v3675_v54 = vpack.c.bf16 %v24612_v58, %v24190_v20  ;;  %v487_v58 = vld [vmem:[%s29179_s1 + $0x150] sm:$0xff] }
 0x28d   : > { %19712 = vmatmul.mubr.msk.bf16.gmra.mrb[12].mxu0 %vm323_vm2, %v29970_v24  ;;  %v3382_v24 = vshll.u32 %v3358_v37, 16  ;;  %v472_v37 = vld [vmem:[%s29179_s1 + $0xd8] sm:$0xff] }
 0x28e   : > { %19715 = vmatprep.mubr.msk.bf16.mxu0 %vm323_vm2, %v29971_v55  ;;  %v3376_v55 = vor.u32 %v3375_v61, %v3372_v15  ;;  %v478_v15 = vld [vmem:[%s29179_s1 + $0x108] sm:$0xff]  ;;  %v480_v61 = vld [vmem:[%s29179_s1 + $0x118] sm:$0xff] }
 0x295   : > { %19716 = vmatmul.mubr.msk.bf16.gmra.mrb[16].mxu0 %vm323_vm2, %v29972_v50  ;;  %v452_v50 = vld [vmem:[%s29179_s1 + $0x38] sm:$0xff] }
 0x296   : > { %19719 = vmatprep.mubr.msk.bf16.mxu0 %vm323_vm2, %v29973_v56  ;;  %v453_v56 = vld [vmem:[%s29179_s1 + $0x40] sm:$0xff]  ;;  %4416 = vperm.xlu1 %22853, %v452_v50  }
 0x297   : > { %4421 = vperm.xlu0 %22852, %v453_v56   ;;  %v489_v50 = vld [vmem:[%s29179_s1 + $0x160] sm:$0xff] }
 0x29b   : > { %4431 = vperm.xlu0 %22852, %v455_v18   ;;  %v24910_v18 = vld [vmem:[#allocation2 + $0x40] sm:$0xff] }
 0x29d   : > { %19720 = vmatmul.mubr.msk.bf16.gmra.mrb[20].mxu0 %vm323_vm2, %v29974_v35  ;;  %v3368_v35 = vsel %vm1082_vm3, %v3363_v45, %v3367_v62  ;;  %v461_v45 = vld [vmem:[%s29179_s1 + $0x80] sm:$0xff] }
 0x29e   : > { %19723 = vmatprep.mubr.msk.bf16.mxu0 %vm323_vm2, %v29975_v2  ;;  %v3381_v2 = vrot.slane %v3379_v40, 3  ;;  %v24853_v40 = vpack.c.bf16 %v24686_v31, %v24672_v28  ;;  %v488_v31 = vld [vmem:[%s29179_s1 + $0x158] sm:$0xff] }
 0x29f   : > { %4441 = vperm.xlu0 %22852, %v457_v30  }
 0x2a5   : > { %19724 = vmatmul.mubr.msk.bf16.gmra.mrb[24].mxu0 %vm323_vm2, %v29976_v38  ;;  %v3384_v38 = vrot.slane %v3382_v24, 4  ;;  %v3973_v24 = vshrl.u32 %v3675_v54, 16 }
 0x2a6   : > { %19727 = vmatprep.mubr.msk.bf16.mxu0 %vm323_vm2, %v29977_v11  ;;  %v3377_v11 = vsel %vm1082_vm3, %v3367_v62, %v3376_v55  ;;  %v3969_v62 = vshll.u32 %v3675_v54, 16 }
 0x2a8   : > { %v24857_v20 = vrot.slane %v3969_v62, 1  ;;  %v30002_v62 = vld [vmem:[#allocation11_spill] sm:$0xff] }
 0x2aa   : > { %v3975_v28 = vor.u32 %v3973_v24, %v24857_v20  ;;  %v30003_v24 = vld [vmem:[#allocation12_spill] sm:$0xff] }
 0x2ad   : > { %19728 = vmatmul.mubr.msk.bf16.gmra.mrb[28].mxu0 %vm323_vm2, %v29978_v57  ;;  %v454_v57 = vld [vmem:[%s29179_s1 + $0x48] sm:$0xff] }
 0x2ae   : > { %19731 = vmatprep.mubr.msk.bf16.mxu0 %vm323_vm2, %v29979_v42  ;;  %v3385_v42 = vor.u32 %v3384_v38, %v3381_v2  ;;  %4426 = vperm.xlu1 %22853, %v454_v57   ;;  %v24891_v2 = vld [vmem:[#allocation2 + $0x20] sm:$0xff]  ;;  %v24893_v38 = vld [vmem:[#allocation2 + $0x28] sm:$0xff]  ;;  %v24904_v57 = vld [vmem:[#allocation2 + $0x30] sm:$0xff] }
 0x2b0   : > { %v3386_v14 = vsel %vm1082_vm3, %v3376_v55, %v3385_v42  ;;  %v3976_v55 = vshll.u32 %v24853_v40, 16  ;;  %v24912_v42 = vld [vmem:[#allocation2 + $0x48] sm:$0xff] }
 0x2b1   : > { %v24920_v30 = vpack.c.bf16 %v24912_v42, %v24910_v18 }
 0x2b2   : > { %4436 = vperm.xlu1 %22853, %v456_v6  }
 0x2b3   : > { %29986 = vst [vmem:[#allocation16_spill] sm:$0xff] %v24920_v30 }
 0x2b5   : > { %19732 = vmatmul.mubr.msk.bf16.gmra.mrb[32].mxu0 %vm323_vm2, %v29980_v21  ;;  %v459_v21 = vld [vmem:[%s29179_s1 + $0x70] sm:$0xff] }
 0x2b6   : > { %19735 = vmatprep.mubr.msk.bf16.mxu0 %vm323_vm2, %v29981_v39  ;;  %4446 = vperm.xlu1 %22853, %v458_v1   ;;  %v17739_v39 = vld [vmem:[%s29182_s4 + $0x2] sm:$0x3] }
 0x2b7   : > { %4451 = vperm.xlu0 %22852, %v459_v21   ;;  %v24749_v46 = vand.u32 %v17739_v39, %v23066_v4  ;;  %v24936_v21 = vld [vmem:[#allocation2 + $0x68] sm:$0xff] }
 0x2ba   : > { %4456 = vperm.xlu1 %22853, %v460_v63   ;;  %v24946_v63 = vld [vmem:[#allocation2 + $0x78] sm:$0xff] }
 0x2bb   : > { %4461 = vperm.xlu0 %22852, %v461_v45   ;;  %v24955_v45 = vld [vmem:[#allocation2 + $0x88] sm:$0xff] }
 0x2bd   : > { %19736 = vmatmul.mubr.msk.bf16.gmra.mrb[36].mxu0 %vm323_vm2, %v29983_v3  ;;  %v482_v3 = vld [vmem:[%s29179_s1 + $0x128] sm:$0xff] }
 0x2be   : > { %19739 = vmatprep.mubr.msk.bf16.mxu0 %vm323_vm2, %v3364_v52  ;;  %4466 = vperm.xlu1 %22853, %v462_v27   ;;  %v476_v52 = vld [vmem:[%s29179_s1 + $0xf8] sm:$0xff] }
 0x2bf   : > { %4471 = vperm.xlu0 %22852, %v463_v17   ;;  %v24963_v17 = vld [vmem:[#allocation2 + $0x90] sm:$0xff] }
 0x2c3   : > { %4481 = vperm.xlu0 %22852, %v465_v23   ;;  %v29991_v23 = vld [vmem:[#allocation5_spill] sm:$0xff] }
 0x2c5   : > { %19740 = vmatmul.mubr.msk.bf16.gmra.mrb[40].mxu0 %vm323_vm2, %v3368_v35  ;;  %v491_v35 = vld [vmem:[%s29179_s1 + $0x170] sm:$0xff] }
 0x2c6   : > { %19743 = vmatprep.mubr.msk.bf16.mxu0 %vm323_vm2, %v3377_v11  ;;  %v24900_v11 = vpack.c.bf16 %v24893_v38, %v24891_v2 }
 0x2cd   : > { %19744 = vmatmul.mubr.msk.bf16.gmra.mrb[44].mxu0 %vm323_vm2, %v3386_v14  ;;  %v24930_v14 = vld [vmem:[#allocation2 + $0x60] sm:$0xff] }
 0x2ce   : > { %19749 = vmatprep.mubr.msk.bf16.mxu0 %vm323_vm2, %v29984_v19  ;;  %v24940_v19 = vpack.c.bf16 %v24936_v21, %v24930_v14 }
 0x2d0   : > { %29988 = vst [vmem:[#allocation18_spill] sm:$0xff] %v24940_v19 }
 0x2d5   : > { %19750 = vmatmul.mubr.msk.bf16.vlgmr.msra.gmra.mrb[0].mxu0 %vm323_vm2, %v29843_v10  ;;  %v464_v10 = vld [vmem:[%s29179_s1 + $0x98] sm:$0xff] }
 0x2d6   : > { %19798 = vmatpush3.bf16.msra.mxu0 %v24633_v33  ;;  %19753 = vmatprep.mubr.msk.bf16.mxu0 %vm323_vm2, %v29844_v43  ;;  %v466_v43 = vld [vmem:[%s29179_s1 + $0xa8] sm:$0xff]  ;;  %v467_v33 = vld [vmem:[%s29179_s1 + $0xb0] sm:$0xff] }
 0x2d7   : > { %20351 = vmatprep.subr.bf16.mxu0 %v24749_v46  ;;  %4476 = vperm.xlu1 %22853, %v464_v10   ;;  %v24965_v10 = vld [vmem:[#allocation2 + $0x98] sm:$0xff] }
 0x2d8   : > { %4491 = vperm.xlu0 %22852, %v467_v33   ;;  %v24973_v33 = vpack.c.bf16 %v24965_v10, %v24963_v17 }
 0x2da   : > { %29992 = vst [vmem:[#allocation21_spill] sm:$0xff] %v24973_v33  ;;  %v8991_v33 = vld [vmem:[#allocation2 + $0x10] sm:$0xff] }
 0x2db   : > { %4486 = vperm.xlu1 %22853, %v466_v43   ;;  %v24969_v43 = vld [vmem:[#allocation2 + $0xa0] sm:$0xff] }
 0x2dd   : > { %19754 = vmatmul.mubr.msk.bf16.gmra.mrb[4].mxu0 %vm323_vm2, %v29846_v16  ;;  %v469_v16 = vld [vmem:[%s29179_s1 + $0xc0] sm:$0xff] }
 0x2de   : > { %19757 = vmatprep.mubr.msk.bf16.mxu0 %vm323_vm2, %v29849_v26  ;;  %4501 = vperm.xlu0 %22852, %v469_v16   ;;  %v471_v26 = vld [vmem:[%s29179_s1 + $0xd0] sm:$0xff] }
 0x2df   : > { %4496 = vperm.xlu1 %22853, %v468_v32   ;;  %v24975_v32 = vld [vmem:[#allocation2 + $0xa8] sm:$0xff] }
 0x2e0   : > { %v24979_v16 = vpack.c.bf16 %v24975_v32, %v24969_v43 }
 0x2e2   : > { %4511 = vperm.xlu0 %22852, %v471_v26   ;;  %29993 = vst [vmem:[#allocation22_spill] sm:$0xff] %v24979_v16  ;;  %v25113_v16 = vld [vmem:[#allocation2 + $0x178] sm:$0xff] }
 0x2e3   : > { %4506 = vperm.xlu1 %22853, %v470_v53   ;;  %v9072_v53 = vld [vmem:[%s29182_s4] sm:$0x3]  ;;  %30022 = vst [vmem:[#allocation37_spill] sm:$0xff] %v25113_v16 }
 0x2e4   : > { %v24985_v26 = vand.u32 %v9072_v53, %v23066_v4  ;;  %v25057_v53 = vld [vmem:[#allocation2 + $0x120] sm:$0xff] }
 0x2e5   : > { %19758 = vmatmul.mubr.msk.bf16.gmra.mrb[8].mxu0 %vm323_vm2, %v29850_v44  ;;  %v473_v44 = vld [vmem:[%s29179_s1 + $0xe0] sm:$0xff] }
 0x2e6   : > { %19761 = vmatprep.mubr.msk.bf16.mxu0 %vm323_vm2, %v29853_v12  ;;  %4521 = vperm.xlu0 %22852, %v473_v44   ;;  %v475_v12 = vld [vmem:[%s29179_s1 + $0xf0] sm:$0xff] }
 0x2e7   : > { %4516 = vperm.xlu1 %22853, %v472_v37   ;;  %v29994_v37 = vld [vmem:[#allocation6_spill] sm:$0xff]  ;;  %v24989_v44 = vld [vmem:[#allocation2 + $0xb0] sm:$0xff] }
 0x2ea   : > { %4531 = vperm.xlu0 %22852, %v475_v12   ;;  %v29995_v12 = vld [vmem:[#allocation8_spill] sm:$0xff] }
 0x2eb   : > { %4526 = vperm.xlu1 %22853, %v474_v8   ;;  %v24991_v8 = vld [vmem:[#allocation2 + $0xb8] sm:$0xff] }
 0x2ed   : > { %19762 = vmatmul.mubr.msk.bf16.gmra.mrb[12].mxu0 %vm323_vm2, %v29854_v13  ;;  %v477_v13 = vld [vmem:[%s29179_s1 + $0x100] sm:$0xff] }
 0x2ee   : > { %19765 = vmatprep.mubr.msk.bf16.mxu0 %vm323_vm2, %v23578_v7  ;;  %4541 = vperm.xlu0 %22852, %v477_v13   ;;  %v479_v7 = vld [vmem:[%s29179_s1 + $0x110] sm:$0xff]  ;;  %v25000_v13 = vpack.c.bf16 %v24991_v8, %v24989_v44 }
 0x2ef   : > { %4536 = vperm.xlu1 %22853, %v476_v52   ;;  %v24996_v52 = vld [vmem:[#allocation2 + $0xc0] sm:$0xff] }
 0x2f0   : > { %29996 = vst [vmem:[#allocation23_spill] sm:$0xff] %v25000_v13  ;;  %v25111_v13 = vld [vmem:[#allocation2 + $0x170] sm:$0xff] }
 0x2f1   : > { %30021 = vst [vmem:[#allocation38_spill] sm:$0xff] %v25111_v13 }
 0x2f2   : > { %4551 = vperm.xlu0 %22852, %v479_v7  }
 0x2f3   : > { %4546 = vperm.xlu1 %22853, %v478_v15   ;;  %v25002_v15 = vld [vmem:[#allocation2 + $0xc8] sm:$0xff] }
 0x2f4   : > { %v25007_v7 = vpack.c.bf16 %v25002_v15, %v24996_v52 }
 0x2f5   : > { %19766 = vmatmul.mubr.msk.bf16.gmra.mrb[16].mxu0 %vm323_vm2, %v23582_v9  ;;  %v481_v9 = vld [vmem:[%s29179_s1 + $0x120] sm:$0xff] }
 0x2f6   : > { %19769 = vmatprep.mubr.msk.bf16.mxu0 %vm323_vm2, %v23633_v34  ;;  %4561 = vperm.xlu0 %22852, %v481_v9   ;;  %v483_v34 = vld [vmem:[%s29179_s1 + $0x130] sm:$0xff]  ;;  %29997 = vst [vmem:[#allocation24_spill] sm:$0xff] %v25007_v7  ;;  %v25013_v9 = vld [vmem:[#allocation2 + $0xd8] sm:$0xff]  ;;  %v25103_v7 = vld [vmem:[#allocation2 + $0x168] sm:$0xff] }
 0x2f7   : > { %4556 = vperm.xlu1 %22853, %v480_v61   ;;  %v29998_v61 = vld [vmem:[#allocation9_spill] sm:$0xff]  ;;  %30018 = vst [vmem:[#allocation35_spill] sm:$0xff] %v25103_v7 }
 0x2fa   : > { %4571 = vperm.xlu0 %22852, %v483_v34   ;;  %v25017_v34 = vld [vmem:[#allocation2 + $0xe0] sm:$0xff] }
 0x2fb   : > { %4566 = vperm.xlu1 %22853, %v482_v3   ;;  %v29999_v3 = vld [vmem:[#allocation10_spill] sm:$0xff] }
 0x2fd   : > { %19770 = vmatmul.mubr.msk.bf16.gmra.mrb[20].mxu0 %vm323_vm2, %v23637_v29  ;;  %v484_v29 = vld [vmem:[%s29179_s1 + $0x138] sm:$0xff] }
 0x2fe   : > { %19773 = vmatprep.mubr.msk.bf16.mxu0 %vm323_vm2, %v23659_v47  ;;  %4581 = vperm.xlu0 %22852, %v485_v49   ;;  %v486_v47 = vld [vmem:[%s29179_s1 + $0x148] sm:$0xff] }
 0x2ff   : > { %4576 = vperm.xlu1 %22853, %v484_v29   ;;  %v25023_v29 = vld [vmem:[#allocation2 + $0xe8] sm:$0xff] }
 0x300   : > { %v25027_v49 = vpack.c.bf16 %v25023_v29, %v25017_v34 }
 0x302   : > { %4591 = vperm.xlu0 %22852, %v487_v58   ;;  %30001 = vst [vmem:[#allocation26_spill] sm:$0xff] %v25027_v49  ;;  %v25033_v58 = vld [vmem:[#allocation2 + $0xf8] sm:$0xff] }
 0x303   : > { %4586 = vperm.xlu1 %22853, %v486_v47   ;;  %v25031_v47 = vld [vmem:[#allocation2 + $0xf0] sm:$0xff]  ;;  %v25093_v49 = vld [vmem:[#allocation2 + $0x158] sm:$0xff] }
 0x305   : > { %19774 = vmatmul.mubr.msk.bf16.gmra.mrb[24].mxu0 %vm323_vm2, %v23663_v36  ;;  %v24869_v36 = vrot.slane %v3976_v55, 1  ;;  %v25037_v55 = vld [vmem:[#allocation2 + $0x100] sm:$0xff] }
 0x306   : > { %19777 = vmatprep.mubr.msk.bf16.mxu0 %vm323_vm2, %v23671_v59  ;;  %4601 = vperm.xlu0 %22852, %v489_v50   ;;  %v490_v59 = vld [vmem:[%s29179_s1 + $0x168] sm:$0xff] }
 0x307   : > { %v24879_v56 = vsel %vm1610_vm4, %v3975_v28, %v24869_v36  ;;  %4596 = vperm.xlu1 %22853, %v488_v31   ;;  %v25041_v28 = vpack.c.bf16 %v25033_v58, %v25031_v47  ;;  %v25043_v31 = vld [vmem:[#allocation2 + $0x108] sm:$0xff] }
 0x308   : > { %v25047_v50 = vpack.c.bf16 %v25043_v31, %v25037_v55 }
 0x309   : > { %30004 = vst [vmem:[#allocation27_spill] sm:$0xff] %v25041_v28  ;;  %v25091_v28 = vld [vmem:[#allocation2 + $0x150] sm:$0xff] }
 0x30a   : > { %4611 = vperm.xlu0 %22852, %v491_v35   ;;  %30005 = vst [vmem:[#allocation28_spill] sm:$0xff] %v25047_v50  ;;  %v25051_v35 = vld [vmem:[#allocation2 + $0x110] sm:$0xff]  ;;  %v25083_v50 = vld [vmem:[#allocation2 + $0x148] sm:$0xff] }
 0x30b   : > { %4606 = vperm.xlu1 %22853, %v490_v59   ;;  %v30006_v59 = vld [vmem:[#allocation13_spill] sm:$0xff] }
 0x30d   : > { %19778 = vmatmul.mubr.msk.bf16.gmra.mrb[28].mxu0 %vm323_vm2, %v23673_v41  ;;  %v492_v41 = vld [vmem:[%s29179_s1 + $0x178] sm:$0xff] }
 0x30e   : > { %19781 = vmatprep.mubr.msk.bf16.mxu0 %vm323_vm2, %v23679_v5  ;;  %v24908_v5 = vld [vmem:[#allocation2 + $0x38] sm:$0xff] }
 0x30f   : > { %4616 = vperm.xlu1 %22853, %v492_v41   ;;  %v24916_v6 = vpack.c.bf16 %v24908_v5, %v24904_v57  ;;  %v25053_v41 = vld [vmem:[#allocation2 + $0x118] sm:$0xff] }
 0x311   : > { %29985 = vst [vmem:[#allocation15_spill] sm:$0xff] %v24916_v6  ;;  %v9407_v6 = vshrl.u32 %v24900_v11, 16 }
 0x315   : > { %19782 = vmatmul.mubr.msk.bf16.gmra.mrb[32].mxu0 %vm323_vm2, %v23681_v51  ;;  %v24924_v51 = vld [vmem:[#allocation2 + $0x50] sm:$0xff] }
 0x316   : > { %19785 = vmatprep.mubr.msk.bf16.mxu0 %vm323_vm2, %v23687_v0  ;;  %v24926_v0 = vld [vmem:[#allocation2 + $0x58] sm:$0xff] }
 0x317   : > { %v24934_v1 = vpack.c.bf16 %v24926_v0, %v24924_v51 }
 0x319   : > { %29987 = vst [vmem:[#allocation17_spill] sm:$0xff] %v24934_v1  ;;  %v30028_v1 = vld [vmem:[#allocation46_spill] sm:$0xff] }
 0x31d   : > { %19786 = vmatmul.mubr.msk.bf16.gmra.mrb[36].mxu0 %vm323_vm2, %v23689_v48  ;;  %v24944_v48 = vld [vmem:[#allocation2 + $0x70] sm:$0xff] }
 0x31e   : > { %19789 = vmatprep.mubr.msk.bf16.mxu0 %vm323_vm2, %v23700_v22  ;;  %v24949_v22 = vld [vmem:[#allocation2 + $0x80] sm:$0xff]  ;;  %v24953_v39 = vpack.c.bf16 %v24946_v63, %v24944_v48 }
 0x31f   : > { %v24959_v27 = vpack.c.bf16 %v24955_v45, %v24949_v22 }
 0x320   : > { %29989 = vst [vmem:[#allocation19_spill] sm:$0xff] %v24953_v39  ;;  %v25123_v39 = vld [vmem:[#allocation2 + $0x188] sm:$0xff] }
 0x321   : > { %29990 = vst [vmem:[#allocation20_spill] sm:$0xff] %v24959_v27  ;;  %v25117_v27 = vld [vmem:[#allocation2 + $0x180] sm:$0xff]  ;;  %30026 = vst [vmem:[#allocation5_spill] sm:$0xff] %v25123_v39 }
 0x322   : > { %30024 = vst [vmem:[#allocation39_spill] sm:$0xff] %v25117_v27 }
 0x325   : > { %19790 = vmatmul.mubr.msk.bf16.gmra.mrb[40].mxu0 %vm323_vm2, %v24389_v60 }
 0x326   : > { %19793 = vmatprep.mubr.msk.bf16.mxu0 %vm323_vm2, %v3675_v54 }
 0x32d   : > { %19794 = vmatmul.mubr.msk.bf16.gmra.mrb[44].mxu0 %vm323_vm2, %v24853_v40 }
 0x32e   : > { %19799 = vmatprep.mubr.msk.bf16.mxu0 %vm323_vm2, %v29991_v23  ;;  %v30007_v23 = vld [vmem:[#allocation14_spill] sm:$0xff] }
 0x335   : > { %19800 = vmatmul.mubr.msk.bf16.vlgmr.msra.gmra.mrb[0].mxu0 %vm323_vm2, %v29994_v37  ;;  %v25061_v37 = vpack.c.bf16 %v25053_v41, %v25051_v35 }
 0x336   : > { %20352 = vmatpush3.bf16.msra.mxu0 %v24749_v46  ;;  %19803 = vmatprep.mubr.msk.bf16.mxu0 %vm323_vm2, %v29995_v12  ;;  %v25011_v46 = vld [vmem:[#allocation2 + $0xd0] sm:$0xff]  ;;  %v25063_v12 = vld [vmem:[#allocation2 + $0x128] sm:$0xff] }
 0x337   : > { %20401 = vmatprep.subr.bf16.mxu0 %v24985_v26  ;;  %v25021_v54 = vpack.c.bf16 %v25013_v9, %v25011_v46  ;;  %30008 = vst [vmem:[#allocation29_spill] sm:$0xff] %v25061_v37 }
 0x339   : > { %30000 = vst [vmem:[#allocation25_spill] sm:$0xff] %v25021_v54  ;;  %v25097_v54 = vld [vmem:[#allocation2 + $0x160] sm:$0xff] }
 0x33a   : > { %30016 = vst [vmem:[#allocation33_spill] sm:$0xff] %v25097_v54 }
 0x33d   : > { %19804 = vmatmul.mubr.msk.bf16.gmra.mrb[4].mxu0 %vm323_vm2, %v29998_v61  ;;  %v25067_v61 = vpack.c.bf16 %v25063_v12, %v25057_v53 }
 0x33e   : > { %19807 = vmatprep.mubr.msk.bf16.mxu0 %vm323_vm2, %v29999_v3  ;;  %v30010_v3 = vld [vmem:[#allocation40_spill] sm:$0xff] }
 0x33f   : > { %30009 = vst [vmem:[#allocation30_spill] sm:$0xff] %v25067_v61 }
 0x345   : > { %19808 = vmatmul.mubr.msk.bf16.gmra.mrb[8].mxu0 %vm323_vm2, %v30002_v62  ;;  %v25071_v62 = vld [vmem:[#allocation2 + $0x130] sm:$0xff] }
 0x346   : > { %19811 = vmatprep.mubr.msk.bf16.mxu0 %vm323_vm2, %v30003_v24  ;;  %v25073_v24 = vld [vmem:[#allocation2 + $0x138] sm:$0xff] }
 0x347   : > { %v25081_v37 = vpack.c.bf16 %v25073_v24, %v25071_v62 }
 0x349   : > { %30012 = vst [vmem:[#allocation31_spill] sm:$0xff] %v25081_v37  ;;  %v25101_v37 = vpack.c.bf16 %v25093_v49, %v25091_v28 }
 0x34b   : > { %30017 = vst [vmem:[#allocation34_spill] sm:$0xff] %v25101_v37  ;;  %v25121_v37 = vpack.c.bf16 %v25113_v16, %v25111_v13  ;;  %v9410_v16 = vshll.u32 %v24900_v11, 16  ;;  %v30031_v11 = vshll.u32 %v24389_v60, 16 }
 0x34d   : > { %19812 = vmatmul.mubr.msk.bf16.gmra.mrb[12].mxu0 %vm323_vm2, %v30006_v59  ;;  %v30011_v59 = vld [vmem:[#allocation41_spill] sm:$0xff]  ;;  %30025 = vst [vmem:[#allocation7_spill] sm:$0xff] %v25121_v37  ;;  %v30029_v37 = vld [vmem:[#allocation47_spill] sm:$0xff] }
 0x34e   : > { %19815 = vmatprep.mubr.msk.bf16.mxu0 %vm323_vm2, %v30007_v23  ;;  %v25077_v23 = vld [vmem:[#allocation2 + $0x140] sm:$0xff] }
 0x34f   : > { %v25087_v61 = vpack.c.bf16 %v25083_v50, %v25077_v23 }
 0x351   : > { %30013 = vst [vmem:[#allocation32_spill] sm:$0xff] %v25087_v61  ;;  %v25107_v61 = vpack.c.bf16 %v25103_v7, %v25097_v54 }
 0x353   : > { %30019 = vst [vmem:[#allocation36_spill] sm:$0xff] %v25107_v61  ;;  %v25127_v61 = vpack.c.bf16 %v25123_v39, %v25117_v27  ;;  %v9409_v39 = vrot.slane %v9407_v6, 3 }
 0x355   : > { %19816 = vmatmul.mubr.msk.bf16.gmra.mrb[16].mxu0 %vm323_vm2, %v30010_v3  ;;  %v30014_v3 = vld [vmem:[#allocation42_spill] sm:$0xff]  ;;  %30027 = vst [vmem:[#allocation6_spill] sm:$0xff] %v25127_v61  ;;  %v9412_v61 = vrot.slane %v9410_v16, 4  ;;  %v30033_v16 = vld [vmem:[#allocation49_spill] sm:$0xff] }
 0x356   : > { %19819 = vmatprep.mubr.msk.bf16.mxu0 %vm323_vm2, %v30011_v59  ;;  %v30015_v59 = vld [vmem:[#allocation43_spill] sm:$0xff] }
 0x357   : > { %v25138_v54 = vor.u32 %v9412_v61, %v9409_v39  ;;  %v30034_v39 = vshrl.u32 %v24389_v60, 16  ;;  %v30035_v60 = vmov 0.0  }
 0x358   : > { %393 = vst.msk [vmem:[#allocation3 + $0x40] sm:$0xff] %vm384_vm5, %v30035_v60  ;;  %387 = vst.msk [vmem:[#allocation3 + $0x10] sm:$0xff] %vm384_vm5, %v30035_v60 }
 0x359   : > { %388 = vst.msk [vmem:[#allocation3 + $0x18] sm:$0xff] %vm384_vm5, %v30035_v60  ;;  %389 = vst.msk [vmem:[#allocation3 + $0x20] sm:$0xff] %vm384_vm5, %v30035_v60 }
 0x35a   : > { %390 = vst.msk [vmem:[#allocation3 + $0x28] sm:$0xff] %vm384_vm5, %v30035_v60  ;;  %391 = vst.msk [vmem:[#allocation3 + $0x30] sm:$0xff] %vm384_vm5, %v30035_v60 }
 0x35b   : > { %392 = vst.msk [vmem:[#allocation3 + $0x38] sm:$0xff] %vm384_vm5, %v30035_v60  ;;  %394 = vst.msk [vmem:[#allocation3 + $0x48] sm:$0xff] %vm384_vm5, %v30035_v60 }
 0x35c   : > { %395 = vst.msk [vmem:[#allocation3 + $0x50] sm:$0xff] %vm384_vm5, %v30035_v60  ;;  %396 = vst.msk [vmem:[#allocation3 + $0x58] sm:$0xff] %vm384_vm5, %v30035_v60 }
 0x35d   : > { %19820 = vmatmul.mubr.msk.bf16.gmra.mrb[20].mxu0 %vm323_vm2, %v30014_v3  ;;  %v30020_v3 = vld [vmem:[#allocation44_spill] sm:$0xff]  ;;  %397 = vst.msk [vmem:[#allocation3 + $0x60] sm:$0xff] %vm384_vm5, %v30035_v60  ;;  %398 = vst.msk [vmem:[#allocation3 + $0x68] sm:$0xff] %vm384_vm5, %v30035_v60 }
 0x35e   : > { %19823 = vmatprep.mubr.msk.bf16.mxu0 %vm323_vm2, %v30015_v59  ;;  %v30023_v59 = vld [vmem:[#allocation45_spill] sm:$0xff]  ;;  %399 = vst.msk [vmem:[#allocation3 + $0x70] sm:$0xff] %vm384_vm5, %v30035_v60  ;;  %400 = vst.msk [vmem:[#allocation3 + $0x78] sm:$0xff] %vm384_vm5, %v30035_v60 }
 0x35f   : > { %401 = vst.msk [vmem:[#allocation3 + $0x80] sm:$0xff] %vm384_vm5, %v30035_v60  ;;  %402 = vst.msk [vmem:[#allocation3 + $0x88] sm:$0xff] %vm384_vm5, %v30035_v60 }
 0x360   : > { %403 = vst.msk [vmem:[#allocation3 + $0x90] sm:$0xff] %vm384_vm5, %v30035_v60  ;;  %404 = vst.msk [vmem:[#allocation3 + $0x98] sm:$0xff] %vm384_vm5, %v30035_v60 }
 0x361   : > { %405 = vst.msk [vmem:[#allocation3 + $0xa0] sm:$0xff] %vm384_vm5, %v30035_v60  ;;  %406 = vst.msk [vmem:[#allocation3 + $0xa8] sm:$0xff] %vm384_vm5, %v30035_v60 }
 0x362   : > { %407 = vst.msk [vmem:[#allocation3 + $0xb0] sm:$0xff] %vm384_vm5, %v30035_v60  ;;  %408 = vst.msk [vmem:[#allocation3 + $0xb8] sm:$0xff] %vm384_vm5, %v30035_v60 }
 0x363   : > { %409 = vst.msk [vmem:[#allocation3 + $0xc0] sm:$0xff] %vm384_vm5, %v30035_v60  ;;  %410 = vst.msk [vmem:[#allocation3 + $0xc8] sm:$0xff] %vm384_vm5, %v30035_v60 }
 0x364   : > { %411 = vst.msk [vmem:[#allocation3 + $0xd0] sm:$0xff] %vm384_vm5, %v30035_v60  ;;  %412 = vst.msk [vmem:[#allocation3 + $0xd8] sm:$0xff] %vm384_vm5, %v30035_v60 }
 0x365   : > { %19824 = vmatmul.mubr.msk.bf16.gmra.mrb[24].mxu0 %vm323_vm2, %v30020_v3  ;;  %v25129_v3 = vld [vmem:[#allocation2 + $0x18] sm:$0xff]  ;;  %413 = vst.msk [vmem:[#allocation3 + $0xe0] sm:$0xff] %vm384_vm5, %v30035_v60  ;;  %414 = vst.msk [vmem:[#allocation3 + $0xe8] sm:$0xff] %vm384_vm5, %v30035_v60 }
 0x366   : > { %19827 = vmatprep.mubr.msk.bf16.mxu0 %vm323_vm2, %v30023_v59  ;;  %v9047_v19 = vpack.c.bf16 %v25129_v3, %v8991_v33  ;;  %415 = vst.msk [vmem:[#allocation3 + $0xf0] sm:$0xff] %vm384_vm5, %v30035_v60  ;;  %416 = vst.msk [vmem:[#allocation3 + $0xf8] sm:$0xff] %vm384_vm5, %v30035_v60 }
 0x367   : > { %417 = vst.msk [vmem:[#allocation3 + $0x100] sm:$0xff] %vm384_vm5, %v30035_v60  ;;  %418 = vst.msk [vmem:[#allocation3 + $0x108] sm:$0xff] %vm384_vm5, %v30035_v60 }
 0x368   : > { %v9399_v59 = vshrl.u32 %v9047_v19, 16  ;;  %v9402_v30 = vshll.u32 %v9047_v19, 16  ;;  %v3966_v19 = vrot.slane %v30031_v11, 1  ;;  %419 = vst.msk [vmem:[#allocation3 + $0x110] sm:$0xff] %vm384_vm5, %v30035_v60  ;;  %420 = vst.msk [vmem:[#allocation3 + $0x118] sm:$0xff] %vm384_vm5, %v30035_v60 }
 0x369   : > { %421 = vst.msk [vmem:[#allocation3 + $0x120] sm:$0xff] %vm384_vm5, %v30035_v60  ;;  %422 = vst.msk [vmem:[#allocation3 + $0x128] sm:$0xff] %vm384_vm5, %v30035_v60  ;;  %v17788_v11 = vld [vmem:[%s29182_s4 + $0x4] sm:$0x3] }
 0x36a   : > { %v9401_v13 = vrot.slane %v9399_v59, 3  ;;  %v9404_v7 = vrot.slane %v9402_v30, 4  ;;  %v725_v30 = vld [vmem:[#allocation2 + $0x1c8] sm:$0xff]  ;;  %423 = vst.msk [vmem:[#allocation3 + $0x130] sm:$0xff] %vm384_vm5, %v30035_v60  ;;  %424 = vst.msk [vmem:[#allocation3 + $0x138] sm:$0xff] %vm384_vm5, %v30035_v60 }
 0x36b   : > { %425 = vst.msk [vmem:[#allocation3 + $0x140] sm:$0xff] %vm384_vm5, %v30035_v60  ;;  %426 = vst.msk [vmem:[#allocation3 + $0x148] sm:$0xff] %vm384_vm5, %v30035_v60 }
 0x36c   : > { %v9405_v27 = vor.u32 %v9404_v7, %v9401_v13  ;;  %v3963_v13 = vpack.c.bf16 %v725_v30, %v725_v30  ;;  %427 = vst.msk [vmem:[#allocation3 + $0x150] sm:$0xff] %vm384_vm5, %v30035_v60  ;;  %428 = vst.msk [vmem:[#allocation3 + $0x158] sm:$0xff] %vm384_vm5, %v30035_v60  ;;  %v25326_v30 = vpack.c.bf16 %v24930_v14, %v24926_v0 }
 0x36d   : > { %19828 = vmatmul.mubr.msk.bf16.gmra.mrb[28].mxu0 %vm323_vm2, %v30028_v1  ;;  %v30030_v1 = vld [vmem:[#allocation48_spill] sm:$0xff]  ;;  %429 = vst.msk [vmem:[#allocation3 + $0x160] sm:$0xff] %vm384_vm5, %v30035_v60  ;;  %430 = vst.msk [vmem:[#allocation3 + $0x168] sm:$0xff] %vm384_vm5, %v30035_v60  ;;  %v25352_v0 = vpack.c.bf16 %v24963_v17, %v24955_v45  ;;  %v25356_v14 = vpack.c.bf16 %v24969_v43, %v24965_v10  ;;  %v25388_v45 = vpack.c.bf16 %v25031_v47, %v25023_v29  ;;  %v30054_v29 = vld [vmem:[#allocation35_spill] sm:$0xff] }
 0x36e   : > { %19831 = vmatprep.mubr.msk.bf16.mxu0 %vm323_vm2, %v30029_v37  ;;  %v25142_v33 = vsel %vm1082_vm3, %v9405_v27, %v25138_v54  ;;  %v30032_v37 = vld [vmem:[#allocation50_spill] sm:$0xff]  ;;  %v3968_v27 = vor.u32 %v3966_v19, %v30034_v39  ;;  %v25160_v61 = vshll.u32 %v3963_v13, 16  ;;  %431 = vst.msk [vmem:[#allocation3 + $0x170] sm:$0xff] %vm384_vm5, %v30035_v60  ;;  %432 = vst.msk [vmem:[#allocation3 + $0x178] sm:$0xff] %vm384_vm5, %v30035_v60  ;;  %v30065_v39 = vld [vmem:[#allocation5_spill] sm:$0xff] }
 0x36f   : > { %v3967_v6 = vsel %vm1610_vm4, %v30032_v37, %v3966_v19  ;;  %433 = vst.msk [vmem:[#allocation3 + $0x180] sm:$0xff] %vm384_vm5, %v30035_v60  ;;  %434 = vst.msk [vmem:[#allocation3 + $0x188] sm:$0xff] %vm384_vm5, %v30035_v60  ;;  %v25305_v19 = vpack.c.bf16 %v24910_v18, %v24908_v5  ;;  %v25308_v37 = vand.u32 %v17788_v11, %v23066_v4  ;;  %v30055_v47 = vld [vmem:[#allocation38_spill] sm:$0xff] }
 0x370   : > { %v3972_v7 = vsel %vm1610_vm4, %v3968_v27, %v24857_v20  ;;  %435 = vst.msk [vmem:[#allocation3 + $0x190] sm:$0xff] %vm384_vm5, %v30035_v60  ;;  %436 = vst.msk [vmem:[#allocation3 + $0x198] sm:$0xff] %vm384_vm5, %v30035_v60  ;;  %v25321_v18 = vpack.c.bf16 %v24924_v51, %v24912_v42  ;;  %v25339_v42 = vpack.c.bf16 %v24944_v48, %v24936_v21 }
 0x371   : > { %437 = vst.msk [vmem:[#allocation3 + $0x1a0] sm:$0xff] %vm384_vm5, %v30035_v60  ;;  %438 = vst.msk [vmem:[#allocation3 + $0x1a8] sm:$0xff] %vm384_vm5, %v30035_v60  ;;  %v25343_v51 = vpack.c.bf16 %v24949_v22, %v24946_v63  ;;  %v25364_v21 = vpack.c.bf16 %v24989_v44, %v24975_v32  ;;  %v25368_v48 = vpack.c.bf16 %v24996_v52, %v24991_v8  ;;  %v25426_v52 = vpop.permute.xlu0 %4381 }
 0x372   : > { %439 = vst.msk [vmem:[#allocation3 + $0x1b0] sm:$0xff] %vm384_vm5, %v30035_v60  ;;  %440 = vst.msk [vmem:[#allocation3 + $0x1b8] sm:$0xff] %vm384_vm5, %v30035_v60  ;;  %v25376_v63 = vpack.c.bf16 %v25011_v46, %v25002_v15  ;;  %v25380_v22 = vpack.c.bf16 %v25017_v34, %v25013_v9  ;;  %v25392_v17 = vpack.c.bf16 %v25037_v55, %v25033_v58  ;;  %v30050_v15 = vld [vmem:[#allocation33_spill] sm:$0xff]  ;;  %v25432_v9 = vpop.permute.xlu1 %4391 }
 0x373   : > { %441 = vst.msk [vmem:[#allocation3 + $0x1c0] sm:$0xff] %vm384_vm5, %v30035_v60  ;;  %442 = vst.msk [vmem:[#allocation3 + $0x1c8] sm:$0xff] %vm384_vm5, %v30035_v60  ;;  %v25400_v10 = vpack.c.bf16 %v25051_v35, %v25043_v31  ;;  %v25404_v43 = vpack.c.bf16 %v25057_v53, %v25053_v41  ;;  %v25412_v32 = vpack.c.bf16 %v25071_v62, %v25063_v12  ;;  %v30059_v31 = vld [vmem:[#allocation39_spill] sm:$0xff]  ;;  %v30063_v62 = vld [vmem:[#allocation16_spill] sm:$0xff] }
 0x374   : > { %30036 = vst [vmem:[#allocation8_spill] sm:$0xff] %v25321_v18  ;;  %30037 = vst [vmem:[#allocation9_spill] sm:$0xff] %v25326_v30  ;;  %v25416_v44 = vpack.c.bf16 %v25077_v23, %v25073_v24  ;;  %v25424_v8 = vpack.c.bf16 %v25091_v28, %v25083_v50  ;;  %v25430_v46 = vpack.c.bf16 %v30050_v15, %v25093_v49  ;;  %v30058_v28 = vld [vmem:[#allocation37_spill] sm:$0xff]  ;;  %v30061_v50 = vld [vmem:[#allocation15_spill] sm:$0xff]  ;;  %v29379_v24 = vshrl.u32 %v30063_v62, 16 }
 0x375   : > { %19832 = vmatmul.mubr.msk.bf16.gmra.mrb[32].mxu0 %vm323_vm2, %v30030_v1  ;;  %v3986_v1 = vrot.slane %v25160_v61, 1  ;;  %30038 = vst [vmem:[#allocation10_spill] sm:$0xff] %v25339_v42  ;;  %30039 = vst [vmem:[#allocation11_spill] sm:$0xff] %v25343_v51  ;;  %v25438_v34 = vpop.permute.xlu0 %4386  ;;  %v25442_v58 = vpack.c.bf16 %v30055_v47, %v30054_v29  ;;  %v25448_v49 = vpack.c.bf16 %v30059_v31, %v30058_v28  ;;  %v29384_v35 = vshrl.u32 %v30061_v50, 16  ;;  %v25458_v12 = vld [vmem:[#allocation2 + $0x190] sm:$0xff] }
 0x376   : > { %19835 = vmatprep.mubr.msk.bf16.mxu0 %vm323_vm2, %v24240_v25  ;;  %v3980_v25 = vshrl.u32 %v24853_v40, 16  ;;  %v22854_v40 = vld [vmem:[%s29184_s6 + $0x20] sm:$0xff]   ;;  %30040 = vst [vmem:[#allocation12_spill] sm:$0xff] %v25352_v0  ;;  %30041 = vst [vmem:[#allocation13_spill] sm:$0xff] %v25356_v14  ;;  %v25444_v55 = vpop.permute.xlu1 %4396  ;;  %v29386_v41 = vshll.u32 %v30061_v50, 16  ;;  %v29383_v23 = vshll.u32 %v30063_v62, 16  ;;  %v25466_v27 = vpack.c.bf16 %v25458_v12, %v30065_v39 }
 0x377   : > { %19847 = vmatprep.subr.bf16.mxu1 %v22854_v40  ;;  %30042 = vst [vmem:[#allocation14_spill] sm:$0xff] %v25364_v21  ;;  %30043 = vst [vmem:[#allocation40_spill] sm:$0xff] %v25368_v48  ;;  %v9418_v13 = vrot.slane %v29384_v35, 3 }
 0x378   : > { %v3982_v59 = vor.u32 %v3980_v25, %v24869_v36  ;;  %v25285_v36 = vpack.c.bf16 %v24891_v2, %v25129_v3  ;;  %19848 = vmatpush3.bf16.msra.mxu1 %v22854_v40  ;;  %v22856_v2 = vld [vmem:[%s29184_s6 + $0x30] sm:$0xff]   ;;  %v25301_v3 = vpack.c.bf16 %v24904_v57, %v24893_v38  ;;  %v4795_v38 = vld [vmem:[#allocation3 + $0x18] sm:$0xff]  ;;  %v4796_v57 = vld [vmem:[#allocation3 + $0x20] sm:$0xff]  ;;  %30044 = vst [vmem:[#allocation41_spill] sm:$0xff] %v25376_v63  ;;  %v9427_v25 = vrot.slane %v29379_v24, 3 }
 0x379   : > { %v4843_v5 = vpack.c.bf16 %v4796_v57, %v4795_v38  ;;  %30045 = vst [vmem:[#allocation42_spill] sm:$0xff] %v25380_v22  ;;  %30046 = vst [vmem:[#allocation43_spill] sm:$0xff] %v25388_v45  ;;  %v25454_v53 = vpop.permute.xlu0 %4401  ;;  %v9430_v61 = vrot.slane %v29383_v23, 4  ;;  %v30069_v40 = vld [vmem:[#allocation17_spill] sm:$0xff]  ;;  %v30081_v23 = vld [vmem:[#allocation22_spill] sm:$0xff] }
 0x37a   : > { %v3987_v20 = vsel %vm1610_vm4, %v3982_v59, %v3986_v1  ;;  %30047 = vst [vmem:[#allocation44_spill] sm:$0xff] %v25392_v17  ;;  %30048 = vst [vmem:[#allocation45_spill] sm:$0xff] %v25424_v8  ;;  %v17813_v57 = vld [vmem:[%s29182_s4 + $0x6] sm:$0x3]  ;;  %v29393_v35 = vshrl.u32 %v30081_v23, 16 }
 0x37b   : > { %19855 = vmatprep.mubr.msk.bf16.mxu1 %vm384_vm5, %v4843_v5  ;;  %30049 = vst [vmem:[#allocation46_spill] sm:$0xff] %v25426_v52  ;;  %30051 = vst [vmem:[#allocation47_spill] sm:$0xff] %v25430_v46  ;;  %v9431_v11 = vor.u32 %v9430_v61, %v9427_v25  ;;  %v25505_v39 = vand.u32 %v17813_v57, %v23066_v4 }
 0x37c   : > { %30052 = vst [vmem:[#allocation48_spill] sm:$0xff] %v25432_v9  ;;  %30053 = vst [vmem:[#allocation50_spill] sm:$0xff] %v25438_v34 }
 0x37d   : > { %19836 = vmatmul.mubr.msk.bf16.gmra.mrb[36].mxu0 %vm323_vm2, %v30033_v16  ;;  %30056 = vst [vmem:[#allocation49_spill] sm:$0xff] %v25442_v58  ;;  %30057 = vst [vmem:[#allocation33_spill] sm:$0xff] %v25444_v55  ;;  %v25462_v16 = vpop.permute.xlu1 %4406  ;;  %v25476_v59 = vpop.permute.xlu0 %4411 }
 0x37e   : > { %19839 = vmatprep.mubr.msk.bf16.mxu0 %vm323_vm2, %v3967_v6  ;;  %v22857_v6 = vld [vmem:[%s29184_s6 + $0x38] sm:$0xff]   ;;  %30060 = vst [vmem:[#allocation35_spill] sm:$0xff] %v25448_v49  ;;  %30062 = vst [vmem:[#allocation38_spill] sm:$0xff] %v25454_v53 }
 0x37f   : > { %30064 = vst [vmem:[#allocation37_spill] sm:$0xff] %v25462_v16  ;;  %30066 = vst [vmem:[#allocation39_spill] sm:$0xff] %v25466_v27 }
 0x380   : > { %30067 = vst [vmem:[#allocation5_spill] sm:$0xff] %v25476_v59 }
 0x381   : > { %v25480_v1 = vpop.permute.xlu1 %4416  ;;  %v25491_v5 = vpop.permute.xlu0 %4421 }
 0x382   : > { %30068 = vst [vmem:[#allocation51_spill] sm:$0xff] %v25480_v1  ;;  %30071 = vst [vmem:[#allocation52_spill] sm:$0xff] %v25491_v5 }
 0x385   : > { %19840 = vmatmul.mubr.msk.bf16.gmra.mrb[40].mxu0 %vm323_vm2, %v3972_v7  ;;  %v9421_v7 = vrot.slane %v29386_v41, 4  ;;  %v25517_v57 = vpop.permute.xlu0 %4431 }
 0x386   : > { %19843 = vmatprep.mubr.msk.bf16.mxu0 %vm323_vm2, %v24879_v56  ;;  %v22855_v56 = vld [vmem:[%s29184_s6 + $0x28] sm:$0xff]   ;;  %30075 = vst [vmem:[#allocation54_spill] sm:$0xff] %v25517_v57 }
 0x387   : > { %19849 = vmatprep.subr.bf16.mxu1 %v22855_v56  ;;  %v9422_v60 = vor.u32 %v9421_v7, %v9418_v13  ;;  %v25507_v13 = vpop.permute.xlu1 %4426  ;;  %v30073_v7 = vld [vmem:[#allocation19_spill] sm:$0xff] }
 0x388   : > { %19850 = vmatpush3.bf16.msra.mxu1 %v22855_v56  ;;  %v29382_v56 = vshll.u32 %v30069_v40, 16  ;;  %30072 = vst [vmem:[#allocation53_spill] sm:$0xff] %v25507_v13  ;;  %v29380_v25 = vshrl.u32 %v30073_v7, 16  ;;  %v29381_v61 = vshll.u32 %v30073_v7, 16 }
 0x389   : > { %19851 = vmatprep.subr.bf16.mxu1 %v22856_v2  ;;  %v9423_v15 = vsel %vm1082_vm3, %v25138_v54, %v9422_v60  ;;  %v9432_v47 = vsel %vm1082_vm3, %v9422_v60, %v9431_v11 }
 0x38a   : > { %v9439_v29 = vrot.slane %v29382_v56, 4 }
 0x38b   : > { %v25519_v24 = vpop.permute.xlu1 %4436 }
 0x38c   : > { %19852 = vmatpush3.bf16.msra.mxu1 %v22856_v2  ;;  %v30070_v2 = vld [vmem:[#allocation18_spill] sm:$0xff]  ;;  %30076 = vst [vmem:[#allocation55_spill] sm:$0xff] %v25519_v24 }
 0x38d   : > { %19844 = vmatmul.mubr.msk.bf16.gmra.mrb[44].mxu0 %vm323_vm2, %v3987_v20  ;;  %19853 = vmatprep.subr.bf16.mxu1 %v22857_v6  ;;  %v29377_v20 = vshrl.u32 %v30069_v40, 16  ;;  %v29378_v38 = vshll.u32 %v30070_v2, 16 }
 0x38e   : > { %20353 = vmatprep.mubr.msk.bf16.mxu0 %vm323_vm2, %v25285_v36 }
 0x38f   : > { %v9448_v31 = vrot.slane %v29378_v38, 4  ;;  %v25545_v41 = vpop.permute.xlu1 %4446 }
 0x390   : > { %19854 = vmatpush3.bf16.msra.mxu1 %v22857_v6  ;;  %v29376_v6 = vshrl.u32 %v30070_v2, 16  ;;  %30082 = vst [vmem:[#allocation59_spill] sm:$0xff] %v25545_v41 }
 0x392   : > { %v9445_v28 = vrot.slane %v29376_v6, 3  ;;  %v30074_v6 = vld [vmem:[#allocation20_spill] sm:$0xff] }
 0x393   : > { %v29387_v38 = vshll.u32 %v30074_v6, 16 }
 0x394   : > { %v9449_v60 = vor.u32 %v9448_v31, %v9445_v28 }
 0x395   : > { %20354 = vmatmul.mubr.msk.bf16.vlgmr.msra.gmra.mrb[48].mxu0 %vm323_vm2, %v25301_v3  ;;  %v9466_v28 = vrot.slane %v29387_v38, 4 }
 0x396   : > { %20402 = vmatpush3.bf16.msra.mxu0 %v24985_v26  ;;  %20357 = vmatprep.mubr.msk.bf16.mxu0 %vm323_vm2, %v25305_v19  ;;  %v25335_v26 = vld [vmem:[%s29184_s6] sm:$0xff]  }
 0x397   : > { %20451 = vmatprep.subr.bf16.mxu0 %v25308_v37  ;;  %19903 = vmatprep.subr.bf16.mxu1 %v25335_v26 }
 0x39d   : > { %20358 = vmatmul.mubr.msk.bf16.gmra.mrb[52].mxu0 %vm323_vm2, %v25321_v18 }
 0x39e   : > { %20361 = vmatprep.mubr.msk.bf16.mxu0 %vm323_vm2, %v25326_v30 }
 0x3a5   : > { %20362 = vmatmul.mubr.msk.bf16.gmra.mrb[56].mxu0 %vm323_vm2, %v25339_v42 }
 0x3a6   : > { %20365 = vmatprep.mubr.msk.bf16.mxu0 %vm323_vm2, %v25343_v51 }
 0x3ad   : > { %20366 = vmatmul.mubr.msk.bf16.gmra.mrb[60].mxu0 %vm323_vm2, %v25352_v0 }
 0x3ae   : > { %20369 = vmatprep.mubr.msk.bf16.mxu0 %vm323_vm2, %v25356_v14 }
 0x3b5   : > { %20370 = vmatmul.mubr.msk.bf16.gmra.mrb[64].mxu0 %vm323_vm2, %v25364_v21 }
 0x3b6   : > { %20373 = vmatprep.mubr.msk.bf16.mxu0 %vm323_vm2, %v25368_v48 }
 0x3bd   : > { %20374 = vmatmul.mubr.msk.bf16.gmra.mrb[68].mxu0 %vm323_vm2, %v25376_v63 }
 0x3be   : > { %20377 = vmatprep.mubr.msk.bf16.mxu0 %vm323_vm2, %v25380_v22 }
 0x3c5   : > { %20378 = vmatmul.mubr.msk.bf16.gmra.mrb[72].mxu0 %vm323_vm2, %v25388_v45 }
 0x3c6   : > { %20381 = vmatprep.mubr.msk.bf16.mxu0 %vm323_vm2, %v25392_v17 }
 0x3cd   : > { %20382 = vmatmul.mubr.msk.bf16.gmra.mrb[76].mxu0 %vm323_vm2, %v25400_v10 }
 0x3ce   : > { %20385 = vmatprep.mubr.msk.bf16.mxu0 %vm323_vm2, %v25404_v43 }
 0x3d5   : > { %20386 = vmatmul.mubr.msk.bf16.gmra.mrb[80].mxu0 %vm323_vm2, %v25412_v32 }
 0x3d6   : > { %20389 = vmatprep.mubr.msk.bf16.mxu0 %vm323_vm2, %v25416_v44 }
 0x3dd   : > { %20390 = vmatmul.mubr.msk.bf16.gmra.mrb[84].mxu0 %vm323_vm2, %v25424_v8 }
 0x3de   : > { %20393 = vmatprep.mubr.msk.bf16.mxu0 %vm323_vm2, %v25430_v46 }
 0x3e5   : > { %20394 = vmatmul.mubr.msk.bf16.gmra.mrb[88].mxu0 %vm323_vm2, %v25442_v58 }
 0x3e6   : > { %20397 = vmatprep.mubr.msk.bf16.mxu0 %vm323_vm2, %v25448_v49 }
 0x3ed   : > { %20398 = vmatmul.mubr.msk.bf16.gmra.mrb[92].mxu0 %vm323_vm2, %v25466_v27 }
 0x3ee   : > { %20403 = vmatprep.mubr.msk.bf16.mxu0 %vm323_vm2, %v25142_v33  ;;  %v9436_v33 = vrot.slane %v29377_v20, 3  ;;  %v29385_v20 = vshrl.u32 %v30074_v6, 16 }
 0x3f0   : > { %v9440_v54 = vor.u32 %v9439_v29, %v9436_v33  ;;  %v9457_v33 = vrot.slane %v29381_v61, 4 }
 0x3f2   : > { %v25529_v29 = vsel %vm1082_vm3, %v9440_v54, %v9449_v60 }
 0x3f3   : > { %30078 = vst [vmem:[#allocation57_spill] sm:$0xff] %v25529_v29 }
 0x3f5   : > { %20404 = vmatmul.mubr.msk.bf16.vlgmr.msra.gmra.mrb[48].mxu0 %vm323_vm2, %v9423_v15  ;;  %v9454_v15 = vrot.slane %v29380_v25, 3  ;;  %v30080_v25 = vld [vmem:[#allocation21_spill] sm:$0xff] }
 0x3f6   : > { %20452 = vmatpush3.bf16.msra.mxu0 %v25308_v37  ;;  %20407 = vmatprep.mubr.msk.bf16.mxu0 %vm323_vm2, %v9432_v47  ;;  %v25522_v37 = vsel %vm1082_vm3, %v9431_v11, %v9440_v54  ;;  %v9463_v47 = vrot.slane %v29385_v20, 3  ;;  %v25537_v11 = vpop.permute.xlu0 %4441  ;;  %v29391_v61 = vshrl.u32 %v30080_v25, 16  ;;  %v29395_v54 = vshll.u32 %v30080_v25, 16  ;;  %v25567_v25 = vpop.permute.xlu1 %4456 }
 0x3f7   : > { %20501 = vmatprep.subr.bf16.mxu0 %v25505_v39  ;;  %30077 = vst [vmem:[#allocation56_spill] sm:$0xff] %v25522_v37  ;;  %30079 = vst [vmem:[#allocation58_spill] sm:$0xff] %v25537_v11  ;;  %v9458_v31 = vor.u32 %v9457_v33, %v9454_v15  ;;  %v29394_v20 = vshll.u32 %v30081_v23, 16 }
 0x3f8   : > { %v9467_v56 = vor.u32 %v9466_v28, %v9463_v47  ;;  %v9475_v15 = vrot.slane %v29395_v54, 4  ;;  %v9481_v47 = vrot.slane %v29393_v35, 3  ;;  %30087 = vst [vmem:[#allocation63_spill] sm:$0xff] %v25567_v25 }
 0x3f9   : > { %v25548_v38 = vsel %vm1082_vm3, %v9449_v60, %v9458_v31  ;;  %v9484_v28 = vrot.slane %v29394_v20, 4  ;;  %v30086_v60 = vld [vmem:[#allocation23_spill] sm:$0xff]  ;;  %v30088_v20 = vld [vmem:[#allocation24_spill] sm:$0xff] }
 0x3fa   : > { %30083 = vst [vmem:[#allocation60_spill] sm:$0xff] %v25548_v38  ;;  %v25555_v33 = vsel %vm1082_vm3, %v9458_v31, %v9467_v56  ;;  %v25572_v31 = vld [vmem:[%s29183_s5] ss:$0 sm:$0xff]  ;;  %v29413_v54 = vshrl.u32 %v30088_v20, 16  ;;  %v29414_v23 = vshll.u32 %v30088_v20, 16  ;;  %v30089_v2 = vshrl.u32 %v30086_v60, 16 }
 0x3fb   : > { %30084 = vst [vmem:[#allocation61_spill] sm:$0xff] %v25555_v33  ;;  %v30090_v62 = vshll.u32 %v30086_v60, 16  ;;  %v25597_v60 = vpop.permute.xlu1 %4466 }
 0x3fc   : > { %v9490_v40 = vrot.slane %v30089_v2, 3  ;;  %30094 = vst [vmem:[#allocation67_spill] sm:$0xff] %v25597_v60 }
 0x3fd   : > { %20408 = vmatmul.mubr.msk.bf16.gmra.mrb[52].mxu0 %vm323_vm2, %v25522_v37  ;;  %v9472_v37 = vrot.slane %v29391_v61, 3  ;;  %v9493_v50 = vrot.slane %v30090_v62, 4 }
 0x3fe   : > { %20411 = vmatprep.mubr.msk.bf16.mxu0 %vm323_vm2, %v25529_v29  ;;  %v25561_v29 = vpop.permute.xlu0 %4451 }
 0x3ff   : > { %30085 = vst [vmem:[#allocation62_spill] sm:$0xff] %v25561_v29  ;;  %v9476_v35 = vor.u32 %v9475_v15, %v9472_v37 }
 0x401   : > { %v25587_v15 = vsel %vm1082_vm3, %v9467_v56, %v9476_v35 }
 0x402   : > { %v25583_v27 = vpop.permute.xlu0 %4461  ;;  %30092 = vst [vmem:[#allocation65_spill] sm:$0xff] %v25587_v15 }
 0x403   : > { %30091 = vst [vmem:[#allocation64_spill] sm:$0xff] %v25583_v27 }
 0x405   : > { %20412 = vmatmul.mubr.msk.bf16.gmra.mrb[56].mxu0 %vm323_vm2, %v25548_v38  ;;  %v9485_v38 = vor.u32 %v9484_v28, %v9481_v47  ;;  %v9499_v47 = vrot.slane %v29413_v54, 3  ;;  %v9494_v54 = vor.u32 %v9493_v50, %v9490_v40 }
 0x406   : > { %20415 = vmatprep.mubr.msk.bf16.mxu0 %vm323_vm2, %v25555_v33  ;;  %v25614_v40 = vpop.permute.xlu0 %4471 }
 0x407   : > { %v25595_v62 = vsel %vm1082_vm3, %v9476_v35, %v9485_v38  ;;  %30097 = vst [vmem:[#allocation68_spill] sm:$0xff] %v25614_v40 }
 0x408   : > { %v19801_v7 = vpop.f32.mrb[0].mxu0  ;;  %30093 = vst [vmem:[#allocation66_spill] sm:$0xff] %v25595_v62 }
 0x409   : > { %v4285_v6 = vadd.f32 %v19801_v7, %v25572_v31  ;;  %v4037_v61 = vpop.f32.mrb[1].mxu0  ;;  %v9502_v7 = vrot.slane %v29414_v23, 4  ;;  %v30095_v23 = vld [vmem:[#allocation25_spill] sm:$0xff] }
 0x40a   : > { %v4283_v33 = vadd.f32 %v25572_v31, %v4037_v61  ;;  %v19802_v37 = vpop.f32.mrb[2].mxu0 }
 0x40b   : > { %v4333_v28 = vmax.f32 %v4285_v6, 0.0  ;;  %v4286_v2 = vadd.f32 %v19802_v37, %v25572_v31  ;;  %v4040_v49 = vpop.f32.mrb[3].mxu0  ;;  %v29426_v6 = vshrl.u32 %v30095_v23, 16  ;;  %v25607_v35 = vor.u32 %v9502_v7, %v9499_v47 }
 0x40c   : > { %v4331_v61 = vmax.f32 %v4283_v33, 0.0  ;;  %v4284_v58 = vadd.f32 %v25572_v31, %v4040_v49  ;;  %v29428_v33 = vshll.u32 %v30095_v23, 16 }
 0x40d   : > { %v4621_v56 = vmul.f32 %v25432_v9, %v4333_v28  ;;  %v4334_v46 = vmax.f32 %v4286_v2, 0.0  ;;  %20416 = vmatmul.mubr.msk.bf16.gmra.mrb[60].mxu0 %vm323_vm2, %v25587_v15  ;;  %v30096_v28 = vld [vmem:[#allocation26_spill] sm:$0xff] }
 0x40e   : > { %v4619_v37 = vmul.f32 %v25426_v52, %v4331_v61  ;;  %v4332_v20 = vmax.f32 %v4284_v58, 0.0  ;;  %20419 = vmatprep.mubr.msk.bf16.mxu0 %vm323_vm2, %v25595_v62  ;;  %v30103_v62 = vld [vmem:[#allocation27_spill] sm:$0xff] }
 0x40f   : > { %4669 = vst.msk [vmem:[#allocation3 + $0x40] sm:$0xff] %vm384_vm5, %v4621_v56  ;;  %v4622_v49 = vmul.f32 %v25444_v55, %v4334_v46  ;;  %v25621_v56 = vsel %vm1082_vm3, %v9485_v38, %v9494_v54  ;;  %v25623_v46 = vpop.permute.xlu1 %4476  ;;  %v30101_v55 = vshrl.u32 %v30096_v28, 16 }
 0x410   : > { %4667 = vst.msk [vmem:[#allocation3 + $0x30] sm:$0xff] %vm384_vm5, %v4619_v37  ;;  %v4620_v58 = vmul.f32 %v25438_v34, %v4332_v20  ;;  %v19805_v61 = vpop.f32.mrb[4].mxu0  ;;  %30098 = vst [vmem:[#allocation69_spill] sm:$0xff] %v25621_v56  ;;  %v25629_v37 = vsel %vm1082_vm3, %v9494_v54, %v25607_v35  ;;  %v9508_v20 = vrot.slane %v29426_v6, 3 }
 0x411   : > { %4670 = vst.msk [vmem:[#allocation3 + $0x48] sm:$0xff] %vm384_vm5, %v4622_v49  ;;  %v4289_v47 = vadd.f32 %v19805_v61, %v25572_v31  ;;  %v4053_v7 = vpop.f32.mrb[5].mxu0  ;;  %30099 = vst [vmem:[#allocation70_spill] sm:$0xff] %v25623_v46  ;;  %v9511_v49 = vrot.slane %v29428_v33, 4 }
 0x412   : > { %4668 = vst.msk [vmem:[#allocation3 + $0x38] sm:$0xff] %vm384_vm5, %v4620_v58  ;;  %v4287_v50 = vadd.f32 %v25572_v31, %v4053_v7  ;;  %v19806_v2 = vpop.f32.mrb[6].mxu0  ;;  %30100 = vst [vmem:[#allocation71_spill] sm:$0xff] %v25629_v37  ;;  %v9517_v58 = vrot.slane %v30101_v55, 3  ;;  %v30102_v7 = vshll.u32 %v30096_v28, 16  ;;  %v25648_v28 = vpop.permute.xlu0 %4481 }
 0x413   : > { %v4337_v61 = vmax.f32 %v4289_v47, 0.0  ;;  %v4290_v38 = vadd.f32 %v19806_v2, %v25572_v31  ;;  %v4056_v34 = vpop.f32.mrb[7].mxu0  ;;  %v4797_v2 = vld [vmem:[#allocation3 + $0x28] sm:$0xff]  ;;  %v30104_v47 = vld [vmem:[#allocation28_spill] sm:$0xff]  ;;  %30105 = vst [vmem:[#allocation27_spill] sm:$0xff] %v25648_v28  ;;  %v25655_v15 = vpop.permute.xlu1 %4486 }
 0x414   : > { %v9520_v52 = vrot.slane %v30102_v7, 4  ;;  %v4335_v9 = vmax.f32 %v4287_v50, 0.0  ;;  %v4288_v54 = vadd.f32 %v25572_v31, %v4056_v34  ;;  %v9512_v7 = vor.u32 %v9511_v49, %v9508_v20  ;;  %30106 = vst [vmem:[#allocation72_spill] sm:$0xff] %v25655_v15 }
 0x415   : > { %v4625_v23 = vmul.f32 %v25476_v59, %v4337_v61  ;;  %v4338_v33 = vmax.f32 %v4290_v38, 0.0  ;;  %20420 = vmatmul.mubr.msk.bf16.gmra.mrb[64].mxu0 %vm323_vm2, %v25621_v56 }
 0x416   : > { %v4623_v50 = vmul.f32 %v25454_v53, %v4335_v9  ;;  %v4336_v34 = vmax.f32 %v4288_v54, 0.0  ;;  %20423 = vmatprep.mubr.msk.bf16.mxu0 %vm323_vm2, %v25629_v37  ;;  %v9521_v6 = vor.u32 %v9520_v52, %v9517_v58  ;;  %v30107_v9 = vshrl.u32 %v30103_v62, 16  ;;  %v4800_v58 = vld [vmem:[#allocation3 + $0x40] sm:$0xff] }
 0x417   : > { %4673 = vst.msk [vmem:[#allocation3 + $0x60] sm:$0xff] %vm384_vm5, %v4625_v23  ;;  %v4626_v61 = vmul.f32 %v25480_v1, %v4338_v33  ;;  %v4798_v38 = vld [vmem:[#allocation3 + $0x30] sm:$0xff]  ;;  %v30108_v53 = vshll.u32 %v30103_v62, 16  ;;  %v22859_v23 = vld [vmem:[%s29184_s6 + $0x8] sm:$0xff]  }
 0x418   : > { %4671 = vst.msk [vmem:[#allocation3 + $0x50] sm:$0xff] %vm384_vm5, %v4623_v50  ;;  %v4624_v55 = vmul.f32 %v25462_v16, %v4336_v34  ;;  %v19809_v8 = vpop.f32.mrb[8].mxu0  ;;  %v4844_v59 = vpack.c.bf16 %v4798_v38, %v4797_v2  ;;  %v9526_v54 = vrot.slane %v30107_v9, 3  ;;  %v30109_v50 = vshrl.u32 %v30104_v47, 16 }
 0x419   : > { %v9529_v20 = vrot.slane %v30108_v53, 4  ;;  %4674 = vst.msk [vmem:[#allocation3 + $0x68] sm:$0xff] %vm384_vm5, %v4626_v61  ;;  %v4293_v52 = vadd.f32 %v19809_v8, %v25572_v31  ;;  %v4069_v33 = vpop.f32.mrb[9].mxu0  ;;  %v4799_v49 = vld [vmem:[#allocation3 + $0x38] sm:$0xff]  ;;  %v30110_v34 = vshll.u32 %v30104_v47, 16  ;;  %v25677_v8 = vsel %vm1082_vm3, %v25607_v35, %v9512_v7 }
 0x41a   : > { %v9535_v2 = vrot.slane %v30109_v50, 3  ;;  %4672 = vst.msk [vmem:[#allocation3 + $0x58] sm:$0xff] %vm384_vm5, %v4624_v55  ;;  %v4291_v53 = vadd.f32 %v25572_v31, %v4069_v33  ;;  %v19810_v9 = vpop.f32.mrb[10].mxu0  ;;  %19856 = vmatmul.mubr.msk.bf16.vlgmr.msra.gmra.mrb[0].mxu1 %vm384_vm5, %v4844_v59  ;;  %v4845_v16 = vpack.c.bf16 %v4800_v58, %v4799_v49  ;;  %30111 = vst [vmem:[#allocation73_spill] sm:$0xff] %v25677_v8  ;;  %v25684_v55 = vpop.permute.xlu0 %4491  ;;  %v30114_v49 = vld [vmem:[#allocation29_spill] sm:$0xff] }
 0x41b   : > { %v9538_v38 = vrot.slane %v30110_v34, 4  ;;  %v4341_v61 = vmax.f32 %v4293_v52, 0.0  ;;  %v4294_v1 = vadd.f32 %v19810_v9, %v25572_v31  ;;  %19904 = vmatpush3.bf16.msra.mxu1 %v25335_v26  ;;  %v4072_v50 = vpop.f32.mrb[11].mxu0  ;;  %v25682_v34 = vsel %vm1082_vm3, %v9512_v7, %v9521_v6  ;;  %30113 = vst [vmem:[#allocation75_spill] sm:$0xff] %v25684_v55  ;;  %v22860_v52 = vld [vmem:[%s29184_s6 + $0x10] sm:$0xff]   ;;  %v25698_v9 = vpop.permute.xlu1 %4496 }
 0x41c   : > { %30112 = vst [vmem:[#allocation74_spill] sm:$0xff] %v25682_v34  ;;  %v4339_v33 = vmax.f32 %v4291_v53, 0.0  ;;  %v4292_v37 = vadd.f32 %v25572_v31, %v4072_v50  ;;  %19859 = vmatprep.mubr.msk.bf16.mxu1 %vm384_vm5, %v4845_v16  ;;  %v9530_v59 = vor.u32 %v9529_v20, %v9526_v54  ;;  %19905 = vmatprep.subr.bf16.mxu1 %v22859_v23  ;;  %30115 = vst [vmem:[#allocation76_spill] sm:$0xff] %v25698_v9  ;;  %v30116_v50 = vld [vmem:[#allocation30_spill] sm:$0xff] }
 0x41d   : > { %v4629_v26 = vmul.f32 %v25517_v57, %v4341_v61  ;;  %v4342_v58 = vmax.f32 %v4294_v1, 0.0  ;;  %20424 = vmatmul.mubr.msk.bf16.gmra.mrb[68].mxu0 %vm323_vm2, %v25677_v8  ;;  %v25695_v7 = vor.u32 %v9538_v38, %v9535_v2  ;;  %v4801_v1 = vld [vmem:[#allocation3 + $0x48] sm:$0xff] }
 0x41e   : > { %v4627_v16 = vmul.f32 %v25491_v5, %v4339_v33  ;;  %v4340_v54 = vmax.f32 %v4292_v37, 0.0  ;;  %20427 = vmatprep.mubr.msk.bf16.mxu0 %vm323_vm2, %v25682_v34  ;;  %v25710_v35 = vsel %vm1082_vm3, %v9521_v6, %v9530_v59  ;;  %v4804_v2 = vld [vmem:[#allocation3 + $0x60] sm:$0xff]  ;;  %v30122_v5 = vld [vmem:[#allocation31_spill] sm:$0xff] }
 0x41f   : > { %4677 = vst.msk [vmem:[#allocation3 + $0x80] sm:$0xff] %vm384_vm5, %v4629_v26  ;;  %v4630_v20 = vmul.f32 %v25519_v24, %v4342_v58  ;;  %v4802_v61 = vld [vmem:[#allocation3 + $0x50] sm:$0xff]  ;;  %19906 = vmatpush3.bf16.msra.mxu1 %v22859_v23  ;;  %30117 = vst [vmem:[#allocation30_spill] sm:$0xff] %v25710_v35  ;;  %v22861_v26 = vld [vmem:[%s29184_s6 + $0x18] sm:$0xff]   ;;  %v29454_v57 = vshrl.u32 %v30122_v5, 16 }
 0x420   : > { %4675 = vst.msk [vmem:[#allocation3 + $0x70] sm:$0xff] %vm384_vm5, %v4627_v16  ;;  %v4628_v53 = vmul.f32 %v25507_v13, %v4340_v54  ;;  %v19813_v33 = vpop.f32.mrb[12].mxu0  ;;  %v4846_v37 = vpack.c.bf16 %v4802_v61, %v4801_v1  ;;  %19907 = vmatprep.subr.bf16.mxu1 %v22860_v52  ;;  %v25719_v16 = vsel %vm1082_vm3, %v9530_v59, %v25695_v7  ;;  %v30119_v54 = vshrl.u32 %v30114_v49, 16  ;;  %v25725_v13 = vpop.permute.xlu0 %4501 }
 0x421   : > { %4678 = vst.msk [vmem:[#allocation3 + $0x88] sm:$0xff] %vm384_vm5, %v4630_v20  ;;  %v4297_v23 = vadd.f32 %v19813_v33, %v25572_v31  ;;  %v4085_v58 = vpop.f32.mrb[13].mxu0  ;;  %v4803_v38 = vld [vmem:[#allocation3 + $0x58] sm:$0xff]  ;;  %30118 = vst [vmem:[#allocation77_spill] sm:$0xff] %v25719_v16  ;;  %v30120_v1 = vshll.u32 %v30114_v49, 16  ;;  %v30124_v49 = vshll.u32 %v30116_v50, 16 }
 0x422   : > { %v9544_v6 = vrot.slane %v30119_v54, 3  ;;  %30121 = vst [vmem:[#allocation78_spill] sm:$0xff] %v25725_v13  ;;  %4676 = vst.msk [vmem:[#allocation3 + $0x78] sm:$0xff] %vm384_vm5, %v4628_v53  ;;  %v4295_v20 = vadd.f32 %v25572_v31, %v4085_v58  ;;  %v19814_v33 = vpop.f32.mrb[14].mxu0  ;;  %19860 = vmatmul.mubr.msk.bf16.gmra.mrb[4].mxu1 %vm384_vm5, %v4846_v37  ;;  %v4847_v24 = vpack.c.bf16 %v4804_v2, %v4803_v38  ;;  %v25737_v58 = vpop.permute.xlu1 %4506  ;;  %v25744_v38 = vld [vmem:[%s29184_s6 + $0x40] sm:$0xff]  }
 0x423   : > { %v9547_v61 = vrot.slane %v30120_v1, 4  ;;  %v4345_v34 = vmax.f32 %v4297_v23, 0.0  ;;  %v4298_v54 = vadd.f32 %v19814_v33, %v25572_v31  ;;  %v4088_v8 = vpop.f32.mrb[15].mxu0  ;;  %v30123_v1 = vshrl.u32 %v30116_v50, 16  ;;  %19908 = vmatpush3.bf16.msra.mxu1 %v22860_v52  ;;  %30125 = vst [vmem:[#allocation31_spill] sm:$0xff] %v25737_v58 }
 0x424   : > { %v9556_v53 = vrot.slane %v30124_v49, 4  ;;  %v4343_v47 = vmax.f32 %v4295_v20, 0.0  ;;  %v4296_v2 = vadd.f32 %v25572_v31, %v4088_v8  ;;  %19863 = vmatprep.mubr.msk.bf16.mxu1 %vm384_vm5, %v4847_v24  ;;  %19909 = vmatprep.subr.bf16.mxu1 %v22861_v26  ;;  %v30126_v24 = vld [vmem:[#allocation32_spill] sm:$0xff] }
 0x425   : > { %v9553_v56 = vrot.slane %v30123_v1, 3  ;;  %v4633_v37 = vmul.f32 %v25561_v29, %v4345_v34  ;;  %v4346_v23 = vmax.f32 %v4298_v54, 0.0  ;;  %20428 = vmatmul.mubr.msk.bf16.gmra.mrb[72].mxu0 %vm323_vm2, %v25710_v35  ;;  %v9548_v49 = vor.u32 %v9547_v61, %v9544_v6  ;;  %v4805_v34 = vld [vmem:[#allocation3 + $0x68] sm:$0xff] }
 0x426   : > { %v4631_v52 = vmul.f32 %v25537_v11, %v4343_v47  ;;  %v4344_v20 = vmax.f32 %v4296_v2, 0.0  ;;  %20431 = vmatprep.mubr.msk.bf16.mxu0 %vm323_vm2, %v25719_v16  ;;  %v9562_v6 = vrot.slane %v29454_v57, 3  ;;  %v30127_v47 = vshll.u32 %v30122_v5, 16  ;;  %v25762_v2 = vpop.permute.xlu0 %4511  ;;  %v4808_v57 = vld [vmem:[#allocation3 + $0x80] sm:$0xff] }
 0x427   : > { %4681 = vst.msk [vmem:[#allocation3 + $0xa0] sm:$0xff] %vm384_vm5, %v4633_v37  ;;  %v4634_v1 = vmul.f32 %v25567_v25, %v4346_v23  ;;  %v4806_v54 = vld [vmem:[#allocation3 + $0x70] sm:$0xff]  ;;  %v25756_v59 = vor.u32 %v9556_v53, %v9553_v56  ;;  %19910 = vmatpush3.bf16.msra.mxu1 %v22861_v26  ;;  %30128 = vst [vmem:[#allocation79_spill] sm:$0xff] %v25762_v2  ;;  %v25771_v26 = vsel %vm1082_vm3, %v25695_v7, %v9548_v49 }
 0x428   : > { %v9565_v61 = vrot.slane %v30127_v47, 4  ;;  %4679 = vst.msk [vmem:[#allocation3 + $0x90] sm:$0xff] %vm384_vm5, %v4631_v52  ;;  %v4632_v33 = vmul.f32 %v25545_v41, %v4344_v20  ;;  %v19817_v37 = vpop.f32.mrb[16].mxu0  ;;  %v4848_v8 = vpack.c.bf16 %v4806_v54, %v4805_v34  ;;  %19959 = vmatprep.subr.bf16.mxu1 %v25744_v38  ;;  %30129 = vst [vmem:[#allocation80_spill] sm:$0xff] %v25771_v26  ;;  %v25773_v47 = vpop.permute.xlu1 %4516 }
 0x429   : > { %4682 = vst.msk [vmem:[#allocation3 + $0xa8] sm:$0xff] %vm384_vm5, %v4634_v1  ;;  %v4301_v56 = vadd.f32 %v19817_v37, %v25572_v31  ;;  %v4101_v53 = vpop.f32.mrb[17].mxu0  ;;  %v4807_v23 = vld [vmem:[#allocation3 + $0x78] sm:$0xff]  ;;  %30130 = vst [vmem:[#allocation81_spill] sm:$0xff] %v25773_v47  ;;  %v30131_v1 = vshrl.u32 %v30126_v24, 16  ;;  %v30132_v37 = vshll.u32 %v30126_v24, 16  ;;  %v25785_v29 = vsel %vm1082_vm3, %v9548_v49, %v25756_v59 }
 0x42a   : > { %4680 = vst.msk [vmem:[#allocation3 + $0x98] sm:$0xff] %vm384_vm5, %v4632_v33  ;;  %v4299_v52 = vadd.f32 %v25572_v31, %v4101_v53  ;;  %v19818_v20 = vpop.f32.mrb[18].mxu0  ;;  %19864 = vmatmul.mubr.msk.bf16.gmra.mrb[8].mxu1 %vm384_vm5, %v4848_v8  ;;  %v4849_v34 = vpack.c.bf16 %v4808_v57, %v4807_v23  ;;  %30133 = vst [vmem:[#allocation82_spill] sm:$0xff] %v25785_v29  ;;  %v9566_v33 = vor.u32 %v9565_v61, %v9562_v6  ;;  %v30134_v57 = vld [vmem:[#allocation34_spill] sm:$0xff]  ;;  %v25796_v6 = vpop.permute.xlu0 %4521 }
 0x42b   : > { %v9571_v54 = vrot.slane %v30131_v1, 3  ;;  %v9574_v41 = vrot.slane %v30132_v37, 4  ;;  %v4349_v25 = vmax.f32 %v4301_v56, 0.0  ;;  %v4302_v7 = vadd.f32 %v19818_v20, %v25572_v31  ;;  %v4104_v11 = vpop.f32.mrb[19].mxu0  ;;  %30135 = vst [vmem:[#allocation83_spill] sm:$0xff] %v25796_v6 }
 0x42c   : > { %v4347_v53 = vmax.f32 %v4299_v52, 0.0  ;;  %v4300_v16 = vadd.f32 %v25572_v31, %v4104_v11  ;;  %19867 = vmatprep.mubr.msk.bf16.mxu1 %vm384_vm5, %v4849_v34  ;;  %v29468_v20 = vshll.u32 %v25321_v18, 16  ;;  %v30136_v34 = vld [vmem:[#allocation36_spill] sm:$0xff]  ;;  %v30226_v24 = vshrl.u32 %v25301_v3, 16 }
 0x42d   : > { %v4637_v1 = vmul.f32 %v25614_v40, %v4349_v25  ;;  %v4350_v56 = vmax.f32 %v4302_v7, 0.0  ;;  %20432 = vmatmul.mubr.msk.bf16.gmra.mrb[76].mxu0 %vm323_vm2, %v25771_v26  ;;  %v25801_v52 = vor.u32 %v9574_v41, %v9571_v54  ;;  %v4809_v7 = vld [vmem:[#allocation3 + $0x88] sm:$0xff] }
 0x42e   : > { %v4635_v11 = vmul.f32 %v25583_v27, %v4347_v53  ;;  %v4348_v61 = vmax.f32 %v4300_v16, 0.0  ;;  %20435 = vmatprep.mubr.msk.bf16.mxu0 %vm323_vm2, %v25785_v29  ;;  %v10455_v49 = vrot.slane %v29468_v20, 4  ;;  %v30137_v16 = vshrl.u32 %v25321_v18, 16  ;;  %v25811_v27 = vpop.permute.xlu1 %4526 }
 0x42f   : > { %4685 = vst.msk [vmem:[#allocation3 + $0xc0] sm:$0xff] %vm384_vm5, %v4637_v1  ;;  %v4638_v37 = vmul.f32 %v25623_v46, %v4350_v56  ;;  %v4810_v23 = vld [vmem:[#allocation3 + $0x90] sm:$0xff]  ;;  %30138 = vst [vmem:[#allocation84_spill] sm:$0xff] %v25811_v27  ;;  %v4812_v46 = vld [vmem:[#allocation3 + $0xa0] sm:$0xff]  ;;  %v25819_v20 = vsel %vm1082_vm3, %v25756_v59, %v9566_v33  ;;  %v30143_v59 = vshrl.u32 %v30136_v34, 16 }
 0x430   : > { %v10454_v53 = vrot.slane %v30137_v16, 3  ;;  %4683 = vst.msk [vmem:[#allocation3 + $0xb0] sm:$0xff] %vm384_vm5, %v4635_v11  ;;  %v4636_v41 = vmul.f32 %v25597_v60, %v4348_v61  ;;  %v19821_v54 = vpop.f32.mrb[20].mxu0  ;;  %v4850_v1 = vpack.c.bf16 %v4810_v23, %v4809_v7  ;;  %30139 = vst [vmem:[#allocation85_spill] sm:$0xff] %v25819_v20  ;;  %v30140_v16 = vshrl.u32 %v30134_v57, 16 }
 0x431   : > { %4686 = vst.msk [vmem:[#allocation3 + $0xc8] sm:$0xff] %vm384_vm5, %v4638_v37  ;;  %v4305_v56 = vadd.f32 %v19821_v54, %v25572_v31  ;;  %v4117_v25 = vpop.f32.mrb[21].mxu0  ;;  %v4811_v8 = vld [vmem:[#allocation3 + $0x98] sm:$0xff]  ;;  %v30141_v11 = vshll.u32 %v30134_v57, 16  ;;  %v25830_v7 = vsel %vm1082_vm3, %v9566_v33, %v25801_v52  ;;  %v9589_v54 = vrot.slane %v30143_v59, 3  ;;  %v30146_v33 = vld [vmem:[#allocation7_spill] sm:$0xff] }
 0x432   : > { %v9580_v40 = vrot.slane %v30140_v16, 3  ;;  %4684 = vst.msk [vmem:[#allocation3 + $0xb8] sm:$0xff] %vm384_vm5, %v4636_v41  ;;  %v4303_v23 = vadd.f32 %v25572_v31, %v4117_v25  ;;  %v19822_v61 = vpop.f32.mrb[22].mxu0  ;;  %19868 = vmatmul.mubr.msk.bf16.gmra.mrb[12].mxu1 %vm384_vm5, %v4850_v1  ;;  %v4851_v37 = vpack.c.bf16 %v4812_v46, %v4811_v8  ;;  %30142 = vst [vmem:[#allocation86_spill] sm:$0xff] %v25830_v7  ;;  %v25839_v25 = vpop.permute.xlu0 %4531 }
 0x433   : > { %v9583_v29 = vrot.slane %v30141_v11, 4  ;;  %v4353_v60 = vmax.f32 %v4305_v56, 0.0  ;;  %v4306_v16 = vadd.f32 %v19822_v61, %v25572_v31  ;;  %v4120_v26 = vpop.f32.mrb[23].mxu0  ;;  %v30144_v11 = vshll.u32 %v30136_v34, 16  ;;  %30145 = vst [vmem:[#allocation87_spill] sm:$0xff] %v25839_v25 }
 0x434   : > { %v25837_v35 = vor.u32 %v10455_v49, %v10454_v53  ;;  %v4351_v1 = vmax.f32 %v4303_v23, 0.0  ;;  %v4304_v46 = vadd.f32 %v25572_v31, %v4120_v26  ;;  %19871 = vmatprep.mubr.msk.bf16.mxu1 %vm384_vm5, %v4851_v37  ;;  %v25848_v49 = vpop.permute.xlu1 %4536  ;;  %v30148_v26 = vld [vmem:[#allocation6_spill] sm:$0xff]  ;;  %v30150_v37 = vshll.u32 %v30146_v33, 16 }
 0x435   : > { %v9592_v41 = vrot.slane %v30144_v11, 4  ;;  %v4641_v56 = vmul.f32 %v25684_v55, %v4353_v60  ;;  %v4354_v61 = vmax.f32 %v4306_v16, 0.0  ;;  %20436 = vmatmul.mubr.msk.bf16.gmra.mrb[80].mxu0 %vm323_vm2, %v25819_v20  ;;  %v9584_v11 = vor.u32 %v9583_v29, %v9580_v40  ;;  %30147 = vst [vmem:[#allocation88_spill] sm:$0xff] %v25848_v49  ;;  %v4813_v16 = vld [vmem:[#allocation3 + $0xa8] sm:$0xff] }
 0x436   : > { %v4639_v53 = vmul.f32 %v25648_v28, %v4351_v1  ;;  %v4352_v23 = vmax.f32 %v4304_v46, 0.0  ;;  %20439 = vmatprep.mubr.msk.bf16.mxu0 %vm323_vm2, %v25830_v7  ;;  %v29487_v8 = vshll.u32 %v30148_v26, 16  ;;  %v30149_v46 = vshrl.u32 %v30146_v33, 16 }
 0x437   : > { %4689 = vst.msk [vmem:[#allocation3 + $0xe0] sm:$0xff] %vm384_vm5, %v4641_v56  ;;  %v4642_v60 = vmul.f32 %v25698_v9, %v4354_v61  ;;  %v4814_v59 = vld [vmem:[#allocation3 + $0xb0] sm:$0xff]  ;;  %v9593_v55 = vor.u32 %v9592_v41, %v9589_v54  ;;  %v9601_v7 = vrot.slane %v30150_v37, 4  ;;  %v9071_v56 = vpack.c.bf16 %v25458_v12, %v25458_v12 }
 0x438   : > { %4687 = vst.msk [vmem:[#allocation3 + $0xd0] sm:$0xff] %vm384_vm5, %v4639_v53  ;;  %v4640_v29 = vmul.f32 %v25655_v15, %v4352_v23  ;;  %v19825_v40 = vpop.f32.mrb[24].mxu0  ;;  %v4852_v1 = vpack.c.bf16 %v4814_v59, %v4813_v16  ;;  %v9598_v28 = vrot.slane %v30149_v46, 3  ;;  %v4816_v53 = vld [vmem:[#allocation3 + $0xc0] sm:$0xff]  ;;  %v25869_v23 = vsel %vm1082_vm3, %v25801_v52, %v9584_v11  ;;  %v25871_v59 = vpop.permute.xlu0 %4541 }
 0x439   : > { %4690 = vst.msk [vmem:[#allocation3 + $0xe8] sm:$0xff] %vm384_vm5, %v4642_v60  ;;  %v4309_v61 = vadd.f32 %v19825_v40, %v25572_v31  ;;  %v4133_v54 = vpop.f32.mrb[25].mxu0  ;;  %v4815_v41 = vld [vmem:[#allocation3 + $0xb8] sm:$0xff]  ;;  %30151 = vst [vmem:[#allocation89_spill] sm:$0xff] %v25869_v23  ;;  %v30153_v60 = vshrl.u32 %v30148_v26, 16  ;;  %v9610_v46 = vrot.slane %v29487_v8, 4  ;;  %v25882_v20 = vsel %vm1082_vm3, %v9584_v11, %v9593_v55 }
 0x43a   : > { %30152 = vst [vmem:[#allocation90_spill] sm:$0xff] %v25871_v59  ;;  %4688 = vst.msk [vmem:[#allocation3 + $0xd8] sm:$0xff] %vm384_vm5, %v4640_v29  ;;  %v4307_v37 = vadd.f32 %v25572_v31, %v4133_v54  ;;  %v19826_v16 = vpop.f32.mrb[26].mxu0  ;;  %19872 = vmatmul.mubr.msk.bf16.gmra.mrb[16].mxu1 %vm384_vm5, %v4852_v1  ;;  %v4853_v12 = vpack.c.bf16 %v4816_v53, %v4815_v41  ;;  %v25884_v29 = vpop.permute.xlu1 %4546  ;;  %v9602_v1 = vor.u32 %v9601_v7, %v9598_v28 }
 0x43b   : > { %v9607_v40 = vrot.slane %v30153_v60, 3  ;;  %v4357_v15 = vmax.f32 %v4309_v61, 0.0  ;;  %v4310_v52 = vadd.f32 %v19826_v16, %v25572_v31  ;;  %v4136_v9 = vpop.f32.mrb[27].mxu0  ;;  %30154 = vst [vmem:[#allocation91_spill] sm:$0xff] %v25882_v20  ;;  %30155 = vst [vmem:[#allocation92_spill] sm:$0xff] %v25884_v29  ;;  %v9614_v61 = vshrl.u32 %v9071_v56, 16 }
 0x43c   : > { %v4355_v54 = vmax.f32 %v4307_v37, 0.0  ;;  %v4308_v33 = vadd.f32 %v25572_v31, %v4136_v9  ;;  %19875 = vmatprep.mubr.msk.bf16.mxu1 %vm384_vm5, %v4853_v12  ;;  %v9617_v16 = vshll.u32 %v9071_v56, 16  ;;  %v4817_v9 = vld [vmem:[#allocation3 + $0xc8] sm:$0xff]  ;;  %v9926_v7 = vshll.u32 %v25285_v36, 16  ;;  %v25899_v12 = vpop.permute.xlu0 %4551 }
 0x43d   : > { %v4645_v41 = vmul.f32 %v25762_v2, %v4357_v15  ;;  %v4358_v53 = vmax.f32 %v4310_v52, 0.0  ;;  %20440 = vmatmul.mubr.msk.bf16.gmra.mrb[84].mxu0 %vm323_vm2, %v25869_v23  ;;  %v25894_v37 = vor.u32 %v9610_v46, %v9607_v40  ;;  %30157 = vst [vmem:[#allocation94_spill] sm:$0xff] %v25899_v12  ;;  %v9616_v8 = vrot.slane %v9614_v61, 3  ;;  %v26235_v2 = vld [vmem:[#allocation3 + $0x67] sm:$0xff] }
 0x43e   : > { %v4643_v60 = vmul.f32 %v25725_v13, %v4355_v54  ;;  %v4356_v11 = vmax.f32 %v4308_v33, 0.0  ;;  %20443 = vmatprep.mubr.msk.bf16.mxu0 %vm323_vm2, %v25882_v20  ;;  %v25908_v13 = vpop.permute.xlu1 %4556 }
 0x43f   : > { %30156 = vst [vmem:[#allocation93_spill] sm:$0xff] %v25894_v37  ;;  %4693 = vst.msk [vmem:[#allocation3 + $0x100] sm:$0xff] %vm384_vm5, %v4645_v41  ;;  %v4646_v28 = vmul.f32 %v25773_v47, %v4358_v53  ;;  %v4818_v15 = vld [vmem:[#allocation3 + $0xd0] sm:$0xff]  ;;  %v4820_v41 = vld [vmem:[#allocation3 + $0xe0] sm:$0xff]  ;;  %v25906_v53 = vsel %vm1082_vm3, %v9593_v55, %v9602_v1  ;;  %v9619_v47 = vrot.slane %v9617_v16, 4 }
 0x440   : > { %4691 = vst.msk [vmem:[#allocation3 + $0xf0] sm:$0xff] %vm384_vm5, %v4643_v60  ;;  %v4644_v56 = vmul.f32 %v25737_v58, %v4356_v11  ;;  %v19829_v33 = vpop.f32.mrb[28].mxu0  ;;  %v4854_v52 = vpack.c.bf16 %v4818_v15, %v4817_v9  ;;  %30158 = vst [vmem:[#allocation95_spill] sm:$0xff] %v25906_v53  ;;  %v25915_v9 = vsel %vm1082_vm3, %v9602_v1, %v25894_v37  ;;  %v29494_v15 = vshll.u32 %v25301_v3, 16  ;;  %v25925_v1 = vpop.permute.xlu0 %4561 }
 0x441   : > { %4694 = vst.msk [vmem:[#allocation3 + $0x108] sm:$0xff] %vm384_vm5, %v4646_v28  ;;  %v4313_v40 = vadd.f32 %v19829_v33, %v25572_v31  ;;  %v4149_v46 = vpop.f32.mrb[29].mxu0  ;;  %v4819_v54 = vld [vmem:[#allocation3 + $0xd8] sm:$0xff]  ;;  %30159 = vst [vmem:[#allocation96_spill] sm:$0xff] %v25908_v13  ;;  %v9924_v33 = vshrl.u32 %v25285_v36, 16  ;;  %v9928_v58 = vrot.slane %v9926_v7, 1  ;;  %v9620_v36 = vor.u32 %v9619_v47, %v9616_v8 }
 0x442   : > { %4692 = vst.msk [vmem:[#allocation3 + $0xf8] sm:$0xff] %vm384_vm5, %v4644_v56  ;;  %v4311_v60 = vadd.f32 %v25572_v31, %v4149_v46  ;;  %v19830_v11 = vpop.f32.mrb[30].mxu0  ;;  %19876 = vmatmul.mubr.msk.bf16.gmra.mrb[20].mxu1 %vm384_vm5, %v4854_v52  ;;  %v4855_v28 = vpack.c.bf16 %v4820_v41, %v4819_v54  ;;  %30160 = vst [vmem:[#allocation97_spill] sm:$0xff] %v25915_v9 }
 0x443   : > { %v4361_v55 = vmax.f32 %v4313_v40, 0.0  ;;  %v4314_v61 = vadd.f32 %v19830_v11, %v25572_v31  ;;  %v4152_v16 = vpop.f32.mrb[31].mxu0  ;;  %30161 = vst [vmem:[#allocation98_spill] sm:$0xff] %v25925_v1 }
 0x444   : > { %v4359_v56 = vmax.f32 %v4311_v60, 0.0  ;;  %v4312_v46 = vadd.f32 %v25572_v31, %v4152_v16  ;;  %19879 = vmatprep.mubr.msk.bf16.mxu1 %vm384_vm5, %v4855_v28  ;;  %v4821_v60 = vld [vmem:[#allocation3 + $0xe8] sm:$0xff]  ;;  %v9929_v28 = vor.u32 %v9928_v58, %v9924_v33  ;;  %v25935_v16 = vpop.permute.xlu1 %4566  ;;  %v25950_v33 = vpop.permute.xlu0 %4571 }
 0x445   : > { %v4649_v52 = vmul.f32 %v25839_v25, %v4361_v55  ;;  %v4362_v54 = vmax.f32 %v4314_v61, 0.0  ;;  %20444 = vmatmul.mubr.msk.bf16.gmra.mrb[88].mxu0 %vm323_vm2, %v25906_v53  ;;  %v9932_v55 = vrot.slane %v29494_v15, 1  ;;  %30162 = vst [vmem:[#allocation99_spill] sm:$0xff] %v25935_v16  ;;  %30163 = vst [vmem:[#allocation100_spill] sm:$0xff] %v25950_v33  ;;  %v29558_v25 = vshrl.u32 %v25404_v43, 16  ;;  %v26330_v53 = vld [vmem:[#allocation2 + $0x198] sm:$0xff] }
 0x446   : > { %v4647_v40 = vmul.f32 %v25796_v6, %v4359_v56  ;;  %v4360_v41 = vmax.f32 %v4312_v46, 0.0  ;;  %20447 = vmatprep.mubr.msk.bf16.mxu0 %vm323_vm2, %v25915_v9  ;;  %v4824_v58 = vld [vmem:[#allocation3 + $0x100] sm:$0xff]  ;;  %v22865_v6 = vld [vmem:[%s29184_s6 + $0x58] sm:$0xff]  }
 0x447   : > { %4697 = vst.msk [vmem:[#allocation3 + $0x120] sm:$0xff] %vm384_vm5, %v4649_v52  ;;  %v4650_v7 = vmul.f32 %v25848_v49, %v4362_v54  ;;  %v4822_v11 = vld [vmem:[#allocation3 + $0xf0] sm:$0xff] }
 0x448   : > { %4695 = vst.msk [vmem:[#allocation3 + $0x110] sm:$0xff] %vm384_vm5, %v4647_v40  ;;  %v4648_v56 = vmul.f32 %v25811_v27, %v4360_v41  ;;  %v19833_v46 = vpop.f32.mrb[32].mxu0  ;;  %v4856_v47 = vpack.c.bf16 %v4822_v11, %v4821_v60  ;;  %v9621_v41 = vsel %vm1082_vm3, %v25894_v37, %v9620_v36  ;;  %v9933_v27 = vsel %vm1610_vm4, %v9929_v28, %v9932_v55  ;;  %v30216_v37 = vld [vmem:[#allocation35_spill] sm:$0xff] }
 0x449   : > { %4698 = vst.msk [vmem:[#allocation3 + $0x128] sm:$0xff] %vm384_vm5, %v4650_v7  ;;  %v4317_v8 = vadd.f32 %v19833_v46, %v25572_v31  ;;  %v4165_v52 = vpop.f32.mrb[33].mxu0  ;;  %v4823_v54 = vld [vmem:[#allocation3 + $0xf8] sm:$0xff]  ;;  %v25960_v7 = vpop.permute.xlu1 %4576  ;;  %v30220_v26 = vshll.u32 %v30216_v37, 16 }
 0x44a   : > { %4696 = vst.msk [vmem:[#allocation3 + $0x118] sm:$0xff] %vm384_vm5, %v4648_v56  ;;  %v4315_v15 = vadd.f32 %v25572_v31, %v4165_v52  ;;  %v19834_v61 = vpop.f32.mrb[34].mxu0  ;;  %19880 = vmatmul.mubr.msk.bf16.gmra.mrb[24].mxu1 %vm384_vm5, %v4856_v47  ;;  %v4857_v40 = vpack.c.bf16 %v4824_v58, %v4823_v54  ;;  %v30164_v47 = vshll.u32 %v25305_v19, 16  ;;  %30166 = vst [vmem:[#allocation101_spill] sm:$0xff] %v25960_v7 }
 0x44b   : > { %v4365_v60 = vmax.f32 %v4317_v8, 0.0  ;;  %v4318_v11 = vadd.f32 %v19834_v61, %v25572_v31  ;;  %v4168_v46 = vpop.f32.mrb[35].mxu0  ;;  %v30165_v61 = vshrl.u32 %v25301_v3, 16  ;;  %v10079_v34 = vrot.slane %v30220_v26, 1 }
 0x44c   : > { %v4363_v56 = vmax.f32 %v4315_v15, 0.0  ;;  %v4316_v52 = vadd.f32 %v25572_v31, %v4168_v46  ;;  %19883 = vmatprep.mubr.msk.bf16.mxu1 %vm384_vm5, %v4857_v40  ;;  %v9939_v54 = vrot.slane %v30164_v47, 1  ;;  %v30167_v40 = vshrl.u32 %v25305_v19, 16 }
 0x44d   : > { %v4653_v36 = vmul.f32 %v25899_v12, %v4365_v60  ;;  %v4366_v58 = vmax.f32 %v4318_v11, 0.0  ;;  %20448 = vmatmul.mubr.msk.bf16.gmra.mrb[92].mxu0 %vm323_vm2, %v9621_v41  ;;  %v9936_v8 = vor.u32 %v30165_v61, %v9932_v55  ;;  %v30168_v47 = vshll.u32 %v25321_v18, 16  ;;  %v4825_v60 = vld [vmem:[#allocation3 + $0x108] sm:$0xff] }
 0x44e   : > { %v4651_v28 = vmul.f32 %v25871_v59, %v4363_v56  ;;  %v4364_v15 = vmax.f32 %v4316_v52, 0.0  ;;  %20453 = vmatprep.mubr.msk.bf16.mxu0 %vm323_vm2, %v9933_v27  ;;  %v9943_v46 = vor.u32 %v30167_v40, %v9939_v54  ;;  %v17838_v27 = vld [vmem:[%s29182_s4 + $0x8] sm:$0x3] }
 0x44f   : > { %v9946_v49 = vrot.slane %v30168_v47, 1  ;;  %4701 = vst.msk [vmem:[#allocation3 + $0x140] sm:$0xff] %vm384_vm5, %v4653_v36  ;;  %v4654_v41 = vmul.f32 %v25908_v13, %v4366_v58  ;;  %v4826_v11 = vld [vmem:[#allocation3 + $0x110] sm:$0xff]  ;;  %v4828_v47 = vld [vmem:[#allocation3 + $0x120] sm:$0xff]  ;;  %v9940_v58 = vsel %vm1610_vm4, %v9936_v8, %v9939_v54  ;;  %v29507_v8 = vshrl.u32 %v25326_v30, 16 }
 0x450   : > { %4699 = vst.msk [vmem:[#allocation3 + $0x130] sm:$0xff] %vm384_vm5, %v4651_v28  ;;  %v4652_v55 = vmul.f32 %v25884_v29, %v4364_v15  ;;  %v19837_v56 = vpop.f32.mrb[36].mxu0  ;;  %v4858_v52 = vpack.c.bf16 %v4826_v11, %v4825_v60  ;;  %v25979_v28 = vpop.permute.xlu0 %4581  ;;  %v25989_v13 = vand.u32 %v17838_v27, %v23066_v4 }
 0x451   : > { %4702 = vst.msk [vmem:[#allocation3 + $0x148] sm:$0xff] %vm384_vm5, %v4654_v41  ;;  %v4321_v61 = vadd.f32 %v19837_v56, %v25572_v31  ;;  %v4181_v40 = vpop.f32.mrb[37].mxu0  ;;  %v4827_v36 = vld [vmem:[#allocation3 + $0x118] sm:$0xff]  ;;  %30169 = vst [vmem:[#allocation102_spill] sm:$0xff] %v25979_v28  ;;  %v9947_v41 = vsel %vm1610_vm4, %v9943_v46, %v9946_v49 }
 0x452   : > { %4700 = vst.msk [vmem:[#allocation3 + $0x138] sm:$0xff] %vm384_vm5, %v4652_v55  ;;  %v4319_v15 = vadd.f32 %v25572_v31, %v4181_v40  ;;  %v19838_v60 = vpop.f32.mrb[38].mxu0  ;;  %19884 = vmatmul.mubr.msk.bf16.gmra.mrb[28].mxu1 %vm384_vm5, %v4858_v52  ;;  %v4859_v11 = vpack.c.bf16 %v4828_v47, %v4827_v36  ;;  %v25991_v55 = vpop.permute.xlu1 %4586  ;;  %v30172_v47 = vshll.u32 %v25326_v30, 16 }
 0x453   : > { %v4369_v29 = vmax.f32 %v4321_v61, 0.0  ;;  %v4322_v59 = vadd.f32 %v19838_v60, %v25572_v31  ;;  %v4184_v54 = vpop.f32.mrb[39].mxu0  ;;  %30170 = vst [vmem:[#allocation103_spill] sm:$0xff] %v25991_v55  ;;  %v30171_v61 = vshrl.u32 %v25321_v18, 16 }
 0x454   : > { %v4367_v40 = vmax.f32 %v4319_v15, 0.0  ;;  %v4320_v12 = vadd.f32 %v25572_v31, %v4184_v54  ;;  %19887 = vmatprep.mubr.msk.bf16.mxu1 %vm384_vm5, %v4859_v11  ;;  %v9953_v60 = vrot.slane %v30172_v47, 1  ;;  %v26011_v54 = vpop.permute.xlu0 %4591 }
 0x455   : > { %v4657_v46 = vmul.f32 %v25950_v33, %v4369_v29  ;;  %v4370_v52 = vmax.f32 %v4322_v59, 0.0  ;;  %20454 = vmatmul.mubr.msk.bf16.vlgmr.msra.gmra.mrb[48].mxu0 %vm323_vm2, %v9940_v58  ;;  %v9950_v36 = vor.u32 %v30171_v61, %v9946_v49  ;;  %v4829_v59 = vld [vmem:[#allocation3 + $0x128] sm:$0xff]  ;;  %v30173_v49 = vshll.u32 %v25339_v42, 16  ;;  %30174 = vst [vmem:[#allocation104_spill] sm:$0xff] %v26011_v54 }
 0x456   : > { %v4655_v27 = vmul.f32 %v25925_v1, %v4367_v40  ;;  %v4368_v56 = vmax.f32 %v4320_v12, 0.0  ;;  %20502 = vmatpush3.bf16.msra.mxu0 %v25505_v39  ;;  %20457 = vmatprep.mubr.msk.bf16.mxu0 %vm323_vm2, %v9947_v41  ;;  %v9957_v58 = vor.u32 %v29507_v8, %v9953_v60  ;;  %v4832_v47 = vld [vmem:[#allocation3 + $0x140] sm:$0xff]  ;;  %v30195_v1 = vshll.u32 %v25400_v10, 16 }
 0x457   : > { %4705 = vst.msk [vmem:[#allocation3 + $0x160] sm:$0xff] %vm384_vm5, %v4657_v46  ;;  %v4658_v29 = vmul.f32 %v25960_v7, %v4370_v52  ;;  %v4830_v15 = vld [vmem:[#allocation3 + $0x130] sm:$0xff]  ;;  %v9960_v11 = vrot.slane %v30173_v49, 1  ;;  %20551 = vmatprep.subr.bf16.mxu0 %v25989_v13  ;;  %v26019_v49 = vsel %vm1610_vm4, %v9950_v36, %v9953_v60  ;;  %v26022_v7 = vpop.permute.xlu1 %4596 }
 0x458   : > { %4703 = vst.msk [vmem:[#allocation3 + $0x150] sm:$0xff] %vm384_vm5, %v4655_v27  ;;  %v4656_v39 = vmul.f32 %v25935_v16, %v4368_v56  ;;  %v19841_v12 = vpop.f32.mrb[40].mxu0  ;;  %v4860_v41 = vpack.c.bf16 %v4830_v15, %v4829_v59  ;;  %30175 = vst [vmem:[#allocation105_spill] sm:$0xff] %v26019_v49  ;;  %v29512_v59 = vshrl.u32 %v25343_v51, 16  ;;  %v26042_v15 = vpop.permute.xlu0 %4601  ;;  %v10030_v33 = vrot.slane %v30195_v1, 1 }
 0x459   : > { %4706 = vst.msk [vmem:[#allocation3 + $0x168] sm:$0xff] %vm384_vm5, %v4658_v29  ;;  %v4325_v46 = vadd.f32 %v19841_v12, %v25572_v31  ;;  %v4197_v52 = vpop.f32.mrb[41].mxu0  ;;  %v4831_v61 = vld [vmem:[#allocation3 + $0x138] sm:$0xff]  ;;  %30176 = vst [vmem:[#allocation106_spill] sm:$0xff] %v26022_v7  ;;  %v26031_v8 = vsel %vm1610_vm4, %v9957_v58, %v9960_v11  ;;  %v29559_v1 = vshrl.u32 %v25400_v10, 16 }
 0x45a   : > { %4704 = vst.msk [vmem:[#allocation3 + $0x158] sm:$0xff] %vm384_vm5, %v4656_v39  ;;  %v4323_v56 = vadd.f32 %v25572_v31, %v4197_v52  ;;  %v19842_v27 = vpop.f32.mrb[42].mxu0  ;;  %19888 = vmatmul.mubr.msk.bf16.gmra.mrb[32].mxu1 %vm384_vm5, %v4860_v41  ;;  %v4861_v29 = vpack.c.bf16 %v4832_v47, %v4831_v61  ;;  %30177 = vst [vmem:[#allocation107_spill] sm:$0xff] %v26031_v8  ;;  %v30178_v52 = vshll.u32 %v25343_v51, 16 }
 0x45b   : > { %v4373_v12 = vmax.f32 %v4325_v46, 0.0  ;;  %v4326_v36 = vadd.f32 %v19842_v27, %v25572_v31  ;;  %v4200_v60 = vpop.f32.mrb[43].mxu0  ;;  %v30179_v46 = vshrl.u32 %v25339_v42, 16  ;;  %30180 = vst [vmem:[#allocation108_spill] sm:$0xff] %v26042_v15 }
 0x45c   : > { %v4371_v40 = vmax.f32 %v4323_v56, 0.0  ;;  %v4324_v39 = vadd.f32 %v25572_v31, %v4200_v60  ;;  %19891 = vmatprep.mubr.msk.bf16.mxu1 %vm384_vm5, %v4861_v29  ;;  %v9967_v41 = vrot.slane %v30178_v52, 1  ;;  %v4833_v52 = vld [vmem:[#allocation3 + $0x148] sm:$0xff] }
 0x45d   : > { %v4661_v61 = vmul.f32 %v26011_v54, %v4373_v12  ;;  %v4374_v47 = vmax.f32 %v4326_v36, 0.0  ;;  %20458 = vmatmul.mubr.msk.bf16.gmra.mrb[52].mxu0 %vm323_vm2, %v26019_v49  ;;  %v9964_v27 = vor.u32 %v30179_v46, %v9960_v11  ;;  %v30181_v12 = vshll.u32 %v25352_v0, 16  ;;  %v26053_v46 = vpop.permute.xlu1 %4606 }
 0x45e   : > { %v4659_v58 = vmul.f32 %v25979_v28, %v4371_v40  ;;  %v4372_v56 = vmax.f32 %v4324_v39, 0.0  ;;  %20461 = vmatprep.mubr.msk.bf16.mxu0 %vm323_vm2, %v26031_v8  ;;  %v9971_v29 = vor.u32 %v29512_v59, %v9967_v41  ;;  %30182 = vst [vmem:[#allocation109_spill] sm:$0xff] %v26053_v46  ;;  %v4836_v16 = vld [vmem:[#allocation3 + $0x160] sm:$0xff]  ;;  %v26296_v8 = vld [vmem:[#allocation3 + $0xaf] sm:$0xff] }
 0x45f   : > { %v9974_v36 = vrot.slane %v30181_v12, 1  ;;  %4709 = vst.msk [vmem:[#allocation3 + $0x180] sm:$0xff] %vm384_vm5, %v4661_v61  ;;  %v4662_v60 = vmul.f32 %v26022_v7, %v4374_v47  ;;  %v4834_v11 = vld [vmem:[#allocation3 + $0x150] sm:$0xff]  ;;  %v26060_v61 = vsel %vm1610_vm4, %v9964_v27, %v9967_v41  ;;  %v29522_v27 = vshrl.u32 %v25356_v14, 16 }
 0x460   : > { %4707 = vst.msk [vmem:[#allocation3 + $0x170] sm:$0xff] %vm384_vm5, %v4659_v58  ;;  %v4660_v40 = vmul.f32 %v25991_v55, %v4372_v56  ;;  %v19845_v39 = vpop.f32.mrb[44].mxu0  ;;  %v4862_v28 = vpack.c.bf16 %v4834_v11, %v4833_v52  ;;  %30183 = vst [vmem:[#allocation110_spill] sm:$0xff] %v26060_v61  ;;  %v29521_v52 = vshrl.u32 %v25352_v0, 16 }
 0x461   : > { %4710 = vst.msk [vmem:[#allocation3 + $0x188] sm:$0xff] %vm384_vm5, %v4662_v60  ;;  %v4329_v59 = vadd.f32 %v19845_v39, %v25572_v31  ;;  %v4213_v54 = vpop.f32.mrb[45].mxu0  ;;  %v4835_v12 = vld [vmem:[#allocation3 + $0x158] sm:$0xff]  ;;  %v26067_v60 = vsel %vm1610_vm4, %v9971_v29, %v9974_v36 }
 0x462   : > { %4708 = vst.msk [vmem:[#allocation3 + $0x178] sm:$0xff] %vm384_vm5, %v4660_v40  ;;  %v4327_v58 = vadd.f32 %v25572_v31, %v4213_v54  ;;  %v19846_v7 = vpop.f32.mrb[46].mxu0  ;;  %19892 = vmatmul.mubr.msk.bf16.gmra.mrb[36].mxu1 %vm384_vm5, %v4862_v28  ;;  %v4863_v56 = vpack.c.bf16 %v4836_v16, %v4835_v12  ;;  %30184 = vst [vmem:[#allocation111_spill] sm:$0xff] %v26067_v60  ;;  %v26073_v40 = vpop.permute.xlu0 %4611  ;;  %v22930_v16 = vld [vmem:[%s29183_s5] ss:$0 sm:$0xff] }
 0x463   : > { %v4377_v11 = vmax.f32 %v4329_v59, 0.0  ;;  %v4330_v39 = vadd.f32 %v19846_v7, %v25572_v31  ;;  %v4216_v41 = vpop.f32.mrb[47].mxu0  ;;  %30185 = vst [vmem:[#allocation112_spill] sm:$0xff] %v26073_v40  ;;  %v30186_v31 = vshll.u32 %v25356_v14, 16  ;;  %v26084_v12 = vpop.permute.xlu1 %4616 }
 0x464   : > { %v4375_v54 = vmax.f32 %v4327_v58, 0.0  ;;  %v4328_v28 = vadd.f32 %v22930_v16, %v4216_v41  ;;  %19895 = vmatprep.mubr.msk.bf16.mxu1 %vm384_vm5, %v4863_v56  ;;  %30187 = vst [vmem:[#allocation113_spill] sm:$0xff] %v26084_v12  ;;  %v9978_v56 = vor.u32 %v29521_v52, %v9974_v36 }
 0x465   : > { %v4665_v29 = vmul.f32 %v26073_v40, %v4377_v11  ;;  %v4378_v59 = vmax.f32 %v4330_v39, 0.0  ;;  %20462 = vmatmul.mubr.msk.bf16.gmra.mrb[56].mxu0 %vm323_vm2, %v26060_v61  ;;  %v9981_v7 = vrot.slane %v30186_v31, 1  ;;  %v4837_v39 = vld [vmem:[#allocation3 + $0x168] sm:$0xff]  ;;  %v30188_v31 = vshll.u32 %v25364_v21, 16  ;;  %v30206_v61 = vld [vmem:[#allocation47_spill] sm:$0xff] }
 0x466   : > { %v4663_v58 = vmul.f32 %v26042_v15, %v4375_v54  ;;  %v4376_v47 = vmax.f32 %v4328_v28, 0.0  ;;  %20465 = vmatprep.mubr.msk.bf16.mxu0 %vm323_vm2, %v26067_v60  ;;  %v4840_v52 = vld [vmem:[#allocation3 + $0x180] sm:$0xff]  ;;  %v29543_v15 = vshll.u32 %v25392_v17, 16  ;;  %v30214_v49 = vshrl.u32 %v30206_v61, 16 }
 0x467   : > { %4713 = vst.msk [vmem:[#allocation3 + $0x1a0] sm:$0xff] %vm384_vm5, %v4665_v29  ;;  %v4666_v11 = vmul.f32 %v26084_v12, %v4378_v59  ;;  %v4838_v41 = vld [vmem:[#allocation3 + $0x170] sm:$0xff]  ;;  %v9985_v16 = vor.u32 %v29522_v27, %v9981_v7  ;;  %v9988_v40 = vrot.slane %v30188_v31, 1  ;;  %v29525_v29 = vshll.u32 %v25368_v48, 16 }
 0x468   : > { %4711 = vst.msk [vmem:[#allocation3 + $0x190] sm:$0xff] %vm384_vm5, %v4663_v58  ;;  %v4664_v54 = vmul.f32 %v26053_v46, %v4376_v47  ;;  %v4864_v28 = vpack.c.bf16 %v4838_v41, %v4837_v39  ;;  %v26104_v27 = vsel %vm1610_vm4, %v9978_v56, %v9981_v7  ;;  %v29531_v31 = vshrl.u32 %v25364_v21, 16  ;;  %v4715_v39 = vld [vmem:[#allocation3 + $0x17] sm:$0xff]  ;;  %v4716_v41 = vld [vmem:[#allocation3 + $0x1f] sm:$0xff]  ;;  %v4841_v56 = vld [vmem:[#allocation3 + $0x188] sm:$0xff] }
 0x469   : > { %4714 = vst.msk [vmem:[#allocation3 + $0x1a8] sm:$0xff] %vm384_vm5, %v4666_v11  ;;  %v4839_v36 = vld [vmem:[#allocation3 + $0x178] sm:$0xff]  ;;  %30189 = vst [vmem:[#allocation114_spill] sm:$0xff] %v26104_v27  ;;  %v26108_v58 = vsel %vm1610_vm4, %v9985_v16, %v9988_v40  ;;  %v29529_v47 = vshrl.u32 %v25368_v48, 16  ;;  %v29528_v11 = vshll.u32 %v25376_v63, 16  ;;  %v29530_v46 = vshll.u32 %v25380_v22, 16 }
 0x46a   : > { %4712 = vst.msk [vmem:[#allocation3 + $0x198] sm:$0xff] %vm384_vm5, %v4664_v54  ;;  %19896 = vmatmul.mubr.msk.bf16.gmra.mrb[40].mxu1 %vm384_vm5, %v4864_v28  ;;  %v4865_v59 = vpack.c.bf16 %v4840_v52, %v4839_v36  ;;  %30190 = vst [vmem:[#allocation115_spill] sm:$0xff] %v26108_v58  ;;  %v9995_v52 = vrot.slane %v29525_v29, 1  ;;  %v9992_v7 = vor.u32 %v29531_v31, %v9988_v40  ;;  %v29536_v12 = vshrl.u32 %v25376_v63, 16 }
 0x46b   : > { %v4763_v54 = vpack.c.bf16 %v4716_v41, %v4715_v39  ;;  %v10002_v36 = vrot.slane %v29528_v11, 1  ;;  %v29534_v39 = vshrl.u32 %v25380_v22, 16  ;;  %v29535_v41 = vshll.u32 %v25388_v45, 16 }
 0x46c   : > { %19899 = vmatprep.mubr.msk.bf16.mxu1 %vm384_vm5, %v4865_v59  ;;  %v9999_v28 = vor.u32 %v29529_v47, %v9995_v52  ;;  %v26128_v29 = vsel %vm1610_vm4, %v9992_v7, %v9995_v52  ;;  %v10009_v52 = vrot.slane %v29530_v46, 1  ;;  %v26143_v7 = vld [vmem:[#allocation3 + $0x37] sm:$0xff]  ;;  %v22863_v46 = vld [vmem:[%s29184_s6 + $0x48] sm:$0xff]  }
 0x46d   : > { %20466 = vmatmul.mubr.msk.bf16.gmra.mrb[60].mxu0 %vm323_vm2, %v26104_v27  ;;  %30191 = vst [vmem:[#allocation116_spill] sm:$0xff] %v26128_v29  ;;  %v10016_v11 = vrot.slane %v29535_v41, 1  ;;  %v29547_v41 = vshrl.u32 %v25392_v17, 16 }
 0x46e   : > { %20469 = vmatprep.mubr.msk.bf16.mxu0 %vm323_vm2, %v26108_v58  ;;  %v26133_v40 = vsel %vm1610_vm4, %v9999_v28, %v10002_v36  ;;  %v10013_v28 = vor.u32 %v29534_v39, %v10009_v52  ;;  %v29546_v39 = vshrl.u32 %v25388_v45, 16 }
 0x46f   : > { %v4842_v16 = vld [vmem:[#allocation3 + $0x190] sm:$0xff]  ;;  %30192 = vst [vmem:[#allocation117_spill] sm:$0xff] %v26133_v40 }
 0x470   : > { %v4866_v59 = vpack.c.bf16 %v4842_v16, %v4841_v56  ;;  %v4717_v56 = vld [vmem:[#allocation3 + $0x27] sm:$0xff]  ;;  %v26139_v16 = vld [vmem:[#allocation3 + $0x2f] sm:$0xff] }
 0x471   : > { %v4764_v47 = vpack.c.bf16 %v26139_v16, %v4717_v56  ;;  %v26170_v56 = vsel %vm1610_vm4, %v10013_v28, %v10016_v11  ;;  %v10020_v28 = vor.u32 %v29546_v39, %v10016_v11  ;;  %v29555_v39 = vshll.u32 %v25404_v43, 16 }
 0x472   : > { %19900 = vmatmul.mubr.msk.bf16.gmra.mrb[44].mxu1 %vm384_vm5, %v4866_v59  ;;  %v26145_v59 = vld [vmem:[#allocation3 + $0x3f] sm:$0xff]  ;;  %30194 = vst [vmem:[#allocation119_spill] sm:$0xff] %v26170_v56 }
 0x473   : > { %19911 = vmatprep.mubr.msk.bf16.mxu1 %vm384_vm5, %v4763_v54  ;;  %v10006_v54 = vor.u32 %v29536_v12, %v10002_v36  ;;  %v4765_v31 = vpack.c.bf16 %v26145_v59, %v26143_v7  ;;  %v26191_v12 = vld [vmem:[#allocation3 + $0x47] sm:$0xff] }
 0x475   : > { %20470 = vmatmul.mubr.msk.bf16.gmra.mrb[64].mxu0 %vm323_vm2, %v26128_v29  ;;  %v26164_v36 = vsel %vm1610_vm4, %v10006_v54, %v10009_v52  ;;  %v26179_v52 = vld [vmem:[#allocation3 + $0x4f] sm:$0xff]  ;;  %v26185_v54 = vld [vmem:[#allocation3 + $0x5f] sm:$0xff]  ;;  %v30204_v29 = vshrl.u32 %v25416_v44, 16 }
 0x476   : > { %20473 = vmatprep.mubr.msk.bf16.mxu0 %vm323_vm2, %v26133_v40  ;;  %30193 = vst [vmem:[#allocation118_spill] sm:$0xff] %v26164_v36  ;;  %v26260_v40 = vld [vmem:[#allocation3 + $0x8f] sm:$0xff] }
 0x47a   : > { %19912 = vmatmul.mubr.msk.bf16.vlgmr.msra.gmra.mrb[0].mxu1 %vm384_vm5, %v4764_v47  ;;  %v22864_v47 = vld [vmem:[%s29184_s6 + $0x50] sm:$0xff]  }
 0x47b   : > { %19960 = vmatpush3.bf16.msra.mxu1 %v25744_v38  ;;  %19915 = vmatprep.mubr.msk.bf16.mxu1 %vm384_vm5, %v4765_v31  ;;  %v10023_v38 = vrot.slane %v29543_v15, 1  ;;  %v26183_v31 = vld [vmem:[#allocation3 + $0x57] sm:$0xff]  ;;  %v4766_v15 = vpack.c.bf16 %v26179_v52, %v26191_v12 }
 0x47c   : > { %19961 = vmatprep.subr.bf16.mxu1 %v22863_v46  ;;  %v4767_v11 = vpack.c.bf16 %v26185_v54, %v26183_v31 }
 0x47d   : > { %20474 = vmatmul.mubr.msk.bf16.gmra.mrb[68].mxu0 %vm323_vm2, %v26164_v36  ;;  %v10027_v55 = vor.u32 %v29547_v41, %v10023_v38  ;;  %v26207_v41 = vsel %vm1610_vm4, %v10020_v28, %v10023_v38  ;;  %v26223_v38 = vld [vmem:[#allocation3 + $0x6f] sm:$0xff]  ;;  %v26227_v28 = vld [vmem:[#allocation3 + $0x77] sm:$0xff] }
 0x47e   : > { %20477 = vmatprep.mubr.msk.bf16.mxu0 %vm323_vm2, %v26170_v56  ;;  %30196 = vst [vmem:[#allocation120_spill] sm:$0xff] %v26207_v41  ;;  %v30198_v56 = vshll.u32 %v25412_v32, 16 }
 0x47f   : > { %19962 = vmatpush3.bf16.msra.mxu1 %v22863_v46  ;;  %v26212_v46 = vsel %vm1610_vm4, %v10027_v55, %v10030_v33  ;;  %v10037_v55 = vrot.slane %v29555_v39, 1  ;;  %v4768_v39 = vpack.c.bf16 %v26223_v38, %v26235_v2 }
 0x480   : > { %19963 = vmatprep.subr.bf16.mxu1 %v22864_v47  ;;  %30197 = vst [vmem:[#allocation121_spill] sm:$0xff] %v26212_v46  ;;  %v10044_v36 = vrot.slane %v30198_v56, 1  ;;  %v26272_v56 = vld [vmem:[#allocation3 + $0x87] sm:$0xff] }
 0x482   : > { %19916 = vmatmul.mubr.msk.bf16.gmra.mrb[4].mxu1 %vm384_vm5, %v4766_v15  ;;  %v26219_v15 = vld [vmem:[%s29184_s6 + $0x60] sm:$0xff]  }
 0x483   : > { %19919 = vmatprep.mubr.msk.bf16.mxu1 %vm384_vm5, %v4767_v11  ;;  %19964 = vmatpush3.bf16.msra.mxu1 %v22864_v47  ;;  %v26229_v11 = vld [vmem:[#allocation3 + $0x7f] sm:$0xff]  ;;  %v10034_v47 = vor.u32 %v29559_v1, %v10030_v33 }
 0x484   : > { %19965 = vmatprep.subr.bf16.mxu1 %v22865_v6  ;;  %v30201_v1 = vld [vmem:[#allocation45_spill] sm:$0xff] }
 0x485   : > { %20478 = vmatmul.mubr.msk.bf16.gmra.mrb[72].mxu0 %vm323_vm2, %v26207_v41  ;;  %v10041_v41 = vor.u32 %v29558_v25, %v10037_v55  ;;  %v26249_v33 = vsel %vm1610_vm4, %v10034_v47, %v10037_v55  ;;  %v26264_v47 = vld [vmem:[#allocation3 + $0x97] sm:$0xff]  ;;  %v26266_v25 = vld [vmem:[#allocation3 + $0x9f] sm:$0xff]  ;;  %v30205_v58 = vshll.u32 %v30201_v1, 16 }
 0x486   : > { %20481 = vmatprep.mubr.msk.bf16.mxu0 %vm323_vm2, %v26212_v46  ;;  %v4769_v46 = vpack.c.bf16 %v26229_v11, %v26227_v28  ;;  %30199 = vst [vmem:[#allocation122_spill] sm:$0xff] %v26249_v33  ;;  %v4771_v60 = vpack.c.bf16 %v26266_v25, %v26264_v47 }
 0x487   : > { %19966 = vmatpush3.bf16.msra.mxu1 %v22865_v6  ;;  %v26254_v6 = vsel %vm1610_vm4, %v10041_v41, %v10044_v36  ;;  %v30203_v41 = vshrl.u32 %v25412_v32, 16  ;;  %v10058_v27 = vrot.slane %v30205_v58, 1  ;;  %v26308_v58 = vld [vmem:[#allocation3 + $0xa7] sm:$0xff] }
 0x488   : > { %20015 = vmatprep.subr.bf16.mxu1 %v26219_v15  ;;  %30200 = vst [vmem:[#allocation123_spill] sm:$0xff] %v26254_v6 }
 0x48a   : > { %19920 = vmatmul.mubr.msk.bf16.gmra.mrb[8].mxu1 %vm384_vm5, %v4768_v39  ;;  %v30202_v39 = vshll.u32 %v25416_v44, 16 }
 0x48b   : > { %19923 = vmatprep.mubr.msk.bf16.mxu1 %vm384_vm5, %v4769_v46  ;;  %v10048_v46 = vor.u32 %v30203_v41, %v10044_v36  ;;  %v26302_v41 = vld [vmem:[#allocation3 + $0xbf] sm:$0xff] }
 0x48c   : > { %v10051_v55 = vrot.slane %v30202_v39, 1  ;;  %v4770_v39 = vpack.c.bf16 %v26260_v40, %v26272_v56  ;;  %30212 = vst [vmem:[#allocation125_spill] sm:$0xff] %v26302_v41 }
 0x48d   : > { %20482 = vmatmul.mubr.msk.bf16.gmra.mrb[76].mxu0 %vm323_vm2, %v26249_v33 }
 0x48e   : > { %20485 = vmatprep.mubr.msk.bf16.mxu0 %vm323_vm2, %v26254_v6  ;;  %v10055_v33 = vor.u32 %v30204_v29, %v10051_v55  ;;  %v26285_v36 = vsel %vm1610_vm4, %v10048_v46, %v10051_v55  ;;  %v30209_v6 = vld [vmem:[#allocation49_spill] sm:$0xff]  ;;  %v26300_v46 = vld [vmem:[#allocation3 + $0xb7] sm:$0xff] }
 0x48f   : > { %30207 = vst [vmem:[#allocation45_spill] sm:$0xff] %v26285_v36  ;;  %30211 = vst [vmem:[#allocation124_spill] sm:$0xff] %v26300_v46  ;;  %v30215_v18 = vshll.u32 %v30209_v6, 16  ;;  %v4773_v20 = vpack.c.bf16 %v26302_v41, %v26300_v46  ;;  %v26352_v41 = vld [vmem:[#allocation3 + $0xc7] sm:$0xff]  ;;  %v10447_v46 = vrot.slane %v30226_v24, 3 }
 0x490   : > { %v26290_v29 = vsel %vm1610_vm4, %v10055_v33, %v10058_v27  ;;  %30223 = vst [vmem:[#allocation130_spill] sm:$0xff] %v26352_v41 }
 0x491   : > { %30208 = vst [vmem:[#allocation47_spill] sm:$0xff] %v26290_v29  ;;  %v10072_v9 = vrot.slane %v30215_v18, 1 }
 0x492   : > { %19924 = vmatmul.mubr.msk.bf16.gmra.mrb[12].mxu1 %vm384_vm5, %v4770_v39  ;;  %v30210_v39 = vshll.u32 %v30206_v61, 16 }
 0x493   : > { %19927 = vmatprep.mubr.msk.bf16.mxu1 %vm384_vm5, %v4771_v60  ;;  %v30213_v60 = vshrl.u32 %v30201_v1, 16 }
 0x494   : > { %v10065_v55 = vrot.slane %v30210_v39, 1  ;;  %v4772_v39 = vpack.c.bf16 %v26296_v8, %v26308_v58 }
 0x495   : > { %20486 = vmatmul.mubr.msk.bf16.gmra.mrb[80].mxu0 %vm323_vm2, %v26285_v36  ;;  %v10062_v33 = vor.u32 %v30213_v60, %v10058_v27  ;;  %v29585_v60 = vshrl.u32 %v30209_v6, 16 }
 0x496   : > { %20489 = vmatprep.mubr.msk.bf16.mxu0 %vm323_vm2, %v26290_v29  ;;  %v10069_v36 = vor.u32 %v30214_v49, %v10065_v55  ;;  %v29583_v49 = vshrl.u32 %v30216_v37, 16  ;;  %v30218_v29 = vld [vmem:[#allocation39_spill] sm:$0xff] }
 0x497   : > { %v26321_v27 = vsel %vm1610_vm4, %v10062_v33, %v10065_v55  ;;  %v29584_v23 = vshll.u32 %v30218_v29, 16  ;;  %v26336_v55 = vld [vmem:[#allocation3 + $0xcf] sm:$0xff]  ;;  %v26338_v33 = vld [vmem:[#allocation3 + $0xd7] sm:$0xff] }
 0x498   : > { %30217 = vst [vmem:[#allocation126_spill] sm:$0xff] %v26321_v27  ;;  %v26328_v18 = vsel %vm1610_vm4, %v10069_v36, %v10072_v9  ;;  %30221 = vst [vmem:[#allocation128_spill] sm:$0xff] %v26336_v55  ;;  %v10083_v36 = vor.u32 %v29583_v49, %v10079_v34  ;;  %v4774_v57 = vpack.c.bf16 %v26336_v55, %v26352_v41  ;;  %v30227_v55 = vshll.u32 %v25301_v3, 16 }
 0x499   : > { %30219 = vst [vmem:[#allocation127_spill] sm:$0xff] %v26328_v18  ;;  %v10086_v26 = vrot.slane %v29584_v23, 1  ;;  %v29593_v23 = vshrl.u32 %v30218_v29, 16 }
 0x49a   : > { %19928 = vmatmul.mubr.msk.bf16.gmra.mrb[16].mxu1 %vm384_vm5, %v4772_v39  ;;  %v26340_v39 = vld [vmem:[#allocation3 + $0xdf] sm:$0xff]  ;;  %v10448_v41 = vrot.slane %v30227_v55, 4  ;;  %v26389_v55 = vld [vmem:[#allocation3 + $0xe7] sm:$0xff] }
 0x49b   : > { %19931 = vmatprep.mubr.msk.bf16.mxu1 %vm384_vm5, %v4773_v20  ;;  %30222 = vst [vmem:[#allocation129_spill] sm:$0xff] %v26340_v39  ;;  %v10076_v20 = vor.u32 %v29585_v60, %v10072_v9  ;;  %v26363_v49 = vsel %vm1610_vm4, %v10083_v36, %v10086_v26  ;;  %v26377_v36 = vld [vmem:[#allocation3 + $0xef] sm:$0xff]  ;;  %v26387_v3 = vor.u32 %v29593_v23, %v10086_v26 }
 0x49c   : > { %30225 = vst [vmem:[#allocation132_spill] sm:$0xff] %v26363_v49 }
 0x49d   : > { %20490 = vmatmul.mubr.msk.bf16.gmra.mrb[84].mxu0 %vm323_vm2, %v26321_v27  ;;  %v9922_v27 = vpack.c.bf16 %v26330_v53, %v26330_v53  ;;  %v26360_v9 = vsel %vm1610_vm4, %v10076_v20, %v10079_v34  ;;  %v30229_v34 = vshll.u32 %v25305_v19, 16  ;;  %30230 = vst [vmem:[#allocation133_spill] sm:$0xff] %v26387_v3 }
 0x49e   : > { %20493 = vmatprep.mubr.msk.bf16.mxu0 %vm323_vm2, %v26328_v18  ;;  %v4775_v18 = vpack.c.bf16 %v26340_v39, %v26338_v33  ;;  %30224 = vst [vmem:[#allocation131_spill] sm:$0xff] %v26360_v9  ;;  %v30228_v39 = vshrl.u32 %v25305_v19, 16  ;;  %v10449_v19 = vor.u32 %v10448_v41, %v10447_v46  ;;  %v30232_v41 = vshll.u32 %v25326_v30, 16 }
 0x49f   : > { %v10092_v60 = vshll.u32 %v9922_v27, 16  ;;  %v10451_v20 = vrot.slane %v30229_v34, 4  ;;  %v26379_v27 = vld [vmem:[#allocation3 + $0xf7] sm:$0xff]  ;;  %v4776_v34 = vpack.c.bf16 %v26377_v36, %v26389_v55 }
 0x4a0   : > { %v10459_v46 = vrot.slane %v30232_v41, 4 }
 0x4a1   : > { %v10094_v24 = vrot.slane %v10092_v60, 1  ;;  %v30231_v60 = vshrl.u32 %v25326_v30, 16 }
 0x4a2   : > { %19932 = vmatmul.mubr.msk.bf16.gmra.mrb[20].mxu1 %vm384_vm5, %v4774_v57  ;;  %v10450_v57 = vrot.slane %v30228_v39, 3 }
 0x4a3   : > { %19935 = vmatprep.mubr.msk.bf16.mxu1 %vm384_vm5, %v4775_v18  ;;  %v26381_v18 = vld [vmem:[#allocation3 + $0xff] sm:$0xff]  ;;  %v10458_v23 = vrot.slane %v30231_v60, 3  ;;  %v17863_v60 = vld [vmem:[%s29182_s4 + $0xa] sm:$0x3] }
 0x4a4   : > { %v10452_v39 = vor.u32 %v10451_v20, %v10450_v57  ;;  %v26405_v57 = vld [vmem:[#allocation3 + $0x10f] sm:$0xff]  ;;  %v26407_v20 = vld [vmem:[#allocation3 + $0x117] sm:$0xff] }
 0x4a5   : > { %20494 = vmatmul.mubr.msk.bf16.gmra.mrb[88].mxu0 %vm323_vm2, %v26360_v9  ;;  %v4777_v9 = vpack.c.bf16 %v26381_v18, %v26379_v27  ;;  %30233 = vst [vmem:[#allocation134_spill] sm:$0xff] %v26405_v57  ;;  %30234 = vst [vmem:[#allocation135_spill] sm:$0xff] %v26407_v20 }
 0x4a6   : > { %20497 = vmatprep.mubr.msk.bf16.mxu0 %vm323_vm2, %v26363_v49  ;;  %v10095_v49 = vsel %vm1610_vm4, %v26387_v3, %v10094_v24  ;;  %v10453_v26 = vsel %vm1082_vm3, %v10449_v19, %v10452_v39  ;;  %v26412_v24 = vld [vmem:[#allocation3 + $0x107] sm:$0xff]  ;;  %v10457_v41 = vsel %vm1082_vm3, %v10452_v39, %v25837_v35  ;;  %v26439_v39 = vld [vmem:[#allocation3 + $0x12f] sm:$0xff] }
 0x4a7   : > { %30236 = vst [vmem:[#allocation137_spill] sm:$0xff] %v26412_v24  ;;  %v4778_v19 = vpack.c.bf16 %v26405_v57, %v26412_v24  ;;  %v30239_v57 = vshrl.u32 %v25343_v51, 16 }
 0x4a9   : > { %v10466_v24 = vrot.slane %v30239_v57, 3  ;;  %v26447_v57 = vld [vmem:[#allocation3 + $0x127] sm:$0xff] }
 0x4aa   : > { %19936 = vmatmul.mubr.msk.bf16.gmra.mrb[24].mxu1 %vm384_vm5, %v4776_v34  ;;  %v26409_v34 = vld [vmem:[#allocation3 + $0x11f] sm:$0xff] }
 0x4ab   : > { %19939 = vmatprep.mubr.msk.bf16.mxu1 %vm384_vm5, %v4777_v9  ;;  %30235 = vst [vmem:[#allocation136_spill] sm:$0xff] %v26409_v34  ;;  %v10460_v9 = vor.u32 %v10459_v46, %v10458_v23  ;;  %v30238_v23 = vshll.u32 %v25339_v42, 16 }
 0x4ad   : > { %20498 = vmatmul.mubr.msk.bf16.gmra.mrb[92].mxu0 %vm323_vm2, %v10095_v49  ;;  %v4779_v49 = vpack.c.bf16 %v26409_v34, %v26407_v20  ;;  %v10463_v46 = vrot.slane %v30238_v23, 4  ;;  %v10461_v30 = vsel %vm1082_vm3, %v25837_v35, %v10460_v9  ;;  %v30240_v34 = vshll.u32 %v25343_v51, 16 }
 0x4ae   : > { %20503 = vmatprep.mubr.msk.bf16.mxu0 %vm323_vm2, %v10453_v26  ;;  %v30237_v26 = vshrl.u32 %v25339_v42, 16  ;;  %v26436_v20 = vand.u32 %v17863_v60, %v23066_v4  ;;  %v30246_v42 = vshll.u32 %v25356_v14, 16 }
 0x4b0   : > { %v10462_v3 = vrot.slane %v30237_v26, 3  ;;  %v26442_v26 = vld [vmem:[#allocation3 + $0x137] sm:$0xff] }
 0x4b1   : > { %30241 = vst [vmem:[#allocation138_spill] sm:$0xff] %v26442_v26 }
 0x4b2   : > { %19940 = vmatmul.mubr.msk.bf16.gmra.mrb[28].mxu1 %vm384_vm5, %v4778_v19  ;;  %v10467_v19 = vrot.slane %v30240_v34, 4  ;;  %v10464_v35 = vor.u32 %v10463_v46, %v10462_v3  ;;  %v4780_v34 = vpack.c.bf16 %v26439_v39, %v26447_v57  ;;  %v30245_v46 = vshrl.u32 %v25356_v14, 16 }
 0x4b3   : > { %19943 = vmatprep.mubr.msk.bf16.mxu1 %vm384_vm5, %v4779_v49  ;;  %v26444_v49 = vld [vmem:[#allocation3 + $0x13f] sm:$0xff]  ;;  %v30249_v14 = vshrl.u32 %v25364_v21, 16 }
 0x4b4   : > { %30242 = vst [vmem:[#allocation139_spill] sm:$0xff] %v26444_v49  ;;  %v10468_v23 = vor.u32 %v10467_v19, %v10466_v24  ;;  %v4781_v60 = vpack.c.bf16 %v26444_v49, %v26442_v26  ;;  %v10474_v19 = vrot.slane %v30245_v46, 3  ;;  %v10475_v49 = vrot.slane %v30246_v42, 4 }
 0x4b5   : > { %20504 = vmatmul.mubr.msk.bf16.vlgmr.msra.gmra.mrb[48].mxu0 %vm323_vm2, %v10457_v41  ;;  %v30243_v41 = vshrl.u32 %v25352_v0, 16  ;;  %v30250_v26 = vshll.u32 %v25364_v21, 16 }
 0x4b6   : > { %20552 = vmatpush3.bf16.msra.mxu0 %v25989_v13  ;;  %20507 = vmatprep.mubr.msk.bf16.mxu0 %vm323_vm2, %v10461_v30  ;;  %v10465_v13 = vsel %vm1082_vm3, %v10460_v9, %v10464_v35  ;;  %v30244_v30 = vshll.u32 %v25352_v0, 16  ;;  %v10469_v24 = vsel %vm1082_vm3, %v10464_v35, %v10468_v23  ;;  %v26469_v9 = vld [vmem:[#allocation3 + $0x157] sm:$0xff]  ;;  %v10476_v35 = vor.u32 %v10475_v49, %v10474_v19 }
 0x4b7   : > { %20601 = vmatprep.subr.bf16.mxu0 %v26436_v20  ;;  %v10470_v51 = vrot.slane %v30243_v41, 3  ;;  %30247 = vst [vmem:[#allocation140_spill] sm:$0xff] %v26469_v9  ;;  %v26471_v41 = vld [vmem:[#allocation3 + $0x15f] sm:$0xff]  ;;  %v10478_v0 = vrot.slane %v30249_v14, 3  ;;  %v30251_v49 = vshrl.u32 %v25368_v48, 16  ;;  %v30252_v19 = vshll.u32 %v25368_v48, 16 }
 0x4b8   : > { %v10471_v3 = vrot.slane %v30244_v30, 4  ;;  %30248 = vst [vmem:[#allocation141_spill] sm:$0xff] %v26471_v41  ;;  %v4783_v42 = vpack.c.bf16 %v26471_v41, %v26469_v9  ;;  %v26497_v14 = vld [vmem:[#allocation3 + $0x17f] sm:$0xff]  ;;  %v30256_v48 = vshrl.u32 %v25376_v63, 16  ;;  %v30257_v9 = vshll.u32 %v25376_v63, 16 }
 0x4b9   : > { %v10483_v41 = vrot.slane %v30252_v19, 4  ;;  %30255 = vst [vmem:[#allocation144_spill] sm:$0xff] %v26497_v14 }
 0x4ba   : > { %19944 = vmatmul.mubr.msk.bf16.gmra.mrb[32].mxu1 %vm384_vm5, %v4780_v34  ;;  %v26467_v34 = vld [vmem:[#allocation3 + $0x14f] sm:$0xff]  ;;  %v10472_v30 = vor.u32 %v10471_v3, %v10470_v51  ;;  %v10482_v3 = vrot.slane %v30251_v49, 3  ;;  %v10486_v21 = vrot.slane %v30256_v48, 3 }
 0x4bb   : > { %19947 = vmatprep.mubr.msk.bf16.mxu1 %vm384_vm5, %v4781_v60  ;;  %v26474_v60 = vld [vmem:[#allocation3 + $0x147] sm:$0xff] }
 0x4bc   : > { %v4782_v46 = vpack.c.bf16 %v26467_v34, %v26474_v60  ;;  %v10477_v51 = vsel %vm1082_vm3, %v10472_v30, %v10476_v35 }
 0x4bd   : > { %20508 = vmatmul.mubr.msk.bf16.gmra.mrb[52].mxu0 %vm323_vm2, %v10465_v13  ;;  %v10473_v13 = vsel %vm1082_vm3, %v10468_v23, %v10472_v30  ;;  %v26495_v23 = vld [vmem:[#allocation3 + $0x177] sm:$0xff]  ;;  %v10484_v30 = vor.u32 %v10483_v41, %v10482_v3  ;;  %v30258_v41 = vshrl.u32 %v25380_v22, 16  ;;  %v30259_v3 = vshll.u32 %v25380_v22, 16 }
 0x4be   : > { %20511 = vmatprep.mubr.msk.bf16.mxu0 %vm323_vm2, %v10469_v24  ;;  %v10479_v24 = vrot.slane %v30250_v26, 4  ;;  %30254 = vst [vmem:[#allocation143_spill] sm:$0xff] %v26495_v23  ;;  %v4785_v19 = vpack.c.bf16 %v26497_v14, %v26495_v23  ;;  %v5518_v23 = vld [vmem:[#allocation3 + $0x19] sm:$0xff] }
 0x4bf   : > { %v10491_v14 = vrot.slane %v30259_v3, 4  ;;  %v30261_v3 = vshrl.u32 %v25388_v45, 16 }
 0x4c0   : > { %v10480_v26 = vor.u32 %v10479_v24, %v10478_v0  ;;  %v10490_v24 = vrot.slane %v30258_v41, 3 }
 0x4c1   : > { %v10494_v22 = vrot.slane %v30261_v3, 3  ;;  %v5520_v3 = vld [vmem:[#allocation3 + $0x29] sm:$0xff] }
 0x4c2   : > { %19948 = vmatmul.mubr.msk.bf16.gmra.mrb[36].mxu1 %vm384_vm5, %v4782_v46  ;;  %v26493_v46 = vld [vmem:[#allocation3 + $0x16f] sm:$0xff]  ;;  %v10485_v0 = vsel %vm1082_vm3, %v10480_v26, %v10484_v30  ;;  %v10492_v63 = vor.u32 %v10491_v14, %v10490_v24 }
 0x4c3   : > { %19951 = vmatprep.mubr.msk.bf16.mxu1 %vm384_vm5, %v4783_v42  ;;  %30253 = vst [vmem:[#allocation142_spill] sm:$0xff] %v26493_v46  ;;  %v26500_v42 = vld [vmem:[#allocation3 + $0x167] sm:$0xff]  ;;  %v5521_v24 = vld [vmem:[#allocation3 + $0x31] sm:$0xff] }
 0x4c4   : > { %v4784_v49 = vpack.c.bf16 %v26493_v46, %v26500_v42 }
 0x4c5   : > { %20512 = vmatmul.mubr.msk.bf16.gmra.mrb[56].mxu0 %vm323_vm2, %v10473_v13  ;;  %v10481_v13 = vsel %vm1082_vm3, %v10476_v35, %v10480_v26  ;;  %v26519_v35 = vld [vmem:[#allocation3 + $0x18f] sm:$0xff] }
 0x4c6   : > { %20515 = vmatprep.mubr.msk.bf16.mxu0 %vm323_vm2, %v10477_v51  ;;  %v10487_v51 = vrot.slane %v30257_v9, 4  ;;  %30260 = vst [vmem:[#allocation145_spill] sm:$0xff] %v26519_v35  ;;  %v26522_v9 = vld [vmem:[#allocation3 + $0x187] sm:$0xff] }
 0x4c7   : > { %v4786_v26 = vpack.c.bf16 %v26519_v35, %v26522_v9 }
 0x4c8   : > { %v10488_v48 = vor.u32 %v10487_v51, %v10486_v21  ;;  %v30264_v51 = vshll.u32 %v25392_v17, 16 }
 0x4ca   : > { %19952 = vmatmul.mubr.msk.bf16.gmra.mrb[40].mxu1 %vm384_vm5, %v4784_v49  ;;  %v5519_v49 = vld [vmem:[#allocation3 + $0x21] sm:$0xff]  ;;  %v10489_v41 = vsel %vm1082_vm3, %v10484_v30, %v10488_v48  ;;  %v10493_v21 = vsel %vm1082_vm3, %v10488_v48, %v10492_v63  ;;  %v5522_v30 = vld [vmem:[#allocation3 + $0x39] sm:$0xff] }
 0x4cb   : > { %19955 = vmatprep.mubr.msk.bf16.mxu1 %vm384_vm5, %v4785_v19  ;;  %v5566_v19 = vpack.c.bf16 %v5519_v49, %v5518_v23  ;;  %v30263_v23 = vshrl.u32 %v25392_v17, 16  ;;  %v5523_v49 = vld [vmem:[#allocation3 + $0x41] sm:$0xff]  ;;  %v30266_v17 = vshll.u32 %v25400_v10, 16 }
 0x4cc   : > { %v22867_v48 = vld [vmem:[%s29184_s6 + $0x68] sm:$0xff]  }
 0x4cd   : > { %20516 = vmatmul.mubr.msk.bf16.gmra.mrb[60].mxu0 %vm323_vm2, %v10481_v13  ;;  %v30262_v13 = vshll.u32 %v25388_v45, 16  ;;  %v10498_v14 = vrot.slane %v30263_v23, 3  ;;  %v5567_v45 = vpack.c.bf16 %v5521_v24, %v5520_v3  ;;  %v10503_v35 = vrot.slane %v30266_v17, 4  ;;  %v5525_v17 = vld [vmem:[#allocation3 + $0x51] sm:$0xff] }
 0x4ce   : > { %20519 = vmatprep.mubr.msk.bf16.mxu0 %vm323_vm2, %v10485_v0  ;;  %v10499_v0 = vrot.slane %v30264_v51, 4  ;;  %v22869_v3 = vld [vmem:[%s29184_s6 + $0x78] sm:$0xff]  }
 0x4cf   : > { %v10495_v46 = vrot.slane %v30262_v13, 4 }
 0x4d0   : > { %v10500_v13 = vor.u32 %v10499_v0, %v10498_v14  ;;  %v30268_v14 = vshll.u32 %v25404_v43, 16  ;;  %v5526_v0 = vld [vmem:[#allocation3 + $0x59] sm:$0xff] }
 0x4d2   : > { %19956 = vmatmul.mubr.msk.bf16.gmra.mrb[44].mxu1 %vm384_vm5, %v4786_v26  ;;  %v10496_v26 = vor.u32 %v10495_v46, %v10494_v22  ;;  %v30267_v46 = vshrl.u32 %v25404_v43, 16 }
 0x4d3   : > { %19967 = vmatprep.mubr.msk.bf16.mxu1 %vm384_vm5, %v5566_v19  ;;  %v5568_v19 = vpack.c.bf16 %v5523_v49, %v5522_v30  ;;  %v5524_v30 = vld [vmem:[#allocation3 + $0x49] sm:$0xff] }
 0x4d4   : > { %v10497_v23 = vsel %vm1082_vm3, %v10492_v63, %v10496_v26  ;;  %v10501_v22 = vsel %vm1082_vm3, %v10496_v26, %v10500_v13  ;;  %v22868_v63 = vld [vmem:[%s29184_s6 + $0x70] sm:$0xff]   ;;  %v5569_v26 = vpack.c.bf16 %v5525_v17, %v5524_v30 }
 0x4d5   : > { %20520 = vmatmul.mubr.msk.bf16.gmra.mrb[64].mxu0 %vm323_vm2, %v10489_v41  ;;  %v30265_v41 = vshrl.u32 %v25400_v10, 16  ;;  %v5529_v17 = vld [vmem:[#allocation3 + $0x71] sm:$0xff]  ;;  %v5528_v30 = vld [vmem:[#allocation3 + $0x69] sm:$0xff] }
 0x4d6   : > { %20523 = vmatprep.mubr.msk.bf16.mxu0 %vm323_vm2, %v10493_v21  ;;  %v10506_v21 = vrot.slane %v30267_v46, 3 }
 0x4d7   : > { %v10502_v51 = vrot.slane %v30265_v41, 3  ;;  %v30269_v41 = vshrl.u32 %v25412_v32, 16 }
 0x4d9   : > { %v10504_v24 = vor.u32 %v10503_v35, %v10502_v51  ;;  %v10510_v46 = vrot.slane %v30269_v41, 3  ;;  %v30271_v51 = vshrl.u32 %v25416_v44, 16 }
 0x4da   : > { %19968 = vmatmul.mubr.msk.bf16.vlgmr.msra.gmra.mrb[0].mxu1 %vm384_vm5, %v5567_v45  ;;  %v10507_v45 = vrot.slane %v30268_v14, 4  ;;  %v30272_v14 = vshll.u32 %v25416_v44, 16 }
 0x4db   : > { %20016 = vmatpush3.bf16.msra.mxu1 %v26219_v15  ;;  %19971 = vmatprep.mubr.msk.bf16.mxu1 %vm384_vm5, %v5568_v19  ;;  %v5527_v15 = vld [vmem:[#allocation3 + $0x61] sm:$0xff] }
 0x4dc   : > { %20017 = vmatprep.subr.bf16.mxu1 %v22867_v48  ;;  %v10508_v49 = vor.u32 %v10507_v45, %v10506_v21  ;;  %v5570_v19 = vpack.c.bf16 %v5527_v15, %v5526_v0  ;;  %v10514_v21 = vrot.slane %v30271_v51, 3  ;;  %v10515_v45 = vrot.slane %v30272_v14, 4  ;;  %v5530_v0 = vld [vmem:[#allocation3 + $0x79] sm:$0xff]  ;;  %v5531_v15 = vld [vmem:[#allocation3 + $0x81] sm:$0xff] }
 0x4dd   : > { %20524 = vmatmul.mubr.msk.bf16.gmra.mrb[68].mxu0 %vm323_vm2, %v10497_v23  ;;  %v10505_v23 = vsel %vm1082_vm3, %v10500_v13, %v10504_v24  ;;  %v26579_v13 = vld [vmem:[%s29184_s6 + $0x80] sm:$0xff]   ;;  %v30274_v51 = vshll.u32 %v30201_v1, 16 }
 0x4de   : > { %20527 = vmatprep.mubr.msk.bf16.mxu0 %vm323_vm2, %v10501_v22  ;;  %v30270_v22 = vshll.u32 %v25412_v32, 16 }
 0x4df   : > { %20018 = vmatpush3.bf16.msra.mxu1 %v22867_v48  ;;  %v10509_v48 = vsel %vm1082_vm3, %v10504_v24, %v10508_v49  ;;  %v10519_v14 = vrot.slane %v30274_v51, 4  ;;  %v30277_v51 = vshrl.u32 %v30209_v6, 16 }
 0x4e0   : > { %20019 = vmatprep.subr.bf16.mxu1 %v22868_v63  ;;  %v10511_v35 = vrot.slane %v30270_v22, 4  ;;  %v30273_v22 = vshrl.u32 %v30201_v1, 16 }
 0x4e2   : > { %19972 = vmatmul.mubr.msk.bf16.gmra.mrb[4].mxu1 %vm384_vm5, %v5569_v26  ;;  %v10512_v24 = vor.u32 %v10511_v35, %v10510_v46  ;;  %v10516_v26 = vor.u32 %v10515_v45, %v10514_v21  ;;  %v5533_v45 = vld [vmem:[#allocation3 + $0x91] sm:$0xff] }
 0x4e3   : > { %19975 = vmatprep.mubr.msk.bf16.mxu1 %vm384_vm5, %v5570_v19  ;;  %20020 = vmatpush3.bf16.msra.mxu1 %v22868_v63  ;;  %v5571_v19 = vpack.c.bf16 %v5529_v17, %v5528_v30  ;;  %v5572_v63 = vpack.c.bf16 %v5531_v15, %v5530_v0  ;;  %v5535_v17 = vld [vmem:[#allocation3 + $0xa1] sm:$0xff]  ;;  %v5532_v15 = vld [vmem:[#allocation3 + $0x89] sm:$0xff] }
 0x4e4   : > { %20021 = vmatprep.subr.bf16.mxu1 %v22869_v3  ;;  %v10513_v41 = vsel %vm1082_vm3, %v10508_v49, %v10512_v24  ;;  %v10517_v46 = vsel %vm1082_vm3, %v10512_v24, %v10516_v26  ;;  %v5534_v49 = vld [vmem:[#allocation3 + $0x99] sm:$0xff] }
 0x4e5   : > { %20528 = vmatmul.mubr.msk.bf16.gmra.mrb[72].mxu0 %vm323_vm2, %v10505_v23  ;;  %v10518_v23 = vrot.slane %v30273_v22, 3  ;;  %v5574_v24 = vpack.c.bf16 %v5535_v17, %v5534_v49  ;;  %v5538_v49 = vld [vmem:[#allocation3 + $0xb9] sm:$0xff]  ;;  %v5539_v17 = vld [vmem:[#allocation3 + $0xc1] sm:$0xff] }
 0x4e6   : > { %20531 = vmatprep.mubr.msk.bf16.mxu0 %vm323_vm2, %v10509_v48  ;;  %v30276_v48 = vshll.u32 %v30206_v61, 16 }
 0x4e7   : > { %20022 = vmatpush3.bf16.msra.mxu1 %v22869_v3  ;;  %v30275_v3 = vshrl.u32 %v30206_v61, 16  ;;  %v10520_v0 = vor.u32 %v10519_v14, %v10518_v23  ;;  %v30280_v14 = vshrl.u32 %v30216_v37, 16 }
 0x4e8   : > { %20071 = vmatprep.subr.bf16.mxu1 %v26579_v13  ;;  %v10523_v21 = vrot.slane %v30276_v48, 4 }
 0x4e9   : > { %v10522_v35 = vrot.slane %v30275_v3, 3  ;;  %v10521_v22 = vsel %vm1082_vm3, %v10516_v26, %v10520_v0  ;;  %v10526_v3 = vrot.slane %v30277_v51, 3 }
 0x4ea   : > { %19976 = vmatmul.mubr.msk.bf16.gmra.mrb[8].mxu1 %vm384_vm5, %v5571_v19  ;;  %v26598_v19 = vld [vmem:[#allocation2 + $0x1a0] sm:$0xff] }
 0x4eb   : > { %19979 = vmatprep.mubr.msk.bf16.mxu1 %vm384_vm5, %v5572_v63  ;;  %v10524_v30 = vor.u32 %v10523_v21, %v10522_v35  ;;  %v5573_v63 = vpack.c.bf16 %v5533_v45, %v5532_v15  ;;  %v10530_v35 = vrot.slane %v30280_v14, 3  ;;  %v30281_v21 = vshll.u32 %v30216_v37, 16  ;;  %v5537_v45 = vld [vmem:[#allocation3 + $0xb1] sm:$0xff] }
 0x4ed   : > { %20532 = vmatmul.mubr.msk.bf16.gmra.mrb[76].mxu0 %vm323_vm2, %v10513_v41  ;;  %v30278_v41 = vshll.u32 %v30209_v6, 16  ;;  %v10525_v23 = vsel %vm1082_vm3, %v10520_v0, %v10524_v30  ;;  %v10531_v26 = vrot.slane %v30281_v21, 4  ;;  %v5576_v6 = vpack.c.bf16 %v5539_v17, %v5538_v49  ;;  %v5542_v49 = vld [vmem:[#allocation3 + $0xd9] sm:$0xff]  ;;  %v5543_v17 = vld [vmem:[#allocation3 + $0xe1] sm:$0xff] }
 0x4ee   : > { %20535 = vmatprep.mubr.msk.bf16.mxu0 %vm323_vm2, %v10517_v46  ;;  %v26608_v46 = vpack.c.bf16 %v26598_v19, %v26330_v53  ;;  %v30282_v21 = vshrl.u32 %v30218_v29, 16 }
 0x4ef   : > { %v10527_v48 = vrot.slane %v30278_v41, 4  ;;  %v10532_v51 = vor.u32 %v10531_v26, %v10530_v35  ;;  %v26620_v41 = vld [vmem:[#allocation2 + $0x1a8] sm:$0xff] }
 0x4f0   : > { %30279 = vst [vmem:[#allocation146_spill] sm:$0xff] %v26608_v46  ;;  %v29624_v0 = vshll.u32 %v26608_v46, 16  ;;  %v10534_v37 = vrot.slane %v30282_v21, 3 }
 0x4f1   : > { %v10528_v15 = vor.u32 %v10527_v48, %v10526_v3  ;;  %v10445_v48 = vpack.c.bf16 %v26620_v41, %v26620_v41 }
 0x4f2   : > { %19980 = vmatmul.mubr.msk.bf16.gmra.mrb[12].mxu1 %vm384_vm5, %v5573_v63  ;;  %v5536_v63 = vld [vmem:[#allocation3 + $0xa9] sm:$0xff] }
 0x4f3   : > { %19983 = vmatprep.mubr.msk.bf16.mxu1 %vm384_vm5, %v5574_v24  ;;  %v29621_v24 = vshrl.u32 %v26608_v46, 16  ;;  %v5575_v14 = vpack.c.bf16 %v5537_v45, %v5536_v63  ;;  %v10533_v35 = vsel %vm1082_vm3, %v10528_v15, %v10532_v51  ;;  %v10544_v45 = vrot.slane %v29624_v0, 4 }
 0x4f4   : > { %v10551_v21 = vshll.u32 %v10445_v48, 16 }
 0x4f5   : > { %20536 = vmatmul.mubr.msk.bf16.gmra.mrb[80].mxu0 %vm323_vm2, %v10521_v22  ;;  %v10529_v22 = vsel %vm1082_vm3, %v10524_v30, %v10528_v15  ;;  %v10541_v26 = vrot.slane %v29621_v24, 3  ;;  %v5541_v30 = vld [vmem:[#allocation3 + $0xd1] sm:$0xff]  ;;  %v5578_v15 = vpack.c.bf16 %v5543_v17, %v5542_v49  ;;  %v5550_v49 = vld [vmem:[#allocation3 + $0x119] sm:$0xff] }
 0x4f6   : > { %20539 = vmatprep.mubr.msk.bf16.mxu0 %vm323_vm2, %v10525_v23  ;;  %v30283_v23 = vshll.u32 %v30218_v29, 16  ;;  %v10553_v0 = vrot.slane %v10551_v21, 4  ;;  %v30284_v17 = vld [vmem:[#allocation15_spill] sm:$0xff] }
 0x4f8   : > { %v10535_v3 = vrot.slane %v30283_v23, 4  ;;  %v5540_v23 = vld [vmem:[#allocation3 + $0xc9] sm:$0xff] }
 0x4f9   : > { %v5577_v29 = vpack.c.bf16 %v5541_v30, %v5540_v23  ;;  %v30285_v23 = vld [vmem:[#allocation16_spill] sm:$0xff] }
 0x4fa   : > { %19984 = vmatmul.mubr.msk.bf16.gmra.mrb[16].mxu1 %vm384_vm5, %v5575_v14  ;;  %v10536_v63 = vor.u32 %v10535_v3, %v10534_v37  ;;  %v10548_v14 = vshrl.u32 %v10445_v48, 16  ;;  %v5546_v37 = vld [vmem:[#allocation3 + $0xf9] sm:$0xff]  ;;  %v5547_v3 = vld [vmem:[#allocation3 + $0x101] sm:$0xff] }
 0x4fb   : > { %19987 = vmatprep.mubr.msk.bf16.mxu1 %vm384_vm5, %v5576_v6  ;;  %v10545_v6 = vor.u32 %v10544_v45, %v10541_v26  ;;  %v5544_v26 = vld [vmem:[#allocation3 + $0xe9] sm:$0xff]  ;;  %v5580_v30 = vpack.c.bf16 %v5547_v3, %v5546_v37 }
 0x4fc   : > { %v10537_v24 = vsel %vm1082_vm3, %v10532_v51, %v10536_v63  ;;  %v10550_v46 = vrot.slane %v10548_v14, 3  ;;  %v5549_v51 = vld [vmem:[#allocation3 + $0x111] sm:$0xff]  ;;  %v5552_v37 = vld [vmem:[#allocation3 + $0x129] sm:$0xff] }
 0x4fd   : > { %20540 = vmatmul.mubr.msk.bf16.gmra.mrb[84].mxu0 %vm323_vm2, %v10529_v22  ;;  %v10546_v22 = vsel %vm1082_vm3, %v10536_v63, %v10545_v6  ;;  %v26650_v63 = vld [vmem:[#allocation3 + $0x109] sm:$0xff] }
 0x4fe   : > { %20543 = vmatprep.mubr.msk.bf16.mxu0 %vm323_vm2, %v10533_v35  ;;  %v5545_v35 = vld [vmem:[#allocation3 + $0xf1] sm:$0xff]  ;;  %v10554_v48 = vor.u32 %v10553_v0, %v10550_v46  ;;  %v5581_v46 = vpack.c.bf16 %v5549_v51, %v26650_v63  ;;  %v17888_v0 = vld [vmem:[%s29182_s4 + $0xc] sm:$0x3] }
 0x4ff   : > { %v5579_v45 = vpack.c.bf16 %v5545_v35, %v5544_v26  ;;  %v26659_v21 = vand.u32 %v17888_v0, %v23066_v4  ;;  %v30286_v35 = vld [vmem:[#allocation17_spill] sm:$0xff]  ;;  %v30287_v26 = vld [vmem:[#allocation18_spill] sm:$0xff]  ;;  %v5561_v0 = vld [vmem:[#allocation3 + $0x171] sm:$0xff] }
 0x500   : > { %v5556_v51 = vld [vmem:[#allocation3 + $0x149] sm:$0xff] }
 0x502   : > { %19988 = vmatmul.mubr.msk.bf16.gmra.mrb[20].mxu1 %vm384_vm5, %v5577_v29  ;;  %v10555_v29 = vsel %vm1082_vm3, %v10545_v6, %v10554_v48  ;;  %v5553_v6 = vld [vmem:[#allocation3 + $0x131] sm:$0xff] }
 0x503   : > { %19991 = vmatprep.mubr.msk.bf16.mxu1 %vm384_vm5, %v5578_v15  ;;  %v5554_v15 = vld [vmem:[#allocation3 + $0x139] sm:$0xff]  ;;  %v5583_v3 = vpack.c.bf16 %v5553_v6, %v5552_v37  ;;  %v5563_v6 = vld [vmem:[#allocation3 + $0x181] sm:$0xff] }
 0x505   : > { %20544 = vmatmul.mubr.msk.bf16.gmra.mrb[88].mxu0 %vm323_vm2, %v10537_v24  ;;  %v5551_v24 = vld [vmem:[#allocation3 + $0x121] sm:$0xff] }
 0x506   : > { %20547 = vmatprep.mubr.msk.bf16.mxu0 %vm323_vm2, %v10546_v22  ;;  %v5582_v14 = vpack.c.bf16 %v5551_v24, %v5550_v49  ;;  %v5555_v22 = vld [vmem:[#allocation3 + $0x141] sm:$0xff] }
 0x507   : > { %v5584_v48 = vpack.c.bf16 %v5555_v22, %v5554_v15  ;;  %v30290_v15 = vld [vmem:[#allocation21_spill] sm:$0xff]  ;;  %v5560_v22 = vld [vmem:[#allocation3 + $0x169] sm:$0xff] }
 0x508   : > { %v5587_v37 = vpack.c.bf16 %v5561_v0, %v5560_v22  ;;  %v30294_v0 = vld [vmem:[#allocation25_spill] sm:$0xff]  ;;  %v30295_v22 = vld [vmem:[#allocation26_spill] sm:$0xff] }
 0x50a   : > { %19992 = vmatmul.mubr.msk.bf16.gmra.mrb[24].mxu1 %vm384_vm5, %v5579_v45  ;;  %v5557_v45 = vld [vmem:[#allocation3 + $0x151] sm:$0xff] }
 0x50b   : > { %19995 = vmatprep.mubr.msk.bf16.mxu1 %vm384_vm5, %v5580_v30  ;;  %v5558_v30 = vld [vmem:[#allocation3 + $0x159] sm:$0xff]  ;;  %v5585_v49 = vpack.c.bf16 %v5557_v45, %v5556_v51  ;;  %v5565_v45 = vld [vmem:[#allocation3 + $0x191] sm:$0xff] }
 0x50d   : > { %20548 = vmatmul.mubr.msk.bf16.gmra.mrb[92].mxu0 %vm323_vm2, %v10555_v29  ;;  %v30288_v29 = vld [vmem:[#allocation19_spill] sm:$0xff] }
 0x50e   : > { %20553 = vmatprep.mubr.msk.bf16.mxu0 %vm323_vm2, %v30284_v17 }
 0x512   : > { %19996 = vmatmul.mubr.msk.bf16.gmra.mrb[28].mxu1 %vm384_vm5, %v5581_v46  ;;  %v30289_v46 = vld [vmem:[#allocation20_spill] sm:$0xff] }
 0x513   : > { %19999 = vmatprep.mubr.msk.bf16.mxu1 %vm384_vm5, %v5582_v14  ;;  %v5562_v14 = vld [vmem:[#allocation3 + $0x179] sm:$0xff] }
 0x515   : > { %20554 = vmatmul.mubr.msk.bf16.vlgmr.msra.gmra.mrb[48].mxu0 %vm323_vm2, %v30285_v23 }
 0x516   : > { %20602 = vmatpush3.bf16.msra.mxu0 %v26436_v20  ;;  %20557 = vmatprep.mubr.msk.bf16.mxu0 %vm323_vm2, %v30286_v35  ;;  %v5559_v20 = vld [vmem:[#allocation3 + $0x161] sm:$0xff] }
 0x517   : > { %20651 = vmatprep.subr.bf16.mxu0 %v26659_v21  ;;  %v5586_v24 = vpack.c.bf16 %v5559_v20, %v5558_v30  ;;  %v30292_v30 = vld [vmem:[#allocation23_spill] sm:$0xff] }
 0x518   : > { %v5564_v20 = vld [vmem:[#allocation3 + $0x189] sm:$0xff] }
 0x519   : > { %v5589_v51 = vpack.c.bf16 %v5565_v45, %v5564_v20  ;;  %v30303_v20 = vld [vmem:[#allocation128_spill] sm:$0xff] }
 0x51a   : > { %20000 = vmatmul.mubr.msk.bf16.gmra.mrb[32].mxu1 %vm384_vm5, %v5583_v3  ;;  %v5588_v3 = vpack.c.bf16 %v5563_v6, %v5562_v14  ;;  %v6017_v14 = vpack.c.bf16 %v26191_v12, %v26145_v59  ;;  %v22871_v6 = vld [vmem:[%s29184_s6 + $0x88] sm:$0xff]   ;;  %v6019_v12 = vpack.c.bf16 %v26235_v2, %v26185_v54  ;;  %v22873_v59 = vld [vmem:[%s29184_s6 + $0x98] sm:$0xff]   ;;  %v30297_v54 = vld [vmem:[#allocation29_spill] sm:$0xff] }
 0x51b   : > { %20003 = vmatprep.mubr.msk.bf16.mxu1 %vm384_vm5, %v5584_v48  ;;  %v30291_v48 = vld [vmem:[#allocation22_spill] sm:$0xff]  ;;  %v30296_v2 = vld [vmem:[#allocation28_spill] sm:$0xff] }
 0x51d   : > { %20558 = vmatmul.mubr.msk.bf16.gmra.mrb[52].mxu0 %vm323_vm2, %v30287_v26 }
 0x51e   : > { %20561 = vmatprep.mubr.msk.bf16.mxu0 %vm323_vm2, %v30288_v29 }
 0x522   : > { %20004 = vmatmul.mubr.msk.bf16.gmra.mrb[36].mxu1 %vm384_vm5, %v5585_v49  ;;  %v6016_v49 = vpack.c.bf16 %v26143_v7, %v26139_v16  ;;  %v6018_v16 = vpack.c.bf16 %v26183_v31, %v26179_v52  ;;  %v22872_v7 = vld [vmem:[%s29184_s6 + $0x90] sm:$0xff]   ;;  %v6020_v52 = vpack.c.bf16 %v26227_v28, %v26223_v38  ;;  %v26722_v31 = vld [vmem:[%s29184_s6 + $0xa0] sm:$0xff]   ;;  %v6021_v38 = vpack.c.bf16 %v26272_v56, %v26229_v11  ;;  %v30298_v11 = vld [vmem:[#allocation124_spill] sm:$0xff] }
 0x523   : > { %20007 = vmatprep.mubr.msk.bf16.mxu1 %vm384_vm5, %v5586_v24  ;;  %v30293_v24 = vld [vmem:[#allocation24_spill] sm:$0xff]  ;;  %v6022_v28 = vpack.c.bf16 %v26264_v47, %v26260_v40  ;;  %v6024_v56 = vpack.c.bf16 %v30298_v11, %v26296_v8  ;;  %v30300_v47 = vld [vmem:[#allocation34_spill] sm:$0xff]  ;;  %v30305_v8 = vld [vmem:[#allocation7_spill] sm:$0xff]  ;;  %v26784_v11 = vpack.c.bf16 %v26620_v41, %v26598_v19  ;;  %v30316_v19 = vshrl.u32 %v30286_v35, 16 }
 0x524   : > { %v30299_v40 = vld [vmem:[#allocation32_spill] sm:$0xff] }
 0x525   : > { %20562 = vmatmul.mubr.msk.bf16.gmra.mrb[56].mxu0 %vm323_vm2, %v30289_v46 }
 0x526   : > { %20565 = vmatprep.mubr.msk.bf16.mxu0 %vm323_vm2, %v30290_v15 }
 0x52a   : > { %20008 = vmatmul.mubr.msk.bf16.gmra.mrb[40].mxu1 %vm384_vm5, %v5587_v37  ;;  %v30301_v37 = vld [vmem:[#allocation125_spill] sm:$0xff] }
 0x52b   : > { %20011 = vmatprep.mubr.msk.bf16.mxu1 %vm384_vm5, %v5588_v3  ;;  %v30302_v3 = vld [vmem:[#allocation130_spill] sm:$0xff] }
 0x52c   : > { %v6025_v45 = vpack.c.bf16 %v30302_v3, %v30301_v37 }
 0x52d   : > { %20566 = vmatmul.mubr.msk.bf16.gmra.mrb[60].mxu0 %vm323_vm2, %v30291_v48 }
 0x52e   : > { %20569 = vmatprep.mubr.msk.bf16.mxu0 %vm323_vm2, %v30292_v30 }
 0x532   : > { %20012 = vmatmul.mubr.msk.bf16.gmra.mrb[44].mxu1 %vm384_vm5, %v5589_v51  ;;  %v6026_v51 = vpack.c.bf16 %v26338_v33, %v30303_v20 }
 0x533   : > { %20023 = vmatprep.mubr.msk.bf16.mxu1 %vm384_vm5, %v6016_v49 }
 0x535   : > { %20570 = vmatmul.mubr.msk.bf16.gmra.mrb[64].mxu0 %vm323_vm2, %v30293_v24 }
 0x536   : > { %20573 = vmatprep.mubr.msk.bf16.mxu0 %vm323_vm2, %v30294_v0 }
 0x53a   : > { %20024 = vmatmul.mubr.msk.bf16.vlgmr.msra.gmra.mrb[0].mxu1 %vm384_vm5, %v6017_v14  ;;  %v6028_v14 = vpack.c.bf16 %v26379_v27, %v26377_v36  ;;  %v30310_v27 = vshll.u32 %v30285_v23, 16 }
 0x53b   : > { %20072 = vmatpush3.bf16.msra.mxu1 %v26579_v13  ;;  %20027 = vmatprep.mubr.msk.bf16.mxu1 %vm384_vm5, %v6018_v16  ;;  %v6023_v13 = vpack.c.bf16 %v26308_v58, %v26266_v25  ;;  %v30304_v25 = vld [vmem:[#allocation36_spill] sm:$0xff]  ;;  %v30306_v58 = vld [vmem:[#allocation129_spill] sm:$0xff]  ;;  %v30307_v16 = vshll.u32 %v30284_v17, 16 }
 0x53c   : > { %20073 = vmatprep.subr.bf16.mxu1 %v22871_v6  ;;  %v6027_v49 = vpack.c.bf16 %v26389_v55, %v30306_v58  ;;  %v30309_v55 = vshrl.u32 %v30284_v17, 16 }
 0x53d   : > { %20574 = vmatmul.mubr.msk.bf16.gmra.mrb[68].mxu0 %vm323_vm2, %v30295_v22 }
 0x53e   : > { %20577 = vmatprep.mubr.msk.bf16.mxu0 %vm323_vm2, %v30103_v62 }
 0x53f   : > { %20074 = vmatpush3.bf16.msra.mxu1 %v22871_v6  ;;  %v22931_v6 = vld [vmem:[#allocation2 + $0x190] sm:$0xff] }
 0x540   : > { %20075 = vmatprep.subr.bf16.mxu1 %v22872_v7  ;;  %v26765_v33 = vpack.c.bf16 %v26330_v53, %v22931_v6  ;;  %v30311_v53 = vld [vmem:[#allocation137_spill] sm:$0xff] }
 0x542   : > { %20028 = vmatmul.mubr.msk.bf16.gmra.mrb[4].mxu1 %vm384_vm5, %v6019_v12  ;;  %v30308_v12 = vld [vmem:[#allocation6_spill] sm:$0xff] }
 0x543   : > { %20031 = vmatprep.mubr.msk.bf16.mxu1 %vm384_vm5, %v6020_v52  ;;  %20076 = vmatpush3.bf16.msra.mxu1 %v22872_v7  ;;  %v11235_v7 = vrot.slane %v30307_v16, 1  ;;  %v6029_v52 = vpack.c.bf16 %v30311_v53, %v26381_v18  ;;  %v30315_v18 = vshrl.u32 %v30285_v23, 16 }
 0x544   : > { %20077 = vmatprep.subr.bf16.mxu1 %v22873_v59 }
 0x545   : > { %20578 = vmatmul.mubr.msk.bf16.gmra.mrb[72].mxu0 %vm323_vm2, %v30296_v2  ;;  %v11236_v36 = vor.u32 %v11235_v7, %v30309_v55 }
 0x546   : > { %20581 = vmatprep.mubr.msk.bf16.mxu0 %vm323_vm2, %v30297_v54 }
 0x547   : > { %20078 = vmatpush3.bf16.msra.mxu1 %v22873_v59  ;;  %v11237_v59 = vrot.slane %v30310_v27, 1 }
 0x548   : > { %20127 = vmatprep.subr.bf16.mxu1 %v26722_v31 }
 0x549   : > { %v11238_v17 = vsel %vm1610_vm4, %v11236_v36, %v11237_v59  ;;  %v11239_v3 = vor.u32 %v11237_v59, %v30315_v18  ;;  %v30322_v36 = vshrl.u32 %v30288_v29, 16  ;;  %v30323_v59 = vshll.u32 %v30289_v46, 16 }
 0x54a   : > { %20032 = vmatmul.mubr.msk.bf16.gmra.mrb[8].mxu1 %vm384_vm5, %v6021_v38  ;;  %v30312_v38 = vld [vmem:[#allocation134_spill] sm:$0xff]  ;;  %v30329_v18 = vshll.u32 %v30291_v48, 16 }
 0x54b   : > { %20035 = vmatprep.mubr.msk.bf16.mxu1 %vm384_vm5, %v6022_v28  ;;  %v30313_v28 = vld [vmem:[#allocation135_spill] sm:$0xff]  ;;  %v11249_v53 = vrot.slane %v30323_v59, 1 }
 0x54d   : > { %20582 = vmatmul.mubr.msk.bf16.gmra.mrb[76].mxu0 %vm323_vm2, %v30116_v50 }
 0x54e   : > { %20585 = vmatprep.mubr.msk.bf16.mxu0 %vm323_vm2, %v30122_v5 }
 0x552   : > { %20036 = vmatmul.mubr.msk.bf16.gmra.mrb[12].mxu1 %vm384_vm5, %v6023_v13  ;;  %v6030_v13 = vpack.c.bf16 %v30313_v28, %v30312_v38  ;;  %v30325_v28 = vld [vmem:[#allocation140_spill] sm:$0xff] }
 0x553   : > { %20039 = vmatprep.mubr.msk.bf16.mxu1 %vm384_vm5, %v6024_v56  ;;  %v30314_v56 = vshll.u32 %v30286_v35, 16 }
 0x555   : > { %20586 = vmatmul.mubr.msk.bf16.gmra.mrb[80].mxu0 %vm323_vm2, %v30299_v40  ;;  %v11240_v37 = vrot.slane %v30314_v56, 1 }
 0x556   : > { %20589 = vmatprep.mubr.msk.bf16.mxu0 %vm323_vm2, %v30300_v47 }
 0x557   : > { %v11242_v41 = vor.u32 %v11240_v37, %v30316_v19  ;;  %v11241_v23 = vsel %vm1610_vm4, %v11239_v3, %v11240_v37  ;;  %v11255_v3 = vrot.slane %v30329_v18, 1  ;;  %v30330_v19 = vld [vmem:[#allocation141_spill] sm:$0xff]  ;;  %v30343_v18 = vshll.u32 %v30103_v62, 16 }
 0x55a   : > { %20040 = vmatmul.mubr.msk.bf16.gmra.mrb[16].mxu1 %vm384_vm5, %v6025_v45  ;;  %v30317_v45 = vshll.u32 %v30287_v26, 16 }
 0x55b   : > { %20043 = vmatprep.mubr.msk.bf16.mxu1 %vm384_vm5, %v6026_v51  ;;  %v30318_v51 = vld [vmem:[#allocation136_spill] sm:$0xff] }
 0x55c   : > { %v11243_v20 = vrot.slane %v30317_v45, 1  ;;  %v6031_v58 = vpack.c.bf16 %v26447_v57, %v30318_v51  ;;  %v30320_v57 = vshll.u32 %v30288_v29, 16  ;;  %v30326_v29 = vshll.u32 %v30290_v15, 16  ;;  %v30331_v45 = vld [vmem:[#allocation142_spill] sm:$0xff] }
 0x55d   : > { %20590 = vmatmul.mubr.msk.bf16.gmra.mrb[84].mxu0 %vm323_vm2, %v30304_v25 }
 0x55e   : > { %20593 = vmatprep.mubr.msk.bf16.mxu0 %vm323_vm2, %v30305_v8  ;;  %v11244_v35 = vsel %vm1610_vm4, %v11242_v41, %v11243_v20  ;;  %v11246_v7 = vrot.slane %v30320_v57, 1  ;;  %v6035_v41 = vpack.c.bf16 %v26500_v42, %v30330_v19  ;;  %v30334_v42 = vshrl.u32 %v30291_v48, 16  ;;  %v26897_v19 = vld [vmem:[#allocation3 + $0x58] sm:$0xff] }
 0x55f   : > { %v30336_v57 = vshll.u32 %v30293_v24, 16 }
 0x560   : > { %v11248_v27 = vor.u32 %v11246_v7, %v30322_v36  ;;  %v30338_v36 = vld [vmem:[#allocation145_spill] sm:$0xff] }
 0x562   : > { %20044 = vmatmul.mubr.msk.bf16.gmra.mrb[20].mxu1 %vm384_vm5, %v6027_v49  ;;  %v17913_v49 = vld [vmem:[%s29182_s4 + $0xe] sm:$0x3] }
 0x563   : > { %20047 = vmatprep.mubr.msk.bf16.mxu1 %vm384_vm5, %v6028_v14  ;;  %v30319_v14 = vld [vmem:[#allocation138_spill] sm:$0xff]  ;;  %v26812_v16 = vand.u32 %v17913_v49, %v23066_v4 }
 0x564   : > { %v6032_v6 = vpack.c.bf16 %v30319_v14, %v26439_v39  ;;  %v30321_v39 = vshrl.u32 %v30287_v26, 16  ;;  %v11250_v26 = vsel %vm1610_vm4, %v11248_v27, %v11249_v53  ;;  %v26855_v14 = vld [vmem:[#allocation3 + $0x197] sm:$0xff] }
 0x565   : > { %20594 = vmatmul.mubr.msk.bf16.gmra.mrb[88].mxu0 %vm323_vm2, %v30308_v12  ;;  %v6038_v27 = vpack.c.bf16 %v26855_v14, %v30338_v36 }
 0x566   : > { %20597 = vmatprep.mubr.msk.bf16.mxu0 %vm323_vm2, %v26765_v33  ;;  %v11245_v55 = vor.u32 %v11243_v20, %v30321_v39  ;;  %v30332_v20 = vld [vmem:[#allocation143_spill] sm:$0xff]  ;;  %v30337_v39 = vld [vmem:[#allocation144_spill] sm:$0xff] }
 0x567   : > { %v6036_v51 = vpack.c.bf16 %v30332_v20, %v30331_v45  ;;  %v6420_v20 = vld [vmem:[#allocation3 + $0x40] sm:$0xff] }
 0x56a   : > { %20048 = vmatmul.mubr.msk.bf16.gmra.mrb[24].mxu1 %vm384_vm5, %v6029_v52  ;;  %v30324_v52 = vld [vmem:[#allocation139_spill] sm:$0xff] }
 0x56b   : > { %20051 = vmatprep.mubr.msk.bf16.mxu1 %vm384_vm5, %v6030_v13  ;;  %v6033_v38 = vpack.c.bf16 %v26474_v60, %v30324_v52  ;;  %v6034_v13 = vpack.c.bf16 %v30325_v28, %v26467_v34  ;;  %v30327_v60 = vshrl.u32 %v30289_v46, 16  ;;  %v30328_v34 = vshrl.u32 %v30290_v15, 16 }
 0x56c   : > { %v30333_v15 = vshll.u32 %v30292_v30, 16  ;;  %v30339_v52 = vshll.u32 %v30294_v0, 16  ;;  %v30340_v28 = vshrl.u32 %v30293_v24, 16 }
 0x56d   : > { %20598 = vmatmul.mubr.msk.bf16.gmra.mrb[92].mxu0 %vm323_vm2, %v26784_v11  ;;  %v11251_v56 = vor.u32 %v11249_v53, %v30327_v60  ;;  %v26875_v53 = vld [vmem:[#allocation3 + $0x1a7] sm:$0xff] }
 0x56e   : > { %20603 = vmatprep.mubr.msk.bf16.mxu0 %vm323_vm2, %v11238_v17  ;;  %v11252_v17 = vrot.slane %v30326_v29, 1  ;;  %v11258_v49 = vrot.slane %v30333_v15, 1  ;;  %v30342_v29 = vshll.u32 %v30295_v22, 16 }
 0x570   : > { %v11254_v37 = vor.u32 %v11252_v17, %v30328_v34 }
 0x572   : > { %20052 = vmatmul.mubr.msk.bf16.gmra.mrb[28].mxu1 %vm384_vm5, %v6031_v58  ;;  %v11253_v58 = vsel %vm1610_vm4, %v11251_v56, %v11252_v17  ;;  %v11256_v46 = vsel %vm1610_vm4, %v11254_v37, %v11255_v3  ;;  %v11267_v17 = vrot.slane %v30342_v29, 1  ;;  %v6418_v56 = vld [vmem:[#allocation3 + $0x30] sm:$0xff]  ;;  %v26957_v29 = vld [vmem:[#allocation3 + $0x88] sm:$0xff] }
 0x573   : > { %20055 = vmatprep.mubr.msk.bf16.mxu1 %vm384_vm5, %v6032_v6  ;;  %v11257_v6 = vor.u32 %v11255_v3, %v30334_v42  ;;  %v11270_v3 = vrot.slane %v30343_v18, 1  ;;  %v26907_v42 = vld [vmem:[#allocation3 + $0x50] sm:$0xff]  ;;  %v30353_v18 = vshrl.u32 %v30122_v5, 16 }
 0x575   : > { %20604 = vmatmul.mubr.msk.bf16.vlgmr.msra.gmra.mrb[48].mxu0 %vm323_vm2, %v11241_v23  ;;  %v30335_v23 = vshrl.u32 %v30292_v30, 16  ;;  %v11259_v59 = vsel %vm1610_vm4, %v11257_v6, %v11258_v49  ;;  %v26873_v30 = vld [vmem:[#allocation3 + $0x19f] sm:$0xff]  ;;  %v22875_v6 = vld [vmem:[%s29184_s6 + $0xa8] sm:$0xff]  }
 0x576   : > { %20652 = vmatpush3.bf16.msra.mxu0 %v26659_v21  ;;  %20607 = vmatprep.mubr.msk.bf16.mxu0 %vm323_vm2, %v11244_v35  ;;  %v11247_v21 = vsel %vm1610_vm4, %v11245_v55, %v11246_v7  ;;  %v11261_v7 = vrot.slane %v30336_v57, 1  ;;  %v6037_v55 = vpack.c.bf16 %v26522_v9, %v30337_v39  ;;  %v11264_v9 = vrot.slane %v30339_v52, 1  ;;  %v26923_v57 = vld [vmem:[#allocation3 + $0x68] sm:$0xff] }
 0x577   : > { %20701 = vmatprep.subr.bf16.mxu0 %v26812_v16  ;;  %v11260_v35 = vor.u32 %v11258_v49, %v30335_v23  ;;  %v6039_v60 = vpack.c.bf16 %v26875_v53, %v26873_v30  ;;  %v6468_v23 = vpack.c.bf16 %v26897_v19, %v26907_v42  ;;  %v30350_v52 = vshll.u32 %v30116_v50, 16 }
 0x579   : > { %v11262_v48 = vsel %vm1610_vm4, %v11260_v35, %v11261_v7  ;;  %v22876_v35 = vld [vmem:[%s29184_s6 + $0xb0] sm:$0xff]  }
 0x57a   : > { %20056 = vmatmul.mubr.msk.bf16.gmra.mrb[32].mxu1 %vm384_vm5, %v6033_v38  ;;  %v6419_v38 = vld [vmem:[#allocation3 + $0x38] sm:$0xff] }
 0x57b   : > { %20059 = vmatprep.mubr.msk.bf16.mxu1 %vm384_vm5, %v6034_v13  ;;  %v11263_v13 = vor.u32 %v11261_v7, %v30340_v28  ;;  %v6466_v34 = vpack.c.bf16 %v6419_v38, %v6418_v56  ;;  %v30347_v7 = vshll.u32 %v30297_v54, 16  ;;  %v26940_v28 = vld [vmem:[#allocation3 + $0x70] sm:$0xff]  ;;  %v26961_v56 = vld [vmem:[#allocation3 + $0x98] sm:$0xff] }
 0x57d   : > { %20608 = vmatmul.mubr.msk.bf16.gmra.mrb[52].mxu0 %vm323_vm2, %v11247_v21  ;;  %v30341_v21 = vshrl.u32 %v30294_v0, 16  ;;  %v11265_v37 = vsel %vm1610_vm4, %v11263_v13, %v11264_v9  ;;  %v26893_v0 = vld [vmem:[#allocation3 + $0x48] sm:$0xff]  ;;  %v11276_v39 = vrot.slane %v30347_v7, 1 }
 0x57e   : > { %20611 = vmatprep.mubr.msk.bf16.mxu0 %vm323_vm2, %v11250_v26  ;;  %v6467_v49 = vpack.c.bf16 %v26893_v0, %v6420_v20 }
 0x57f   : > { %v11266_v26 = vor.u32 %v11264_v9, %v30341_v21  ;;  %v11279_v9 = vrot.slane %v30350_v52, 1  ;;  %v27010_v52 = vld [vmem:[#allocation3 + $0xc8] sm:$0xff] }
 0x581   : > { %v11268_v24 = vsel %vm1610_vm4, %v11266_v26, %v11267_v17  ;;  %v26954_v26 = vld [vmem:[%s29184_s6 + $0xc0] sm:$0xff]  }
 0x582   : > { %20060 = vmatmul.mubr.msk.bf16.gmra.mrb[36].mxu1 %vm384_vm5, %v6035_v41  ;;  %v30344_v41 = vshrl.u32 %v30295_v22, 16 }
 0x583   : > { %20063 = vmatprep.mubr.msk.bf16.mxu1 %vm384_vm5, %v6036_v51  ;;  %v30345_v51 = vshrl.u32 %v30103_v62, 16 }
 0x584   : > { %v11269_v45 = vor.u32 %v11267_v17, %v30344_v41  ;;  %v30351_v17 = vshll.u32 %v30122_v5, 16  ;;  %v30354_v41 = vshll.u32 %v30299_v40, 16 }
 0x585   : > { %20612 = vmatmul.mubr.msk.bf16.gmra.mrb[56].mxu0 %vm323_vm2, %v11253_v58  ;;  %v11272_v58 = vor.u32 %v11270_v3, %v30345_v51  ;;  %v26974_v51 = vld [vmem:[#allocation3 + $0x90] sm:$0xff] }
 0x586   : > { %20615 = vmatprep.mubr.msk.bf16.mxu0 %vm323_vm2, %v11256_v46  ;;  %v30346_v46 = vshll.u32 %v30296_v2, 16  ;;  %v11271_v22 = vsel %vm1610_vm4, %v11269_v45, %v11270_v3  ;;  %v11285_v45 = vrot.slane %v30354_v41, 1 }
 0x588   : > { %v11273_v15 = vrot.slane %v30346_v46, 1  ;;  %v26984_v46 = vld [vmem:[#allocation3 + $0xa8] sm:$0xff] }
 0x58a   : > { %20064 = vmatmul.mubr.msk.bf16.gmra.mrb[40].mxu1 %vm384_vm5, %v6037_v55  ;;  %v11274_v62 = vsel %vm1610_vm4, %v11272_v58, %v11273_v15  ;;  %v26927_v55 = vld [vmem:[#allocation3 + $0x78] sm:$0xff] }
 0x58b   : > { %20067 = vmatprep.mubr.msk.bf16.mxu1 %vm384_vm5, %v6038_v27  ;;  %v26932_v27 = vld [vmem:[#allocation3 + $0x60] sm:$0xff]  ;;  %v6470_v13 = vpack.c.bf16 %v26927_v55, %v26940_v28 }
 0x58c   : > { %v6469_v38 = vpack.c.bf16 %v26923_v57, %v26932_v27 }
 0x58d   : > { %20616 = vmatmul.mubr.msk.bf16.gmra.mrb[60].mxu0 %vm323_vm2, %v11259_v59  ;;  %v30349_v59 = vshrl.u32 %v30297_v54, 16 }
 0x58e   : > { %20619 = vmatprep.mubr.msk.bf16.mxu0 %vm323_vm2, %v11262_v48 }
 0x58f   : > { %v11278_v48 = vor.u32 %v11276_v39, %v30349_v59  ;;  %v27001_v59 = vld [vmem:[#allocation3 + $0xb0] sm:$0xff] }
 0x591   : > { %v11280_v21 = vsel %vm1610_vm4, %v11278_v48, %v11279_v9 }
 0x592   : > { %20068 = vmatmul.mubr.msk.bf16.gmra.mrb[44].mxu1 %vm384_vm5, %v6039_v60  ;;  %v11282_v60 = vrot.slane %v30351_v17, 1  ;;  %v30361_v17 = vshrl.u32 %v30305_v8, 16 }
 0x593   : > { %20079 = vmatprep.mubr.msk.bf16.mxu1 %vm384_vm5, %v6466_v34  ;;  %v30352_v34 = vshrl.u32 %v30116_v50, 16  ;;  %v6472_v50 = vpack.c.bf16 %v26961_v56, %v26974_v51 }
 0x594   : > { %v11284_v3 = vor.u32 %v11282_v60, %v30353_v18 }
 0x595   : > { %20620 = vmatmul.mubr.msk.bf16.gmra.mrb[64].mxu0 %vm323_vm2, %v11265_v37  ;;  %v11281_v37 = vor.u32 %v11279_v9, %v30352_v34  ;;  %v30359_v9 = vshll.u32 %v30305_v8, 16  ;;  %v30362_v34 = vshll.u32 %v30308_v12, 16 }
 0x596   : > { %20623 = vmatprep.mubr.msk.bf16.mxu0 %vm323_vm2, %v11268_v24  ;;  %v26966_v24 = vld [vmem:[#allocation3 + $0x80] sm:$0xff]  ;;  %v11286_v5 = vsel %vm1610_vm4, %v11284_v3, %v11285_v45  ;;  %v27027_v3 = vld [vmem:[#allocation3 + $0xd0] sm:$0xff] }
 0x597   : > { %v6471_v20 = vpack.c.bf16 %v26957_v29, %v26966_v24  ;;  %v11283_v58 = vsel %vm1610_vm4, %v11281_v37, %v11282_v60  ;;  %v11297_v37 = vrot.slane %v30362_v34, 1  ;;  %v27077_v34 = vld [vmem:[#allocation3 + $0x100] sm:$0xff] }
 0x59a   : > { %20080 = vmatmul.mubr.msk.bf16.vlgmr.msra.gmra.mrb[0].mxu1 %vm384_vm5, %v6467_v49 }
 0x59b   : > { %20128 = vmatpush3.bf16.msra.mxu1 %v26722_v31  ;;  %20083 = vmatprep.mubr.msk.bf16.mxu1 %vm384_vm5, %v6468_v23  ;;  %v30348_v31 = vshrl.u32 %v30296_v2, 16  ;;  %v22877_v2 = vld [vmem:[%s29184_s6 + $0xb8] sm:$0xff]   ;;  %v30356_v23 = vshrl.u32 %v30299_v40, 16 }
 0x59c   : > { %20129 = vmatprep.subr.bf16.mxu1 %v22875_v6 }
 0x59d   : > { %20624 = vmatmul.mubr.msk.bf16.gmra.mrb[68].mxu0 %vm323_vm2, %v11271_v22  ;;  %v11275_v36 = vor.u32 %v11273_v15, %v30348_v31  ;;  %v30355_v15 = vshll.u32 %v30300_v47, 16  ;;  %v11287_v22 = vor.u32 %v11285_v45, %v30356_v23  ;;  %v29627_v45 = vshll.u32 %v26765_v33, 16 }
 0x59e   : > { %20627 = vmatprep.mubr.msk.bf16.mxu0 %vm323_vm2, %v11274_v62  ;;  %v26993_v62 = vld [vmem:[#allocation3 + $0xa0] sm:$0xff]  ;;  %v30363_v23 = vshrl.u32 %v30308_v12, 16 }
 0x59f   : > { %20130 = vmatpush3.bf16.msra.mxu1 %v22875_v6  ;;  %v11277_v54 = vsel %vm1610_vm4, %v11275_v36, %v11276_v39  ;;  %v11288_v49 = vrot.slane %v30355_v15, 1  ;;  %v26988_v6 = vld [vmem:[#allocation3 + $0xb8] sm:$0xff]  ;;  %v30358_v39 = vshll.u32 %v30304_v25, 16  ;;  %v6473_v36 = vpack.c.bf16 %v26984_v46, %v26993_v62 }
 0x5a0   : > { %20131 = vmatprep.subr.bf16.mxu1 %v22876_v35  ;;  %v6474_v48 = vpack.c.bf16 %v26988_v6, %v27001_v59  ;;  %v11302_v15 = vrot.slane %v29627_v45, 1  ;;  %v27161_v45 = vld [vmem:[#allocation3 + $0x190] sm:$0xff] }
 0x5a1   : > { %v11291_v31 = vrot.slane %v30358_v39, 1  ;;  %v11289_v40 = vsel %vm1610_vm4, %v11287_v22, %v11288_v49  ;;  %v11299_v22 = vor.u32 %v11297_v37, %v30363_v23  ;;  %v30365_v23 = vld [vmem:[#allocation56_spill] sm:$0xff]  ;;  %30384 = vst [vmem:[#allocation29_spill] sm:$0xff] %v27161_v45 }
 0x5a2   : > { %20084 = vmatmul.mubr.msk.bf16.gmra.mrb[4].mxu1 %vm384_vm5, %v6469_v38  ;;  %v11294_v38 = vrot.slane %v30359_v9, 1 }
 0x5a3   : > { %20087 = vmatprep.mubr.msk.bf16.mxu1 %vm384_vm5, %v6470_v13  ;;  %20132 = vmatpush3.bf16.msra.mxu1 %v22876_v35  ;;  %v30357_v35 = vshrl.u32 %v30300_v47, 16  ;;  %v30360_v13 = vshrl.u32 %v30304_v25, 16 }
 0x5a4   : > { %20133 = vmatprep.subr.bf16.mxu1 %v22877_v2  ;;  %v11296_v60 = vor.u32 %v11294_v38, %v30361_v17 }
 0x5a5   : > { %20628 = vmatmul.mubr.msk.bf16.gmra.mrb[72].mxu0 %vm323_vm2, %v11277_v54  ;;  %v11290_v7 = vor.u32 %v11288_v49, %v30357_v35  ;;  %v11293_v54 = vor.u32 %v11291_v31, %v30360_v13  ;;  %v27045_v49 = vld [vmem:[#allocation3 + $0xf8] sm:$0xff]  ;;  %v27070_v13 = vld [vmem:[#allocation3 + $0x108] sm:$0xff] }
 0x5a6   : > { %20631 = vmatprep.mubr.msk.bf16.mxu0 %vm323_vm2, %v11280_v21  ;;  %v27019_v21 = vld [vmem:[#allocation3 + $0xc0] sm:$0xff]  ;;  %v11298_v8 = vsel %vm1610_vm4, %v11296_v60, %v11297_v37  ;;  %v6479_v37 = vpack.c.bf16 %v27070_v13, %v27077_v34 }
 0x5a7   : > { %20134 = vmatpush3.bf16.msra.mxu1 %v22877_v2  ;;  %v11292_v47 = vsel %vm1610_vm4, %v11290_v7, %v11291_v31  ;;  %v27014_v2 = vld [vmem:[#allocation3 + $0xd8] sm:$0xff]  ;;  %v6475_v18 = vpack.c.bf16 %v27010_v52, %v27019_v21  ;;  %v11295_v25 = vsel %vm1610_vm4, %v11293_v54, %v11294_v38  ;;  %v27052_v7 = vld [vmem:[#allocation3 + $0xe0] sm:$0xff] }
 0x5a8   : > { %20183 = vmatprep.subr.bf16.mxu1 %v26954_v26  ;;  %v6476_v41 = vpack.c.bf16 %v27014_v2, %v27027_v3  ;;  %v27072_v54 = vld [vmem:[#allocation3 + $0x118] sm:$0xff] }
 0x5aa   : > { %20088 = vmatmul.mubr.msk.bf16.gmra.mrb[8].mxu1 %vm384_vm5, %v6471_v20  ;;  %v29628_v20 = vshrl.u32 %v26765_v33, 16 }
 0x5ab   : > { %20091 = vmatprep.mubr.msk.bf16.mxu1 %vm384_vm5, %v6472_v50  ;;  %v29625_v50 = vshll.u32 %v26784_v11, 16 }
 0x5ac   : > { %v11306_v39 = vor.u32 %v29628_v20, %v11302_v15  ;;  %v6869_v20 = vld [vmem:[#allocation3 + $0x39] sm:$0xff] }
 0x5ad   : > { %20632 = vmatmul.mubr.msk.bf16.gmra.mrb[76].mxu0 %vm323_vm2, %v11283_v58  ;;  %v27038_v58 = vld [vmem:[#allocation2 + $0x1b0] sm:$0xff]  ;;  %v11309_v31 = vrot.slane %v29625_v50, 1  ;;  %v27157_v50 = vld [vmem:[#allocation3 + $0x180] sm:$0xff] }
 0x5ae   : > { %20635 = vmatprep.mubr.msk.bf16.mxu0 %vm323_vm2, %v11286_v5  ;;  %v27041_v5 = vld [vmem:[#allocation3 + $0xe8] sm:$0xff]  ;;  %v11233_v35 = vpack.c.bf16 %v27038_v58, %v27038_v58  ;;  %30383 = vst [vmem:[#allocation28_spill] sm:$0xff] %v27157_v50 }
 0x5af   : > { %v11310_v38 = vsel %vm1610_vm4, %v11306_v39, %v11309_v31  ;;  %v27099_v39 = vld [vmem:[#allocation3 + $0x130] sm:$0xff] }
 0x5b0   : > { %v11315_v9 = vshll.u32 %v11233_v35, 16  ;;  %30366 = vst [vmem:[#allocation16_spill] sm:$0xff] %v27099_v39 }
 0x5b2   : > { %20092 = vmatmul.mubr.msk.bf16.gmra.mrb[12].mxu1 %vm384_vm5, %v6473_v36  ;;  %v6477_v36 = vpack.c.bf16 %v27041_v5, %v27052_v7  ;;  %v11317_v60 = vrot.slane %v11315_v9, 1  ;;  %v27113_v9 = vld [vmem:[#allocation3 + $0x148] sm:$0xff] }
 0x5b3   : > { %20095 = vmatprep.mubr.msk.bf16.mxu1 %vm384_vm5, %v6474_v48  ;;  %v27060_v48 = vld [vmem:[#allocation3 + $0xf0] sm:$0xff]  ;;  %30368 = vst [vmem:[#allocation17_spill] sm:$0xff] %v27113_v9 }
 0x5b4   : > { %v6478_v12 = vpack.c.bf16 %v27045_v49, %v27060_v48 }
 0x5b5   : > { %20636 = vmatmul.mubr.msk.bf16.gmra.mrb[80].mxu0 %vm323_vm2, %v11289_v40  ;;  %v11303_v40 = vsel %vm1610_vm4, %v11299_v22, %v11302_v15  ;;  %v27091_v15 = vld [vmem:[#allocation3 + $0x138] sm:$0xff]  ;;  %v27095_v22 = vld [vmem:[#allocation3 + $0x120] sm:$0xff] }
 0x5b6   : > { %20639 = vmatprep.mubr.msk.bf16.mxu0 %vm323_vm2, %v11292_v47  ;;  %v29626_v47 = vshrl.u32 %v26784_v11, 16  ;;  %30364 = vst [vmem:[#allocation15_spill] sm:$0xff] %v27091_v15 }
 0x5b8   : > { %v11313_v17 = vor.u32 %v29626_v47, %v11309_v31  ;;  %v17938_v31 = vld [vmem:[%s29182_s4 + $0x10] sm:$0x3] }
 0x5ba   : > { %20096 = vmatmul.mubr.msk.bf16.gmra.mrb[16].mxu1 %vm384_vm5, %v6475_v18  ;;  %v27081_v18 = vld [vmem:[#allocation3 + $0x110] sm:$0xff] }
 0x5bb   : > { %20099 = vmatprep.mubr.msk.bf16.mxu1 %vm384_vm5, %v6476_v41  ;;  %v6480_v41 = vpack.c.bf16 %v27072_v54, %v27081_v18 }
 0x5bd   : > { %20640 = vmatmul.mubr.msk.bf16.gmra.mrb[84].mxu0 %vm323_vm2, %v11295_v25  ;;  %v11318_v25 = vsel %vm1610_vm4, %v11313_v17, %v11317_v60  ;;  %v30370_v17 = vld [vmem:[#allocation60_spill] sm:$0xff]  ;;  %v27120_v60 = vld [vmem:[#allocation3 + $0x140] sm:$0xff] }
 0x5be   : > { %20643 = vmatprep.mubr.msk.bf16.mxu0 %vm323_vm2, %v11298_v8  ;;  %v27089_v8 = vld [vmem:[#allocation3 + $0x128] sm:$0xff]  ;;  %30371 = vst [vmem:[#allocation19_spill] sm:$0xff] %v27120_v60 }
 0x5bf   : > { %v6481_v35 = vpack.c.bf16 %v27089_v8, %v27095_v22 }
 0x5c2   : > { %20100 = vmatmul.mubr.msk.bf16.gmra.mrb[20].mxu1 %vm384_vm5, %v6477_v36  ;;  %v6482_v36 = vpack.c.bf16 %v27091_v15, %v27099_v39 }
 0x5c3   : > { %20103 = vmatprep.mubr.msk.bf16.mxu1 %vm384_vm5, %v6478_v12  ;;  %v27109_v12 = vand.u32 %v17938_v31, %v23066_v4  ;;  %v6483_v4 = vpack.c.bf16 %v27113_v9, %v27120_v60  ;;  %v27139_v31 = vld [vmem:[#allocation3 + $0x160] sm:$0xff] }
 0x5c4   : > { %30377 = vst [vmem:[#allocation23_spill] sm:$0xff] %v27139_v31  ;;  %v30423_v60 = vld [vmem:[#allocation97_spill] sm:$0xff] }
 0x5c5   : > { %20644 = vmatmul.mubr.msk.bf16.gmra.mrb[88].mxu0 %vm323_vm2, %v11303_v40  ;;  %v30367_v40 = vld [vmem:[#allocation57_spill] sm:$0xff] }
 0x5c6   : > { %20647 = vmatprep.mubr.msk.bf16.mxu0 %vm323_vm2, %v11310_v38  ;;  %v27116_v38 = vld [vmem:[#allocation3 + $0x158] sm:$0xff] }
 0x5c7   : > { %30369 = vst [vmem:[#allocation18_spill] sm:$0xff] %v27116_v38 }
 0x5ca   : > { %20104 = vmatmul.mubr.msk.bf16.gmra.mrb[24].mxu1 %vm384_vm5, %v6479_v37  ;;  %v27125_v37 = vld [vmem:[#allocation3 + $0x150] sm:$0xff] }
 0x5cb   : > { %20107 = vmatprep.mubr.msk.bf16.mxu1 %vm384_vm5, %v6480_v41  ;;  %30372 = vst [vmem:[#allocation20_spill] sm:$0xff] %v27125_v37  ;;  %v6484_v41 = vpack.c.bf16 %v27116_v38, %v27125_v37  ;;  %v30420_v38 = vshrl.u32 %v26784_v11, 16 }
 0x5cd   : > { %20648 = vmatmul.mubr.msk.bf16.gmra.mrb[92].mxu0 %vm323_vm2, %v11318_v25  ;;  %v27133_v25 = vld [vmem:[#allocation3 + $0x168] sm:$0xff]  ;;  %v11674_v37 = vrot.slane %v30420_v38, 3  ;;  %v27306_v38 = vld [vmem:[#allocation3 + $0xf9] sm:$0xff] }
 0x5ce   : > { %20653 = vmatprep.mubr.msk.bf16.mxu0 %vm323_vm2, %v30365_v23  ;;  %30374 = vst [vmem:[#allocation21_spill] sm:$0xff] %v27133_v25  ;;  %v27135_v23 = vld [vmem:[#allocation3 + $0x178] sm:$0xff] }
 0x5cf   : > { %30375 = vst [vmem:[#allocation22_spill] sm:$0xff] %v27135_v23 }
 0x5d2   : > { %20108 = vmatmul.mubr.msk.bf16.gmra.mrb[28].mxu1 %vm384_vm5, %v6481_v35  ;;  %v30376_v35 = vld [vmem:[#allocation65_spill] sm:$0xff] }
 0x5d3   : > { %20111 = vmatprep.mubr.msk.bf16.mxu1 %vm384_vm5, %v6482_v36  ;;  %v6485_v36 = vpack.c.bf16 %v27133_v25, %v27139_v31  ;;  %v30414_v25 = vld [vmem:[#allocation91_spill] sm:$0xff] }
 0x5d5   : > { %20654 = vmatmul.mubr.msk.bf16.vlgmr.msra.gmra.mrb[48].mxu0 %vm323_vm2, %v30367_v40  ;;  %v27143_v40 = vld [vmem:[#allocation3 + $0x170] sm:$0xff] }
 0x5d6   : > { %20702 = vmatpush3.bf16.msra.mxu0 %v26812_v16  ;;  %20657 = vmatprep.mubr.msk.bf16.mxu0 %vm323_vm2, %v30370_v17  ;;  %v30373_v16 = vld [vmem:[#allocation61_spill] sm:$0xff]  ;;  %30378 = vst [vmem:[#allocation24_spill] sm:$0xff] %v27143_v40  ;;  %v6486_v17 = vpack.c.bf16 %v27135_v23, %v27143_v40 }
 0x5d7   : > { %20751 = vmatprep.subr.bf16.mxu0 %v27109_v12  ;;  %v30387_v23 = vld [vmem:[#allocation73_spill] sm:$0xff] }
 0x5d8   : > { %v6870_v40 = vld [vmem:[#allocation3 + $0x41] sm:$0xff] }
 0x5da   : > { %20112 = vmatmul.mubr.msk.bf16.gmra.mrb[32].mxu1 %vm384_vm5, %v6483_v4  ;;  %v30379_v4 = vld [vmem:[#allocation66_spill] sm:$0xff] }
 0x5db   : > { %20115 = vmatprep.mubr.msk.bf16.mxu1 %vm384_vm5, %v6484_v41  ;;  %v27151_v41 = vld [vmem:[#allocation3 + $0x188] sm:$0xff] }
 0x5dc   : > { %30380 = vst [vmem:[#allocation25_spill] sm:$0xff] %v27151_v41  ;;  %v6487_v47 = vpack.c.bf16 %v27151_v41, %v27157_v50  ;;  %v27173_v41 = vld [vmem:[#allocation3 + $0x1a0] sm:$0xff] }
 0x5dd   : > { %20658 = vmatmul.mubr.msk.bf16.gmra.mrb[52].mxu0 %vm323_vm2, %v30373_v16  ;;  %v27153_v16 = vld [vmem:[#allocation3 + $0x198] sm:$0xff]  ;;  %30388 = vst [vmem:[#allocation32_spill] sm:$0xff] %v27173_v41 }
 0x5de   : > { %20661 = vmatprep.mubr.msk.bf16.mxu0 %vm323_vm2, %v30376_v35  ;;  %30381 = vst [vmem:[#allocation26_spill] sm:$0xff] %v27153_v16  ;;  %v30382_v35 = vld [vmem:[#allocation69_spill] sm:$0xff] }
 0x5e2   : > { %20116 = vmatmul.mubr.msk.bf16.gmra.mrb[36].mxu1 %vm384_vm5, %v6485_v36  ;;  %v6488_v36 = vpack.c.bf16 %v27153_v16, %v27161_v45  ;;  %v27185_v45 = vld [vmem:[#allocation3 + $0x59] sm:$0xff] }
 0x5e3   : > { %20119 = vmatprep.mubr.msk.bf16.mxu1 %vm384_vm5, %v6486_v17  ;;  %v30385_v17 = vld [vmem:[#allocation71_spill] sm:$0xff]  ;;  %30392 = vst [vmem:[#allocation130_spill] sm:$0xff] %v27185_v45 }
 0x5e5   : > { %20662 = vmatmul.mubr.msk.bf16.gmra.mrb[56].mxu0 %vm323_vm2, %v30379_v4  ;;  %v27169_v4 = vld [vmem:[#allocation3 + $0x1a8] sm:$0xff] }
 0x5e6   : > { %20665 = vmatprep.mubr.msk.bf16.mxu0 %vm323_vm2, %v30382_v35  ;;  %30386 = vst [vmem:[#allocation124_spill] sm:$0xff] %v27169_v4  ;;  %v6868_v35 = vld [vmem:[#allocation3 + $0x31] sm:$0xff]  ;;  %v6489_v50 = vpack.c.bf16 %v27169_v4, %v27173_v41 }
 0x5e7   : > { %v6916_v16 = vpack.c.bf16 %v6869_v20, %v6868_v35  ;;  %v22879_v20 = vld [vmem:[%s29184_s6 + $0xc8] sm:$0xff]   ;;  %v30394_v35 = vld [vmem:[#allocation77_spill] sm:$0xff] }
 0x5ea   : > { %20120 = vmatmul.mubr.msk.bf16.gmra.mrb[40].mxu1 %vm384_vm5, %v6487_v47  ;;  %v30389_v47 = vld [vmem:[#allocation74_spill] sm:$0xff] }
 0x5eb   : > { %20123 = vmatprep.mubr.msk.bf16.mxu1 %vm384_vm5, %v6488_v36  ;;  %v27181_v36 = vld [vmem:[#allocation3 + $0x49] sm:$0xff] }
 0x5ec   : > { %30390 = vst [vmem:[#allocation34_spill] sm:$0xff] %v27181_v36  ;;  %v6917_v4 = vpack.c.bf16 %v27181_v36, %v6870_v40  ;;  %v27203_v40 = vld [vmem:[#allocation3 + $0x69] sm:$0xff]  ;;  %v30410_v36 = vld [vmem:[#allocation89_spill] sm:$0xff] }
 0x5ed   : > { %20666 = vmatmul.mubr.msk.bf16.gmra.mrb[60].mxu0 %vm323_vm2, %v30385_v17  ;;  %v27183_v17 = vld [vmem:[#allocation3 + $0x51] sm:$0xff]  ;;  %30395 = vst [vmem:[#allocation128_spill] sm:$0xff] %v27203_v40 }
 0x5ee   : > { %20669 = vmatprep.mubr.msk.bf16.mxu0 %vm323_vm2, %v30387_v23  ;;  %30391 = vst [vmem:[#allocation125_spill] sm:$0xff] %v27183_v17  ;;  %v30393_v23 = vld [vmem:[#allocation30_spill] sm:$0xff] }
 0x5f2   : > { %20124 = vmatmul.mubr.msk.bf16.gmra.mrb[44].mxu1 %vm384_vm5, %v6489_v50  ;;  %v6918_v50 = vpack.c.bf16 %v27185_v45, %v27183_v17  ;;  %v30398_v45 = vld [vmem:[#allocation80_spill] sm:$0xff] }
 0x5f3   : > { %20135 = vmatprep.mubr.msk.bf16.mxu1 %vm384_vm5, %v6916_v16  ;;  %v22880_v16 = vld [vmem:[%s29184_s6 + $0xd0] sm:$0xff]   ;;  %v27233_v17 = vld [vmem:[#allocation3 + $0x99] sm:$0xff] }
 0x5f4   : > { %30403 = vst [vmem:[#allocation134_spill] sm:$0xff] %v27233_v17 }
 0x5f5   : > { %20670 = vmatmul.mubr.msk.bf16.gmra.mrb[64].mxu0 %vm323_vm2, %v30389_v47  ;;  %v27205_v47 = vld [vmem:[#allocation3 + $0x71] sm:$0xff] }
 0x5f6   : > { %20673 = vmatprep.mubr.msk.bf16.mxu0 %vm323_vm2, %v30393_v23  ;;  %30396 = vst [vmem:[#allocation36_spill] sm:$0xff] %v27205_v47  ;;  %v27207_v23 = vld [vmem:[#allocation3 + $0x79] sm:$0xff] }
 0x5f7   : > { %30397 = vst [vmem:[#allocation7_spill] sm:$0xff] %v27207_v23 }
 0x5fa   : > { %20136 = vmatmul.mubr.msk.bf16.vlgmr.msra.gmra.mrb[0].mxu1 %vm384_vm5, %v6917_v4 }
 0x5fb   : > { %20184 = vmatpush3.bf16.msra.mxu1 %v26954_v26  ;;  %20139 = vmatprep.mubr.msk.bf16.mxu1 %vm384_vm5, %v6918_v50  ;;  %v27211_v26 = vld [vmem:[#allocation3 + $0x61] sm:$0xff]  ;;  %v22881_v50 = vld [vmem:[%s29184_s6 + $0xd8] sm:$0xff]  }
 0x5fc   : > { %20185 = vmatprep.subr.bf16.mxu1 %v22879_v20  ;;  %30399 = vst [vmem:[#allocation129_spill] sm:$0xff] %v27211_v26  ;;  %v6919_v4 = vpack.c.bf16 %v27203_v40, %v27211_v26  ;;  %v27229_v40 = vld [vmem:[#allocation3 + $0x89] sm:$0xff]  ;;  %v27231_v26 = vld [vmem:[#allocation3 + $0x91] sm:$0xff] }
 0x5fd   : > { %20674 = vmatmul.mubr.msk.bf16.gmra.mrb[68].mxu0 %vm323_vm2, %v30394_v35  ;;  %v6920_v35 = vpack.c.bf16 %v27207_v23, %v27205_v47  ;;  %30401 = vst [vmem:[#allocation6_spill] sm:$0xff] %v27229_v40  ;;  %30402 = vst [vmem:[#allocation137_spill] sm:$0xff] %v27231_v26  ;;  %v30404_v23 = vld [vmem:[#allocation85_spill] sm:$0xff]  ;;  %v27248_v47 = vld [vmem:[#allocation3 + $0xa9] sm:$0xff] }
 0x5fe   : > { %20677 = vmatprep.mubr.msk.bf16.mxu0 %vm323_vm2, %v30398_v45  ;;  %v27225_v45 = vld [vmem:[%s29184_s6 + $0xe0] sm:$0xff]   ;;  %30407 = vst [vmem:[#allocation136_spill] sm:$0xff] %v27248_v47 }
 0x5ff   : > { %20186 = vmatpush3.bf16.msra.mxu1 %v22879_v20  ;;  %v30400_v20 = vld [vmem:[#allocation82_spill] sm:$0xff] }
 0x600   : > { %20187 = vmatprep.subr.bf16.mxu1 %v22880_v16 }
 0x602   : > { %20140 = vmatmul.mubr.msk.bf16.gmra.mrb[4].mxu1 %vm384_vm5, %v6919_v4  ;;  %v27237_v4 = vld [vmem:[#allocation3 + $0x81] sm:$0xff] }
 0x603   : > { %20143 = vmatprep.mubr.msk.bf16.mxu1 %vm384_vm5, %v6920_v35  ;;  %20188 = vmatpush3.bf16.msra.mxu1 %v22880_v16  ;;  %30405 = vst [vmem:[#allocation135_spill] sm:$0xff] %v27237_v4  ;;  %v6921_v16 = vpack.c.bf16 %v27229_v40, %v27237_v4  ;;  %v6922_v35 = vpack.c.bf16 %v27233_v17, %v27231_v26  ;;  %v27256_v40 = vld [vmem:[#allocation3 + $0xa1] sm:$0xff]  ;;  %v30413_v4 = vshll.u32 %v26765_v33, 16 }
 0x604   : > { %20189 = vmatprep.subr.bf16.mxu1 %v22881_v50  ;;  %30411 = vst [vmem:[#allocation140_spill] sm:$0xff] %v27256_v40  ;;  %v6923_v17 = vpack.c.bf16 %v27248_v47, %v27256_v40  ;;  %v27274_v47 = vld [vmem:[#allocation3 + $0xc9] sm:$0xff]  ;;  %v27276_v40 = vld [vmem:[#allocation3 + $0xd1] sm:$0xff] }
 0x605   : > { %20678 = vmatmul.mubr.msk.bf16.gmra.mrb[72].mxu0 %vm323_vm2, %v30400_v20  ;;  %v30406_v20 = vld [vmem:[#allocation86_spill] sm:$0xff]  ;;  %30415 = vst [vmem:[#allocation141_spill] sm:$0xff] %v27274_v47  ;;  %30416 = vst [vmem:[#allocation142_spill] sm:$0xff] %v27276_v40 }
 0x606   : > { %20681 = vmatprep.mubr.msk.bf16.mxu0 %vm323_vm2, %v30404_v23  ;;  %v27250_v23 = vld [vmem:[#allocation3 + $0xb1] sm:$0xff] }
 0x607   : > { %20190 = vmatpush3.bf16.msra.mxu1 %v22881_v50  ;;  %30408 = vst [vmem:[#allocation138_spill] sm:$0xff] %v27250_v23  ;;  %v27252_v50 = vld [vmem:[#allocation3 + $0xb9] sm:$0xff] }
 0x608   : > { %20239 = vmatprep.subr.bf16.mxu1 %v27225_v45  ;;  %30409 = vst [vmem:[#allocation139_spill] sm:$0xff] %v27252_v50 }
 0x60a   : > { %20144 = vmatmul.mubr.msk.bf16.gmra.mrb[8].mxu1 %vm384_vm5, %v6921_v16  ;;  %v27260_v16 = vld [vmem:[#allocation2 + $0x1b8] sm:$0xff] }
 0x60b   : > { %20147 = vmatprep.mubr.msk.bf16.mxu1 %vm384_vm5, %v6922_v35  ;;  %v6924_v35 = vpack.c.bf16 %v27252_v50, %v27250_v23  ;;  %v11667_v41 = vpack.c.bf16 %v27260_v16, %v27038_v58  ;;  %v27278_v50 = vld [vmem:[#allocation3 + $0xd9] sm:$0xff] }
 0x60c   : > { %30417 = vst [vmem:[#allocation143_spill] sm:$0xff] %v27278_v50  ;;  %v27284_v23 = vld [vmem:[#allocation2 + $0x1c0] sm:$0xff] }
 0x60d   : > { %20682 = vmatmul.mubr.msk.bf16.gmra.mrb[76].mxu0 %vm323_vm2, %v30406_v20  ;;  %v30412_v20 = vshrl.u32 %v26765_v33, 16  ;;  %v11679_v33 = vshrl.u32 %v11667_v41, 16 }
 0x60e   : > { %20685 = vmatprep.mubr.msk.bf16.mxu0 %vm323_vm2, %v30410_v36  ;;  %v11671_v36 = vrot.slane %v30413_v4, 4  ;;  %v11682_v4 = vshll.u32 %v11667_v41, 16  ;;  %v30422_v41 = vld [vmem:[#allocation93_spill] sm:$0xff] }
 0x60f   : > { %v11670_v26 = vrot.slane %v30412_v20, 3 }
 0x611   : > { %v11672_v20 = vor.u32 %v11671_v36, %v11670_v26  ;;  %v11668_v26 = vpack.c.bf16 %v27284_v23, %v27284_v23 }
 0x612   : > { %20148 = vmatmul.mubr.msk.bf16.gmra.mrb[12].mxu1 %vm384_vm5, %v6923_v17  ;;  %v30418_v17 = vld [vmem:[#allocation95_spill] sm:$0xff] }
 0x613   : > { %20151 = vmatprep.mubr.msk.bf16.mxu1 %vm384_vm5, %v6924_v35  ;;  %v27282_v35 = vld [vmem:[#allocation3 + $0xc1] sm:$0xff]  ;;  %v11673_v36 = vsel %vm1082_vm3, %v30422_v41, %v11672_v20 }
 0x614   : > { %30419 = vst [vmem:[#allocation144_spill] sm:$0xff] %v27282_v35  ;;  %v6925_v31 = vpack.c.bf16 %v27274_v47, %v27282_v35  ;;  %v11681_v47 = vrot.slane %v11679_v33, 3  ;;  %v11684_v35 = vrot.slane %v11682_v4, 4 }
 0x615   : > { %20686 = vmatmul.mubr.msk.bf16.gmra.mrb[80].mxu0 %vm323_vm2, %v30414_v25  ;;  %v6926_v25 = vpack.c.bf16 %v27278_v50, %v27276_v40  ;;  %v27304_v50 = vld [vmem:[#allocation3 + $0xf1] sm:$0xff]  ;;  %v11691_v40 = vshll.u32 %v11668_v26, 16 }
 0x616   : > { %20689 = vmatprep.mubr.msk.bf16.mxu0 %vm323_vm2, %v30418_v17  ;;  %v30421_v17 = vshll.u32 %v26784_v11, 16  ;;  %v11685_v15 = vor.u32 %v11684_v35, %v11681_v47  ;;  %v27322_v47 = vld [vmem:[#allocation3 + $0x119] sm:$0xff] }
 0x617   : > { %v11693_v39 = vrot.slane %v11691_v40, 4 }
 0x618   : > { %v11675_v9 = vrot.slane %v30421_v17, 4  ;;  %v11688_v17 = vshrl.u32 %v11668_v26, 16  ;;  %v27325_v26 = vld [vmem:[#allocation3 + $0x101] sm:$0xff] }
 0x61a   : > { %20152 = vmatmul.mubr.msk.bf16.gmra.mrb[16].mxu1 %vm384_vm5, %v6925_v31  ;;  %v27302_v31 = vld [vmem:[#allocation3 + $0xe9] sm:$0xff]  ;;  %v11676_v11 = vor.u32 %v11675_v9, %v11674_v37  ;;  %v11690_v41 = vrot.slane %v11688_v17, 3  ;;  %v27320_v37 = vld [vmem:[#allocation3 + $0x111] sm:$0xff] }
 0x61b   : > { %20155 = vmatprep.mubr.msk.bf16.mxu1 %vm384_vm5, %v6926_v25  ;;  %v27309_v25 = vld [vmem:[#allocation3 + $0xe1] sm:$0xff]  ;;  %v6930_v40 = vpack.c.bf16 %v27322_v47, %v27320_v37  ;;  %v27337_v17 = vld [vmem:[#allocation3 + $0x131] sm:$0xff] }
 0x61c   : > { %v6927_v33 = vpack.c.bf16 %v27302_v31, %v27309_v25  ;;  %v11677_v4 = vsel %vm1082_vm3, %v11672_v20, %v11676_v11  ;;  %v11686_v9 = vsel %vm1082_vm3, %v11676_v11, %v11685_v15  ;;  %v11694_v35 = vor.u32 %v11693_v39, %v11690_v41  ;;  %v27335_v11 = vld [vmem:[#allocation3 + $0x129] sm:$0xff]  ;;  %30424 = vst [vmem:[#allocation145_spill] sm:$0xff] %v27337_v17  ;;  %v27339_v39 = vld [vmem:[#allocation3 + $0x139] sm:$0xff] }
 0x61d   : > { %20690 = vmatmul.mubr.msk.bf16.gmra.mrb[84].mxu0 %vm323_vm2, %v30423_v60  ;;  %v6928_v60 = vpack.c.bf16 %v27306_v38, %v27304_v50  ;;  %v6929_v20 = vpack.c.bf16 %v26650_v63, %v27325_v26  ;;  %30425 = vst [vmem:[#allocation56_spill] sm:$0xff] %v27339_v39  ;;  %v27343_v63 = vld [vmem:[#allocation3 + $0x121] sm:$0xff]  ;;  %v27353_v41 = vld [vmem:[#allocation3 + $0x149] sm:$0xff] }
 0x61e   : > { %20693 = vmatprep.mubr.msk.bf16.mxu0 %vm323_vm2, %v11673_v36  ;;  %v11695_v36 = vsel %vm1082_vm3, %v11685_v15, %v11694_v35  ;;  %v6932_v15 = vpack.c.bf16 %v27339_v39, %v27337_v17  ;;  %30428 = vst [vmem:[#allocation57_spill] sm:$0xff] %v27353_v41  ;;  %v27358_v35 = vld [vmem:[#allocation3 + $0x159] sm:$0xff]  ;;  %v30449_v39 = vld [vmem:[#allocation43_spill] sm:$0xff] }
 0x61f   : > { %30430 = vst [vmem:[#allocation61_spill] sm:$0xff] %v27358_v35 }
 0x622   : > { %20156 = vmatmul.mubr.msk.bf16.gmra.mrb[20].mxu1 %vm384_vm5, %v6927_v33  ;;  %v30426_v33 = vld [vmem:[#allocation8_spill] sm:$0xff] }
 0x623   : > { %20159 = vmatprep.mubr.msk.bf16.mxu1 %vm384_vm5, %v6928_v60  ;;  %v6931_v60 = vpack.c.bf16 %v27335_v11, %v27343_v63 }
 0x625   : > { %20694 = vmatmul.mubr.msk.bf16.gmra.mrb[88].mxu0 %vm323_vm2, %v11677_v4  ;;  %v30427_v4 = vld [vmem:[#allocation9_spill] sm:$0xff] }
 0x626   : > { %20697 = vmatprep.mubr.msk.bf16.mxu0 %vm323_vm2, %v11686_v9  ;;  %v27356_v9 = vld [vmem:[#allocation3 + $0x151] sm:$0xff] }
 0x627   : > { %30429 = vst [vmem:[#allocation60_spill] sm:$0xff] %v27356_v9 }
 0x62a   : > { %20160 = vmatmul.mubr.msk.bf16.gmra.mrb[24].mxu1 %vm384_vm5, %v6929_v20  ;;  %v30431_v20 = vld [vmem:[#allocation10_spill] sm:$0xff] }
 0x62b   : > { %20163 = vmatprep.mubr.msk.bf16.mxu1 %vm384_vm5, %v6930_v40  ;;  %v27362_v40 = vld [vmem:[#allocation3 + $0x141] sm:$0xff] }
 0x62c   : > { %30432 = vst [vmem:[#allocation65_spill] sm:$0xff] %v27362_v40 }
 0x62d   : > { %20698 = vmatmul.mubr.msk.bf16.gmra.mrb[92].mxu0 %vm323_vm2, %v11695_v36  ;;  %v6933_v36 = vpack.c.bf16 %v27353_v41, %v27362_v40  ;;  %v27380_v41 = vld [vmem:[#allocation3 + $0x161] sm:$0xff] }
 0x62e   : > { %20703 = vmatprep.mubr.msk.bf16.mxu0 %vm323_vm2, %v30426_v33  ;;  %v6934_v33 = vpack.c.bf16 %v27358_v35, %v27356_v9  ;;  %30438 = vst [vmem:[#allocation73_spill] sm:$0xff] %v27380_v41  ;;  %v27392_v9 = vld [vmem:[#allocation3 + $0x191] sm:$0xff]  ;;  %v30443_v40 = vld [vmem:[#allocation14_spill] sm:$0xff] }
 0x62f   : > { %30441 = vst [vmem:[#allocation30_spill] sm:$0xff] %v27392_v9 }
 0x632   : > { %20164 = vmatmul.mubr.msk.bf16.gmra.mrb[28].mxu1 %vm384_vm5, %v6931_v60  ;;  %v27372_v60 = vld [vmem:[#allocation3 + $0x169] sm:$0xff] }
 0x633   : > { %20167 = vmatprep.mubr.msk.bf16.mxu1 %vm384_vm5, %v6932_v15  ;;  %30434 = vst [vmem:[#allocation66_spill] sm:$0xff] %v27372_v60  ;;  %v27374_v15 = vld [vmem:[#allocation3 + $0x171] sm:$0xff]  ;;  %v6935_v35 = vpack.c.bf16 %v27372_v60, %v27380_v41  ;;  %v27398_v60 = vld [vmem:[#allocation3 + $0x181] sm:$0xff] }
 0x634   : > { %30435 = vst [vmem:[#allocation69_spill] sm:$0xff] %v27374_v15  ;;  %30444 = vst [vmem:[#allocation80_spill] sm:$0xff] %v27398_v60  ;;  %v30447_v41 = vld [vmem:[#allocation41_spill] sm:$0xff] }
 0x635   : > { %20704 = vmatmul.mubr.msk.bf16.vlgmr.msra.gmra.mrb[48].mxu0 %vm323_vm2, %v30427_v4  ;;  %v27376_v4 = vld [vmem:[#allocation3 + $0x179] sm:$0xff] }
 0x636   : > { %20752 = vmatpush3.bf16.msra.mxu0 %v27109_v12  ;;  %20707 = vmatprep.mubr.msk.bf16.mxu0 %vm323_vm2, %v30431_v20  ;;  %v30433_v12 = vld [vmem:[#allocation11_spill] sm:$0xff]  ;;  %30436 = vst [vmem:[#allocation71_spill] sm:$0xff] %v27376_v4  ;;  %v30437_v20 = vld [vmem:[#allocation12_spill] sm:$0xff] }
 0x63a   : > { %20168 = vmatmul.mubr.msk.bf16.gmra.mrb[32].mxu1 %vm384_vm5, %v6933_v36  ;;  %v6936_v36 = vpack.c.bf16 %v27376_v4, %v27374_v15  ;;  %v27410_v15 = vld [vmem:[#allocation3 + $0x1a9] sm:$0xff] }
 0x63b   : > { %20171 = vmatprep.mubr.msk.bf16.mxu1 %vm384_vm5, %v6934_v33  ;;  %v30439_v33 = vld [vmem:[#allocation13_spill] sm:$0xff]  ;;  %30446 = vst [vmem:[#allocation82_spill] sm:$0xff] %v27410_v15 }
 0x63d   : > { %20708 = vmatmul.mubr.msk.bf16.gmra.mrb[52].mxu0 %vm323_vm2, %v30433_v12  ;;  %v27390_v12 = vld [vmem:[#allocation3 + $0x189] sm:$0xff] }
 0x63e   : > { %20711 = vmatprep.mubr.msk.bf16.mxu0 %vm323_vm2, %v30437_v20  ;;  %30440 = vst [vmem:[#allocation74_spill] sm:$0xff] %v27390_v12  ;;  %v27394_v20 = vld [vmem:[#allocation3 + $0x199] sm:$0xff]  ;;  %v6937_v4 = vpack.c.bf16 %v27390_v12, %v27398_v60  ;;  %v7318_v60 = vld [vmem:[#allocation3 + $0x47] sm:$0xff] }
 0x63f   : > { %30442 = vst [vmem:[#allocation77_spill] sm:$0xff] %v27394_v20 }
 0x642   : > { %20172 = vmatmul.mubr.msk.bf16.gmra.mrb[36].mxu1 %vm384_vm5, %v6935_v35  ;;  %v6938_v35 = vpack.c.bf16 %v27394_v20, %v27392_v9  ;;  %v7323_v9 = vld [vmem:[#allocation3 + $0x6f] sm:$0xff] }
 0x643   : > { %20175 = vmatprep.mubr.msk.bf16.mxu1 %vm384_vm5, %v6936_v36  ;;  %v30445_v36 = vld [vmem:[#allocation40_spill] sm:$0xff] }
 0x645   : > { %20712 = vmatmul.mubr.msk.bf16.gmra.mrb[56].mxu0 %vm323_vm2, %v30439_v33  ;;  %v27408_v33 = vld [vmem:[#allocation3 + $0x1a1] sm:$0xff] }
 0x646   : > { %20715 = vmatprep.mubr.msk.bf16.mxu0 %vm323_vm2, %v30443_v40  ;;  %v7319_v40 = vld [vmem:[#allocation3 + $0x4f] sm:$0xff]  ;;  %v6939_v12 = vpack.c.bf16 %v27410_v15, %v27408_v33 }
 0x647   : > { %v7366_v20 = vpack.c.bf16 %v7319_v40, %v7318_v60  ;;  %v22883_v15 = vld [vmem:[%s29184_s6 + $0xe8] sm:$0xff]   ;;  %v7325_v40 = vld [vmem:[#allocation3 + $0x7f] sm:$0xff] }
 0x64a   : > { %20176 = vmatmul.mubr.msk.bf16.gmra.mrb[40].mxu1 %vm384_vm5, %v6937_v4  ;;  %v30448_v4 = vld [vmem:[#allocation42_spill] sm:$0xff] }
 0x64b   : > { %20179 = vmatprep.mubr.msk.bf16.mxu1 %vm384_vm5, %v6938_v35  ;;  %v7320_v35 = vld [vmem:[#allocation3 + $0x57] sm:$0xff] }
 0x64d   : > { %20716 = vmatmul.mubr.msk.bf16.gmra.mrb[60].mxu0 %vm323_vm2, %v30445_v36  ;;  %v7321_v36 = vld [vmem:[#allocation3 + $0x5f] sm:$0xff] }
 0x64e   : > { %20719 = vmatprep.mubr.msk.bf16.mxu0 %vm323_vm2, %v30447_v41  ;;  %v7367_v17 = vpack.c.bf16 %v7321_v36, %v7320_v35  ;;  %v7322_v41 = vld [vmem:[#allocation3 + $0x67] sm:$0xff] }
 0x64f   : > { %v7368_v60 = vpack.c.bf16 %v7323_v9, %v7322_v41  ;;  %v7326_v9 = vld [vmem:[#allocation3 + $0x87] sm:$0xff] }
 0x650   : > { %v27443_v36 = vld [vmem:[%s29184_s6 + $0x100] sm:$0xff]   ;;  %v22932_v41 = vld [vmem:[#allocation2 + $0x1a8] sm:$0xff] }
 0x652   : > { %20180 = vmatmul.mubr.msk.bf16.gmra.mrb[44].mxu1 %vm384_vm5, %v6939_v12  ;;  %v22884_v12 = vld [vmem:[%s29184_s6 + $0xf0] sm:$0xff]  }
 0x653   : > { %20191 = vmatprep.mubr.msk.bf16.mxu1 %vm384_vm5, %v7366_v20  ;;  %v30450_v20 = vld [vmem:[#allocation44_spill] sm:$0xff] }
 0x655   : > { %20720 = vmatmul.mubr.msk.bf16.gmra.mrb[64].mxu0 %vm323_vm2, %v30448_v4  ;;  %v7327_v4 = vld [vmem:[#allocation3 + $0x8f] sm:$0xff] }
 0x656   : > { %20723 = vmatprep.mubr.msk.bf16.mxu0 %vm323_vm2, %v30449_v39  ;;  %v7324_v39 = vld [vmem:[#allocation3 + $0x77] sm:$0xff]  ;;  %v7370_v35 = vpack.c.bf16 %v7327_v4, %v7326_v9 }
 0x657   : > { %v7332_v9 = vld [vmem:[#allocation3 + $0xb7] sm:$0xff] }
 0x65a   : > { %20192 = vmatmul.mubr.msk.bf16.vlgmr.msra.gmra.mrb[0].mxu1 %vm384_vm5, %v7367_v17  ;;  %v7369_v17 = vpack.c.bf16 %v7325_v40, %v7324_v39  ;;  %v7330_v40 = vld [vmem:[#allocation3 + $0xa7] sm:$0xff] }
 0x65b   : > { %20240 = vmatpush3.bf16.msra.mxu1 %v27225_v45  ;;  %20195 = vmatprep.mubr.msk.bf16.mxu1 %vm384_vm5, %v7368_v60  ;;  %v22885_v45 = vld [vmem:[%s29184_s6 + $0xf8] sm:$0xff]   ;;  %v11984_v60 = vpack.c.bf16 %v27038_v58, %v22932_v41  ;;  %v7334_v41 = vld [vmem:[#allocation3 + $0xc7] sm:$0xff] }
 0x65c   : > { %20241 = vmatprep.subr.bf16.mxu1 %v22883_v15 }
 0x65d   : > { %20724 = vmatmul.mubr.msk.bf16.gmra.mrb[68].mxu0 %vm323_vm2, %v30450_v20  ;;  %v7331_v20 = vld [vmem:[#allocation3 + $0xaf] sm:$0xff]  ;;  %v12280_v58 = vshrl.u32 %v11984_v60, 16 }
 0x65e   : > { %20727 = vmatprep.mubr.msk.bf16.mxu0 %vm323_vm2, %v25400_v10  ;;  %v7328_v10 = vld [vmem:[#allocation3 + $0x97] sm:$0xff]  ;;  %v7372_v4 = vpack.c.bf16 %v7331_v20, %v7330_v40  ;;  %v30451_v40 = vld [vmem:[#allocation49_spill] sm:$0xff] }
 0x65f   : > { %20242 = vmatpush3.bf16.msra.mxu1 %v22883_v15  ;;  %v7329_v15 = vld [vmem:[#allocation3 + $0x9f] sm:$0xff] }
 0x660   : > { %20243 = vmatprep.subr.bf16.mxu1 %v22884_v12  ;;  %v7371_v39 = vpack.c.bf16 %v7329_v15, %v7328_v10 }
 0x662   : > { %20196 = vmatmul.mubr.msk.bf16.gmra.mrb[4].mxu1 %vm384_vm5, %v7369_v17  ;;  %v27453_v17 = vpack.c.bf16 %v27284_v23, %v27260_v16  ;;  %v7335_v23 = vld [vmem:[#allocation3 + $0xcf] sm:$0xff] }
 0x663   : > { %20199 = vmatprep.mubr.msk.bf16.mxu1 %vm384_vm5, %v7370_v35  ;;  %20244 = vmatpush3.bf16.msra.mxu1 %v22884_v12  ;;  %v12276_v12 = vshll.u32 %v11984_v60, 16  ;;  %v7374_v20 = vpack.c.bf16 %v7335_v23, %v7334_v41 }
 0x664   : > { %20245 = vmatprep.subr.bf16.mxu1 %v22885_v45 }
 0x665   : > { %20728 = vmatmul.mubr.msk.bf16.gmra.mrb[72].mxu0 %vm323_vm2, %v25404_v43  ;;  %v27457_v43 = vrot.slane %v12276_v12, 1  ;;  %v7337_v12 = vld [vmem:[#allocation3 + $0xdf] sm:$0xff] }
 0x666   : > { %20731 = vmatprep.mubr.msk.bf16.mxu0 %vm323_vm2, %v25412_v32  ;;  %v12283_v32 = vshll.u32 %v27453_v17, 16 }
 0x667   : > { %20246 = vmatpush3.bf16.msra.mxu1 %v22885_v45  ;;  %v7333_v45 = vld [vmem:[#allocation3 + $0xbf] sm:$0xff]  ;;  %v12282_v35 = vor.u32 %v12280_v58, %v27457_v43 }
 0x668   : > { %20295 = vmatprep.subr.bf16.mxu1 %v27443_v36  ;;  %v27463_v10 = vrot.slane %v12283_v32, 1  ;;  %v7373_v15 = vpack.c.bf16 %v7333_v45, %v7332_v9  ;;  %v30452_v32 = vld [vmem:[#allocation35_spill] sm:$0xff]  ;;  %v7341_v45 = vld [vmem:[#allocation3 + $0xff] sm:$0xff] }
 0x669   : > { %v7340_v9 = vld [vmem:[#allocation3 + $0xf7] sm:$0xff] }
 0x66a   : > { %20200 = vmatmul.mubr.msk.bf16.gmra.mrb[8].mxu1 %vm384_vm5, %v7371_v39  ;;  %v27469_v16 = vsel %vm1610_vm4, %v12282_v35, %v27463_v10  ;;  %v7339_v39 = vld [vmem:[#allocation3 + $0xef] sm:$0xff]  ;;  %v7377_v23 = vpack.c.bf16 %v7341_v45, %v7340_v9  ;;  %v30455_v45 = vld [vmem:[#allocation105_spill] sm:$0xff] }
 0x66b   : > { %20203 = vmatprep.mubr.msk.bf16.mxu1 %vm384_vm5, %v7372_v4  ;;  %v7338_v4 = vld [vmem:[#allocation3 + $0xe7] sm:$0xff]  ;;  %v7343_v35 = vld [vmem:[#allocation3 + $0x10f] sm:$0xff] }
 0x66c   : > { %v7376_v58 = vpack.c.bf16 %v7339_v39, %v7338_v4  ;;  %v7347_v39 = vld [vmem:[#allocation3 + $0x12f] sm:$0xff] }
 0x66d   : > { %20732 = vmatmul.mubr.msk.bf16.gmra.mrb[76].mxu0 %vm323_vm2, %v25416_v44  ;;  %v7336_v44 = vld [vmem:[#allocation3 + $0xd7] sm:$0xff]  ;;  %v7351_v9 = vld [vmem:[#allocation3 + $0x14f] sm:$0xff] }
 0x66e   : > { %20735 = vmatprep.mubr.msk.bf16.mxu0 %vm323_vm2, %v30201_v1  ;;  %v7375_v1 = vpack.c.bf16 %v7337_v12, %v7336_v44  ;;  %v7344_v44 = vld [vmem:[#allocation3 + $0x117] sm:$0xff]  ;;  %v7345_v12 = vld [vmem:[#allocation3 + $0x11f] sm:$0xff] }
 0x672   : > { %20204 = vmatmul.mubr.msk.bf16.gmra.mrb[12].mxu1 %vm384_vm5, %v7373_v15  ;;  %v7342_v15 = vld [vmem:[#allocation3 + $0x107] sm:$0xff] }
 0x673   : > { %20207 = vmatprep.mubr.msk.bf16.mxu1 %vm384_vm5, %v7374_v20  ;;  %v7378_v41 = vpack.c.bf16 %v7343_v35, %v7342_v15  ;;  %v30454_v20 = vld [vmem:[#allocation146_spill] sm:$0xff]  ;;  %v7352_v15 = vld [vmem:[#allocation3 + $0x157] sm:$0xff] }
 0x675   : > { %20736 = vmatmul.mubr.msk.bf16.gmra.mrb[80].mxu0 %vm323_vm2, %v30206_v61  ;;  %v30453_v61 = vld [vmem:[#allocation39_spill] sm:$0xff] }
 0x676   : > { %20739 = vmatprep.mubr.msk.bf16.mxu0 %vm323_vm2, %v30451_v40  ;;  %v7379_v40 = vpack.c.bf16 %v7345_v12, %v7344_v44  ;;  %v7355_v44 = vld [vmem:[#allocation3 + $0x16f] sm:$0xff] }
 0x677   : > { %v30457_v12 = vld [vmem:[#allocation110_spill] sm:$0xff] }
 0x67a   : > { %20208 = vmatmul.mubr.msk.bf16.gmra.mrb[16].mxu1 %vm384_vm5, %v7375_v1  ;;  %v7346_v1 = vld [vmem:[#allocation3 + $0x127] sm:$0xff] }
 0x67b   : > { %20211 = vmatprep.mubr.msk.bf16.mxu1 %vm384_vm5, %v7376_v58  ;;  %v7380_v4 = vpack.c.bf16 %v7347_v39, %v7346_v1  ;;  %v7348_v58 = vld [vmem:[#allocation3 + $0x137] sm:$0xff] }
 0x67d   : > { %20740 = vmatmul.mubr.msk.bf16.gmra.mrb[84].mxu0 %vm323_vm2, %v30452_v32  ;;  %v7349_v32 = vld [vmem:[#allocation3 + $0x13f] sm:$0xff] }
 0x67e   : > { %20743 = vmatprep.mubr.msk.bf16.mxu0 %vm323_vm2, %v30453_v61  ;;  %v7381_v35 = vpack.c.bf16 %v7349_v32, %v7348_v58  ;;  %v7350_v61 = vld [vmem:[#allocation3 + $0x147] sm:$0xff]  ;;  %v7356_v58 = vld [vmem:[#allocation3 + $0x177] sm:$0xff]  ;;  %v7357_v32 = vld [vmem:[#allocation3 + $0x17f] sm:$0xff] }
 0x682   : > { %20212 = vmatmul.mubr.msk.bf16.gmra.mrb[20].mxu1 %vm384_vm5, %v7377_v23  ;;  %v7382_v23 = vpack.c.bf16 %v7351_v9, %v7350_v61  ;;  %v7359_v9 = vld [vmem:[#allocation3 + $0x18f] sm:$0xff]  ;;  %v7358_v61 = vld [vmem:[#allocation3 + $0x187] sm:$0xff] }
 0x683   : > { %20215 = vmatprep.mubr.msk.bf16.mxu1 %vm384_vm5, %v7378_v41  ;;  %v7353_v41 = vld [vmem:[#allocation3 + $0x15f] sm:$0xff] }
 0x684   : > { %v7383_v39 = vpack.c.bf16 %v7353_v41, %v7352_v15  ;;  %v7363_v15 = vld [vmem:[#allocation3 + $0x1af] sm:$0xff]  ;;  %v30461_v41 = vld [vmem:[#allocation116_spill] sm:$0xff] }
 0x685   : > { %20744 = vmatmul.mubr.msk.bf16.gmra.mrb[88].mxu0 %vm323_vm2, %v30454_v20 }
 0x686   : > { %20747 = vmatprep.mubr.msk.bf16.mxu0 %vm323_vm2, %v11984_v60  ;;  %v30456_v60 = vld [vmem:[#allocation107_spill] sm:$0xff] }
 0x68a   : > { %20216 = vmatmul.mubr.msk.bf16.gmra.mrb[24].mxu1 %vm384_vm5, %v7379_v40  ;;  %v7354_v40 = vld [vmem:[#allocation3 + $0x167] sm:$0xff] }
 0x68b   : > { %20219 = vmatprep.mubr.msk.bf16.mxu1 %vm384_vm5, %v7380_v4  ;;  %v7384_v1 = vpack.c.bf16 %v7355_v44, %v7354_v40  ;;  %v30458_v4 = vld [vmem:[#allocation111_spill] sm:$0xff]  ;;  %v7387_v44 = vpack.c.bf16 %v26873_v30, %v26855_v14  ;;  %v7365_v40 = vld [vmem:[#allocation3 + $0x1bf] sm:$0xff] }
 0x68c   : > { %v30464_v14 = vld [vmem:[#allocation119_spill] sm:$0xff]  ;;  %v30465_v30 = vld [vmem:[#allocation120_spill] sm:$0xff] }
 0x68d   : > { %20748 = vmatmul.mubr.msk.bf16.gmra.mrb[92].mxu0 %vm323_vm2, %v27453_v17 }
 0x68e   : > { %20753 = vmatprep.mubr.msk.bf16.mxu0 %vm323_vm2, %v30455_v45  ;;  %v30459_v45 = vld [vmem:[#allocation114_spill] sm:$0xff] }
 0x692   : > { %20220 = vmatmul.mubr.msk.bf16.gmra.mrb[28].mxu1 %vm384_vm5, %v7381_v35  ;;  %v7385_v35 = vpack.c.bf16 %v7357_v32, %v7356_v58  ;;  %v30463_v58 = vld [vmem:[#allocation118_spill] sm:$0xff]  ;;  %v7816_v32 = vpack.c.bf16 %v26907_v42, %v26893_v0  ;;  %v7818_v0 = vpack.c.bf16 %v26940_v28, %v26923_v57  ;;  %v22888_v42 = vld [vmem:[%s29184_s6 + $0x110] sm:$0xff]   ;;  %v7819_v57 = vpack.c.bf16 %v26966_v24, %v26927_v55  ;;  %v30469_v24 = vld [vmem:[#allocation45_spill] sm:$0xff] }
 0x693   : > { %20223 = vmatprep.mubr.msk.bf16.mxu1 %vm384_vm5, %v7382_v23  ;;  %v7386_v23 = vpack.c.bf16 %v7359_v9, %v7358_v61  ;;  %v22887_v9 = vld [vmem:[%s29184_s6 + $0x108] sm:$0xff]   ;;  %v7820_v28 = vpack.c.bf16 %v26974_v51, %v26957_v29  ;;  %v30468_v55 = vld [vmem:[#allocation123_spill] sm:$0xff]  ;;  %v7821_v29 = vpack.c.bf16 %v26993_v62, %v26961_v56  ;;  %v7822_v51 = vpack.c.bf16 %v27001_v59, %v26984_v46 }
 0x694   : > { %v30471_v61 = vld [vmem:[#allocation126_spill] sm:$0xff]  ;;  %v7824_v56 = vpack.c.bf16 %v27027_v3, %v27010_v52  ;;  %v30472_v46 = vld [vmem:[#allocation127_spill] sm:$0xff]  ;;  %v30474_v59 = vshll.u32 %v30454_v20, 16  ;;  %v30475_v52 = vld [vmem:[#allocation133_spill] sm:$0xff] }
 0x695   : > { %20754 = vmatmul.mubr.msk.bf16.vlgmr.msra.gmra.mrb[48].mxu0 %vm323_vm2, %v30456_v60  ;;  %v30460_v60 = vld [vmem:[#allocation115_spill] sm:$0xff]  ;;  %v9046_v3 = vld [vmem:[#allocation2 + $0x1c8] sm:$0xff] }
 0x696   : > { %20757 = vmatprep.mubr.msk.bf16.mxu0 %vm323_vm2, %v30457_v12  ;;  %v7388_v12 = vpack.c.bf16 %v7363_v15, %v26875_v53  ;;  %v7817_v53 = vpack.c.bf16 %v26932_v27, %v26897_v19  ;;  %v30467_v19 = vld [vmem:[#allocation122_spill] sm:$0xff]  ;;  %v22889_v27 = vld [vmem:[%s29184_s6 + $0x118] sm:$0xff]   ;;  %v30473_v62 = vld [vmem:[#allocation131_spill] sm:$0xff]  ;;  %v7825_v15 = vpack.c.bf16 %v27052_v7, %v27014_v2  ;;  %v12271_v2 = vpack.c.bf16 %v9046_v3, %v9046_v3 }
 0x697   : > { %v7828_v7 = vpack.c.bf16 %v27081_v18, %v27070_v13  ;;  %v7829_v13 = vpack.c.bf16 %v27095_v22, %v27072_v54  ;;  %v30478_v18 = vld [vmem:[#allocation16_spill] sm:$0xff]  ;;  %v30483_v54 = vld [vmem:[#allocation18_spill] sm:$0xff]  ;;  %v22892_v3 = vld [vmem:[%s29184_s6 + $0x30] sm:$0xff]  }
 0x69a   : > { %20224 = vmatmul.mubr.msk.bf16.gmra.mrb[32].mxu1 %vm384_vm5, %v7383_v39  ;;  %v7364_v39 = vld [vmem:[#allocation3 + $0x1b7] sm:$0xff] }
 0x69b   : > { %20227 = vmatprep.mubr.msk.bf16.mxu1 %vm384_vm5, %v7384_v1  ;;  %v30462_v1 = vld [vmem:[#allocation117_spill] sm:$0xff] }
 0x69d   : > { %20758 = vmatmul.mubr.msk.bf16.gmra.mrb[52].mxu0 %vm323_vm2, %v30458_v4  ;;  %v7389_v4 = vpack.c.bf16 %v7365_v40, %v7364_v39  ;;  %v12287_v39 = vshrl.u32 %v27453_v17, 16  ;;  %v12291_v40 = vshll.u32 %v12271_v2, 16  ;;  %v22893_v2 = vld [vmem:[%s29184_s6 + $0x38] sm:$0xff]  }
 0x69e   : > { %20761 = vmatprep.mubr.msk.bf16.mxu0 %vm323_vm2, %v30459_v45  ;;  %v30466_v45 = vld [vmem:[#allocation121_spill] sm:$0xff] }
 0x6a2   : > { %20228 = vmatmul.mubr.msk.bf16.gmra.mrb[36].mxu1 %vm384_vm5, %v7385_v35  ;;  %v30470_v35 = vld [vmem:[#allocation47_spill] sm:$0xff] }
 0x6a3   : > { %20231 = vmatprep.mubr.msk.bf16.mxu1 %vm384_vm5, %v7386_v23  ;;  %v7823_v23 = vpack.c.bf16 %v27019_v21, %v26988_v6  ;;  %v7826_v6 = vpack.c.bf16 %v27060_v48, %v27041_v5  ;;  %v7827_v5 = vpack.c.bf16 %v27077_v34, %v27045_v49  ;;  %v12289_v49 = vor.u32 %v12287_v39, %v27463_v10  ;;  %v30482_v10 = vld [vmem:[#allocation20_spill] sm:$0xff]  ;;  %v30504_v39 = vld [vmem:[#allocation134_spill] sm:$0xff] }
 0x6a4   : > { %v12293_v34 = vrot.slane %v12291_v40, 1  ;;  %v30505_v40 = vld [vmem:[#allocation140_spill] sm:$0xff] }
 0x6a5   : > { %20762 = vmatmul.mubr.msk.bf16.gmra.mrb[56].mxu0 %vm323_vm2, %v30460_v60  ;;  %v12273_v60 = vrot.slane %v30474_v59, 1  ;;  %v30497_v59 = vld [vmem:[#allocation129_spill] sm:$0xff] }
 0x6a6   : > { %20765 = vmatprep.mubr.msk.bf16.mxu0 %vm323_vm2, %v30461_v41  ;;  %v30476_v41 = vld [vmem:[#allocation132_spill] sm:$0xff]  ;;  %v12294_v17 = vsel %vm1610_vm4, %v12289_v49, %v12293_v34  ;;  %v8271_v49 = vpack.c.bf16 %v30505_v40, %v30504_v39 }
 0x6a7   : > { %v12274_v21 = vsel %vm1610_vm4, %v30475_v52, %v12273_v60  ;;  %v30499_v52 = vld [vmem:[#allocation36_spill] sm:$0xff] }
 0x6a8   : > { %v30506_v34 = vld [vmem:[#allocation136_spill] sm:$0xff] }
 0x6aa   : > { %20232 = vmatmul.mubr.msk.bf16.gmra.mrb[40].mxu1 %vm384_vm5, %v7387_v44  ;;  %v30477_v44 = vshrl.u32 %v30454_v20, 16  ;;  %v7830_v20 = vpack.c.bf16 %v30478_v18, %v27089_v8  ;;  %v30484_v8 = vld [vmem:[#allocation23_spill] sm:$0xff] }
 0x6ab   : > { %20235 = vmatprep.mubr.msk.bf16.mxu1 %vm384_vm5, %v7388_v12  ;;  %v7833_v22 = vpack.c.bf16 %v30484_v8, %v30483_v54  ;;  %v8276_v54 = vpack.c.bf16 %v27304_v50, %v27302_v31  ;;  %v8277_v8 = vpack.c.bf16 %v27325_v26, %v27306_v38  ;;  %v30514_v31 = vld [vmem:[#allocation56_spill] sm:$0xff]  ;;  %v30516_v26 = vld [vmem:[#allocation57_spill] sm:$0xff] }
 0x6ac   : > { %v12275_v12 = vor.u32 %v12273_v60, %v30477_v44  ;;  %v30501_v44 = vld [vmem:[#allocation135_spill] sm:$0xff] }
 0x6ad   : > { %20766 = vmatmul.mubr.msk.bf16.gmra.mrb[60].mxu0 %vm323_vm2, %v30462_v1  ;;  %v30480_v1 = vld [vmem:[#allocation19_spill] sm:$0xff] }
 0x6ae   : > { %20769 = vmatprep.mubr.msk.bf16.mxu0 %vm323_vm2, %v30463_v58  ;;  %v12279_v48 = vsel %vm1610_vm4, %v12275_v12, %v27457_v43  ;;  %v30479_v43 = vld [vmem:[#allocation15_spill] sm:$0xff] }
 0x6b2   : > { %20236 = vmatmul.mubr.msk.bf16.gmra.mrb[44].mxu1 %vm384_vm5, %v7389_v4  ;;  %v30481_v4 = vld [vmem:[#allocation17_spill] sm:$0xff] }
 0x6b3   : > { %20247 = vmatprep.mubr.msk.bf16.mxu1 %vm384_vm5, %v7816_v32  ;;  %v7832_v58 = vpack.c.bf16 %v30482_v10, %v30481_v4  ;;  %v30485_v32 = vld [vmem:[#allocation21_spill] sm:$0xff]  ;;  %v30512_v10 = vld [vmem:[#allocation143_spill] sm:$0xff] }
 0x6b5   : > { %20770 = vmatmul.mubr.msk.bf16.gmra.mrb[64].mxu0 %vm323_vm2, %v30464_v14  ;;  %v30486_v14 = vld [vmem:[#allocation24_spill] sm:$0xff] }
 0x6b6   : > { %20773 = vmatprep.mubr.msk.bf16.mxu0 %vm323_vm2, %v30465_v30  ;;  %v7834_v30 = vpack.c.bf16 %v30486_v14, %v30485_v32  ;;  %v30513_v14 = vld [vmem:[#allocation145_spill] sm:$0xff] }
 0x6b7   : > { %v8280_v50 = vpack.c.bf16 %v30513_v14, %v27335_v11 }
 0x6ba   : > { %20248 = vmatmul.mubr.msk.bf16.vlgmr.msra.gmra.mrb[0].mxu1 %vm384_vm5, %v7817_v53  ;;  %v30487_v53 = vld [vmem:[#allocation22_spill] sm:$0xff] }
 0x6bb   : > { %20296 = vmatpush3.bf16.msra.mxu1 %v27443_v36  ;;  %20251 = vmatprep.mubr.msk.bf16.mxu1 %vm384_vm5, %v7818_v0  ;;  %v27558_v36 = vld [vmem:[%s29184_s6 + $0x20] sm:$0xff]  }
 0x6bc   : > { %20297 = vmatprep.subr.bf16.mxu1 %v22887_v9 }
 0x6bd   : > { %20774 = vmatmul.mubr.msk.bf16.gmra.mrb[68].mxu0 %vm323_vm2, %v30466_v45  ;;  %v30490_v45 = vld [vmem:[#allocation29_spill] sm:$0xff] }
 0x6be   : > { %20777 = vmatprep.mubr.msk.bf16.mxu0 %vm323_vm2, %v30467_v19 }
 0x6bf   : > { %20298 = vmatpush3.bf16.msra.mxu1 %v22887_v9  ;;  %v30488_v9 = vld [vmem:[#allocation28_spill] sm:$0xff] }
 0x6c0   : > { %20299 = vmatprep.subr.bf16.mxu1 %v22888_v42  ;;  %v7835_v0 = vpack.c.bf16 %v30488_v9, %v30487_v53  ;;  %v30517_v53 = vld [vmem:[#allocation60_spill] sm:$0xff]  ;;  %v30518_v9 = vld [vmem:[#allocation61_spill] sm:$0xff] }
 0x6c2   : > { %20252 = vmatmul.mubr.msk.bf16.gmra.mrb[4].mxu1 %vm384_vm5, %v7819_v57  ;;  %v7813_v57 = vld [vmem:[#allocation3 + $0x1b0] sm:$0xff] }
 0x6c3   : > { %20255 = vmatprep.mubr.msk.bf16.mxu1 %vm384_vm5, %v7820_v28  ;;  %20300 = vmatpush3.bf16.msra.mxu1 %v22888_v42  ;;  %v30489_v42 = vld [vmem:[#allocation25_spill] sm:$0xff]  ;;  %v30492_v28 = vld [vmem:[#allocation32_spill] sm:$0xff] }
 0x6c4   : > { %20301 = vmatprep.subr.bf16.mxu1 %v22889_v27  ;;  %v7836_v19 = vpack.c.bf16 %v30490_v45, %v30489_v42  ;;  %v30521_v42 = vld [vmem:[#allocation69_spill] sm:$0xff]  ;;  %v30522_v45 = vld [vmem:[#allocation71_spill] sm:$0xff] }
 0x6c5   : > { %20778 = vmatmul.mubr.msk.bf16.gmra.mrb[72].mxu0 %vm323_vm2, %v30468_v55 }
 0x6c6   : > { %20781 = vmatprep.mubr.msk.bf16.mxu0 %vm323_vm2, %v30469_v24  ;;  %v30493_v24 = vld [vmem:[#allocation124_spill] sm:$0xff] }
 0x6c7   : > { %20302 = vmatpush3.bf16.msra.mxu1 %v22889_v27  ;;  %v30491_v27 = vld [vmem:[#allocation26_spill] sm:$0xff] }
 0x6c8   : > { %20801 = vmatprep.subr.bf16.mxu1 %v27558_v36  ;;  %v7837_v55 = vpack.c.bf16 %v30492_v28, %v30491_v27  ;;  %v30524_v27 = vld [vmem:[#allocation74_spill] sm:$0xff] }
 0x6c9   : > { %v30525_v28 = vld [vmem:[#allocation30_spill] sm:$0xff] }
 0x6ca   : > { %20256 = vmatmul.mubr.msk.bf16.gmra.mrb[8].mxu1 %vm384_vm5, %v7821_v29  ;;  %v7838_v29 = vpack.c.bf16 %v7813_v57, %v30493_v24  ;;  %v27726_v24 = vld [vmem:[%s29183_s5] ss:$0 sm:$0xff] }
 0x6cb   : > { %20259 = vmatprep.mubr.msk.bf16.mxu1 %vm384_vm5, %v7822_v51  ;;  %v7814_v51 = vld [vmem:[#allocation3 + $0x1b8] sm:$0xff] }
 0x6cd   : > { %20782 = vmatmul.mubr.msk.bf16.gmra.mrb[76].mxu0 %vm323_vm2, %v30470_v35  ;;  %v7815_v35 = vld [vmem:[#allocation3 + $0x1c0] sm:$0xff] }
 0x6ce   : > { %20785 = vmatprep.mubr.msk.bf16.mxu0 %vm323_vm2, %v30471_v61  ;;  %v7839_v61 = vpack.c.bf16 %v7815_v35, %v7814_v51  ;;  %v30526_v35 = vld [vmem:[#allocation77_spill] sm:$0xff] }
 0x6d2   : > { %20260 = vmatmul.mubr.msk.bf16.gmra.mrb[12].mxu1 %vm384_vm5, %v7823_v23  ;;  %v30494_v23 = vld [vmem:[#allocation34_spill] sm:$0xff] }
 0x6d3   : > { %20263 = vmatprep.mubr.msk.bf16.mxu1 %vm384_vm5, %v7824_v56  ;;  %v30495_v56 = vld [vmem:[#allocation125_spill] sm:$0xff] }
 0x6d5   : > { %20786 = vmatmul.mubr.msk.bf16.gmra.mrb[80].mxu0 %vm323_vm2, %v30472_v46  ;;  %v8266_v46 = vpack.c.bf16 %v30495_v56, %v30494_v23 }
 0x6d6   : > { %20789 = vmatprep.mubr.msk.bf16.mxu0 %vm323_vm2, %v30473_v62  ;;  %v30496_v62 = vld [vmem:[#allocation130_spill] sm:$0xff] }
 0x6d7   : > { %v8267_v60 = vpack.c.bf16 %v30497_v59, %v30496_v62 }
 0x6da   : > { %20264 = vmatmul.mubr.msk.bf16.gmra.mrb[16].mxu1 %vm384_vm5, %v7825_v15  ;;  %v22891_v15 = vld [vmem:[%s29184_s6 + $0x28] sm:$0xff]  }
 0x6db   : > { %20267 = vmatprep.mubr.msk.bf16.mxu1 %vm384_vm5, %v7826_v6  ;;  %v30498_v6 = vld [vmem:[#allocation128_spill] sm:$0xff] }
 0x6dd   : > { %20790 = vmatmul.mubr.msk.bf16.gmra.mrb[84].mxu0 %vm323_vm2, %v30476_v41  ;;  %v30500_v41 = vld [vmem:[#allocation7_spill] sm:$0xff] }
 0x6de   : > { %20793 = vmatprep.mubr.msk.bf16.mxu0 %vm323_vm2, %v12274_v21  ;;  %v8268_v21 = vpack.c.bf16 %v30499_v52, %v30498_v6  ;;  %v8269_v12 = vpack.c.bf16 %v30501_v44, %v30500_v41  ;;  %v12862_v44 = vld [vmem:[#allocation3 + $0x18] sm:$0xff] }
 0x6e2   : > { %20268 = vmatmul.mubr.msk.bf16.gmra.mrb[20].mxu1 %vm384_vm5, %v7827_v5  ;;  %v30502_v5 = vld [vmem:[#allocation6_spill] sm:$0xff] }
 0x6e3   : > { %20271 = vmatprep.mubr.msk.bf16.mxu1 %vm384_vm5, %v7828_v7  ;;  %v30503_v7 = vld [vmem:[#allocation137_spill] sm:$0xff] }
 0x6e5   : > { %20794 = vmatmul.mubr.msk.bf16.gmra.mrb[88].mxu0 %vm323_vm2, %v12279_v48  ;;  %v8270_v48 = vpack.c.bf16 %v30503_v7, %v30502_v5 }
 0x6e6   : > { %20797 = vmatprep.mubr.msk.bf16.mxu0 %vm323_vm2, %v27469_v16  ;;  %v7831_v16 = vpack.c.bf16 %v30480_v1, %v30479_v43  ;;  %v30510_v1 = vld [vmem:[#allocation141_spill] sm:$0xff] }
 0x6ea   : > { %20272 = vmatmul.mubr.msk.bf16.gmra.mrb[24].mxu1 %vm384_vm5, %v7829_v13  ;;  %v30507_v13 = vld [vmem:[#allocation138_spill] sm:$0xff] }
 0x6eb   : > { %20275 = vmatprep.mubr.msk.bf16.mxu1 %vm384_vm5, %v7830_v20  ;;  %v8272_v18 = vpack.c.bf16 %v30507_v13, %v30506_v34  ;;  %v30508_v20 = vld [vmem:[#allocation139_spill] sm:$0xff]  ;;  %v30530_v34 = vld [vmem:[#allocation33_spill] sm:$0xff] }
 0x6ed   : > { %20798 = vmatmul.mubr.msk.bf16.gmra.mrb[92].mxu0 %vm323_vm2, %v12294_v17  ;;  %v30509_v17 = vld [vmem:[#allocation144_spill] sm:$0xff] }
 0x6ee   : > { %v8273_v43 = vpack.c.bf16 %v30509_v17, %v30508_v20  ;;  %v30531_v20 = vld [vmem:[#allocation50_spill] sm:$0xff] }
 0x6f2   : > { %20276 = vmatmul.mubr.msk.bf16.gmra.mrb[28].mxu1 %vm384_vm5, %v7831_v16  ;;  %v30511_v16 = vld [vmem:[#allocation142_spill] sm:$0xff] }
 0x6f3   : > { %20279 = vmatprep.mubr.msk.bf16.mxu1 %vm384_vm5, %v7832_v58  ;;  %v8274_v4 = vpack.c.bf16 %v30511_v16, %v30510_v1  ;;  %v8275_v58 = vpack.c.bf16 %v27309_v25, %v30512_v10  ;;  %v8279_v25 = vpack.c.bf16 %v27343_v63, %v27322_v47  ;;  %v30520_v63 = vld [vmem:[#allocation66_spill] sm:$0xff] }
 0x6f4   : > { %v8284_v11 = vpack.c.bf16 %v30521_v42, %v30520_v63 }
 0x6fa   : > { %20280 = vmatmul.mubr.msk.bf16.gmra.mrb[32].mxu1 %vm384_vm5, %v7833_v22  ;;  %v8242_v22 = vld [vmem:[#allocation3 + $0x109] sm:$0xff] }
 0x6fb   : > { %20283 = vmatprep.mubr.msk.bf16.mxu1 %vm384_vm5, %v7834_v30  ;;  %v8278_v32 = vpack.c.bf16 %v27320_v37, %v8242_v22  ;;  %v30515_v30 = vld [vmem:[#allocation65_spill] sm:$0xff]  ;;  %v8282_v37 = vpack.c.bf16 %v30517_v53, %v30516_v26  ;;  %v30534_v53 = vld [vmem:[#allocation51_spill] sm:$0xff] }
 0x6fc   : > { %v8281_v38 = vpack.c.bf16 %v30515_v30, %v30514_v31  ;;  %v12864_v31 = vld [vmem:[#allocation3 + $0x28] sm:$0xff] }
 0x6fd   : > { %v30533_v30 = vld [vmem:[#allocation38_spill] sm:$0xff] }
 0x702   : > { %20284 = vmatmul.mubr.msk.bf16.gmra.mrb[36].mxu1 %vm384_vm5, %v7835_v0  ;;  %v30519_v0 = vld [vmem:[#allocation73_spill] sm:$0xff] }
 0x703   : > { %20287 = vmatprep.mubr.msk.bf16.mxu1 %vm384_vm5, %v7836_v19  ;;  %v8283_v47 = vpack.c.bf16 %v30519_v0, %v30518_v9  ;;  %v30523_v19 = vld [vmem:[#allocation80_spill] sm:$0xff]  ;;  %v22895_v0 = vld [vmem:[%s29184_s6 + $0x8] sm:$0xff]  }
 0x704   : > { %v8285_v57 = vpack.c.bf16 %v30523_v19, %v30522_v45 }
 0x70a   : > { %20288 = vmatmul.mubr.msk.bf16.gmra.mrb[40].mxu1 %vm384_vm5, %v7837_v55  ;;  %v8286_v55 = vpack.c.bf16 %v30525_v28, %v30524_v27 }
 0x70b   : > { %20291 = vmatprep.mubr.msk.bf16.mxu1 %vm384_vm5, %v7838_v29  ;;  %v8263_v29 = vld [vmem:[#allocation3 + $0x1b1] sm:$0xff] }
 0x712   : > { %20292 = vmatmul.mubr.msk.bf16.gmra.mrb[44].mxu1 %vm384_vm5, %v7839_v61  ;;  %v8287_v61 = vpack.c.bf16 %v27408_v33, %v30526_v35 }
 0x713   : > { %20303 = vmatprep.mubr.msk.bf16.mxu1 %vm384_vm5, %v8266_v46  ;;  %v30527_v46 = vld [vmem:[#allocation82_spill] sm:$0xff] }
 0x714   : > { %v8288_v62 = vpack.c.bf16 %v8263_v29, %v30527_v46 }
 0x71a   : > { %20304 = vmatmul.mubr.msk.bf16.vlgmr.msra.gmra.mrb[0].mxu1 %vm384_vm5, %v8267_v60 }
 0x71b   : > { %20802 = vmatpush3.bf16.msra.mxu1 %v27558_v36  ;;  %20307 = vmatprep.mubr.msk.bf16.mxu1 %vm384_vm5, %v8268_v21  ;;  %v27673_v36 = vld [vmem:[%s29184_s6] sm:$0xff]  }
 0x71c   : > { %20803 = vmatprep.subr.bf16.mxu1 %v22891_v15  ;;  %v8264_v21 = vld [vmem:[#allocation3 + $0x1b9] sm:$0xff] }
 0x71f   : > { %20804 = vmatpush3.bf16.msra.mxu1 %v22891_v15 }
 0x720   : > { %20805 = vmatprep.subr.bf16.mxu1 %v22892_v3 }
 0x722   : > { %20308 = vmatmul.mubr.msk.bf16.gmra.mrb[4].mxu1 %vm384_vm5, %v8269_v12  ;;  %v12863_v12 = vld [vmem:[#allocation3 + $0x20] sm:$0xff] }
 0x723   : > { %20311 = vmatprep.mubr.msk.bf16.mxu1 %vm384_vm5, %v8270_v48  ;;  %20806 = vmatpush3.bf16.msra.mxu1 %v22892_v3  ;;  %v8265_v3 = vld [vmem:[#allocation3 + $0x1c1] sm:$0xff] }
 0x724   : > { %20807 = vmatprep.subr.bf16.mxu1 %v22893_v2  ;;  %v30529_v48 = vld [vmem:[#allocation46_spill] sm:$0xff] }
 0x727   : > { %20808 = vmatpush3.bf16.msra.mxu1 %v22893_v2  ;;  %v30528_v2 = vld [vmem:[#allocation48_spill] sm:$0xff] }
 0x728   : > { %20857 = vmatprep.subr.bf16.mxu1 %v27673_v36 }
 0x72a   : > { %20312 = vmatmul.mubr.msk.bf16.gmra.mrb[8].mxu1 %vm384_vm5, %v8271_v49  ;;  %v8289_v49 = vpack.c.bf16 %v8265_v3, %v8264_v21  ;;  %v22896_v21 = vld [vmem:[%s29184_s6 + $0x10] sm:$0xff]  }
 0x72b   : > { %20315 = vmatprep.mubr.msk.bf16.mxu1 %vm384_vm5, %v8272_v18  ;;  %v12910_v18 = vpack.c.bf16 %v12863_v12, %v12862_v44  ;;  %v30540_v12 = vld [vmem:[#allocation52_spill] sm:$0xff] }
 0x732   : > { %20316 = vmatmul.mubr.msk.bf16.gmra.mrb[12].mxu1 %vm384_vm5, %v8273_v43 }
 0x733   : > { %20319 = vmatprep.mubr.msk.bf16.mxu1 %vm384_vm5, %v8274_v4 }
 0x73a   : > { %20320 = vmatmul.mubr.msk.bf16.gmra.mrb[16].mxu1 %vm384_vm5, %v8275_v58 }
 0x73b   : > { %20323 = vmatprep.mubr.msk.bf16.mxu1 %vm384_vm5, %v8276_v54 }
 0x742   : > { %20324 = vmatmul.mubr.msk.bf16.gmra.mrb[20].mxu1 %vm384_vm5, %v8277_v8 }
 0x743   : > { %20327 = vmatprep.mubr.msk.bf16.mxu1 %vm384_vm5, %v8278_v32 }
 0x74a   : > { %20328 = vmatmul.mubr.msk.bf16.gmra.mrb[24].mxu1 %vm384_vm5, %v8279_v25  ;;  %v30532_v25 = vld [vmem:[#allocation5_spill] sm:$0xff] }
 0x74b   : > { %20331 = vmatprep.mubr.msk.bf16.mxu1 %vm384_vm5, %v8280_v50 }
 0x752   : > { %20332 = vmatmul.mubr.msk.bf16.gmra.mrb[28].mxu1 %vm384_vm5, %v8281_v38 }
 0x753   : > { %20335 = vmatprep.mubr.msk.bf16.mxu1 %vm384_vm5, %v8282_v37 }
 0x75a   : > { %20336 = vmatmul.mubr.msk.bf16.gmra.mrb[32].mxu1 %vm384_vm5, %v8283_v47  ;;  %v30535_v47 = vld [vmem:[#allocation37_spill] sm:$0xff] }
 0x75b   : > { %20339 = vmatprep.mubr.msk.bf16.mxu1 %vm384_vm5, %v8284_v11 }
 0x762   : > { %20340 = vmatmul.mubr.msk.bf16.gmra.mrb[36].mxu1 %vm384_vm5, %v8285_v57 }
 0x763   : > { %20343 = vmatprep.mubr.msk.bf16.mxu1 %vm384_vm5, %v8286_v55 }
 0x768   : > { %v20755_v51 = vpop.f32.mrb[48].mxu0 }
 0x769   : > { %v12592_v23 = vadd.f32 %v20755_v51, %v27726_v24  ;;  %v12344_v56 = vpop.f32.mrb[49].mxu0 }
 0x76a   : > { %v12590_v59 = vadd.f32 %v27726_v24, %v12344_v56  ;;  %20344 = vmatmul.mubr.msk.bf16.gmra.mrb[40].mxu1 %vm384_vm5, %v8287_v61  ;;  %v20756_v60 = vpop.f32.mrb[50].mxu0 }
 0x76b   : > { %v12640_v15 = vmax.f32 %v12592_v23, 0.0  ;;  %v12593_v6 = vadd.f32 %v20756_v60, %v27726_v24  ;;  %20347 = vmatprep.mubr.msk.bf16.mxu1 %vm384_vm5, %v8288_v62  ;;  %v12347_v52 = vpop.f32.mrb[51].mxu0 }
 0x76c   : > { %v12638_v41 = vmax.f32 %v12590_v59, 0.0  ;;  %v12591_v33 = vadd.f32 %v27726_v24, %v12347_v52 }
 0x76d   : > { %v12688_v5 = vmul.f32 %v12640_v15, %v30528_v2  ;;  %v12641_v7 = vmax.f32 %v12593_v6, 0.0 }
 0x76e   : > { %v12686_v39 = vmul.f32 %v12638_v41, %v30529_v48  ;;  %v12639_v40 = vmax.f32 %v12591_v33, 0.0  ;;  %v30539_v41 = vld [vmem:[#allocation54_spill] sm:$0xff] }
 0x76f   : > { %12736 = vst.msk [vmem:[#allocation3 + $0x40] sm:$0xff] %vm384_vm5, %v12688_v5  ;;  %v12689_v13 = vmul.f32 %v12641_v7, %v30530_v34 }
 0x770   : > { %12734 = vst.msk [vmem:[#allocation3 + $0x30] sm:$0xff] %vm384_vm5, %v12686_v39  ;;  %v12687_v17 = vmul.f32 %v12639_v40, %v30531_v20  ;;  %v20759_v43 = vpop.f32.mrb[52].mxu0  ;;  %v22897_v40 = vld [vmem:[%s29184_s6 + $0x18] sm:$0xff]  }
 0x771   : > { %12737 = vst.msk [vmem:[#allocation3 + $0x48] sm:$0xff] %vm384_vm5, %v12689_v13  ;;  %v12596_v1 = vadd.f32 %v20759_v43, %v27726_v24  ;;  %v12360_v16 = vpop.f32.mrb[53].mxu0 }
 0x772   : > { %12735 = vst.msk [vmem:[#allocation3 + $0x38] sm:$0xff] %vm384_vm5, %v12687_v17  ;;  %v12594_v4 = vadd.f32 %v27726_v24, %v12360_v16  ;;  %20348 = vmatmul.mubr.msk.bf16.gmra.mrb[44].mxu1 %vm384_vm5, %v8289_v49  ;;  %v20760_v10 = vpop.f32.mrb[54].mxu0  ;;  %v30541_v49 = vld [vmem:[#allocation55_spill] sm:$0xff] }
 0x773   : > { %v12644_v58 = vmax.f32 %v12596_v1, 0.0  ;;  %v12597_v54 = vadd.f32 %v20760_v10, %v27726_v24  ;;  %v12363_v8 = vpop.f32.mrb[55].mxu0  ;;  %20809 = vmatprep.mubr.msk.bf16.mxu1 %vm384_vm5, %v12910_v18  ;;  %v30544_v1 = vld [vmem:[#allocation53_spill] sm:$0xff] }
 0x774   : > { %v12642_v22 = vmax.f32 %v12594_v4, 0.0  ;;  %v12595_v32 = vadd.f32 %v27726_v24, %v12363_v8 }
 0x775   : > { %v12692_v14 = vmul.f32 %v12644_v58, %v30532_v25  ;;  %v12645_v50 = vmax.f32 %v12597_v54, 0.0 }
 0x776   : > { %v12690_v38 = vmul.f32 %v12642_v22, %v30533_v30  ;;  %v12643_v26 = vmax.f32 %v12595_v32, 0.0  ;;  %v12867_v45 = vld [vmem:[#allocation3 + $0x40] sm:$0xff] }
 0x777   : > { %12740 = vst.msk [vmem:[#allocation3 + $0x60] sm:$0xff] %vm384_vm5, %v12692_v14  ;;  %v12693_v37 = vmul.f32 %v12645_v50, %v30534_v53  ;;  %v12865_v9 = vld [vmem:[#allocation3 + $0x30] sm:$0xff] }
 0x778   : > { %12738 = vst.msk [vmem:[#allocation3 + $0x50] sm:$0xff] %vm384_vm5, %v12690_v38  ;;  %v12691_v63 = vmul.f32 %v12643_v26, %v30535_v47  ;;  %v20763_v42 = vpop.f32.mrb[56].mxu0  ;;  %v12911_v11 = vpack.c.bf16 %v12865_v9, %v12864_v31  ;;  %v27760_v19 = vld [vmem:[#allocation3 + $0x2f] sm:$0xff]  ;;  %v27762_v57 = vld [vmem:[#allocation3 + $0x47] sm:$0xff] }
 0x779   : > { %30536 = vst [vmem:[#allocation85_spill] sm:$0xff] %v27762_v57  ;;  %12741 = vst.msk [vmem:[#allocation3 + $0x68] sm:$0xff] %vm384_vm5, %v12693_v37  ;;  %v12600_v27 = vadd.f32 %v20763_v42, %v27726_v24  ;;  %v12376_v28 = vpop.f32.mrb[57].mxu0  ;;  %v12866_v55 = vld [vmem:[#allocation3 + $0x38] sm:$0xff]  ;;  %v12868_v39 = vld [vmem:[#allocation3 + $0x48] sm:$0xff] }
 0x77a   : > { %v27766_v29 = vld [vmem:[#allocation3 + $0x37] sm:$0xff]  ;;  %v27768_v51 = vld [vmem:[#allocation3 + $0x3f] sm:$0xff]  ;;  %12739 = vst.msk [vmem:[#allocation3 + $0x58] sm:$0xff] %vm384_vm5, %v12691_v63  ;;  %v12598_v35 = vadd.f32 %v27726_v24, %v12376_v28  ;;  %v20764_v61 = vpop.f32.mrb[58].mxu0  ;;  %20810 = vmatmul.mubr.msk.bf16.vlgmr.msra.gmra.mrb[48].mxu1 %vm384_vm5, %v12911_v11  ;;  %v12912_v23 = vpack.c.bf16 %v12867_v45, %v12866_v55 }
 0x77b   : > { %v27773_v56 = vld [vmem:[#allocation3 + $0x31] sm:$0xff]  ;;  %v27775_v46 = vld [vmem:[#allocation3 + $0x39] sm:$0xff]  ;;  %v12648_v59 = vmax.f32 %v12600_v27, 0.0  ;;  %v12601_v60 = vadd.f32 %v20764_v61, %v27726_v24  ;;  %20858 = vmatpush3.bf16.msra.mxu1 %v27673_v36  ;;  %v12379_v15 = vpop.f32.mrb[59].mxu0  ;;  %v27797_v17 = vld [vmem:[#allocation3 + $0x41] sm:$0xff] }
 0x77c   : > { %30537 = vst [vmem:[#allocation86_spill] sm:$0xff] %v27773_v56  ;;  %30538 = vst [vmem:[#allocation89_spill] sm:$0xff] %v27775_v46  ;;  %v12646_v6 = vmax.f32 %v12598_v35, 0.0  ;;  %v12599_v52 = vadd.f32 %v27726_v24, %v12379_v15  ;;  %20813 = vmatprep.mubr.msk.bf16.mxu1 %vm384_vm5, %v12912_v23  ;;  %20859 = vmatprep.subr.bf16.mxu1 %v22895_v0  ;;  %v27830_v35 = vld [vmem:[%s29184_s6 + $0x40] sm:$0xff]  }
 0x77d   : > { %v12696_v33 = vmul.f32 %v12648_v59, %v30539_v41  ;;  %v12649_v44 = vmax.f32 %v12601_v60, 0.0  ;;  %30542 = vst [vmem:[#allocation91_spill] sm:$0xff] %v27797_v17  ;;  %v30549_v60 = vld [vmem:[#allocation62_spill] sm:$0xff] }
 0x77e   : > { %v12694_v5 = vmul.f32 %v12646_v6, %v30540_v12  ;;  %v12647_v7 = vmax.f32 %v12599_v52, 0.0  ;;  %v12871_v58 = vld [vmem:[#allocation3 + $0x60] sm:$0xff] }
 0x77f   : > { %12744 = vst.msk [vmem:[#allocation3 + $0x80] sm:$0xff] %vm384_vm5, %v12696_v33  ;;  %v12697_v13 = vmul.f32 %v12649_v44, %v30541_v49  ;;  %v12869_v18 = vld [vmem:[#allocation3 + $0x50] sm:$0xff]  ;;  %20860 = vmatpush3.bf16.msra.mxu1 %v22895_v0 }
 0x780   : > { %v27799_v43 = vld [vmem:[#allocation3 + $0x49] sm:$0xff]  ;;  %12742 = vst.msk [vmem:[#allocation3 + $0x70] sm:$0xff] %vm384_vm5, %v12694_v5  ;;  %v12695_v16 = vmul.f32 %v12647_v7, %v30544_v1  ;;  %v20767_v4 = vpop.f32.mrb[60].mxu0  ;;  %v12913_v10 = vpack.c.bf16 %v12869_v18, %v12868_v39  ;;  %20861 = vmatprep.subr.bf16.mxu1 %v22896_v21  ;;  %v27844_v39 = vld [vmem:[#allocation3 + $0x60] sm:$0xff] }
 0x781   : > { %30543 = vst [vmem:[#allocation95_spill] sm:$0xff] %v27799_v43  ;;  %v27803_v54 = vld [vmem:[#allocation3 + $0x4f] sm:$0xff]  ;;  %v27805_v8 = vld [vmem:[#allocation3 + $0x67] sm:$0xff]  ;;  %12745 = vst.msk [vmem:[#allocation3 + $0x88] sm:$0xff] %vm384_vm5, %v12697_v13  ;;  %v12604_v32 = vadd.f32 %v20767_v4, %v27726_v24  ;;  %v12392_v14 = vpop.f32.mrb[61].mxu0 }
 0x782   : > { %v12870_v50 = vld [vmem:[#allocation3 + $0x58] sm:$0xff]  ;;  %12743 = vst.msk [vmem:[#allocation3 + $0x78] sm:$0xff] %vm384_vm5, %v12695_v16  ;;  %v12602_v26 = vadd.f32 %v27726_v24, %v12392_v14  ;;  %v20768_v37 = vpop.f32.mrb[62].mxu0  ;;  %20814 = vmatmul.mubr.msk.bf16.gmra.mrb[52].mxu1 %vm384_vm5, %v12913_v10  ;;  %v27834_v23 = vld [vmem:[#allocation3 + $0x50] sm:$0xff]  ;;  %v12872_v5 = vld [vmem:[#allocation3 + $0x68] sm:$0xff] }
 0x783   : > { %v27811_v31 = vld [vmem:[#allocation3 + $0x57] sm:$0xff]  ;;  %v27813_v38 = vld [vmem:[#allocation3 + $0x5f] sm:$0xff]  ;;  %v12914_v9 = vpack.c.bf16 %v12871_v58, %v12870_v50  ;;  %v12652_v11 = vmax.f32 %v12604_v32, 0.0  ;;  %v12605_v45 = vadd.f32 %v20768_v37, %v27726_v24  ;;  %v12395_v27 = vpop.f32.mrb[63].mxu0  ;;  %20862 = vmatpush3.bf16.msra.mxu1 %v22896_v21  ;;  %30547 = vst [vmem:[#allocation8_spill] sm:$0xff] %v27834_v23  ;;  %v30550_v21 = vld [vmem:[#allocation58_spill] sm:$0xff] }
 0x784   : > { %v27818_v0 = vld [vmem:[#allocation3 + $0x51] sm:$0xff]  ;;  %v27820_v63 = vld [vmem:[#allocation3 + $0x59] sm:$0xff]  ;;  %v12650_v28 = vmax.f32 %v12602_v26, 0.0  ;;  %v12603_v55 = vadd.f32 %v27726_v24, %v12395_v27  ;;  %20863 = vmatprep.subr.bf16.mxu1 %v22897_v40  ;;  %v27842_v7 = vld [vmem:[#allocation3 + $0x48] sm:$0xff]  ;;  %30552 = vst [vmem:[#allocation11_spill] sm:$0xff] %v27844_v39 }
 0x785   : > { %30545 = vst [vmem:[#allocation93_spill] sm:$0xff] %v27818_v0  ;;  %30546 = vst [vmem:[#allocation97_spill] sm:$0xff] %v27820_v63  ;;  %20817 = vmatprep.mubr.msk.bf16.mxu1 %vm384_vm5, %v12914_v9  ;;  %v27836_v59 = vld [vmem:[#allocation3 + $0x58] sm:$0xff]  ;;  %v12700_v15 = vmul.f32 %v12652_v11, %v30549_v60  ;;  %v12653_v6 = vmax.f32 %v12605_v45, 0.0  ;;  %v30553_v13 = vld [vmem:[#allocation63_spill] sm:$0xff] }
 0x786   : > { %30548 = vst [vmem:[#allocation9_spill] sm:$0xff] %v27836_v59  ;;  %v12698_v33 = vmul.f32 %v12650_v28, %v30550_v21  ;;  %v12651_v44 = vmax.f32 %v12603_v55, 0.0  ;;  %30551 = vst [vmem:[#allocation10_spill] sm:$0xff] %v27842_v7  ;;  %v27848_v4 = vld [vmem:[#allocation3 + $0x61] sm:$0xff]  ;;  %v30556_v14 = vld [vmem:[#allocation59_spill] sm:$0xff] }
 0x787   : > { %12748 = vst.msk [vmem:[#allocation3 + $0xa0] sm:$0xff] %vm384_vm5, %v12700_v15  ;;  %v12701_v18 = vmul.f32 %v12653_v6, %v30553_v13  ;;  %v12873_v16 = vld [vmem:[#allocation3 + $0x70] sm:$0xff]  ;;  %20864 = vmatpush3.bf16.msra.mxu1 %v22897_v40  ;;  %30554 = vst [vmem:[#allocation12_spill] sm:$0xff] %v27848_v4  ;;  %v12875_v9 = vld [vmem:[#allocation3 + $0x80] sm:$0xff] }
 0x788   : > { %v27850_v10 = vld [vmem:[#allocation3 + $0x69] sm:$0xff]  ;;  %12746 = vst.msk [vmem:[#allocation3 + $0x90] sm:$0xff] %vm384_vm5, %v12698_v33  ;;  %v12699_v50 = vmul.f32 %v12651_v44, %v30556_v14  ;;  %v20771_v26 = vpop.f32.mrb[64].mxu0  ;;  %v12915_v37 = vpack.c.bf16 %v12873_v16, %v12872_v5  ;;  %20913 = vmatprep.subr.bf16.mxu1 %v27830_v35  ;;  %v27899_v62 = vld [vmem:[#allocation3 + $0x81] sm:$0xff] }
 0x789   : > { %30555 = vst [vmem:[#allocation13_spill] sm:$0xff] %v27850_v10  ;;  %v27859_v40 = vld [vmem:[#allocation3 + $0x6f] sm:$0xff]  ;;  %v27861_v11 = vld [vmem:[#allocation3 + $0x87] sm:$0xff]  ;;  %12749 = vst.msk [vmem:[#allocation3 + $0xa8] sm:$0xff] %vm384_vm5, %v12701_v18  ;;  %v12608_v27 = vadd.f32 %v20771_v26, %v27726_v24  ;;  %v12408_v28 = vpop.f32.mrb[65].mxu0 }
 0x78a   : > { %v12874_v55 = vld [vmem:[#allocation3 + $0x78] sm:$0xff]  ;;  %12747 = vst.msk [vmem:[#allocation3 + $0x98] sm:$0xff] %vm384_vm5, %v12699_v50  ;;  %v12606_v33 = vadd.f32 %v27726_v24, %v12408_v28  ;;  %v20772_v44 = vpop.f32.mrb[66].mxu0  ;;  %20818 = vmatmul.mubr.msk.bf16.gmra.mrb[56].mxu1 %vm384_vm5, %v12915_v37  ;;  %v12876_v61 = vld [vmem:[#allocation3 + $0x88] sm:$0xff]  ;;  %30566 = vst [vmem:[#allocation49_spill] sm:$0xff] %v27899_v62 }
 0x78b   : > { %v27867_v15 = vld [vmem:[#allocation3 + $0x77] sm:$0xff]  ;;  %v27869_v6 = vld [vmem:[#allocation3 + $0x7f] sm:$0xff]  ;;  %v12916_v5 = vpack.c.bf16 %v12875_v9, %v12874_v55  ;;  %v12656_v26 = vmax.f32 %v12608_v27, 0.0  ;;  %v12609_v58 = vadd.f32 %v20772_v44, %v27726_v24  ;;  %v12411_v45 = vpop.f32.mrb[67].mxu0  ;;  %v30565_v37 = vld [vmem:[#allocation70_spill] sm:$0xff] }
 0x78c   : > { %v27874_v16 = vld [vmem:[#allocation3 + $0x71] sm:$0xff]  ;;  %v27876_v32 = vld [vmem:[#allocation3 + $0x79] sm:$0xff]  ;;  %v12654_v52 = vmax.f32 %v12606_v33, 0.0  ;;  %v12607_v50 = vadd.f32 %v27726_v24, %v12411_v45  ;;  %v27893_v45 = vld [vmem:[#allocation3 + $0x68] sm:$0xff] }
 0x78d   : > { %30557 = vst [vmem:[#allocation14_spill] sm:$0xff] %v27874_v16  ;;  %30558 = vst [vmem:[#allocation40_spill] sm:$0xff] %v27876_v32  ;;  %20821 = vmatprep.mubr.msk.bf16.mxu1 %vm384_vm5, %v12916_v5  ;;  %v27885_v9 = vld [vmem:[#allocation3 + $0x70] sm:$0xff]  ;;  %v27887_v28 = vld [vmem:[#allocation3 + $0x78] sm:$0xff]  ;;  %v12657_v36 = vmax.f32 %v12609_v58, 0.0 }
 0x78e   : > { %30559 = vst [vmem:[#allocation41_spill] sm:$0xff] %v27885_v9  ;;  %30560 = vst [vmem:[#allocation42_spill] sm:$0xff] %v27887_v28  ;;  %v30561_v55 = vld [vmem:[#allocation68_spill] sm:$0xff]  ;;  %v12655_v33 = vmax.f32 %v12607_v50, 0.0  ;;  %v27895_v5 = vld [vmem:[#allocation3 + $0x80] sm:$0xff] }
 0x78f   : > { %v12704_v22 = vmul.f32 %v12656_v26, %v30561_v55  ;;  %v30562_v44 = vld [vmem:[#allocation64_spill] sm:$0xff]  ;;  %30563 = vst [vmem:[#allocation43_spill] sm:$0xff] %v27893_v45  ;;  %30564 = vst [vmem:[#allocation44_spill] sm:$0xff] %v27895_v5  ;;  %v12705_v42 = vmul.f32 %v12657_v36, %v30565_v37  ;;  %v12877_v3 = vld [vmem:[#allocation3 + $0x90] sm:$0xff] }
 0x790   : > { %v12702_v18 = vmul.f32 %v12654_v52, %v30562_v44  ;;  %v27901_v26 = vld [vmem:[#allocation3 + $0x89] sm:$0xff]  ;;  %v20775_v55 = vpop.f32.mrb[68].mxu0  ;;  %v12917_v44 = vpack.c.bf16 %v12877_v3, %v12876_v61  ;;  %v27949_v30 = vld [vmem:[#allocation3 + $0xa1] sm:$0xff] }
 0x791   : > { %12752 = vst.msk [vmem:[#allocation3 + $0xc0] sm:$0xff] %vm384_vm5, %v12704_v22  ;;  %30567 = vst [vmem:[#allocation35_spill] sm:$0xff] %v27901_v26  ;;  %v30568_v50 = vld [vmem:[#allocation67_spill] sm:$0xff]  ;;  %v12879_v22 = vld [vmem:[#allocation3 + $0xa0] sm:$0xff]  ;;  %v12612_v58 = vadd.f32 %v20775_v55, %v27726_v24  ;;  %v12424_v14 = vpop.f32.mrb[69].mxu0 }
 0x792   : > { %12750 = vst.msk [vmem:[#allocation3 + $0xb0] sm:$0xff] %vm384_vm5, %v12702_v18  ;;  %v12703_v27 = vmul.f32 %v12655_v33, %v30568_v50  ;;  %v27909_v13 = vld [vmem:[#allocation3 + $0x8f] sm:$0xff]  ;;  %v27911_v36 = vld [vmem:[#allocation3 + $0xa7] sm:$0xff]  ;;  %12753 = vst.msk [vmem:[#allocation3 + $0xc8] sm:$0xff] %vm384_vm5, %v12705_v42  ;;  %v12610_v3 = vadd.f32 %v27726_v24, %v12424_v14  ;;  %v20776_v61 = vpop.f32.mrb[70].mxu0  ;;  %20822 = vmatmul.mubr.msk.bf16.gmra.mrb[60].mxu1 %vm384_vm5, %v12917_v44 }
 0x793   : > { %v12878_v52 = vld [vmem:[#allocation3 + $0x98] sm:$0xff]  ;;  %v12660_v55 = vmax.f32 %v12612_v58, 0.0  ;;  %v12613_v21 = vadd.f32 %v20776_v61, %v27726_v24  ;;  %v12427_v49 = vpop.f32.mrb[71].mxu0  ;;  %v27935_v44 = vld [vmem:[#allocation3 + $0x90] sm:$0xff]  ;;  %v12880_v53 = vld [vmem:[#allocation3 + $0xa8] sm:$0xff]  ;;  %30578 = vst [vmem:[#allocation114_spill] sm:$0xff] %v27949_v30 }
 0x794   : > { %v27917_v60 = vld [vmem:[#allocation3 + $0x97] sm:$0xff]  ;;  %v27919_v18 = vld [vmem:[#allocation3 + $0x9f] sm:$0xff]  ;;  %12751 = vst.msk [vmem:[#allocation3 + $0xb8] sm:$0xff] %vm384_vm5, %v12703_v27  ;;  %v12918_v33 = vpack.c.bf16 %v12879_v22, %v12878_v52  ;;  %v12658_v1 = vmax.f32 %v12610_v3, 0.0  ;;  %v12611_v27 = vadd.f32 %v27726_v24, %v12427_v49  ;;  %30571 = vst [vmem:[#allocation105_spill] sm:$0xff] %v27935_v44 }
 0x795   : > { %v27924_v50 = vld [vmem:[#allocation3 + $0x91] sm:$0xff]  ;;  %v27926_v37 = vld [vmem:[#allocation3 + $0x99] sm:$0xff]  ;;  %v12661_v12 = vmax.f32 %v12613_v21, 0.0  ;;  %v27943_v49 = vld [vmem:[#allocation3 + $0x88] sm:$0xff] }
 0x796   : > { %30569 = vst [vmem:[#allocation39_spill] sm:$0xff] %v27924_v50  ;;  %30570 = vst [vmem:[#allocation146_spill] sm:$0xff] %v27926_v37  ;;  %20825 = vmatprep.mubr.msk.bf16.mxu1 %vm384_vm5, %v12918_v33  ;;  %v27937_v52 = vld [vmem:[#allocation3 + $0x98] sm:$0xff]  ;;  %v30573_v22 = vld [vmem:[#allocation75_spill] sm:$0xff]  ;;  %v12659_v3 = vmax.f32 %v12611_v27, 0.0 }
 0x797   : > { %30572 = vst [vmem:[#allocation107_spill] sm:$0xff] %v27937_v52  ;;  %v12708_v41 = vmul.f32 %v12660_v55, %v30573_v22  ;;  %v30574_v61 = vld [vmem:[#allocation27_spill] sm:$0xff]  ;;  %30575 = vst [vmem:[#allocation110_spill] sm:$0xff] %v27943_v49  ;;  %v27945_v33 = vld [vmem:[#allocation3 + $0xa0] sm:$0xff] }
 0x798   : > { %v12706_v42 = vmul.f32 %v12658_v1, %v30574_v61  ;;  %30576 = vst [vmem:[#allocation111_spill] sm:$0xff] %v27945_v33  ;;  %v30577_v14 = vld [vmem:[#allocation76_spill] sm:$0xff]  ;;  %v20779_v22 = vpop.f32.mrb[72].mxu0 }
 0x799   : > { %12756 = vst.msk [vmem:[#allocation3 + $0xe0] sm:$0xff] %vm384_vm5, %v12708_v41  ;;  %v12709_v47 = vmul.f32 %v12661_v12, %v30577_v14  ;;  %v12881_v25 = vld [vmem:[#allocation3 + $0xb0] sm:$0xff]  ;;  %v30580_v27 = vld [vmem:[#allocation72_spill] sm:$0xff]  ;;  %v12883_v41 = vld [vmem:[#allocation3 + $0xc0] sm:$0xff]  ;;  %v12616_v21 = vadd.f32 %v20779_v22, %v27726_v24  ;;  %v12440_v20 = vpop.f32.mrb[73].mxu0 }
 0x79a   : > { %v27951_v55 = vld [vmem:[#allocation3 + $0xa9] sm:$0xff]  ;;  %12754 = vst.msk [vmem:[#allocation3 + $0xd0] sm:$0xff] %vm384_vm5, %v12706_v42  ;;  %v12707_v58 = vmul.f32 %v12659_v3, %v30580_v27  ;;  %v12919_v61 = vpack.c.bf16 %v12881_v25, %v12880_v53  ;;  %v12614_v25 = vadd.f32 %v27726_v24, %v12440_v20  ;;  %v20780_v53 = vpop.f32.mrb[74].mxu0  ;;  %v30589_v20 = vld [vmem:[#allocation81_spill] sm:$0xff] }
 0x79b   : > { %30579 = vst [vmem:[#allocation115_spill] sm:$0xff] %v27951_v55  ;;  %v27959_v34 = vld [vmem:[#allocation3 + $0xaf] sm:$0xff]  ;;  %v27961_v12 = vld [vmem:[#allocation3 + $0xc7] sm:$0xff]  ;;  %12757 = vst.msk [vmem:[#allocation3 + $0xe8] sm:$0xff] %vm384_vm5, %v12709_v47  ;;  %v12664_v22 = vmax.f32 %v12616_v21, 0.0  ;;  %v12617_v48 = vadd.f32 %v20780_v53, %v27726_v24  ;;  %v12443_v52 = vpop.f32.mrb[75].mxu0 }
 0x79c   : > { %v12882_v1 = vld [vmem:[#allocation3 + $0xb8] sm:$0xff]  ;;  %12755 = vst.msk [vmem:[#allocation3 + $0xd8] sm:$0xff] %vm384_vm5, %v12707_v58  ;;  %20826 = vmatmul.mubr.msk.bf16.gmra.mrb[64].mxu1 %vm384_vm5, %v12919_v61  ;;  %v12662_v33 = vmax.f32 %v12614_v25, 0.0  ;;  %v12615_v58 = vadd.f32 %v27726_v24, %v12443_v52  ;;  %v27985_v61 = vld [vmem:[#allocation3 + $0xb0] sm:$0xff]  ;;  %v30586_v53 = vld [vmem:[#allocation78_spill] sm:$0xff] }
 0x79d   : > { %v27967_v2 = vld [vmem:[#allocation3 + $0xb7] sm:$0xff]  ;;  %v27969_v42 = vld [vmem:[#allocation3 + $0xbf] sm:$0xff]  ;;  %v12920_v3 = vpack.c.bf16 %v12883_v41, %v12882_v1  ;;  %30583 = vst [vmem:[#allocation118_spill] sm:$0xff] %v27985_v61  ;;  %v12665_v44 = vmax.f32 %v12617_v48, 0.0  ;;  %v12884_v28 = vld [vmem:[#allocation3 + $0xc8] sm:$0xff] }
 0x79e   : > { %v27974_v27 = vld [vmem:[#allocation3 + $0xb1] sm:$0xff]  ;;  %v27976_v14 = vld [vmem:[#allocation3 + $0xb9] sm:$0xff]  ;;  %v12710_v47 = vmul.f32 %v12662_v33, %v30586_v53  ;;  %v12663_v25 = vmax.f32 %v12615_v58, 0.0  ;;  %v27993_v52 = vld [vmem:[#allocation3 + $0xa8] sm:$0xff] }
 0x79f   : > { %30581 = vst [vmem:[#allocation116_spill] sm:$0xff] %v27974_v27  ;;  %30582 = vst [vmem:[#allocation117_spill] sm:$0xff] %v27976_v14  ;;  %20829 = vmatprep.mubr.msk.bf16.mxu1 %vm384_vm5, %v12920_v3  ;;  %v27987_v1 = vld [vmem:[#allocation3 + $0xb8] sm:$0xff]  ;;  %v30585_v41 = vld [vmem:[#allocation79_spill] sm:$0xff]  ;;  %v12713_v5 = vmul.f32 %v12665_v44, %v30589_v20 }
 0x7a0   : > { %30584 = vst [vmem:[#allocation119_spill] sm:$0xff] %v27987_v1  ;;  %v12712_v49 = vmul.f32 %v12664_v22, %v30585_v41  ;;  %30587 = vst [vmem:[#allocation120_spill] sm:$0xff] %v27993_v52  ;;  %v27995_v3 = vld [vmem:[#allocation3 + $0xc0] sm:$0xff]  ;;  %v30592_v58 = vld [vmem:[#allocation31_spill] sm:$0xff]  ;;  %v20783_v41 = vpop.f32.mrb[76].mxu0 }
 0x7a1   : > { %30588 = vst [vmem:[#allocation121_spill] sm:$0xff] %v27995_v3  ;;  %v12885_v45 = vld [vmem:[#allocation3 + $0xd0] sm:$0xff]  ;;  %v27999_v9 = vld [vmem:[#allocation3 + $0xc1] sm:$0xff]  ;;  %12758 = vst.msk [vmem:[#allocation3 + $0xf0] sm:$0xff] %vm384_vm5, %v12710_v47  ;;  %v12711_v21 = vmul.f32 %v12663_v25, %v30592_v58  ;;  %v12620_v48 = vadd.f32 %v20783_v41, %v27726_v24  ;;  %v12456_v52 = vpop.f32.mrb[77].mxu0 }
 0x7a2   : > { %12760 = vst.msk [vmem:[#allocation3 + $0x100] sm:$0xff] %vm384_vm5, %v12712_v49  ;;  %30590 = vst [vmem:[#allocation122_spill] sm:$0xff] %v27999_v9  ;;  %v28001_v22 = vld [vmem:[#allocation3 + $0xc9] sm:$0xff]  ;;  %v12921_v53 = vpack.c.bf16 %v12885_v45, %v12884_v28  ;;  %v12887_v49 = vld [vmem:[#allocation3 + $0xe0] sm:$0xff]  ;;  %v12618_v28 = vadd.f32 %v27726_v24, %v12456_v52  ;;  %v20784_v45 = vpop.f32.mrb[78].mxu0 }
 0x7a3   : > { %30591 = vst [vmem:[#allocation123_spill] sm:$0xff] %v28001_v22  ;;  %v28009_v59 = vld [vmem:[#allocation3 + $0xcf] sm:$0xff]  ;;  %v28011_v44 = vld [vmem:[#allocation3 + $0xe7] sm:$0xff]  ;;  %12761 = vst.msk [vmem:[#allocation3 + $0x108] sm:$0xff] %vm384_vm5, %v12713_v5  ;;  %v12668_v41 = vmax.f32 %v12620_v48, 0.0  ;;  %v12621_v3 = vadd.f32 %v20784_v45, %v27726_v24  ;;  %v12459_v61 = vpop.f32.mrb[79].mxu0 }
 0x7a4   : > { %v12886_v33 = vld [vmem:[#allocation3 + $0xd8] sm:$0xff]  ;;  %12759 = vst.msk [vmem:[#allocation3 + $0xf8] sm:$0xff] %vm384_vm5, %v12711_v21  ;;  %20830 = vmatmul.mubr.msk.bf16.gmra.mrb[68].mxu1 %vm384_vm5, %v12921_v53  ;;  %v12666_v39 = vmax.f32 %v12618_v28, 0.0  ;;  %v12619_v21 = vadd.f32 %v27726_v24, %v12459_v61  ;;  %v28035_v52 = vld [vmem:[#allocation3 + $0xd0] sm:$0xff]  ;;  %v12888_v9 = vld [vmem:[#allocation3 + $0xe8] sm:$0xff] }
 0x7a5   : > { %v28017_v1 = vld [vmem:[#allocation3 + $0xd7] sm:$0xff]  ;;  %v28019_v47 = vld [vmem:[#allocation3 + $0xdf] sm:$0xff]  ;;  %v12922_v25 = vpack.c.bf16 %v12887_v49, %v12886_v33  ;;  %30595 = vst [vmem:[#allocation126_spill] sm:$0xff] %v28035_v52  ;;  %v12669_v23 = vmax.f32 %v12621_v3, 0.0  ;;  %v28043_v61 = vld [vmem:[#allocation3 + $0xc8] sm:$0xff] }
 0x7a6   : > { %v28024_v58 = vld [vmem:[#allocation3 + $0xd1] sm:$0xff]  ;;  %v28026_v20 = vld [vmem:[#allocation3 + $0xd9] sm:$0xff]  ;;  %v12667_v28 = vmax.f32 %v12619_v21, 0.0  ;;  %30599 = vst [vmem:[#allocation131_spill] sm:$0xff] %v28043_v61  ;;  %v28049_v14 = vld [vmem:[#allocation3 + $0xe1] sm:$0xff] }
 0x7a7   : > { %30593 = vst [vmem:[#allocation45_spill] sm:$0xff] %v28024_v58  ;;  %30594 = vst [vmem:[#allocation47_spill] sm:$0xff] %v28026_v20  ;;  %20833 = vmatprep.mubr.msk.bf16.mxu1 %vm384_vm5, %v12922_v25  ;;  %v28037_v33 = vld [vmem:[#allocation3 + $0xd8] sm:$0xff]  ;;  %v30597_v49 = vld [vmem:[#allocation87_spill] sm:$0xff] }
 0x7a8   : > { %30596 = vst [vmem:[#allocation127_spill] sm:$0xff] %v28037_v33  ;;  %v12716_v7 = vmul.f32 %v12668_v41, %v30597_v49  ;;  %v30598_v45 = vld [vmem:[#allocation83_spill] sm:$0xff]  ;;  %v28045_v25 = vld [vmem:[#allocation3 + $0xe0] sm:$0xff]  ;;  %v30601_v53 = vld [vmem:[#allocation88_spill] sm:$0xff]  ;;  %v20787_v49 = vpop.f32.mrb[80].mxu0 }
 0x7a9   : > { %v12714_v5 = vmul.f32 %v12666_v39, %v30598_v45  ;;  %30600 = vst [vmem:[#allocation133_spill] sm:$0xff] %v28045_v25  ;;  %v12717_v22 = vmul.f32 %v12669_v23, %v30601_v53  ;;  %v12889_v27 = vld [vmem:[#allocation3 + $0xf0] sm:$0xff]  ;;  %30602 = vst [vmem:[#allocation132_spill] sm:$0xff] %v28049_v14  ;;  %v30604_v21 = vld [vmem:[#allocation84_spill] sm:$0xff]  ;;  %v12624_v3 = vadd.f32 %v20787_v49, %v27726_v24  ;;  %v12472_v61 = vpop.f32.mrb[81].mxu0 }
 0x7aa   : > { %12764 = vst.msk [vmem:[#allocation3 + $0x120] sm:$0xff] %vm384_vm5, %v12716_v7  ;;  %v28051_v41 = vld [vmem:[#allocation3 + $0xe9] sm:$0xff]  ;;  %v12715_v48 = vmul.f32 %v12667_v28, %v30604_v21  ;;  %v12923_v45 = vpack.c.bf16 %v12889_v27, %v12888_v9  ;;  %v12891_v7 = vld [vmem:[#allocation3 + $0x100] sm:$0xff]  ;;  %v12622_v9 = vadd.f32 %v27726_v24, %v12472_v61  ;;  %v20788_v27 = vpop.f32.mrb[82].mxu0 }
 0x7ab   : > { %30603 = vst [vmem:[#allocation16_spill] sm:$0xff] %v28051_v41  ;;  %12762 = vst.msk [vmem:[#allocation3 + $0x110] sm:$0xff] %vm384_vm5, %v12714_v5  ;;  %v28059_v58 = vld [vmem:[#allocation3 + $0xef] sm:$0xff]  ;;  %v28061_v23 = vld [vmem:[#allocation3 + $0x107] sm:$0xff]  ;;  %v12672_v49 = vmax.f32 %v12624_v3, 0.0  ;;  %v12625_v25 = vadd.f32 %v20788_v27, %v27726_v24  ;;  %v12475_v52 = vpop.f32.mrb[83].mxu0 }
 0x7ac   : > { %12765 = vst.msk [vmem:[#allocation3 + $0x128] sm:$0xff] %vm384_vm5, %v12717_v22  ;;  %v12890_v39 = vld [vmem:[#allocation3 + $0xf8] sm:$0xff]  ;;  %12763 = vst.msk [vmem:[#allocation3 + $0x118] sm:$0xff] %vm384_vm5, %v12715_v48  ;;  %20834 = vmatmul.mubr.msk.bf16.gmra.mrb[72].mxu1 %vm384_vm5, %v12923_v45  ;;  %v12670_v14 = vmax.f32 %v12622_v9, 0.0  ;;  %v12623_v48 = vadd.f32 %v27726_v24, %v12475_v52  ;;  %v28085_v61 = vld [vmem:[#allocation3 + $0xf0] sm:$0xff] }
 0x7ad   : > { %v28067_v33 = vld [vmem:[#allocation3 + $0xf7] sm:$0xff]  ;;  %v28069_v5 = vld [vmem:[#allocation3 + $0xff] sm:$0xff]  ;;  %v12924_v28 = vpack.c.bf16 %v12891_v7, %v12890_v39  ;;  %30606 = vst [vmem:[#allocation19_spill] sm:$0xff] %v28085_v61  ;;  %v30608_v7 = vld [vmem:[#allocation94_spill] sm:$0xff]  ;;  %v12673_v20 = vmax.f32 %v12625_v25, 0.0 }
 0x7ae   : > { %v28074_v21 = vld [vmem:[#allocation3 + $0xf1] sm:$0xff]  ;;  %v28076_v53 = vld [vmem:[#allocation3 + $0xf9] sm:$0xff]  ;;  %v12720_v41 = vmul.f32 %v12672_v49, %v30608_v7  ;;  %v30609_v27 = vld [vmem:[#allocation90_spill] sm:$0xff]  ;;  %v12671_v9 = vmax.f32 %v12623_v48, 0.0 }
 0x7af   : > { %30605 = vst [vmem:[#allocation15_spill] sm:$0xff] %v28076_v53  ;;  %20837 = vmatprep.mubr.msk.bf16.mxu1 %vm384_vm5, %v12924_v28  ;;  %v28087_v39 = vld [vmem:[#allocation3 + $0xf8] sm:$0xff]  ;;  %v12718_v22 = vmul.f32 %v12670_v14, %v30609_v27  ;;  %v12892_v30 = vld [vmem:[#allocation3 + $0x108] sm:$0xff]  ;;  %v28095_v28 = vld [vmem:[#allocation3 + $0x100] sm:$0xff] }
 0x7b0   : > { %30607 = vst [vmem:[#allocation17_spill] sm:$0xff] %v28087_v39  ;;  %v28093_v52 = vld [vmem:[#allocation3 + $0xe8] sm:$0xff]  ;;  %30611 = vst [vmem:[#allocation18_spill] sm:$0xff] %v28095_v28  ;;  %v30612_v45 = vld [vmem:[#allocation96_spill] sm:$0xff]  ;;  %v20791_v7 = vpop.f32.mrb[84].mxu0 }
 0x7b1   : > { %30610 = vst [vmem:[#allocation20_spill] sm:$0xff] %v28093_v52  ;;  %12768 = vst.msk [vmem:[#allocation3 + $0x140] sm:$0xff] %vm384_vm5, %v12720_v41  ;;  %v12721_v55 = vmul.f32 %v12673_v20, %v30612_v45  ;;  %v28099_v37 = vld [vmem:[#allocation3 + $0x101] sm:$0xff]  ;;  %v30615_v48 = vld [vmem:[#allocation92_spill] sm:$0xff]  ;;  %v12628_v25 = vadd.f32 %v20791_v7, %v27726_v24  ;;  %v12488_v52 = vpop.f32.mrb[85].mxu0 }
 0x7b2   : > { %v12893_v50 = vld [vmem:[#allocation3 + $0x110] sm:$0xff]  ;;  %30613 = vst [vmem:[#allocation23_spill] sm:$0xff] %v28099_v37  ;;  %12766 = vst.msk [vmem:[#allocation3 + $0x130] sm:$0xff] %vm384_vm5, %v12718_v22  ;;  %v12719_v3 = vmul.f32 %v12671_v9, %v30615_v48  ;;  %v12895_v41 = vld [vmem:[#allocation3 + $0x120] sm:$0xff] }
 0x7b3   : > { %v28101_v49 = vld [vmem:[#allocation3 + $0x109] sm:$0xff]  ;;  %v12925_v27 = vpack.c.bf16 %v12893_v50, %v12892_v30  ;;  %12769 = vst.msk [vmem:[#allocation3 + $0x148] sm:$0xff] %vm384_vm5, %v12721_v55  ;;  %v12894_v14 = vld [vmem:[#allocation3 + $0x118] sm:$0xff]  ;;  %v12626_v30 = vadd.f32 %v27726_v24, %v12488_v52  ;;  %v20792_v50 = vpop.f32.mrb[86].mxu0  ;;  %v12676_v7 = vmax.f32 %v12628_v25, 0.0  ;;  %v28149_v63 = vld [vmem:[#allocation3 + $0x121] sm:$0xff] }
 0x7b4   : > { %30614 = vst [vmem:[#allocation21_spill] sm:$0xff] %v28101_v49  ;;  %v28109_v62 = vld [vmem:[#allocation3 + $0x10f] sm:$0xff]  ;;  %v28111_v20 = vld [vmem:[#allocation3 + $0x127] sm:$0xff]  ;;  %v28117_v39 = vld [vmem:[#allocation3 + $0x117] sm:$0xff]  ;;  %v12926_v9 = vpack.c.bf16 %v12895_v41, %v12894_v14  ;;  %v12629_v28 = vadd.f32 %v20792_v50, %v27726_v24  ;;  %v12491_v61 = vpop.f32.mrb[87].mxu0 }
 0x7b5   : > { %v28119_v22 = vld [vmem:[#allocation3 + $0x11f] sm:$0xff]  ;;  %12767 = vst.msk [vmem:[#allocation3 + $0x138] sm:$0xff] %vm384_vm5, %v12719_v3  ;;  %20838 = vmatmul.mubr.msk.bf16.gmra.mrb[76].mxu1 %vm384_vm5, %v12925_v27  ;;  %v28124_v48 = vld [vmem:[#allocation3 + $0x111] sm:$0xff]  ;;  %v12674_v26 = vmax.f32 %v12626_v30, 0.0  ;;  %v12627_v3 = vadd.f32 %v27726_v24, %v12491_v61  ;;  %v30621_v50 = vld [vmem:[#allocation98_spill] sm:$0xff] }
 0x7b6   : > { %30616 = vst [vmem:[#allocation24_spill] sm:$0xff] %v28124_v48  ;;  %v28126_v45 = vld [vmem:[#allocation3 + $0x119] sm:$0xff]  ;;  %20841 = vmatprep.mubr.msk.bf16.mxu1 %vm384_vm5, %v12926_v9  ;;  %v28135_v52 = vld [vmem:[#allocation3 + $0x110] sm:$0xff]  ;;  %v12677_v32 = vmax.f32 %v12629_v28, 0.0  ;;  %v12896_v4 = vld [vmem:[#allocation3 + $0x128] sm:$0xff] }
 0x7b7   : > { %30617 = vst [vmem:[#allocation22_spill] sm:$0xff] %v28126_v45  ;;  %30618 = vst [vmem:[#allocation28_spill] sm:$0xff] %v28135_v52  ;;  %v28137_v14 = vld [vmem:[#allocation3 + $0x118] sm:$0xff]  ;;  %v12722_v55 = vmul.f32 %v12674_v26, %v30621_v50  ;;  %v12675_v30 = vmax.f32 %v12627_v3, 0.0  ;;  %v28143_v61 = vld [vmem:[#allocation3 + $0x108] sm:$0xff] }
 0x7b8   : > { %30619 = vst [vmem:[#allocation25_spill] sm:$0xff] %v28137_v14  ;;  %v30620_v41 = vld [vmem:[#allocation100_spill] sm:$0xff]  ;;  %30622 = vst [vmem:[#allocation29_spill] sm:$0xff] %v28143_v61  ;;  %v28145_v9 = vld [vmem:[#allocation3 + $0x120] sm:$0xff] }
 0x7b9   : > { %v12724_v16 = vmul.f32 %v12676_v7, %v30620_v41  ;;  %30623 = vst [vmem:[#allocation26_spill] sm:$0xff] %v28145_v9  ;;  %v30624_v27 = vld [vmem:[#allocation101_spill] sm:$0xff]  ;;  %v12897_v0 = vld [vmem:[#allocation3 + $0x130] sm:$0xff]  ;;  %30625 = vst [vmem:[#allocation32_spill] sm:$0xff] %v28149_v63  ;;  %v20795_v41 = vpop.f32.mrb[88].mxu0 }
 0x7ba   : > { %v12725_v10 = vmul.f32 %v12677_v32, %v30624_v27  ;;  %v28151_v7 = vld [vmem:[#allocation3 + $0x129] sm:$0xff]  ;;  %12770 = vst.msk [vmem:[#allocation3 + $0x150] sm:$0xff] %vm384_vm5, %v12722_v55  ;;  %v12927_v50 = vpack.c.bf16 %v12897_v0, %v12896_v4  ;;  %v12632_v28 = vadd.f32 %v20795_v41, %v27726_v24  ;;  %v12504_v61 = vpop.f32.mrb[89].mxu0  ;;  %v28199_v45 = vld [vmem:[#allocation3 + $0x141] sm:$0xff] }
 0x7bb   : > { %12772 = vst.msk [vmem:[#allocation3 + $0x160] sm:$0xff] %vm384_vm5, %v12724_v16  ;;  %30626 = vst [vmem:[#allocation124_spill] sm:$0xff] %v28151_v7  ;;  %v30627_v3 = vld [vmem:[#allocation99_spill] sm:$0xff]  ;;  %v12899_v16 = vld [vmem:[#allocation3 + $0x140] sm:$0xff]  ;;  %v12630_v0 = vadd.f32 %v27726_v24, %v12504_v61  ;;  %v20796_v4 = vpop.f32.mrb[90].mxu0 }
 0x7bc   : > { %v12723_v25 = vmul.f32 %v12675_v30, %v30627_v3  ;;  %v28159_v17 = vld [vmem:[#allocation3 + $0x12f] sm:$0xff]  ;;  %v28161_v32 = vld [vmem:[#allocation3 + $0x147] sm:$0xff]  ;;  %12773 = vst.msk [vmem:[#allocation3 + $0x168] sm:$0xff] %vm384_vm5, %v12725_v10  ;;  %v12898_v26 = vld [vmem:[#allocation3 + $0x138] sm:$0xff]  ;;  %v12680_v41 = vmax.f32 %v12632_v28, 0.0  ;;  %v12633_v9 = vadd.f32 %v20796_v4, %v27726_v24  ;;  %v12507_v52 = vpop.f32.mrb[91].mxu0 }
 0x7bd   : > { %v28167_v14 = vld [vmem:[#allocation3 + $0x137] sm:$0xff]  ;;  %v28169_v55 = vld [vmem:[#allocation3 + $0x13f] sm:$0xff]  ;;  %20842 = vmatmul.mubr.msk.bf16.gmra.mrb[80].mxu1 %vm384_vm5, %v12927_v50  ;;  %v12928_v30 = vpack.c.bf16 %v12899_v16, %v12898_v26  ;;  %v12678_v43 = vmax.f32 %v12630_v0, 0.0  ;;  %v30633_v4 = vld [vmem:[#allocation102_spill] sm:$0xff]  ;;  %30637 = vst [vmem:[#allocation7_spill] sm:$0xff] %v28199_v45 }
 0x7be   : > { %12771 = vst.msk [vmem:[#allocation3 + $0x158] sm:$0xff] %vm384_vm5, %v12723_v25  ;;  %v28174_v3 = vld [vmem:[#allocation3 + $0x131] sm:$0xff]  ;;  %v28176_v27 = vld [vmem:[#allocation3 + $0x139] sm:$0xff]  ;;  %v12631_v25 = vadd.f32 %v27726_v24, %v12507_v52  ;;  %v12681_v46 = vmax.f32 %v12633_v9, 0.0  ;;  %v12900_v57 = vld [vmem:[#allocation3 + $0x148] sm:$0xff] }
 0x7bf   : > { %30628 = vst [vmem:[#allocation34_spill] sm:$0xff] %v28174_v3  ;;  %30629 = vst [vmem:[#allocation125_spill] sm:$0xff] %v28176_v27  ;;  %20845 = vmatprep.mubr.msk.bf16.mxu1 %vm384_vm5, %v12928_v30  ;;  %v28185_v61 = vld [vmem:[#allocation3 + $0x130] sm:$0xff]  ;;  %v28187_v26 = vld [vmem:[#allocation3 + $0x138] sm:$0xff]  ;;  %v12726_v10 = vmul.f32 %v12678_v43, %v30633_v4 }
 0x7c0   : > { %30630 = vst [vmem:[#allocation130_spill] sm:$0xff] %v28185_v61  ;;  %30631 = vst [vmem:[#allocation129_spill] sm:$0xff] %v28187_v26  ;;  %v30632_v16 = vld [vmem:[#allocation104_spill] sm:$0xff]  ;;  %v12679_v0 = vmax.f32 %v12631_v25, 0.0  ;;  %v28193_v52 = vld [vmem:[#allocation3 + $0x128] sm:$0xff] }
 0x7c1   : > { %v12728_v56 = vmul.f32 %v12680_v41, %v30632_v16  ;;  %30634 = vst [vmem:[#allocation128_spill] sm:$0xff] %v28193_v52  ;;  %v28195_v30 = vld [vmem:[#allocation3 + $0x140] sm:$0xff]  ;;  %v30636_v50 = vld [vmem:[#allocation106_spill] sm:$0xff]  ;;  %v12901_v63 = vld [vmem:[#allocation3 + $0x150] sm:$0xff]  ;;  %v20799_v16 = vpop.f32.mrb[92].mxu0 }
 0x7c2   : > { %30635 = vst [vmem:[#allocation36_spill] sm:$0xff] %v28195_v30  ;;  %v12729_v7 = vmul.f32 %v12681_v46, %v30636_v50  ;;  %v28201_v41 = vld [vmem:[#allocation3 + $0x149] sm:$0xff]  ;;  %12774 = vst.msk [vmem:[#allocation3 + $0x170] sm:$0xff] %vm384_vm5, %v12726_v10  ;;  %v12929_v4 = vpack.c.bf16 %v12901_v63, %v12900_v57  ;;  %v12636_v9 = vadd.f32 %v20799_v16, %v27726_v24  ;;  %v12520_v61 = vpop.f32.mrb[93].mxu0 }
 0x7c3   : > { %12776 = vst.msk [vmem:[#allocation3 + $0x180] sm:$0xff] %vm384_vm5, %v12728_v56  ;;  %30638 = vst [vmem:[#allocation135_spill] sm:$0xff] %v28201_v41  ;;  %v30639_v25 = vld [vmem:[#allocation103_spill] sm:$0xff]  ;;  %v12903_v56 = vld [vmem:[#allocation3 + $0x160] sm:$0xff]  ;;  %v12634_v57 = vadd.f32 %v27726_v24, %v12520_v61  ;;  %v20800_v63 = vpop.f32.mrb[94].mxu0 }
 0x7c4   : > { %v12727_v28 = vmul.f32 %v12679_v0, %v30639_v25  ;;  %v28209_v27 = vld [vmem:[#allocation3 + $0x14f] sm:$0xff]  ;;  %v28211_v46 = vld [vmem:[#allocation3 + $0x167] sm:$0xff]  ;;  %12777 = vst.msk [vmem:[#allocation3 + $0x188] sm:$0xff] %vm384_vm5, %v12729_v7  ;;  %v12684_v16 = vmax.f32 %v12636_v9, 0.0  ;;  %v12637_v30 = vadd.f32 %v20800_v63, %v27726_v24  ;;  %v12523_v52 = vpop.f32.mrb[95].mxu0  ;;  %v30645_v63 = vld [vmem:[#allocation108_spill] sm:$0xff] }
 0x7c5   : > { %v12902_v43 = vld [vmem:[#allocation3 + $0x158] sm:$0xff]  ;;  %20846 = vmatmul.mubr.msk.bf16.gmra.mrb[84].mxu1 %vm384_vm5, %v12929_v4  ;;  %v12682_v41 = vmax.f32 %v12634_v57, 0.0  ;;  %v28235_v4 = vld [vmem:[#allocation3 + $0x150] sm:$0xff]  ;;  %v12904_v48 = vld [vmem:[#allocation3 + $0x168] sm:$0xff] }
 0x7c6   : > { %v28217_v26 = vld [vmem:[#allocation3 + $0x157] sm:$0xff]  ;;  %v28219_v10 = vld [vmem:[#allocation3 + $0x15f] sm:$0xff]  ;;  %12775 = vst.msk [vmem:[#allocation3 + $0x178] sm:$0xff] %vm384_vm5, %v12727_v28  ;;  %v12930_v0 = vpack.c.bf16 %v12903_v56, %v12902_v43  ;;  %v12635_v28 = vadd.f32 %v27726_v24, %v12523_v52  ;;  %30642 = vst [vmem:[#allocation134_spill] sm:$0xff] %v28235_v4  ;;  %v12685_v3 = vmax.f32 %v12637_v30, 0.0 }
 0x7c7   : > { %v28224_v25 = vld [vmem:[#allocation3 + $0x151] sm:$0xff]  ;;  %v28226_v50 = vld [vmem:[#allocation3 + $0x159] sm:$0xff]  ;;  %v12730_v7 = vmul.f32 %v12682_v41, %v30645_v63  ;;  %v28243_v24 = vld [vmem:[#allocation3 + $0x148] sm:$0xff] }
 0x7c8   : > { %30640 = vst [vmem:[#allocation6_spill] sm:$0xff] %v28224_v25  ;;  %30641 = vst [vmem:[#allocation137_spill] sm:$0xff] %v28226_v50  ;;  %20849 = vmatprep.mubr.msk.bf16.mxu1 %vm384_vm5, %v12930_v0  ;;  %v28237_v43 = vld [vmem:[#allocation3 + $0x158] sm:$0xff]  ;;  %v12683_v57 = vmax.f32 %v12635_v28, 0.0  ;;  %v28245_v52 = vld [vmem:[#allocation3 + $0x160] sm:$0xff] }
 0x7c9   : > { %30643 = vst [vmem:[#allocation140_spill] sm:$0xff] %v28237_v43  ;;  %v30644_v56 = vld [vmem:[#allocation112_spill] sm:$0xff]  ;;  %30646 = vst [vmem:[#allocation136_spill] sm:$0xff] %v28243_v24  ;;  %v30648_v0 = vld [vmem:[#allocation113_spill] sm:$0xff] }
 0x7ca   : > { %v12732_v45 = vmul.f32 %v12684_v16, %v30644_v56  ;;  %30647 = vst [vmem:[#allocation138_spill] sm:$0xff] %v28245_v52  ;;  %v12733_v61 = vmul.f32 %v12685_v3, %v30648_v0  ;;  %v12905_v49 = vld [vmem:[#allocation3 + $0x170] sm:$0xff]  ;;  %v28249_v37 = vld [vmem:[#allocation3 + $0x161] sm:$0xff]  ;;  %12778 = vst.msk [vmem:[#allocation3 + $0x190] sm:$0xff] %vm384_vm5, %v12730_v7 }
 0x7cb   : > { %30649 = vst [vmem:[#allocation139_spill] sm:$0xff] %v28249_v37  ;;  %v28251_v16 = vld [vmem:[#allocation3 + $0x169] sm:$0xff]  ;;  %v30651_v28 = vld [vmem:[#allocation109_spill] sm:$0xff]  ;;  %v12931_v56 = vpack.c.bf16 %v12905_v49, %v12904_v48 }
 0x7cc   : > { %12780 = vst.msk [vmem:[#allocation3 + $0x1a0] sm:$0xff] %vm384_vm5, %v12732_v45  ;;  %30650 = vst [vmem:[#allocation144_spill] sm:$0xff] %v28251_v16  ;;  %v12731_v9 = vmul.f32 %v12683_v57, %v30651_v28  ;;  %v12907_v63 = vld [vmem:[#allocation3 + $0x180] sm:$0xff]  ;;  %v28259_v45 = vld [vmem:[#allocation3 + $0x16f] sm:$0xff] }
 0x7cd   : > { %30652 = vst [vmem:[#allocation141_spill] sm:$0xff] %v28259_v45  ;;  %v28261_v3 = vld [vmem:[#allocation3 + $0x187] sm:$0xff]  ;;  %12781 = vst.msk [vmem:[#allocation3 + $0x1a8] sm:$0xff] %vm384_vm5, %v12733_v61  ;;  %v12906_v30 = vld [vmem:[#allocation3 + $0x178] sm:$0xff]  ;;  %20850 = vmatmul.mubr.msk.bf16.gmra.mrb[88].mxu1 %vm384_vm5, %v12931_v56 }
 0x7ce   : > { %30653 = vst [vmem:[#allocation142_spill] sm:$0xff] %v28261_v3  ;;  %v28263_v0 = vld [vmem:[#allocation3 + $0x168] sm:$0xff]  ;;  %v28268_v4 = vld [vmem:[#allocation3 + $0x177] sm:$0xff]  ;;  %v28270_v41 = vld [vmem:[#allocation3 + $0x17f] sm:$0xff]  ;;  %v12932_v49 = vpack.c.bf16 %v12907_v63, %v12906_v30 }
 0x7cf   : > { %30654 = vst [vmem:[#allocation143_spill] sm:$0xff] %v28263_v0  ;;  %30655 = vst [vmem:[#allocation145_spill] sm:$0xff] %v28270_v41  ;;  %v28274_v48 = vld [vmem:[#allocation3 + $0x171] sm:$0xff]  ;;  %v28276_v7 = vld [vmem:[#allocation3 + $0x179] sm:$0xff]  ;;  %v12838_v0 = vpack.c.bf16 %v27919_v18, %v27917_v60 }
 0x7d0   : > { %12779 = vst.msk [vmem:[#allocation3 + $0x198] sm:$0xff] %vm384_vm5, %v12731_v9  ;;  %v28282_v50 = vld [vmem:[#allocation3 + $0x170] sm:$0xff]  ;;  %v28284_v28 = vld [vmem:[#allocation3 + $0x178] sm:$0xff]  ;;  %v28286_v52 = vld [vmem:[#allocation3 + $0x180] sm:$0xff]  ;;  %20853 = vmatprep.mubr.msk.bf16.mxu1 %vm384_vm5, %v12932_v49 }
 0x7d1   : > { %30656 = vst [vmem:[#allocation56_spill] sm:$0xff] %v28282_v50  ;;  %30657 = vst [vmem:[#allocation65_spill] sm:$0xff] %v28284_v28  ;;  %v12782_v63 = vld [vmem:[#allocation3 + $0x17] sm:$0xff]  ;;  %v12783_v30 = vld [vmem:[#allocation3 + $0x1f] sm:$0xff] }
 0x7d2   : > { %30658 = vst [vmem:[#allocation57_spill] sm:$0xff] %v28286_v52  ;;  %v12908_v61 = vld [vmem:[#allocation3 + $0x188] sm:$0xff]  ;;  %v12909_v43 = vld [vmem:[#allocation3 + $0x190] sm:$0xff]  ;;  %v12830_v24 = vpack.c.bf16 %v12783_v30, %v12782_v63  ;;  %v22901_v52 = vld [vmem:[%s29184_s6 + $0x58] sm:$0xff]  }
 0x7d3   : > { %v28295_v16 = vld [vmem:[#allocation3 + $0x181] sm:$0xff]  ;;  %v28297_v37 = vld [vmem:[#allocation3 + $0x189] sm:$0xff]  ;;  %v12933_v25 = vpack.c.bf16 %v12909_v43, %v12908_v61 }
 0x7d4   : > { %30659 = vst [vmem:[#allocation60_spill] sm:$0xff] %v28295_v16  ;;  %v28299_v53 = vld [vmem:[#allocation3 + $0x188] sm:$0xff]  ;;  %v28301_v56 = vld [vmem:[#allocation3 + $0x190] sm:$0xff]  ;;  %v28309_v57 = vld [vmem:[#allocation3 + $0x1a0] sm:$0xff] }
 0x7d5   : > { %30660 = vst [vmem:[#allocation61_spill] sm:$0xff] %v28299_v53  ;;  %30661 = vst [vmem:[#allocation73_spill] sm:$0xff] %v28301_v56  ;;  %20854 = vmatmul.mubr.msk.bf16.gmra.mrb[92].mxu1 %vm384_vm5, %v12933_v25  ;;  %v28318_v61 = vld [vmem:[#allocation3 + $0x1a1] sm:$0xff]  ;;  %v12832_v53 = vpack.c.bf16 %v27768_v51, %v27766_v29 }
 0x7d6   : > { %30664 = vst [vmem:[#allocation71_spill] sm:$0xff] %v28309_v57  ;;  %30667 = vst [vmem:[#allocation30_spill] sm:$0xff] %v28318_v61  ;;  %20865 = vmatprep.mubr.msk.bf16.mxu1 %vm384_vm5, %v12830_v24  ;;  %v12784_v63 = vld [vmem:[#allocation3 + $0x27] sm:$0xff]  ;;  %v22900_v24 = vld [vmem:[%s29184_s6 + $0x50] sm:$0xff]  }
 0x7d7   : > { %v28305_v9 = vld [vmem:[#allocation3 + $0x197] sm:$0xff]  ;;  %v28307_v50 = vld [vmem:[#allocation3 + $0x19f] sm:$0xff]  ;;  %v12831_v25 = vpack.c.bf16 %v27760_v19, %v12784_v63  ;;  %v22899_v56 = vld [vmem:[%s29184_s6 + $0x48] sm:$0xff]  }
 0x7d8   : > { %30662 = vst [vmem:[#allocation66_spill] sm:$0xff] %v28305_v9  ;;  %30663 = vst [vmem:[#allocation69_spill] sm:$0xff] %v28307_v50  ;;  %v28314_v30 = vld [vmem:[#allocation3 + $0x198] sm:$0xff]  ;;  %v22933_v63 = vld [vmem:[#allocation3 + $0x47] sm:$0xff] }
 0x7d9   : > { %30665 = vst [vmem:[#allocation80_spill] sm:$0xff] %v28314_v30  ;;  %v28316_v43 = vld [vmem:[#allocation3 + $0x199] sm:$0xff]  ;;  %v12833_v28 = vpack.c.bf16 %v27803_v54, %v22933_v63 }
 0x7da   : > { %30666 = vst [vmem:[#allocation74_spill] sm:$0xff] %v28316_v43 }
 0x7dd   : > { %20866 = vmatmul.mubr.msk.bf16.vlgmr.msra.gmra.mrb[48].mxu1 %vm384_vm5, %v12831_v25  ;;  %v12834_v25 = vpack.c.bf16 %v27813_v38, %v27811_v31 }
 0x7de   : > { %20914 = vmatpush3.bf16.msra.mxu1 %v27830_v35  ;;  %20869 = vmatprep.mubr.msk.bf16.mxu1 %vm384_vm5, %v12832_v53  ;;  %v28350_v35 = vld [vmem:[%s29184_s6 + $0x60] sm:$0xff]   ;;  %v12835_v53 = vpack.c.bf16 %v27859_v40, %v27805_v8 }
 0x7df   : > { %20915 = vmatprep.subr.bf16.mxu1 %v22899_v56 }
 0x7e2   : > { %20916 = vmatpush3.bf16.msra.mxu1 %v22899_v56  ;;  %v12836_v56 = vpack.c.bf16 %v27869_v6, %v27867_v15 }
 0x7e3   : > { %20917 = vmatprep.subr.bf16.mxu1 %v22900_v24 }
 0x7e5   : > { %20870 = vmatmul.mubr.msk.bf16.gmra.mrb[52].mxu1 %vm384_vm5, %v12833_v28  ;;  %v28362_v28 = vld [vmem:[%s29185_s7] ss:$0 sm:$0xff] }
 0x7e6   : > { %20873 = vmatprep.mubr.msk.bf16.mxu1 %vm384_vm5, %v12834_v25  ;;  %20918 = vmatpush3.bf16.msra.mxu1 %v22900_v24 }
 0x7e7   : > { %20919 = vmatprep.subr.bf16.mxu1 %v22901_v52 }
 0x7ea   : > { %20920 = vmatpush3.bf16.msra.mxu1 %v22901_v52 }
 0x7eb   : > { %20969 = vmatprep.subr.bf16.mxu1 %v28350_v35 }
 0x7ed   : > { %20874 = vmatmul.mubr.msk.bf16.gmra.mrb[56].mxu1 %vm384_vm5, %v12835_v53  ;;  %v20305_v24 = vpop.f32.mrb[0].mxu1  ;;  %v12837_v53 = vpack.c.bf16 %v27909_v13, %v27861_v11 }
 0x7ee   : > { %20877 = vmatprep.mubr.msk.bf16.mxu1 %vm384_vm5, %v12836_v56  ;;  %v8677_v52 = vadd.f32 %v20305_v24, %v28362_v28  ;;  %v8429_v63 = vpop.f32.mrb[1].mxu1 }
 0x7ef   : > { %v8675_v25 = vadd.f32 %v28362_v28, %v8429_v63  ;;  %v20306_v49 = vpop.f32.mrb[2].mxu1 }
 0x7f0   : > { %v8725_v61 = vmax.f32 %v8677_v52, 0.0  ;;  %v8678_v43 = vadd.f32 %v20306_v49, %v28362_v28  ;;  %v8432_v57 = vpop.f32.mrb[3].mxu1 }
 0x7f1   : > { %v8723_v56 = vmax.f32 %v8675_v25, 0.0  ;;  %v8676_v30 = vadd.f32 %v28362_v28, %v8432_v57 }
 0x7f2   : > { %8773 = vst.msk [vmem:[#allocation4 + $0x10] sm:$0xff] %vm384_vm5, %v8725_v61  ;;  %v8726_v24 = vmax.f32 %v8678_v43, 0.0 }
 0x7f3   : > { %8771 = vst.msk [vmem:[#allocation4] sm:$0xff] %vm384_vm5, %v8723_v56  ;;  %v8724_v52 = vmax.f32 %v8676_v30, 0.0  ;;  %v12839_v30 = vpack.c.bf16 %v27959_v34, %v27911_v36 }
 0x7f4   : > { %8774 = vst.msk [vmem:[#allocation4 + $0x18] sm:$0xff] %vm384_vm5, %v8726_v24  ;;  %v12840_v24 = vpack.c.bf16 %v27969_v42, %v27967_v2 }
 0x7f5   : > { %20878 = vmatmul.mubr.msk.bf16.gmra.mrb[60].mxu1 %vm384_vm5, %v12837_v53  ;;  %8772 = vst.msk [vmem:[#allocation4 + $0x8] sm:$0xff] %vm384_vm5, %v8724_v52  ;;  %v20309_v49 = vpop.f32.mrb[4].mxu1 }
 0x7f6   : > { %20881 = vmatprep.mubr.msk.bf16.mxu1 %vm384_vm5, %v12838_v0  ;;  %v8681_v57 = vadd.f32 %v20309_v49, %v28362_v28  ;;  %v8445_v63 = vpop.f32.mrb[5].mxu1 }
 0x7f7   : > { %v8679_v25 = vadd.f32 %v28362_v28, %v8445_v63  ;;  %v20310_v50 = vpop.f32.mrb[6].mxu1 }
 0x7f8   : > { %v8729_v61 = vmax.f32 %v8681_v57, 0.0  ;;  %v8682_v43 = vadd.f32 %v20310_v50, %v28362_v28  ;;  %v8448_v53 = vpop.f32.mrb[7].mxu1 }
 0x7f9   : > { %v8727_v56 = vmax.f32 %v8679_v25, 0.0  ;;  %v8680_v0 = vadd.f32 %v28362_v28, %v8448_v53 }
 0x7fa   : > { %8777 = vst.msk [vmem:[#allocation4 + $0x30] sm:$0xff] %vm384_vm5, %v8729_v61  ;;  %v8730_v52 = vmax.f32 %v8682_v43, 0.0 }
 0x7fb   : > { %8775 = vst.msk [vmem:[#allocation4 + $0x20] sm:$0xff] %vm384_vm5, %v8727_v56  ;;  %v8728_v49 = vmax.f32 %v8680_v0, 0.0  ;;  %v12841_v56 = vpack.c.bf16 %v28009_v59, %v27961_v12 }
 0x7fc   : > { %8778 = vst.msk [vmem:[#allocation4 + $0x38] sm:$0xff] %vm384_vm5, %v8730_v52  ;;  %v12842_v52 = vpack.c.bf16 %v28019_v47, %v28017_v1 }
 0x7fd   : > { %20882 = vmatmul.mubr.msk.bf16.gmra.mrb[64].mxu1 %vm384_vm5, %v12839_v30  ;;  %8776 = vst.msk [vmem:[#allocation4 + $0x28] sm:$0xff] %vm384_vm5, %v8728_v49  ;;  %v20313_v50 = vpop.f32.mrb[8].mxu1 }
 0x7fe   : > { %20885 = vmatprep.mubr.msk.bf16.mxu1 %vm384_vm5, %v12840_v24  ;;  %v8685_v57 = vadd.f32 %v20313_v50, %v28362_v28  ;;  %v8461_v63 = vpop.f32.mrb[9].mxu1 }
 0x7ff   : > { %v8683_v25 = vadd.f32 %v28362_v28, %v8461_v63  ;;  %v20314_v53 = vpop.f32.mrb[10].mxu1 }
 0x800   : > { %v8733_v61 = vmax.f32 %v8685_v57, 0.0  ;;  %v8686_v43 = vadd.f32 %v20314_v53, %v28362_v28  ;;  %v8464_v30 = vpop.f32.mrb[11].mxu1 }
 0x801   : > { %v8731_v0 = vmax.f32 %v8683_v25, 0.0  ;;  %v8684_v24 = vadd.f32 %v28362_v28, %v8464_v30 }
 0x802   : > { %8781 = vst.msk [vmem:[#allocation4 + $0x50] sm:$0xff] %vm384_vm5, %v8733_v61  ;;  %v8734_v49 = vmax.f32 %v8686_v43, 0.0 }
 0x803   : > { %8779 = vst.msk [vmem:[#allocation4 + $0x40] sm:$0xff] %vm384_vm5, %v8731_v0  ;;  %v8732_v50 = vmax.f32 %v8684_v24, 0.0  ;;  %v12843_v0 = vpack.c.bf16 %v28059_v58, %v28011_v44 }
 0x804   : > { %8782 = vst.msk [vmem:[#allocation4 + $0x58] sm:$0xff] %vm384_vm5, %v8734_v49  ;;  %v12844_v49 = vpack.c.bf16 %v28069_v5, %v28067_v33 }
 0x805   : > { %20886 = vmatmul.mubr.msk.bf16.gmra.mrb[68].mxu1 %vm384_vm5, %v12841_v56  ;;  %8780 = vst.msk [vmem:[#allocation4 + $0x48] sm:$0xff] %vm384_vm5, %v8732_v50  ;;  %v20317_v57 = vpop.f32.mrb[12].mxu1 }
 0x806   : > { %20889 = vmatprep.mubr.msk.bf16.mxu1 %vm384_vm5, %v12842_v52  ;;  %v8689_v63 = vadd.f32 %v20317_v57, %v28362_v28  ;;  %v8477_v25 = vpop.f32.mrb[13].mxu1 }
 0x807   : > { %v8687_v53 = vadd.f32 %v28362_v28, %v8477_v25  ;;  %v20318_v30 = vpop.f32.mrb[14].mxu1 }
 0x808   : > { %v8737_v61 = vmax.f32 %v8689_v63, 0.0  ;;  %v8690_v43 = vadd.f32 %v20318_v30, %v28362_v28  ;;  %v8480_v56 = vpop.f32.mrb[15].mxu1 }
 0x809   : > { %v8735_v24 = vmax.f32 %v8687_v53, 0.0  ;;  %v8688_v52 = vadd.f32 %v28362_v28, %v8480_v56 }
 0x80a   : > { %8785 = vst.msk [vmem:[#allocation4 + $0x70] sm:$0xff] %vm384_vm5, %v8737_v61  ;;  %v8738_v50 = vmax.f32 %v8690_v43, 0.0 }
 0x80b   : > { %8783 = vst.msk [vmem:[#allocation4 + $0x60] sm:$0xff] %vm384_vm5, %v8735_v24  ;;  %v8736_v57 = vmax.f32 %v8688_v52, 0.0  ;;  %v12845_v24 = vpack.c.bf16 %v28109_v62, %v28061_v23 }
 0x80c   : > { %8786 = vst.msk [vmem:[#allocation4 + $0x78] sm:$0xff] %vm384_vm5, %v8738_v50  ;;  %v12846_v50 = vpack.c.bf16 %v28119_v22, %v28117_v39 }
 0x80d   : > { %20890 = vmatmul.mubr.msk.bf16.gmra.mrb[72].mxu1 %vm384_vm5, %v12843_v0  ;;  %8784 = vst.msk [vmem:[#allocation4 + $0x68] sm:$0xff] %vm384_vm5, %v8736_v57  ;;  %v20321_v63 = vpop.f32.mrb[16].mxu1 }
 0x80e   : > { %20893 = vmatprep.mubr.msk.bf16.mxu1 %vm384_vm5, %v12844_v49  ;;  %v8693_v25 = vadd.f32 %v20321_v63, %v28362_v28  ;;  %v8493_v53 = vpop.f32.mrb[17].mxu1 }
 0x80f   : > { %v8691_v30 = vadd.f32 %v28362_v28, %v8493_v53  ;;  %v20322_v56 = vpop.f32.mrb[18].mxu1 }
 0x810   : > { %v8741_v61 = vmax.f32 %v8693_v25, 0.0  ;;  %v8694_v43 = vadd.f32 %v20322_v56, %v28362_v28  ;;  %v8496_v0 = vpop.f32.mrb[19].mxu1 }
 0x811   : > { %v8739_v52 = vmax.f32 %v8691_v30, 0.0  ;;  %v8692_v49 = vadd.f32 %v28362_v28, %v8496_v0 }
 0x812   : > { %8789 = vst.msk [vmem:[#allocation4 + $0x90] sm:$0xff] %vm384_vm5, %v8741_v61  ;;  %v8742_v57 = vmax.f32 %v8694_v43, 0.0 }
 0x813   : > { %8787 = vst.msk [vmem:[#allocation4 + $0x80] sm:$0xff] %vm384_vm5, %v8739_v52  ;;  %v8740_v63 = vmax.f32 %v8692_v49, 0.0  ;;  %v12847_v52 = vpack.c.bf16 %v28159_v17, %v28111_v20 }
 0x814   : > { %8790 = vst.msk [vmem:[#allocation4 + $0x98] sm:$0xff] %vm384_vm5, %v8742_v57  ;;  %v12848_v57 = vpack.c.bf16 %v28169_v55, %v28167_v14 }
 0x815   : > { %20894 = vmatmul.mubr.msk.bf16.gmra.mrb[76].mxu1 %vm384_vm5, %v12845_v24  ;;  %8788 = vst.msk [vmem:[#allocation4 + $0x88] sm:$0xff] %vm384_vm5, %v8740_v63  ;;  %v20325_v25 = vpop.f32.mrb[20].mxu1 }
 0x816   : > { %20897 = vmatprep.mubr.msk.bf16.mxu1 %vm384_vm5, %v12846_v50  ;;  %v8697_v53 = vadd.f32 %v20325_v25, %v28362_v28  ;;  %v8509_v30 = vpop.f32.mrb[21].mxu1 }
 0x817   : > { %v8695_v56 = vadd.f32 %v28362_v28, %v8509_v30  ;;  %v20326_v0 = vpop.f32.mrb[22].mxu1 }
 0x818   : > { %v8745_v61 = vmax.f32 %v8697_v53, 0.0  ;;  %v8698_v43 = vadd.f32 %v20326_v0, %v28362_v28  ;;  %v8512_v24 = vpop.f32.mrb[23].mxu1 }
 0x819   : > { %v8743_v49 = vmax.f32 %v8695_v56, 0.0  ;;  %v8696_v50 = vadd.f32 %v28362_v28, %v8512_v24 }
 0x81a   : > { %8793 = vst.msk [vmem:[#allocation4 + $0xb0] sm:$0xff] %vm384_vm5, %v8745_v61  ;;  %v8746_v63 = vmax.f32 %v8698_v43, 0.0 }
 0x81b   : > { %8791 = vst.msk [vmem:[#allocation4 + $0xa0] sm:$0xff] %vm384_vm5, %v8743_v49  ;;  %v8744_v25 = vmax.f32 %v8696_v50, 0.0  ;;  %v12849_v49 = vpack.c.bf16 %v28209_v27, %v28161_v32 }
 0x81c   : > { %8794 = vst.msk [vmem:[#allocation4 + $0xb8] sm:$0xff] %vm384_vm5, %v8746_v63  ;;  %v12850_v63 = vpack.c.bf16 %v28219_v10, %v28217_v26 }
 0x81d   : > { %20898 = vmatmul.mubr.msk.bf16.gmra.mrb[80].mxu1 %vm384_vm5, %v12847_v52  ;;  %8792 = vst.msk [vmem:[#allocation4 + $0xa8] sm:$0xff] %vm384_vm5, %v8744_v25  ;;  %v20329_v53 = vpop.f32.mrb[24].mxu1 }
 0x81e   : > { %20901 = vmatprep.mubr.msk.bf16.mxu1 %vm384_vm5, %v12848_v57  ;;  %v8701_v30 = vadd.f32 %v20329_v53, %v28362_v28  ;;  %v8525_v56 = vpop.f32.mrb[25].mxu1 }
 0x81f   : > { %v8699_v0 = vadd.f32 %v28362_v28, %v8525_v56  ;;  %v20330_v24 = vpop.f32.mrb[26].mxu1 }
 0x820   : > { %v8749_v61 = vmax.f32 %v8701_v30, 0.0  ;;  %v8702_v43 = vadd.f32 %v20330_v24, %v28362_v28  ;;  %v8528_v52 = vpop.f32.mrb[27].mxu1 }
 0x821   : > { %v8747_v50 = vmax.f32 %v8699_v0, 0.0  ;;  %v8700_v57 = vadd.f32 %v28362_v28, %v8528_v52 }
 0x822   : > { %8797 = vst.msk [vmem:[#allocation4 + $0xd0] sm:$0xff] %vm384_vm5, %v8749_v61  ;;  %v8750_v25 = vmax.f32 %v8702_v43, 0.0 }
 0x823   : > { %8795 = vst.msk [vmem:[#allocation4 + $0xc0] sm:$0xff] %vm384_vm5, %v8747_v50  ;;  %v8748_v53 = vmax.f32 %v8700_v57, 0.0  ;;  %v12851_v50 = vpack.c.bf16 %v28259_v45, %v28211_v46 }
 0x824   : > { %8798 = vst.msk [vmem:[#allocation4 + $0xd8] sm:$0xff] %vm384_vm5, %v8750_v25  ;;  %v12852_v25 = vpack.c.bf16 %v28270_v41, %v28268_v4 }
 0x825   : > { %20902 = vmatmul.mubr.msk.bf16.gmra.mrb[84].mxu1 %vm384_vm5, %v12849_v49  ;;  %8796 = vst.msk [vmem:[#allocation4 + $0xc8] sm:$0xff] %vm384_vm5, %v8748_v53  ;;  %v20333_v30 = vpop.f32.mrb[28].mxu1 }
 0x826   : > { %20905 = vmatprep.mubr.msk.bf16.mxu1 %vm384_vm5, %v12850_v63  ;;  %v8705_v56 = vadd.f32 %v20333_v30, %v28362_v28  ;;  %v8541_v0 = vpop.f32.mrb[29].mxu1 }
 0x827   : > { %v8703_v24 = vadd.f32 %v28362_v28, %v8541_v0  ;;  %v20334_v52 = vpop.f32.mrb[30].mxu1  ;;  %v13585_v0 = vld [vmem:[#allocation3 + $0x21] sm:$0xff] }
 0x828   : > { %v8753_v61 = vmax.f32 %v8705_v56, 0.0  ;;  %v8706_v43 = vadd.f32 %v20334_v52, %v28362_v28  ;;  %v8544_v49 = vpop.f32.mrb[31].mxu1  ;;  %v13584_v56 = vld [vmem:[#allocation3 + $0x19] sm:$0xff]  ;;  %v28476_v52 = vld [vmem:[#allocation3 + $0x18f] sm:$0xff] }
 0x829   : > { %v8751_v57 = vmax.f32 %v8703_v24, 0.0  ;;  %v8704_v63 = vadd.f32 %v28362_v28, %v8544_v49  ;;  %v13632_v41 = vpack.c.bf16 %v13585_v0, %v13584_v56 }
 0x82a   : > { %8801 = vst.msk [vmem:[#allocation4 + $0xf0] sm:$0xff] %vm384_vm5, %v8753_v61  ;;  %v8754_v53 = vmax.f32 %v8706_v43, 0.0 }
 0x82b   : > { %8799 = vst.msk [vmem:[#allocation4 + $0xe0] sm:$0xff] %vm384_vm5, %v8751_v57  ;;  %v8752_v30 = vmax.f32 %v8704_v63, 0.0 }
 0x82c   : > { %8802 = vst.msk [vmem:[#allocation4 + $0xf8] sm:$0xff] %vm384_vm5, %v8754_v53  ;;  %v12853_v53 = vpack.c.bf16 %v28476_v52, %v28261_v3 }
 0x82d   : > { %20906 = vmatmul.mubr.msk.bf16.gmra.mrb[88].mxu1 %vm384_vm5, %v12851_v50  ;;  %8800 = vst.msk [vmem:[#allocation4 + $0xe8] sm:$0xff] %vm384_vm5, %v8752_v30  ;;  %v20337_v24 = vpop.f32.mrb[32].mxu1 }
 0x82e   : > { %20909 = vmatprep.mubr.msk.bf16.mxu1 %vm384_vm5, %v12852_v25  ;;  %v8709_v49 = vadd.f32 %v20337_v24, %v28362_v28  ;;  %v8557_v61 = vpop.f32.mrb[33].mxu1 }
 0x82f   : > { %v8707_v43 = vadd.f32 %v28362_v28, %v8557_v61  ;;  %v20338_v50 = vpop.f32.mrb[34].mxu1 }
 0x830   : > { %v8757_v57 = vmax.f32 %v8709_v49, 0.0  ;;  %v8710_v63 = vadd.f32 %v20338_v50, %v28362_v28  ;;  %v8560_v25 = vpop.f32.mrb[35].mxu1  ;;  %v13586_v50 = vld [vmem:[#allocation3 + $0x29] sm:$0xff] }
 0x831   : > { %v8755_v9 = vmax.f32 %v8707_v43, 0.0  ;;  %v8708_v30 = vadd.f32 %v28362_v28, %v8560_v25 }
 0x832   : > { %8805 = vst.msk [vmem:[#allocation4 + $0x110] sm:$0xff] %vm384_vm5, %v8757_v57  ;;  %v8758_v45 = vmax.f32 %v8710_v63, 0.0 }
 0x833   : > { %8803 = vst.msk [vmem:[#allocation4 + $0x100] sm:$0xff] %vm384_vm5, %v8755_v9  ;;  %v8756_v24 = vmax.f32 %v8708_v30, 0.0  ;;  %v22934_v9 = vld [vmem:[#allocation3 + $0x31] sm:$0xff] }
 0x834   : > { %8806 = vst.msk [vmem:[#allocation4 + $0x118] sm:$0xff] %vm384_vm5, %v8758_v45 }
 0x835   : > { %20910 = vmatmul.mubr.msk.bf16.gmra.mrb[92].mxu1 %vm384_vm5, %v12853_v53  ;;  %8804 = vst.msk [vmem:[#allocation4 + $0x108] sm:$0xff] %vm384_vm5, %v8756_v24  ;;  %v20341_v56 = vpop.f32.mrb[36].mxu1  ;;  %v13633_v53 = vpack.c.bf16 %v22934_v9, %v13586_v50  ;;  %v22935_v24 = vld [vmem:[#allocation3 + $0x39] sm:$0xff] }
 0x836   : > { %20921 = vmatprep.mubr.msk.bf16.mxu1 %vm384_vm5, %v13632_v41  ;;  %v8713_v0 = vadd.f32 %v20341_v56, %v28362_v28  ;;  %v8573_v49 = vpop.f32.mrb[37].mxu1  ;;  %v22903_v41 = vld [vmem:[%s29184_s6 + $0x68] sm:$0xff]  }
 0x837   : > { %v8711_v61 = vadd.f32 %v28362_v28, %v8573_v49  ;;  %v20342_v43 = vpop.f32.mrb[38].mxu1  ;;  %v22936_v56 = vld [vmem:[#allocation3 + $0x41] sm:$0xff] }
 0x838   : > { %v8761_v57 = vmax.f32 %v8713_v0, 0.0  ;;  %v8714_v63 = vadd.f32 %v20342_v43, %v28362_v28  ;;  %v8576_v25 = vpop.f32.mrb[39].mxu1  ;;  %v13634_v3 = vpack.c.bf16 %v22936_v56, %v22935_v24  ;;  %v22905_v24 = vld [vmem:[%s29184_s6 + $0x78] sm:$0xff]  }
 0x839   : > { %v8759_v45 = vmax.f32 %v8711_v61, 0.0  ;;  %v8712_v30 = vadd.f32 %v28362_v28, %v8576_v25  ;;  %v22904_v61 = vld [vmem:[%s29184_s6 + $0x70] sm:$0xff]  }
 0x83a   : > { %8809 = vst.msk [vmem:[#allocation4 + $0x130] sm:$0xff] %vm384_vm5, %v8761_v57  ;;  %v8762_v49 = vmax.f32 %v8714_v63, 0.0 }
 0x83b   : > { %8807 = vst.msk [vmem:[#allocation4 + $0x120] sm:$0xff] %vm384_vm5, %v8759_v45  ;;  %v8760_v0 = vmax.f32 %v8712_v30, 0.0  ;;  %v22938_v45 = vld [vmem:[#allocation3 + $0x51] sm:$0xff] }
 0x83c   : > { %8810 = vst.msk [vmem:[#allocation4 + $0x138] sm:$0xff] %vm384_vm5, %v8762_v49 }
 0x83d   : > { %20922 = vmatmul.mubr.msk.bf16.vlgmr.msra.gmra.mrb[48].mxu1 %vm384_vm5, %v13633_v53  ;;  %8808 = vst.msk [vmem:[#allocation4 + $0x128] sm:$0xff] %vm384_vm5, %v8760_v0  ;;  %v20345_v43 = vpop.f32.mrb[40].mxu1  ;;  %v22937_v53 = vld [vmem:[#allocation3 + $0x49] sm:$0xff]  ;;  %v22939_v0 = vld [vmem:[#allocation3 + $0x59] sm:$0xff] }
 0x83e   : > { %20970 = vmatpush3.bf16.msra.mxu1 %v28350_v35  ;;  %20925 = vmatprep.mubr.msk.bf16.mxu1 %vm384_vm5, %v13634_v3  ;;  %v8717_v50 = vadd.f32 %v20345_v43, %v28362_v28  ;;  %v8589_v57 = vpop.f32.mrb[41].mxu1  ;;  %v13635_v30 = vpack.c.bf16 %v22938_v45, %v22937_v53  ;;  %v22940_v43 = vld [vmem:[#allocation3 + $0x61] sm:$0xff] }
 0x83f   : > { %20971 = vmatprep.subr.bf16.mxu1 %v22903_v41  ;;  %v8715_v63 = vadd.f32 %v28362_v28, %v8589_v57  ;;  %v20346_v25 = vpop.f32.mrb[42].mxu1  ;;  %v13636_v57 = vpack.c.bf16 %v22940_v43, %v22939_v0 }
 0x840   : > { %v8765_v35 = vmax.f32 %v8717_v50, 0.0  ;;  %v8718_v3 = vadd.f32 %v20346_v25, %v28362_v28  ;;  %v8592_v9 = vpop.f32.mrb[43].mxu1 }
 0x841   : > { %v8763_v56 = vmax.f32 %v8715_v63, 0.0  ;;  %v8716_v49 = vadd.f32 %v28362_v28, %v8592_v9  ;;  %v28522_v63 = vld [vmem:[%s29184_s6 + $0x80] sm:$0xff]  }
 0x842   : > { %20972 = vmatpush3.bf16.msra.mxu1 %v22903_v41  ;;  %8813 = vst.msk [vmem:[#allocation4 + $0x150] sm:$0xff] %vm384_vm5, %v8765_v35  ;;  %v8766_v41 = vmax.f32 %v8718_v3, 0.0 }
 0x843   : > { %20973 = vmatprep.subr.bf16.mxu1 %v22904_v61  ;;  %8811 = vst.msk [vmem:[#allocation4 + $0x140] sm:$0xff] %vm384_vm5, %v8763_v56  ;;  %v8764_v50 = vmax.f32 %v8716_v49, 0.0  ;;  %v22941_v56 = vld [vmem:[#allocation3 + $0x69] sm:$0xff]  ;;  %v22942_v49 = vld [vmem:[#allocation3 + $0x71] sm:$0xff] }
 0x844   : > { %8814 = vst.msk [vmem:[#allocation4 + $0x158] sm:$0xff] %vm384_vm5, %v8766_v41  ;;  %v13637_v0 = vpack.c.bf16 %v22942_v49, %v22941_v56  ;;  %v22943_v41 = vld [vmem:[#allocation3 + $0x79] sm:$0xff] }
 0x845   : > { %20926 = vmatmul.mubr.msk.bf16.gmra.mrb[52].mxu1 %vm384_vm5, %v13635_v30  ;;  %8812 = vst.msk [vmem:[#allocation4 + $0x148] sm:$0xff] %vm384_vm5, %v8764_v50  ;;  %v20349_v25 = vpop.f32.mrb[44].mxu1  ;;  %v22944_v50 = vld [vmem:[#allocation3 + $0x81] sm:$0xff] }
 0x846   : > { %20929 = vmatprep.mubr.msk.bf16.mxu1 %vm384_vm5, %v13636_v57  ;;  %20974 = vmatpush3.bf16.msra.mxu1 %v22904_v61  ;;  %v8721_v35 = vadd.f32 %v20349_v25, %v28362_v28  ;;  %v8605_v3 = vpop.f32.mrb[45].mxu1  ;;  %v13638_v25 = vpack.c.bf16 %v22944_v50, %v22943_v41  ;;  %v22953_v41 = vld [vmem:[#allocation3 + $0xc9] sm:$0xff]  ;;  %v22954_v50 = vld [vmem:[#allocation3 + $0xd1] sm:$0xff] }
 0x847   : > { %20975 = vmatprep.subr.bf16.mxu1 %v22905_v24  ;;  %v8719_v9 = vadd.f32 %v28362_v28, %v8605_v3  ;;  %v20350_v53 = vpop.f32.mrb[46].mxu1 }
 0x848   : > { %v8769_v45 = vmax.f32 %v8721_v35, 0.0  ;;  %v8722_v61 = vadd.f32 %v20350_v53, %v28362_v28  ;;  %v8608_v30 = vpop.f32.mrb[47].mxu1  ;;  %v22945_v35 = vld [vmem:[#allocation3 + $0x89] sm:$0xff]  ;;  %v22947_v53 = vld [vmem:[#allocation3 + $0x99] sm:$0xff] }
 0x849   : > { %v8767_v43 = vmax.f32 %v8719_v9, 0.0  ;;  %v8720_v57 = vadd.f32 %v28362_v28, %v8608_v30  ;;  %v22946_v9 = vld [vmem:[#allocation3 + $0x91] sm:$0xff]  ;;  %v22948_v30 = vld [vmem:[#allocation3 + $0xa1] sm:$0xff] }
 0x84a   : > { %20976 = vmatpush3.bf16.msra.mxu1 %v22905_v24  ;;  %8817 = vst.msk [vmem:[#allocation4 + $0x170] sm:$0xff] %vm384_vm5, %v8769_v45  ;;  %v8770_v3 = vmax.f32 %v8722_v61, 0.0  ;;  %v13639_v28 = vpack.c.bf16 %v22946_v9, %v22945_v35  ;;  %v13640_v56 = vpack.c.bf16 %v22948_v30, %v22947_v53  ;;  %v22949_v45 = vld [vmem:[#allocation3 + $0xa9] sm:$0xff]  ;;  %v22950_v61 = vld [vmem:[#allocation3 + $0xb1] sm:$0xff] }
 0x84b   : > { %21025 = vmatprep.subr.bf16.mxu1 %v28522_v63  ;;  %8815 = vst.msk [vmem:[#allocation4 + $0x160] sm:$0xff] %vm384_vm5, %v8767_v43  ;;  %v8768_v24 = vmax.f32 %v8720_v57, 0.0  ;;  %v13641_v49 = vpack.c.bf16 %v22950_v61, %v22949_v45  ;;  %v22952_v43 = vld [vmem:[#allocation3 + $0xc1] sm:$0xff]  ;;  %v22957_v9 = vld [vmem:[#allocation3 + $0xe9] sm:$0xff]  ;;  %v30671_v61 = vld [vmem:[#allocation24_spill] sm:$0xff] }
 0x84c   : > { %8818 = vst.msk [vmem:[#allocation4 + $0x178] sm:$0xff] %vm384_vm5, %v8770_v3  ;;  %v22955_v3 = vld [vmem:[#allocation3 + $0xd9] sm:$0xff]  ;;  %v30668_v53 = vld [vmem:[#allocation15_spill] sm:$0xff] }
 0x84d   : > { %20930 = vmatmul.mubr.msk.bf16.gmra.mrb[56].mxu1 %vm384_vm5, %v13637_v0  ;;  %8816 = vst.msk [vmem:[#allocation4 + $0x168] sm:$0xff] %vm384_vm5, %v8768_v24  ;;  %v22951_v0 = vld [vmem:[#allocation3 + $0xb9] sm:$0xff]  ;;  %v22956_v24 = vld [vmem:[#allocation3 + $0xe1] sm:$0xff]  ;;  %v30669_v30 = vld [vmem:[#allocation23_spill] sm:$0xff] }
 0x84e   : > { %20933 = vmatprep.mubr.msk.bf16.mxu1 %vm384_vm5, %v13638_v25  ;;  %v13642_v57 = vpack.c.bf16 %v22952_v43, %v22951_v0  ;;  %v13643_v25 = vpack.c.bf16 %v22954_v50, %v22953_v41  ;;  %v13644_v35 = vpack.c.bf16 %v22956_v24, %v22955_v3  ;;  %v30670_v45 = vld [vmem:[#allocation21_spill] sm:$0xff]  ;;  %v30672_v0 = vld [vmem:[#allocation22_spill] sm:$0xff]  ;;  %v30673_v43 = vld [vmem:[#allocation32_spill] sm:$0xff] }
 0x84f   : > { %v30674_v41 = vld [vmem:[#allocation124_spill] sm:$0xff]  ;;  %v30675_v50 = vld [vmem:[#allocation34_spill] sm:$0xff]  ;;  %v30676_v3 = vld [vmem:[#allocation125_spill] sm:$0xff] }
 0x850   : > { %v30677_v24 = vld [vmem:[#allocation7_spill] sm:$0xff] }
 0x855   : > { %20934 = vmatmul.mubr.msk.bf16.gmra.mrb[60].mxu1 %vm384_vm5, %v13639_v28  ;;  %v13645_v28 = vpack.c.bf16 %v28074_v21, %v22957_v9  ;;  %v30678_v9 = vld [vmem:[#allocation135_spill] sm:$0xff] }
 0x856   : > { %20937 = vmatprep.mubr.msk.bf16.mxu1 %vm384_vm5, %v13640_v56  ;;  %v13646_v56 = vpack.c.bf16 %v30669_v30, %v30668_v53  ;;  %v30681_v30 = vld [vmem:[#allocation139_spill] sm:$0xff] }
 0x85d   : > { %20938 = vmatmul.mubr.msk.bf16.gmra.mrb[64].mxu1 %vm384_vm5, %v13641_v49  ;;  %v13647_v49 = vpack.c.bf16 %v30671_v61, %v30670_v45  ;;  %v30680_v61 = vld [vmem:[#allocation137_spill] sm:$0xff] }
 0x85e   : > { %20941 = vmatprep.mubr.msk.bf16.mxu1 %vm384_vm5, %v13642_v57  ;;  %v13648_v57 = vpack.c.bf16 %v30673_v43, %v30672_v0  ;;  %v13652_v43 = vpack.c.bf16 %v30681_v30, %v30680_v61 }
 0x865   : > { %20942 = vmatmul.mubr.msk.bf16.gmra.mrb[68].mxu1 %vm384_vm5, %v13643_v25  ;;  %v13649_v25 = vpack.c.bf16 %v30675_v50, %v30674_v41 }
 0x866   : > { %20945 = vmatprep.mubr.msk.bf16.mxu1 %vm384_vm5, %v13644_v35  ;;  %v13650_v35 = vpack.c.bf16 %v30677_v24, %v30676_v3  ;;  %v13654_v24 = vpack.c.bf16 %v28295_v16, %v28276_v7  ;;  %v30684_v16 = vld [vmem:[#allocation85_spill] sm:$0xff] }
 0x86d   : > { %20946 = vmatmul.mubr.msk.bf16.gmra.mrb[72].mxu1 %vm384_vm5, %v13645_v28  ;;  %v30679_v28 = vld [vmem:[#allocation6_spill] sm:$0xff] }
 0x86e   : > { %20949 = vmatprep.mubr.msk.bf16.mxu1 %vm384_vm5, %v13646_v56  ;;  %v13651_v56 = vpack.c.bf16 %v30679_v28, %v30678_v9 }
 0x875   : > { %20950 = vmatmul.mubr.msk.bf16.gmra.mrb[76].mxu1 %vm384_vm5, %v13647_v49  ;;  %v30682_v49 = vld [vmem:[#allocation144_spill] sm:$0xff] }
 0x876   : > { %20953 = vmatprep.mubr.msk.bf16.mxu1 %vm384_vm5, %v13648_v57  ;;  %v13653_v57 = vpack.c.bf16 %v28274_v48, %v30682_v49 }
 0x87d   : > { %20954 = vmatmul.mubr.msk.bf16.gmra.mrb[80].mxu1 %vm384_vm5, %v13649_v25  ;;  %v28571_v25 = vld [vmem:[#allocation3 + $0x191] sm:$0xff] }
 0x87e   : > { %20957 = vmatprep.mubr.msk.bf16.mxu1 %vm384_vm5, %v13650_v35  ;;  %v13655_v35 = vpack.c.bf16 %v28571_v25, %v28297_v37 }
 0x885   : > { %20958 = vmatmul.mubr.msk.bf16.gmra.mrb[84].mxu1 %vm384_vm5, %v13651_v56  ;;  %v22907_v56 = vld [vmem:[%s29184_s6 + $0x88] sm:$0xff]  }
 0x886   : > { %20961 = vmatprep.mubr.msk.bf16.mxu1 %vm384_vm5, %v13652_v43  ;;  %v30683_v43 = vpack.c.bf16 %v27766_v29, %v27760_v19  ;;  %v22908_v19 = vld [vmem:[%s29184_s6 + $0x90] sm:$0xff]   ;;  %v22909_v29 = vld [vmem:[%s29184_s6 + $0x98] sm:$0xff]  }
 0x88d   : > { %20962 = vmatmul.mubr.msk.bf16.gmra.mrb[88].mxu1 %vm384_vm5, %v13653_v57  ;;  %v30685_v57 = vpack.c.bf16 %v30684_v16, %v27768_v51  ;;  %v30687_v51 = vpack.c.bf16 %v27805_v8, %v27813_v38  ;;  %v30689_v16 = vpack.c.bf16 %v27861_v11, %v27869_v6  ;;  %v30690_v8 = vpack.c.bf16 %v27917_v60, %v27909_v13 }
 0x88e   : > { %20965 = vmatprep.mubr.msk.bf16.mxu1 %vm384_vm5, %v13654_v24  ;;  %v30686_v24 = vpack.c.bf16 %v27811_v31, %v27803_v54  ;;  %v30688_v54 = vpack.c.bf16 %v27867_v15, %v27859_v40  ;;  %v22910_v31 = vld [vmem:[%s29184_s6 + $0xa0] sm:$0xff]   ;;  %v30691_v38 = vpack.c.bf16 %v27911_v36, %v27919_v18  ;;  %v30692_v40 = vpack.c.bf16 %v27967_v2, %v27959_v34 }
 0x88f   : > { %v30693_v11 = vpack.c.bf16 %v27961_v12, %v27969_v42  ;;  %v30694_v60 = vpack.c.bf16 %v28017_v1, %v28009_v59  ;;  %v30695_v13 = vpack.c.bf16 %v28011_v44, %v28019_v47  ;;  %v30696_v2 = vpack.c.bf16 %v28067_v33, %v28059_v58  ;;  %v30704_v12 = vld [vmem:[#allocation141_spill] sm:$0xff]  ;;  %v30706_v42 = vld [vmem:[#allocation66_spill] sm:$0xff] }
 0x890   : > { %v30697_v34 = vpack.c.bf16 %v28061_v23, %v28069_v5  ;;  %v30698_v59 = vpack.c.bf16 %v28117_v39, %v28109_v62  ;;  %v30699_v15 = vpack.c.bf16 %v28111_v20, %v28119_v22  ;;  %v30700_v6 = vpack.c.bf16 %v28167_v14, %v28159_v17  ;;  %v30707_v58 = vld [vmem:[#allocation142_spill] sm:$0xff]  ;;  %v30708_v44 = vld [vmem:[#allocation145_spill] sm:$0xff]  ;;  %v14483_v23 = vld [vmem:[#allocation3 + $0x38] sm:$0xff] }
 0x891   : > { %v30701_v36 = vpack.c.bf16 %v28161_v32, %v28169_v55  ;;  %v30702_v62 = vpack.c.bf16 %v28217_v26, %v28209_v27  ;;  %v30703_v18 = vpack.c.bf16 %v28211_v46, %v28219_v10  ;;  %v30705_v17 = vpack.c.bf16 %v28268_v4, %v30704_v12  ;;  %v28680_v33 = vld [vmem:[#allocation3 + $0x1a7] sm:$0xff]  ;;  %v14482_v20 = vld [vmem:[#allocation3 + $0x30] sm:$0xff]  ;;  %v22960_v46 = vld [vmem:[#allocation3 + $0x58] sm:$0xff] }
 0x892   : > { %v14103_v1 = vpack.c.bf16 %v30706_v42, %v28476_v52  ;;  %v30709_v47 = vpack.c.bf16 %v30707_v58, %v30708_v44  ;;  %v30710_v5 = vld [vmem:[#allocation69_spill] sm:$0xff]  ;;  %v14530_v22 = vpack.c.bf16 %v14483_v23, %v14482_v20  ;;  %v22958_v14 = vld [vmem:[#allocation3 + $0x48] sm:$0xff]  ;;  %v22959_v26 = vld [vmem:[#allocation3 + $0x50] sm:$0xff] }
 0x893   : > { %v14104_v39 = vpack.c.bf16 %v28680_v33, %v30710_v5  ;;  %v14484_v27 = vld [vmem:[#allocation3 + $0x40] sm:$0xff]  ;;  %v22911_v55 = vld [vmem:[%s29184_s6 + $0xa8] sm:$0xff]   ;;  %v14532_v10 = vpack.c.bf16 %v22960_v46, %v22959_v26  ;;  %v22912_v4 = vld [vmem:[%s29184_s6 + $0xb0] sm:$0xff]  }
 0x894   : > { %v14531_v32 = vpack.c.bf16 %v22958_v14, %v14484_v27  ;;  %v22961_v52 = vld [vmem:[#allocation3 + $0x60] sm:$0xff]  ;;  %v22978_v12 = vld [vmem:[#allocation3 + $0xe8] sm:$0xff]  ;;  %v22980_v58 = vld [vmem:[#allocation3 + $0xf8] sm:$0xff] }
 0x895   : > { %20966 = vmatmul.mubr.msk.bf16.gmra.mrb[92].mxu1 %vm384_vm5, %v13655_v35  ;;  %v22982_v23 = vld [vmem:[#allocation3 + $0x108] sm:$0xff]  ;;  %v22983_v20 = vld [vmem:[#allocation3 + $0x110] sm:$0xff]  ;;  %v22985_v14 = vld [vmem:[#allocation3 + $0x120] sm:$0xff] }
 0x896   : > { %20977 = vmatprep.mubr.msk.bf16.mxu1 %vm384_vm5, %v30683_v43  ;;  %v22913_v43 = vld [vmem:[%s29184_s6 + $0xb8] sm:$0xff]   ;;  %v22986_v26 = vld [vmem:[#allocation3 + $0x130] sm:$0xff] }
 0x897   : > { %v22987_v46 = vld [vmem:[#allocation3 + $0x138] sm:$0xff] }
 0x89d   : > { %20978 = vmatmul.mubr.msk.bf16.vlgmr.msra.gmra.mrb[48].mxu1 %vm384_vm5, %v30685_v57  ;;  %v22964_v57 = vld [vmem:[#allocation3 + $0x78] sm:$0xff] }
 0x89e   : > { %21026 = vmatpush3.bf16.msra.mxu1 %v28522_v63  ;;  %20981 = vmatprep.mubr.msk.bf16.mxu1 %vm384_vm5, %v30686_v24  ;;  %v22962_v63 = vld [vmem:[#allocation3 + $0x68] sm:$0xff] }
 0x89f   : > { %21027 = vmatprep.subr.bf16.mxu1 %v22907_v56  ;;  %v14533_v35 = vpack.c.bf16 %v22962_v63, %v22961_v52  ;;  %v30713_v52 = vld [vmem:[#allocation136_spill] sm:$0xff] }
 0x8a2   : > { %21028 = vmatpush3.bf16.msra.mxu1 %v22907_v56  ;;  %v22963_v56 = vld [vmem:[#allocation3 + $0x70] sm:$0xff] }
 0x8a3   : > { %21029 = vmatprep.subr.bf16.mxu1 %v22908_v19  ;;  %v14534_v24 = vpack.c.bf16 %v22964_v57, %v22963_v56  ;;  %v30716_v57 = vld [vmem:[#allocation138_spill] sm:$0xff] }
 0x8a5   : > { %20982 = vmatmul.mubr.msk.bf16.gmra.mrb[52].mxu1 %vm384_vm5, %v30687_v51  ;;  %v22966_v51 = vld [vmem:[#allocation3 + $0x88] sm:$0xff] }
 0x8a6   : > { %20985 = vmatprep.mubr.msk.bf16.mxu1 %vm384_vm5, %v30688_v54  ;;  %21030 = vmatpush3.bf16.msra.mxu1 %v22908_v19  ;;  %v28702_v19 = vld [vmem:[%s29184_s6 + $0xc0] sm:$0xff]  }
 0x8a7   : > { %21031 = vmatprep.subr.bf16.mxu1 %v22909_v29 }
 0x8aa   : > { %21032 = vmatpush3.bf16.msra.mxu1 %v22909_v29  ;;  %v22965_v29 = vld [vmem:[#allocation3 + $0x80] sm:$0xff] }
 0x8ab   : > { %21081 = vmatprep.subr.bf16.mxu1 %v22910_v31  ;;  %v14535_v54 = vpack.c.bf16 %v22966_v51, %v22965_v29  ;;  %v30718_v51 = vld [vmem:[#allocation56_spill] sm:$0xff] }
 0x8ad   : > { %20986 = vmatmul.mubr.msk.bf16.gmra.mrb[56].mxu1 %vm384_vm5, %v30689_v16  ;;  %v22968_v16 = vld [vmem:[#allocation3 + $0x98] sm:$0xff] }
 0x8ae   : > { %20989 = vmatprep.mubr.msk.bf16.mxu1 %vm384_vm5, %v30690_v8 }
 0x8b5   : > { %20990 = vmatmul.mubr.msk.bf16.gmra.mrb[60].mxu1 %vm384_vm5, %v30691_v38  ;;  %v22969_v38 = vld [vmem:[#allocation3 + $0xa0] sm:$0xff] }
 0x8b6   : > { %20993 = vmatprep.mubr.msk.bf16.mxu1 %vm384_vm5, %v30692_v40  ;;  %v22970_v40 = vld [vmem:[#allocation3 + $0xa8] sm:$0xff] }
 0x8bd   : > { %20994 = vmatmul.mubr.msk.bf16.gmra.mrb[64].mxu1 %vm384_vm5, %v30693_v11  ;;  %v14537_v11 = vpack.c.bf16 %v22970_v40, %v22969_v38  ;;  %v30722_v40 = vld [vmem:[#allocation73_spill] sm:$0xff] }
 0x8be   : > { %20997 = vmatprep.mubr.msk.bf16.mxu1 %vm384_vm5, %v30694_v60  ;;  %v22971_v60 = vld [vmem:[#allocation3 + $0xb0] sm:$0xff] }
 0x8c5   : > { %20998 = vmatmul.mubr.msk.bf16.gmra.mrb[68].mxu1 %vm384_vm5, %v30695_v13  ;;  %v22972_v13 = vld [vmem:[#allocation3 + $0xb8] sm:$0xff] }
 0x8c6   : > { %21001 = vmatprep.mubr.msk.bf16.mxu1 %vm384_vm5, %v30696_v2  ;;  %v14538_v2 = vpack.c.bf16 %v22972_v13, %v22971_v60  ;;  %v28736_v13 = vld [vmem:[#allocation3 + $0x1a8] sm:$0xff] }
 0x8cd   : > { %21002 = vmatmul.mubr.msk.bf16.gmra.mrb[72].mxu1 %vm384_vm5, %v30697_v34  ;;  %v22973_v34 = vld [vmem:[#allocation3 + $0xc0] sm:$0xff] }
 0x8ce   : > { %21005 = vmatprep.mubr.msk.bf16.mxu1 %vm384_vm5, %v30698_v59  ;;  %v22974_v59 = vld [vmem:[#allocation3 + $0xc8] sm:$0xff] }
 0x8d5   : > { %21006 = vmatmul.mubr.msk.bf16.gmra.mrb[76].mxu1 %vm384_vm5, %v30699_v15  ;;  %v14539_v15 = vpack.c.bf16 %v22974_v59, %v22973_v34  ;;  %v30725_v59 = vld [vmem:[#allocation89_spill] sm:$0xff] }
 0x8d6   : > { %21009 = vmatprep.mubr.msk.bf16.mxu1 %vm384_vm5, %v30700_v6  ;;  %v22975_v6 = vld [vmem:[#allocation3 + $0xd0] sm:$0xff] }
 0x8dd   : > { %21010 = vmatmul.mubr.msk.bf16.gmra.mrb[80].mxu1 %vm384_vm5, %v30701_v36  ;;  %v22976_v36 = vld [vmem:[#allocation3 + $0xd8] sm:$0xff] }
 0x8de   : > { %21013 = vmatprep.mubr.msk.bf16.mxu1 %vm384_vm5, %v30702_v62  ;;  %v14540_v62 = vpack.c.bf16 %v22976_v36, %v22975_v6  ;;  %v22915_v36 = vld [vmem:[%s29184_s6 + $0xc8] sm:$0xff]  }
 0x8e5   : > { %21014 = vmatmul.mubr.msk.bf16.gmra.mrb[84].mxu1 %vm384_vm5, %v30703_v18  ;;  %v22977_v18 = vld [vmem:[#allocation3 + $0xe0] sm:$0xff] }
 0x8e6   : > { %21017 = vmatprep.mubr.msk.bf16.mxu1 %vm384_vm5, %v30705_v17  ;;  %v14541_v17 = vpack.c.bf16 %v22978_v12, %v22977_v18  ;;  %v30729_v18 = vld [vmem:[#allocation91_spill] sm:$0xff] }
 0x8ed   : > { %21018 = vmatmul.mubr.msk.bf16.gmra.mrb[88].mxu1 %vm384_vm5, %v30709_v47  ;;  %v22981_v47 = vld [vmem:[#allocation3 + $0x100] sm:$0xff] }
 0x8ee   : > { %21021 = vmatprep.mubr.msk.bf16.mxu1 %vm384_vm5, %v14103_v1  ;;  %v22979_v1 = vld [vmem:[#allocation3 + $0xf0] sm:$0xff] }
 0x8ef   : > { %v14542_v44 = vpack.c.bf16 %v22980_v58, %v22979_v1  ;;  %v30732_v1 = vld [vmem:[#allocation93_spill] sm:$0xff] }
 0x8f5   : > { %21022 = vmatmul.mubr.msk.bf16.gmra.mrb[92].mxu1 %vm384_vm5, %v14104_v39  ;;  %v14543_v39 = vpack.c.bf16 %v22982_v23, %v22981_v47  ;;  %v22917_v47 = vld [vmem:[%s29184_s6 + $0xd8] sm:$0xff]   ;;  %v30734_v23 = vld [vmem:[#allocation13_spill] sm:$0xff] }
 0x8f6   : > { %21033 = vmatprep.mubr.msk.bf16.mxu1 %vm384_vm5, %v14530_v22  ;;  %v22984_v22 = vld [vmem:[#allocation3 + $0x118] sm:$0xff] }
 0x8f7   : > { %v14544_v27 = vpack.c.bf16 %v22984_v22, %v22983_v20  ;;  %v30738_v22 = vld [vmem:[#allocation14_spill] sm:$0xff] }
 0x8fd   : > { %21034 = vmatmul.mubr.msk.bf16.vlgmr.msra.gmra.mrb[48].mxu1 %vm384_vm5, %v14531_v32  ;;  %v30711_v32 = vld [vmem:[#allocation128_spill] sm:$0xff] }
 0x8fe   : > { %21082 = vmatpush3.bf16.msra.mxu1 %v22910_v31  ;;  %21037 = vmatprep.mubr.msk.bf16.mxu1 %vm384_vm5, %v14532_v10  ;;  %v22967_v31 = vld [vmem:[#allocation3 + $0x90] sm:$0xff]  ;;  %v14546_v10 = vpack.c.bf16 %v22987_v46, %v22986_v26  ;;  %v30741_v26 = vld [vmem:[#allocation49_spill] sm:$0xff] }
 0x8ff   : > { %21083 = vmatprep.subr.bf16.mxu1 %v22911_v55  ;;  %v14536_v8 = vpack.c.bf16 %v22968_v16, %v22967_v31  ;;  %v30720_v16 = vld [vmem:[#allocation57_spill] sm:$0xff] }
 0x902   : > { %21084 = vmatpush3.bf16.msra.mxu1 %v22911_v55  ;;  %v14545_v55 = vpack.c.bf16 %v30711_v32, %v22985_v14  ;;  %v22918_v14 = vld [vmem:[%s29184_s6 + $0xe0] sm:$0xff]  }
 0x903   : > { %21085 = vmatprep.subr.bf16.mxu1 %v22912_v4 }
 0x905   : > { %21038 = vmatmul.mubr.msk.bf16.gmra.mrb[52].mxu1 %vm384_vm5, %v14533_v35  ;;  %v30714_v35 = vld [vmem:[#allocation134_spill] sm:$0xff] }
 0x906   : > { %21041 = vmatprep.mubr.msk.bf16.mxu1 %vm384_vm5, %v14534_v24  ;;  %21086 = vmatpush3.bf16.msra.mxu1 %v22912_v4  ;;  %v30712_v4 = vld [vmem:[#allocation36_spill] sm:$0xff]  ;;  %v30717_v24 = vld [vmem:[#allocation143_spill] sm:$0xff] }
 0x907   : > { %21087 = vmatprep.subr.bf16.mxu1 %v22913_v43  ;;  %v14547_v63 = vpack.c.bf16 %v30713_v52, %v30712_v4  ;;  %v14549_v29 = vpack.c.bf16 %v30717_v24, %v30716_v57 }
 0x90a   : > { %21088 = vmatpush3.bf16.msra.mxu1 %v22913_v43  ;;  %v30715_v43 = vld [vmem:[#allocation140_spill] sm:$0xff] }
 0x90b   : > { %21137 = vmatprep.subr.bf16.mxu1 %v28702_v19  ;;  %v14548_v56 = vpack.c.bf16 %v30715_v43, %v30714_v35 }
 0x90d   : > { %21042 = vmatmul.mubr.msk.bf16.gmra.mrb[56].mxu1 %vm384_vm5, %v14535_v54  ;;  %v30719_v54 = vld [vmem:[#allocation65_spill] sm:$0xff] }
 0x90e   : > { %21045 = vmatprep.mubr.msk.bf16.mxu1 %vm384_vm5, %v14536_v8  ;;  %v14550_v31 = vpack.c.bf16 %v30719_v54, %v30718_v51  ;;  %v30721_v8 = vld [vmem:[#allocation61_spill] sm:$0xff] }
 0x90f   : > { %v14551_v38 = vpack.c.bf16 %v30721_v8, %v30720_v16 }
 0x915   : > { %21046 = vmatmul.mubr.msk.bf16.gmra.mrb[60].mxu1 %vm384_vm5, %v14537_v11  ;;  %v30723_v11 = vld [vmem:[#allocation80_spill] sm:$0xff] }
 0x916   : > { %21049 = vmatprep.mubr.msk.bf16.mxu1 %vm384_vm5, %v14538_v2  ;;  %v14552_v60 = vpack.c.bf16 %v30723_v11, %v30722_v40  ;;  %v30724_v2 = vld [vmem:[#allocation71_spill] sm:$0xff] }
 0x917   : > { %v14553_v34 = vpack.c.bf16 %v28736_v13, %v30724_v2 }
 0x91d   : > { %21050 = vmatmul.mubr.msk.bf16.gmra.mrb[64].mxu1 %vm384_vm5, %v14539_v15  ;;  %v30726_v15 = vld [vmem:[#allocation86_spill] sm:$0xff] }
 0x91e   : > { %21053 = vmatprep.mubr.msk.bf16.mxu1 %vm384_vm5, %v14540_v62  ;;  %v30727_v6 = vpack.c.bf16 %v30725_v59, %v30726_v15  ;;  %v30728_v62 = vld [vmem:[#allocation95_spill] sm:$0xff] }
 0x91f   : > { %v30730_v12 = vpack.c.bf16 %v30728_v62, %v30729_v18  ;;  %v30752_v15 = vld [vmem:[#allocation123_spill] sm:$0xff]  ;;  %v30756_v18 = vld [vmem:[#allocation45_spill] sm:$0xff] }
 0x920   : > { %v30755_v62 = vld [vmem:[#allocation47_spill] sm:$0xff] }
 0x925   : > { %21054 = vmatmul.mubr.msk.bf16.gmra.mrb[68].mxu1 %vm384_vm5, %v14541_v17  ;;  %v30731_v17 = vld [vmem:[#allocation97_spill] sm:$0xff] }
 0x926   : > { %21057 = vmatprep.mubr.msk.bf16.mxu1 %vm384_vm5, %v14542_v44  ;;  %v30733_v58 = vpack.c.bf16 %v30731_v17, %v30732_v1  ;;  %v22916_v44 = vld [vmem:[%s29184_s6 + $0xd0] sm:$0xff]   ;;  %v30758_v17 = vld [vmem:[#allocation16_spill] sm:$0xff] }
 0x927   : > { %v30759_v1 = vld [vmem:[#allocation132_spill] sm:$0xff] }
 0x92d   : > { %21058 = vmatmul.mubr.msk.bf16.gmra.mrb[72].mxu1 %vm384_vm5, %v14543_v39  ;;  %v30735_v39 = vld [vmem:[#allocation12_spill] sm:$0xff] }
 0x92e   : > { %21061 = vmatprep.mubr.msk.bf16.mxu1 %vm384_vm5, %v14544_v27  ;;  %v30736_v20 = vpack.c.bf16 %v30734_v23, %v30735_v39  ;;  %v30764_v39 = vld [vmem:[#allocation24_spill] sm:$0xff] }
 0x935   : > { %21062 = vmatmul.mubr.msk.bf16.gmra.mrb[76].mxu1 %vm384_vm5, %v14545_v55  ;;  %v30740_v55 = vld [vmem:[#allocation35_spill] sm:$0xff] }
 0x936   : > { %21065 = vmatprep.mubr.msk.bf16.mxu1 %vm384_vm5, %v14546_v10  ;;  %v30742_v46 = vpack.c.bf16 %v30740_v55, %v30741_v26  ;;  %v30743_v10 = vld [vmem:[#allocation146_spill] sm:$0xff] }
 0x937   : > { %v15380_v26 = vld [vmem:[#allocation3 + $0x47] sm:$0xff] }
 0x93d   : > { %21066 = vmatmul.mubr.msk.bf16.gmra.mrb[80].mxu1 %vm384_vm5, %v14547_v63  ;;  %v30744_v63 = vld [vmem:[#allocation39_spill] sm:$0xff] }
 0x93e   : > { %21069 = vmatprep.mubr.msk.bf16.mxu1 %vm384_vm5, %v14548_v56  ;;  %v30745_v56 = vpack.c.bf16 %v30743_v10, %v30744_v63  ;;  %v15384_v10 = vld [vmem:[#allocation3 + $0x67] sm:$0xff] }
 0x93f   : > { %v22919_v63 = vld [vmem:[%s29184_s6 + $0xe8] sm:$0xff]  }
 0x945   : > { %21070 = vmatmul.mubr.msk.bf16.gmra.mrb[84].mxu1 %vm384_vm5, %v14549_v29  ;;  %v30746_v29 = vld [vmem:[#allocation115_spill] sm:$0xff] }
 0x946   : > { %21073 = vmatprep.mubr.msk.bf16.mxu1 %vm384_vm5, %v14550_v31  ;;  %v30747_v31 = vld [vmem:[#allocation114_spill] sm:$0xff] }
 0x94d   : > { %21074 = vmatmul.mubr.msk.bf16.gmra.mrb[88].mxu1 %vm384_vm5, %v14551_v38  ;;  %v30748_v38 = vpack.c.bf16 %v30746_v29, %v30747_v31  ;;  %v22920_v29 = vld [vmem:[%s29184_s6 + $0xf0] sm:$0xff]  }
 0x94e   : > { %21077 = vmatprep.mubr.msk.bf16.mxu1 %vm384_vm5, %v14552_v60  ;;  %v30749_v60 = vld [vmem:[#allocation117_spill] sm:$0xff]  ;;  %v15386_v31 = vld [vmem:[#allocation3 + $0x77] sm:$0xff] }
 0x955   : > { %21078 = vmatmul.mubr.msk.bf16.gmra.mrb[92].mxu1 %vm384_vm5, %v14553_v34  ;;  %v30750_v34 = vld [vmem:[#allocation116_spill] sm:$0xff] }
 0x956   : > { %21089 = vmatprep.mubr.msk.bf16.mxu1 %vm384_vm5, %v30727_v6  ;;  %v30751_v59 = vpack.c.bf16 %v30749_v60, %v30750_v34  ;;  %v30753_v6 = vld [vmem:[#allocation122_spill] sm:$0xff] }
 0x957   : > { %v15389_v60 = vld [vmem:[#allocation3 + $0x8f] sm:$0xff] }
 0x95d   : > { %21090 = vmatmul.mubr.msk.bf16.vlgmr.msra.gmra.mrb[48].mxu1 %vm384_vm5, %v30730_v12  ;;  %v30757_v12 = vpack.c.bf16 %v30755_v62, %v30756_v18  ;;  %v15391_v62 = vld [vmem:[#allocation3 + $0x9f] sm:$0xff]  ;;  %v15393_v18 = vld [vmem:[#allocation3 + $0xaf] sm:$0xff] }
 0x95e   : > { %21138 = vmatpush3.bf16.msra.mxu1 %v28702_v19  ;;  %21093 = vmatprep.mubr.msk.bf16.mxu1 %vm384_vm5, %v30733_v58  ;;  %v30737_v19 = vld [vmem:[#allocation40_spill] sm:$0xff]  ;;  %v30760_v58 = vpack.c.bf16 %v30758_v17, %v30759_v1  ;;  %v15392_v17 = vld [vmem:[#allocation3 + $0xa7] sm:$0xff] }
 0x95f   : > { %21139 = vmatprep.subr.bf16.mxu1 %v22915_v36  ;;  %v30739_v27 = vpack.c.bf16 %v30737_v19, %v30738_v22  ;;  %v30766_v19 = vld [vmem:[#allocation32_spill] sm:$0xff]  ;;  %v15434_v1 = vpack.c.bf16 %v15393_v18, %v15392_v17  ;;  %v15421_v18 = vld [vmem:[#allocation3 + $0x18f] sm:$0xff]  ;;  %v15420_v17 = vld [vmem:[#allocation3 + $0x187] sm:$0xff] }
 0x960   : > { %v30767_v22 = vpack.c.bf16 %v30674_v41, %v30766_v19  ;;  %v30772_v41 = vpack.c.bf16 %v30682_v49, %v30681_v30  ;;  %v15381_v30 = vld [vmem:[#allocation3 + $0x4f] sm:$0xff]  ;;  %v15398_v19 = vld [vmem:[#allocation3 + $0xd7] sm:$0xff] }
 0x962   : > { %21140 = vmatpush3.bf16.msra.mxu1 %v22915_v36  ;;  %v30754_v36 = vpack.c.bf16 %v30752_v15, %v30753_v6  ;;  %v22921_v15 = vld [vmem:[%s29184_s6 + $0xf8] sm:$0xff]  }
 0x963   : > { %21141 = vmatprep.subr.bf16.mxu1 %v22916_v44 }
 0x965   : > { %21094 = vmatmul.mubr.msk.bf16.gmra.mrb[52].mxu1 %vm384_vm5, %v30736_v20  ;;  %v30765_v20 = vpack.c.bf16 %v30672_v0, %v30764_v39  ;;  %v30771_v0 = vpack.c.bf16 %v30680_v61, %v30679_v28  ;;  %v28845_v61 = vld [vmem:[#allocation3 + $0x1a9] sm:$0xff] }
 0x966   : > { %21097 = vmatprep.mubr.msk.bf16.mxu1 %vm384_vm5, %v30739_v27  ;;  %21142 = vmatpush3.bf16.msra.mxu1 %v22916_v44  ;;  %v30761_v44 = vpack.c.bf16 %v30668_v53, %v28074_v21  ;;  %v30768_v21 = vpack.c.bf16 %v30676_v3, %v30675_v50  ;;  %v30769_v53 = vld [vmem:[#allocation7_spill] sm:$0xff]  ;;  %v30773_v50 = vpack.c.bf16 %v28276_v7, %v28274_v48  ;;  %v30774_v3 = vld [vmem:[#allocation74_spill] sm:$0xff]  ;;  %v30775_v27 = vld [vmem:[#allocation60_spill] sm:$0xff] }
 0x967   : > { %21143 = vmatprep.subr.bf16.mxu1 %v22917_v47  ;;  %v30776_v55 = vpack.c.bf16 %v28297_v37, %v30775_v27  ;;  %v30777_v28 = vld [vmem:[#allocation30_spill] sm:$0xff]  ;;  %v15428_v48 = vpack.c.bf16 %v15381_v30, %v15380_v26  ;;  %v15382_v7 = vld [vmem:[#allocation3 + $0x57] sm:$0xff]  ;;  %v15407_v26 = vld [vmem:[#allocation3 + $0x11f] sm:$0xff] }
 0x968   : > { %v15002_v49 = vpack.c.bf16 %v28845_v61, %v30777_v28  ;;  %v15396_v39 = vld [vmem:[#allocation3 + $0xc7] sm:$0xff] }
 0x96a   : > { %21144 = vmatpush3.bf16.msra.mxu1 %v22917_v47  ;;  %v30762_v47 = vld [vmem:[#allocation23_spill] sm:$0xff] }
 0x96b   : > { %21193 = vmatprep.subr.bf16.mxu1 %v22918_v14  ;;  %v30763_v23 = vpack.c.bf16 %v30670_v45, %v30762_v47  ;;  %v30770_v45 = vpack.c.bf16 %v30678_v9, %v30769_v53  ;;  %v15001_v9 = vpack.c.bf16 %v30774_v3, %v28571_v25  ;;  %v15383_v25 = vld [vmem:[#allocation3 + $0x5f] sm:$0xff]  ;;  %v15397_v47 = vld [vmem:[#allocation3 + $0xcf] sm:$0xff] }
 0x96c   : > { %v15429_v37 = vpack.c.bf16 %v15383_v25, %v15382_v7  ;;  %v15408_v25 = vld [vmem:[#allocation3 + $0x127] sm:$0xff] }
 0x96d   : > { %21098 = vmatmul.mubr.msk.bf16.gmra.mrb[56].mxu1 %vm384_vm5, %v30742_v46  ;;  %v15385_v46 = vld [vmem:[#allocation3 + $0x6f] sm:$0xff] }
 0x96e   : > { %21101 = vmatprep.mubr.msk.bf16.mxu1 %vm384_vm5, %v30745_v56  ;;  %v15430_v56 = vpack.c.bf16 %v15385_v46, %v15384_v10  ;;  %v15411_v10 = vld [vmem:[#allocation3 + $0x13f] sm:$0xff] }
 0x975   : > { %21102 = vmatmul.mubr.msk.bf16.gmra.mrb[60].mxu1 %vm384_vm5, %v30748_v38  ;;  %v15387_v38 = vld [vmem:[#allocation3 + $0x7f] sm:$0xff] }
 0x976   : > { %21105 = vmatprep.mubr.msk.bf16.mxu1 %vm384_vm5, %v30751_v59  ;;  %v15431_v34 = vpack.c.bf16 %v15387_v38, %v15386_v31  ;;  %v15388_v59 = vld [vmem:[#allocation3 + $0x87] sm:$0xff]  ;;  %v15414_v38 = vld [vmem:[#allocation3 + $0x157] sm:$0xff] }
 0x977   : > { %v15432_v6 = vpack.c.bf16 %v15389_v60, %v15388_v59  ;;  %v15415_v60 = vld [vmem:[#allocation3 + $0x15f] sm:$0xff] }
 0x978   : > { %v15445_v59 = vpack.c.bf16 %v15415_v60, %v15414_v38  ;;  %v30804_v38 = vld [vmem:[#allocation131_spill] sm:$0xff] }
 0x97d   : > { %21106 = vmatmul.mubr.msk.bf16.gmra.mrb[64].mxu1 %vm384_vm5, %v30754_v36  ;;  %v15390_v36 = vld [vmem:[#allocation3 + $0x97] sm:$0xff] }
 0x97e   : > { %21109 = vmatprep.mubr.msk.bf16.mxu1 %vm384_vm5, %v30757_v12  ;;  %v15433_v12 = vpack.c.bf16 %v15391_v62, %v15390_v36  ;;  %v15418_v36 = vld [vmem:[#allocation3 + $0x177] sm:$0xff]  ;;  %v15419_v62 = vld [vmem:[#allocation3 + $0x17f] sm:$0xff] }
 0x985   : > { %21110 = vmatmul.mubr.msk.bf16.gmra.mrb[68].mxu1 %vm384_vm5, %v30760_v58  ;;  %v15394_v58 = vld [vmem:[#allocation3 + $0xb7] sm:$0xff] }
 0x986   : > { %21113 = vmatprep.mubr.msk.bf16.mxu1 %vm384_vm5, %v30761_v44  ;;  %v15395_v44 = vld [vmem:[#allocation3 + $0xbf] sm:$0xff] }
 0x98d   : > { %21114 = vmatmul.mubr.msk.bf16.gmra.mrb[72].mxu1 %vm384_vm5, %v30763_v23  ;;  %v15435_v23 = vpack.c.bf16 %v15395_v44, %v15394_v58  ;;  %v15425_v58 = vld [vmem:[#allocation3 + $0x1af] sm:$0xff] }
 0x98e   : > { %21117 = vmatprep.mubr.msk.bf16.mxu1 %vm384_vm5, %v30765_v20  ;;  %v15436_v20 = vpack.c.bf16 %v15397_v47, %v15396_v39  ;;  %v15450_v44 = vpack.c.bf16 %v15425_v58, %v28680_v33  ;;  %v30778_v47 = vpack.c.bf16 %v30710_v5, %v30706_v42  ;;  %v15427_v39 = vld [vmem:[#allocation3 + $0x1bf] sm:$0xff]  ;;  %v22923_v33 = vld [vmem:[%s29184_s6 + $0x108] sm:$0xff]  }
 0x98f   : > { %v30783_v42 = vld [vmem:[#allocation9_spill] sm:$0xff] }
 0x990   : > { %v30816_v58 = vld [vmem:[#allocation29_spill] sm:$0xff] }
 0x995   : > { %21118 = vmatmul.mubr.msk.bf16.gmra.mrb[76].mxu1 %vm384_vm5, %v30767_v22  ;;  %v15399_v22 = vld [vmem:[#allocation3 + $0xdf] sm:$0xff] }
 0x996   : > { %21121 = vmatprep.mubr.msk.bf16.mxu1 %vm384_vm5, %v30768_v21  ;;  %v15401_v21 = vld [vmem:[#allocation3 + $0xef] sm:$0xff]  ;;  %v15437_v53 = vpack.c.bf16 %v15399_v22, %v15398_v19  ;;  %v30779_v19 = vld [vmem:[#allocation8_spill] sm:$0xff] }
 0x997   : > { %v30780_v22 = vld [vmem:[#allocation10_spill] sm:$0xff] }
 0x99d   : > { %21122 = vmatmul.mubr.msk.bf16.gmra.mrb[80].mxu1 %vm384_vm5, %v30770_v45  ;;  %v15400_v45 = vld [vmem:[#allocation3 + $0xe7] sm:$0xff] }
 0x99e   : > { %21125 = vmatprep.mubr.msk.bf16.mxu1 %vm384_vm5, %v30771_v0  ;;  %v15438_v0 = vpack.c.bf16 %v15401_v21, %v15400_v45  ;;  %v30781_v21 = vpack.c.bf16 %v30779_v19, %v30780_v22  ;;  %v30785_v45 = vld [vmem:[#allocation41_spill] sm:$0xff] }
 0x99f   : > { %v30823_v22 = vld [vmem:[#allocation129_spill] sm:$0xff] }
 0x9a5   : > { %21126 = vmatmul.mubr.msk.bf16.gmra.mrb[84].mxu1 %vm384_vm5, %v30772_v41  ;;  %v15402_v41 = vld [vmem:[#allocation3 + $0xf7] sm:$0xff] }
 0x9a6   : > { %21129 = vmatprep.mubr.msk.bf16.mxu1 %vm384_vm5, %v30773_v50  ;;  %v15403_v50 = vld [vmem:[#allocation3 + $0xff] sm:$0xff] }
 0x9a7   : > { %v15439_v27 = vpack.c.bf16 %v15403_v50, %v15402_v41  ;;  %v22924_v50 = vld [vmem:[%s29184_s6 + $0x110] sm:$0xff]  }
 0x9ad   : > { %21130 = vmatmul.mubr.msk.bf16.gmra.mrb[88].mxu1 %vm384_vm5, %v30776_v55  ;;  %v15404_v55 = vld [vmem:[#allocation3 + $0x107] sm:$0xff] }
 0x9ae   : > { %21133 = vmatprep.mubr.msk.bf16.mxu1 %vm384_vm5, %v15001_v9  ;;  %v15405_v9 = vld [vmem:[#allocation3 + $0x10f] sm:$0xff] }
 0x9af   : > { %v15440_v30 = vpack.c.bf16 %v15405_v9, %v15404_v55  ;;  %v22925_v9 = vld [vmem:[%s29184_s6 + $0x118] sm:$0xff]   ;;  %v30789_v55 = vld [vmem:[#allocation42_spill] sm:$0xff] }
 0x9b5   : > { %21134 = vmatmul.mubr.msk.bf16.gmra.mrb[92].mxu1 %vm384_vm5, %v15002_v49  ;;  %v15406_v49 = vld [vmem:[#allocation3 + $0x117] sm:$0xff] }
 0x9b6   : > { %21145 = vmatprep.mubr.msk.bf16.mxu1 %vm384_vm5, %v15428_v48  ;;  %v15409_v48 = vld [vmem:[#allocation3 + $0x12f] sm:$0xff]  ;;  %v15441_v7 = vpack.c.bf16 %v15407_v26, %v15406_v49 }
 0x9b7   : > { %v15442_v46 = vpack.c.bf16 %v15409_v48, %v15408_v25  ;;  %v30792_v49 = vld [vmem:[#allocation110_spill] sm:$0xff]  ;;  %v30794_v48 = vld [vmem:[#allocation111_spill] sm:$0xff] }
 0x9bd   : > { %21146 = vmatmul.mubr.msk.bf16.vlgmr.msra.gmra.mrb[48].mxu1 %vm384_vm5, %v15429_v37  ;;  %v15410_v37 = vld [vmem:[#allocation3 + $0x137] sm:$0xff] }
 0x9be   : > { %21194 = vmatpush3.bf16.msra.mxu1 %v22918_v14  ;;  %21149 = vmatprep.mubr.msk.bf16.mxu1 %vm384_vm5, %v15430_v56  ;;  %v28867_v14 = vld [vmem:[%s29184_s6 + $0x100] sm:$0xff]   ;;  %v15443_v56 = vpack.c.bf16 %v15411_v10, %v15410_v37  ;;  %v30798_v37 = vld [vmem:[#allocation120_spill] sm:$0xff] }
 0x9bf   : > { %21195 = vmatprep.subr.bf16.mxu1 %v22919_v63 }
 0x9c2   : > { %21196 = vmatpush3.bf16.msra.mxu1 %v22919_v63  ;;  %v15413_v63 = vld [vmem:[#allocation3 + $0x14f] sm:$0xff] }
 0x9c3   : > { %21197 = vmatprep.subr.bf16.mxu1 %v22920_v29 }
 0x9c5   : > { %21150 = vmatmul.mubr.msk.bf16.gmra.mrb[52].mxu1 %vm384_vm5, %v15431_v34  ;;  %v15417_v34 = vld [vmem:[#allocation3 + $0x16f] sm:$0xff] }
 0x9c6   : > { %21153 = vmatprep.mubr.msk.bf16.mxu1 %vm384_vm5, %v15432_v6  ;;  %21198 = vmatpush3.bf16.msra.mxu1 %v22920_v29  ;;  %v15412_v29 = vld [vmem:[#allocation3 + $0x147] sm:$0xff] }
 0x9c7   : > { %21199 = vmatprep.subr.bf16.mxu1 %v22921_v15  ;;  %v15444_v31 = vpack.c.bf16 %v15413_v63, %v15412_v29  ;;  %v30800_v63 = vld [vmem:[#allocation121_spill] sm:$0xff] }
 0x9ca   : > { %21200 = vmatpush3.bf16.msra.mxu1 %v22921_v15  ;;  %v15416_v15 = vld [vmem:[#allocation3 + $0x167] sm:$0xff] }
 0x9cb   : > { %21249 = vmatprep.subr.bf16.mxu1 %v28867_v14  ;;  %v15446_v6 = vpack.c.bf16 %v15417_v34, %v15416_v15  ;;  %v30806_v34 = vld [vmem:[#allocation133_spill] sm:$0xff] }
 0x9cd   : > { %21154 = vmatmul.mubr.msk.bf16.gmra.mrb[56].mxu1 %vm384_vm5, %v15433_v12  ;;  %v15447_v12 = vpack.c.bf16 %v15419_v62, %v15418_v36  ;;  %v30810_v36 = vld [vmem:[#allocation20_spill] sm:$0xff] }
 0x9ce   : > { %21157 = vmatprep.mubr.msk.bf16.mxu1 %vm384_vm5, %v15434_v1  ;;  %v15448_v1 = vpack.c.bf16 %v15421_v18, %v15420_v17  ;;  %v30812_v18 = vld [vmem:[#allocation18_spill] sm:$0xff] }
 0x9d5   : > { %21158 = vmatmul.mubr.msk.bf16.gmra.mrb[60].mxu1 %vm384_vm5, %v15435_v23  ;;  %v15426_v23 = vld [vmem:[#allocation3 + $0x1b7] sm:$0xff] }
 0x9d6   : > { %21161 = vmatprep.mubr.msk.bf16.mxu1 %vm384_vm5, %v15436_v20  ;;  %v15451_v20 = vpack.c.bf16 %v15427_v39, %v15426_v23  ;;  %v30819_v23 = vld [vmem:[#allocation25_spill] sm:$0xff] }
 0x9dd   : > { %21162 = vmatmul.mubr.msk.bf16.gmra.mrb[64].mxu1 %vm384_vm5, %v15437_v53  ;;  %v30782_v53 = vld [vmem:[#allocation11_spill] sm:$0xff] }
 0x9de   : > { %21165 = vmatprep.mubr.msk.bf16.mxu1 %vm384_vm5, %v15438_v0  ;;  %v30784_v5 = vpack.c.bf16 %v30782_v53, %v30783_v42  ;;  %v30786_v0 = vld [vmem:[#allocation43_spill] sm:$0xff]  ;;  %v30826_v53 = vpack.c.bf16 %v30716_v57, %v30715_v43  ;;  %v30830_v57 = vpack.c.bf16 %v30724_v2, %v30723_v11  ;;  %v16284_v2 = vld [vmem:[#allocation3 + $0x79] sm:$0xff] }
 0x9df   : > { %v30787_v41 = vpack.c.bf16 %v30785_v45, %v30786_v0  ;;  %v16278_v42 = vld [vmem:[#allocation3 + $0x49] sm:$0xff] }
 0x9e0   : > { %v16282_v0 = vld [vmem:[#allocation3 + $0x69] sm:$0xff] }
 0x9e5   : > { %21166 = vmatmul.mubr.msk.bf16.gmra.mrb[68].mxu1 %vm384_vm5, %v15439_v27  ;;  %v30788_v27 = vld [vmem:[#allocation44_spill] sm:$0xff] }
 0x9e6   : > { %21169 = vmatprep.mubr.msk.bf16.mxu1 %vm384_vm5, %v15440_v30  ;;  %v30790_v30 = vpack.c.bf16 %v30788_v27, %v30789_v55  ;;  %v16286_v27 = vld [vmem:[#allocation3 + $0x89] sm:$0xff] }
 0x9ed   : > { %21170 = vmatmul.mubr.msk.bf16.gmra.mrb[72].mxu1 %vm384_vm5, %v15441_v7  ;;  %v30795_v7 = vld [vmem:[#allocation107_spill] sm:$0xff] }
 0x9ee   : > { %21173 = vmatprep.mubr.msk.bf16.mxu1 %vm384_vm5, %v15442_v46  ;;  %v30796_v25 = vpack.c.bf16 %v30794_v48, %v30795_v7  ;;  %v30797_v46 = vld [vmem:[#allocation118_spill] sm:$0xff] }
 0x9ef   : > { %v30799_v10 = vpack.c.bf16 %v30797_v46, %v30798_v37  ;;  %v16290_v48 = vld [vmem:[#allocation3 + $0xa9] sm:$0xff]  ;;  %v16293_v46 = vld [vmem:[#allocation3 + $0xc1] sm:$0xff]  ;;  %v16295_v37 = vld [vmem:[#allocation3 + $0xd1] sm:$0xff] }
 0x9f5   : > { %21174 = vmatmul.mubr.msk.bf16.gmra.mrb[76].mxu1 %vm384_vm5, %v15443_v56  ;;  %v30801_v56 = vld [vmem:[#allocation119_spill] sm:$0xff] }
 0x9f6   : > { %21177 = vmatprep.mubr.msk.bf16.mxu1 %vm384_vm5, %v15444_v31  ;;  %v30802_v29 = vpack.c.bf16 %v30800_v63, %v30801_v56  ;;  %v30803_v31 = vld [vmem:[#allocation126_spill] sm:$0xff] }
 0x9f7   : > { %v30805_v60 = vpack.c.bf16 %v30803_v31, %v30804_v38  ;;  %v16294_v63 = vld [vmem:[#allocation3 + $0xc9] sm:$0xff]  ;;  %v16297_v31 = vld [vmem:[#allocation3 + $0xe1] sm:$0xff]  ;;  %v16299_v38 = vld [vmem:[#allocation3 + $0xf1] sm:$0xff] }
 0x9f8   : > { %v16334_v56 = vpack.c.bf16 %v16295_v37, %v16294_v63 }
 0x9fd   : > { %21178 = vmatmul.mubr.msk.bf16.gmra.mrb[80].mxu1 %vm384_vm5, %v15445_v59  ;;  %v30807_v59 = vld [vmem:[#allocation127_spill] sm:$0xff] }
 0x9fe   : > { %21181 = vmatprep.mubr.msk.bf16.mxu1 %vm384_vm5, %v15446_v6  ;;  %v30808_v15 = vpack.c.bf16 %v30806_v34, %v30807_v59  ;;  %v30809_v6 = vld [vmem:[#allocation19_spill] sm:$0xff] }
 0x9ff   : > { %v30811_v62 = vpack.c.bf16 %v30809_v6, %v30810_v36  ;;  %v16298_v34 = vld [vmem:[#allocation3 + $0xe9] sm:$0xff]  ;;  %v16301_v6 = vld [vmem:[#allocation3 + $0x101] sm:$0xff]  ;;  %v16303_v36 = vld [vmem:[#allocation3 + $0x111] sm:$0xff] }
 0xa00   : > { %v16336_v59 = vpack.c.bf16 %v16299_v38, %v16298_v34 }
 0xa05   : > { %21182 = vmatmul.mubr.msk.bf16.gmra.mrb[84].mxu1 %vm384_vm5, %v15447_v12  ;;  %v30813_v12 = vld [vmem:[#allocation17_spill] sm:$0xff] }
 0xa06   : > { %21185 = vmatprep.mubr.msk.bf16.mxu1 %vm384_vm5, %v15448_v1  ;;  %v30814_v17 = vpack.c.bf16 %v30812_v18, %v30813_v12  ;;  %v30815_v1 = vld [vmem:[#allocation28_spill] sm:$0xff]  ;;  %v16302_v18 = vld [vmem:[#allocation3 + $0x109] sm:$0xff] }
 0xa07   : > { %v16338_v12 = vpack.c.bf16 %v16303_v36, %v16302_v18 }
 0xa0d   : > { %21186 = vmatmul.mubr.msk.bf16.gmra.mrb[88].mxu1 %vm384_vm5, %v30778_v47  ;;  %v30818_v47 = vld [vmem:[#allocation26_spill] sm:$0xff] }
 0xa0e   : > { %21189 = vmatprep.mubr.msk.bf16.mxu1 %vm384_vm5, %v15450_v44  ;;  %v30817_v44 = vpack.c.bf16 %v30815_v1, %v30816_v58  ;;  %v30820_v39 = vpack.c.bf16 %v30818_v47, %v30819_v23  ;;  %v16305_v1 = vld [vmem:[#allocation3 + $0x121] sm:$0xff]  ;;  %v16307_v58 = vld [vmem:[#allocation3 + $0x131] sm:$0xff]  ;;  %v16306_v47 = vld [vmem:[#allocation3 + $0x129] sm:$0xff] }
 0xa0f   : > { %v16340_v23 = vpack.c.bf16 %v16307_v58, %v16306_v47 }
 0xa15   : > { %21190 = vmatmul.mubr.msk.bf16.gmra.mrb[92].mxu1 %vm384_vm5, %v15451_v20  ;;  %v30821_v20 = vld [vmem:[#allocation130_spill] sm:$0xff] }
 0xa16   : > { %21201 = vmatprep.mubr.msk.bf16.mxu1 %vm384_vm5, %v30781_v21  ;;  %v30822_v19 = vpack.c.bf16 %v30821_v20, %v30711_v32  ;;  %v30824_v21 = vpack.c.bf16 %v30712_v4, %v30823_v22  ;;  %v30827_v32 = vpack.c.bf16 %v30718_v51, %v30717_v24  ;;  %v30828_v4 = vpack.c.bf16 %v30720_v16, %v30719_v54  ;;  %v15875_v24 = vld [vmem:[#allocation3 + $0x1b8] sm:$0xff]  ;;  %v15876_v51 = vld [vmem:[#allocation3 + $0x1c0] sm:$0xff] }
 0xa17   : > { %v15900_v54 = vpack.c.bf16 %v15876_v51, %v15875_v24  ;;  %v16279_v16 = vld [vmem:[#allocation3 + $0x51] sm:$0xff]  ;;  %v16309_v20 = vld [vmem:[#allocation3 + $0x141] sm:$0xff] }
 0xa18   : > { %v16317_v24 = vld [vmem:[#allocation3 + $0x181] sm:$0xff]  ;;  %v16319_v51 = vld [vmem:[#allocation3 + $0x191] sm:$0xff] }
 0xa1d   : > { %21202 = vmatmul.mubr.msk.bf16.vlgmr.msra.gmra.mrb[48].mxu1 %vm384_vm5, %v30784_v5  ;;  %v16326_v5 = vpack.c.bf16 %v16279_v16, %v16278_v42  ;;  %v16318_v16 = vld [vmem:[#allocation3 + $0x189] sm:$0xff] }
 0xa1e   : > { %21250 = vmatpush3.bf16.msra.mxu1 %v28867_v14  ;;  %21205 = vmatprep.mubr.msk.bf16.mxu1 %vm384_vm5, %v30787_v41  ;;  %v30791_v14 = vld [vmem:[#allocation105_spill] sm:$0xff]  ;;  %v16346_v42 = vpack.c.bf16 %v16319_v51, %v16318_v16 }
 0xa1f   : > { %21251 = vmatprep.subr.bf16.mxu1 %v22923_v33  ;;  %v30793_v26 = vpack.c.bf16 %v30791_v14, %v30792_v49  ;;  %v16285_v41 = vld [vmem:[#allocation3 + $0x81] sm:$0xff]  ;;  %v16291_v49 = vld [vmem:[#allocation3 + $0xb1] sm:$0xff] }
 0xa20   : > { %v16289_v14 = vld [vmem:[#allocation3 + $0xa1] sm:$0xff]  ;;  %v16332_v7 = vpack.c.bf16 %v16291_v49, %v16290_v48 }
 0xa22   : > { %21252 = vmatpush3.bf16.msra.mxu1 %v22923_v33  ;;  %v30825_v33 = vpack.c.bf16 %v30714_v35, %v30713_v52  ;;  %v30829_v52 = vpack.c.bf16 %v30722_v40, %v30721_v8  ;;  %v15874_v35 = vld [vmem:[#allocation3 + $0x1b0] sm:$0xff]  ;;  %v16280_v8 = vld [vmem:[#allocation3 + $0x59] sm:$0xff]  ;;  %v16281_v40 = vld [vmem:[#allocation3 + $0x61] sm:$0xff] }
 0xa23   : > { %21253 = vmatprep.subr.bf16.mxu1 %v22924_v50  ;;  %v15899_v43 = vpack.c.bf16 %v15874_v35, %v28736_v13  ;;  %v16283_v13 = vld [vmem:[#allocation3 + $0x71] sm:$0xff]  ;;  %v16327_v45 = vpack.c.bf16 %v16281_v40, %v16280_v8  ;;  %v16314_v35 = vld [vmem:[#allocation3 + $0x169] sm:$0xff]  ;;  %v30831_v40 = vpack.c.bf16 %v30777_v28, %v30774_v3 }
 0xa24   : > { %v16328_v11 = vpack.c.bf16 %v16283_v13, %v16282_v0  ;;  %v16324_v13 = vld [vmem:[#allocation3 + $0x1b9] sm:$0xff] }
 0xa25   : > { %21206 = vmatmul.mubr.msk.bf16.gmra.mrb[52].mxu1 %vm384_vm5, %v30790_v30  ;;  %v16288_v30 = vld [vmem:[#allocation3 + $0x99] sm:$0xff] }
 0xa26   : > { %21209 = vmatprep.mubr.msk.bf16.mxu1 %vm384_vm5, %v30793_v26  ;;  %21254 = vmatpush3.bf16.msra.mxu1 %v22924_v50  ;;  %v16287_v50 = vld [vmem:[#allocation3 + $0x91] sm:$0xff]  ;;  %v16331_v26 = vpack.c.bf16 %v16289_v14, %v16288_v30 }
 0xa27   : > { %21255 = vmatprep.subr.bf16.mxu1 %v22925_v9  ;;  %v16330_v55 = vpack.c.bf16 %v16287_v50, %v16286_v27 }
 0xa2a   : > { %21256 = vmatpush3.bf16.msra.mxu1 %v22925_v9  ;;  %v16329_v9 = vpack.c.bf16 %v16285_v41, %v16284_v2 }
 0xa2d   : > { %21210 = vmatmul.mubr.msk.bf16.gmra.mrb[56].mxu1 %vm384_vm5, %v30796_v25  ;;  %v16292_v25 = vld [vmem:[#allocation3 + $0xb9] sm:$0xff] }
 0xa2e   : > { %21213 = vmatprep.mubr.msk.bf16.mxu1 %vm384_vm5, %v30799_v10  ;;  %v16333_v10 = vpack.c.bf16 %v16293_v46, %v16292_v25  ;;  %v16833_v25 = vld [vmem:[#allocation4 + $0x18] sm:$0xff] }
 0xa35   : > { %21214 = vmatmul.mubr.msk.bf16.gmra.mrb[60].mxu1 %vm384_vm5, %v30802_v29  ;;  %v16296_v29 = vld [vmem:[#allocation3 + $0xd9] sm:$0xff] }
 0xa36   : > { %21217 = vmatprep.mubr.msk.bf16.mxu1 %vm384_vm5, %v30805_v60  ;;  %v16335_v60 = vpack.c.bf16 %v16297_v31, %v16296_v29 }
 0xa3d   : > { %21218 = vmatmul.mubr.msk.bf16.gmra.mrb[64].mxu1 %vm384_vm5, %v30808_v15  ;;  %v16300_v15 = vld [vmem:[#allocation3 + $0xf9] sm:$0xff] }
 0xa3e   : > { %21221 = vmatprep.mubr.msk.bf16.mxu1 %vm384_vm5, %v30811_v62  ;;  %v16337_v62 = vpack.c.bf16 %v16301_v6, %v16300_v15 }
 0xa45   : > { %21222 = vmatmul.mubr.msk.bf16.gmra.mrb[68].mxu1 %vm384_vm5, %v30814_v17  ;;  %v16304_v17 = vld [vmem:[#allocation3 + $0x119] sm:$0xff] }
 0xa46   : > { %21225 = vmatprep.mubr.msk.bf16.mxu1 %vm384_vm5, %v30817_v44  ;;  %v16339_v44 = vpack.c.bf16 %v16305_v1, %v16304_v17  ;;  %v30833_v1 = vld [vmem:[#allocation48_spill] sm:$0xff] }
 0xa4d   : > { %21226 = vmatmul.mubr.msk.bf16.gmra.mrb[72].mxu1 %vm384_vm5, %v30820_v39  ;;  %v16308_v39 = vld [vmem:[#allocation3 + $0x139] sm:$0xff] }
 0xa4e   : > { %21229 = vmatprep.mubr.msk.bf16.mxu1 %vm384_vm5, %v30822_v19  ;;  %v16311_v19 = vld [vmem:[#allocation3 + $0x151] sm:$0xff]  ;;  %v16341_v22 = vpack.c.bf16 %v16309_v20, %v16308_v39 }
 0xa55   : > { %21230 = vmatmul.mubr.msk.bf16.gmra.mrb[76].mxu1 %vm384_vm5, %v30824_v21  ;;  %v16310_v21 = vld [vmem:[#allocation3 + $0x149] sm:$0xff] }
 0xa56   : > { %21233 = vmatprep.mubr.msk.bf16.mxu1 %vm384_vm5, %v30825_v33  ;;  %v16342_v33 = vpack.c.bf16 %v16311_v19, %v16310_v21  ;;  %v30835_v19 = vld [vmem:[#allocation33_spill] sm:$0xff] }
 0xa5d   : > { %21234 = vmatmul.mubr.msk.bf16.gmra.mrb[80].mxu1 %vm384_vm5, %v30826_v53  ;;  %v16312_v53 = vld [vmem:[#allocation3 + $0x159] sm:$0xff] }
 0xa5e   : > { %21237 = vmatprep.mubr.msk.bf16.mxu1 %vm384_vm5, %v30827_v32  ;;  %v16313_v32 = vld [vmem:[#allocation3 + $0x161] sm:$0xff] }
 0xa65   : > { %21238 = vmatmul.mubr.msk.bf16.gmra.mrb[84].mxu1 %vm384_vm5, %v30828_v4  ;;  %v16315_v4 = vld [vmem:[#allocation3 + $0x171] sm:$0xff] }
 0xa66   : > { %21241 = vmatprep.mubr.msk.bf16.mxu1 %vm384_vm5, %v30829_v52  ;;  %v16343_v52 = vpack.c.bf16 %v16313_v32, %v16312_v53 }
 0xa6d   : > { %21242 = vmatmul.mubr.msk.bf16.gmra.mrb[88].mxu1 %vm384_vm5, %v30830_v57  ;;  %v16316_v57 = vld [vmem:[#allocation3 + $0x179] sm:$0xff] }
 0xa6e   : > { %21245 = vmatprep.mubr.msk.bf16.mxu1 %vm384_vm5, %v15899_v43  ;;  %v16344_v43 = vpack.c.bf16 %v16315_v4, %v16314_v35  ;;  %v16837_v35 = vld [vmem:[#allocation4 + $0x38] sm:$0xff] }
 0xa75   : > { %21246 = vmatmul.mubr.msk.bf16.gmra.mrb[92].mxu1 %vm384_vm5, %v15900_v54  ;;  %v16345_v54 = vpack.c.bf16 %v16317_v24, %v16316_v57 }
 0xa76   : > { %21257 = vmatprep.mubr.msk.bf16.mxu1 %vm384_vm5, %v16326_v5  ;;  %v16323_v5 = vld [vmem:[#allocation3 + $0x1b1] sm:$0xff] }
 0xa77   : > { %v16348_v8 = vpack.c.bf16 %v16323_v5, %v28845_v61 }
 0xa7d   : > { %21258 = vmatmul.mubr.msk.bf16.vlgmr.msra.gmra.mrb[48].mxu1 %vm384_vm5, %v16327_v45  ;;  %v16325_v45 = vld [vmem:[#allocation3 + $0x1c1] sm:$0xff] }
 0xa7e   : > { %21261 = vmatprep.mubr.msk.bf16.mxu1 %vm384_vm5, %v16328_v11  ;;  %v16349_v0 = vpack.c.bf16 %v16325_v45, %v16324_v13  ;;  %v29025_v11 = vld [vmem:[%s29185_s7] ss:$0 sm:$0xff] }
 0xa85   : > { %21262 = vmatmul.mubr.msk.bf16.gmra.mrb[52].mxu1 %vm384_vm5, %v16329_v9 }
 0xa86   : > { %21265 = vmatprep.mubr.msk.bf16.mxu1 %vm384_vm5, %v16330_v55  ;;  %v16832_v55 = vld [vmem:[#allocation4 + $0x10] sm:$0xff] }
 0xa8d   : > { %21266 = vmatmul.mubr.msk.bf16.gmra.mrb[56].mxu1 %vm384_vm5, %v16331_v26  ;;  %v16830_v26 = vld [vmem:[#allocation4] sm:$0xff] }
 0xa8e   : > { %21269 = vmatprep.mubr.msk.bf16.mxu1 %vm384_vm5, %v16332_v7 }
 0xa95   : > { %21270 = vmatmul.mubr.msk.bf16.gmra.mrb[60].mxu1 %vm384_vm5, %v16333_v10  ;;  %v16831_v10 = vld [vmem:[#allocation4 + $0x8] sm:$0xff] }
 0xa96   : > { %21273 = vmatprep.mubr.msk.bf16.mxu1 %vm384_vm5, %v16334_v56 }
 0xa9d   : > { %21274 = vmatmul.mubr.msk.bf16.gmra.mrb[64].mxu1 %vm384_vm5, %v16335_v60 }
 0xa9e   : > { %21277 = vmatprep.mubr.msk.bf16.mxu1 %vm384_vm5, %v16336_v59  ;;  %v30832_v59 = vld [vmem:[#allocation46_spill] sm:$0xff] }
 0xaa5   : > { %21278 = vmatmul.mubr.msk.bf16.gmra.mrb[68].mxu1 %vm384_vm5, %v16337_v62 }
 0xaa6   : > { %21281 = vmatprep.mubr.msk.bf16.mxu1 %vm384_vm5, %v16338_v12 }
 0xaad   : > { %21282 = vmatmul.mubr.msk.bf16.gmra.mrb[72].mxu1 %vm384_vm5, %v16339_v44  ;;  %v30834_v44 = vld [vmem:[#allocation50_spill] sm:$0xff] }
 0xaae   : > { %21285 = vmatprep.mubr.msk.bf16.mxu1 %vm384_vm5, %v16340_v23  ;;  %v16836_v23 = vld [vmem:[#allocation4 + $0x30] sm:$0xff] }
 0xab5   : > { %21286 = vmatmul.mubr.msk.bf16.gmra.mrb[76].mxu1 %vm384_vm5, %v16341_v22 }
 0xab6   : > { %21289 = vmatprep.mubr.msk.bf16.mxu1 %vm384_vm5, %v16342_v33  ;;  %v16834_v33 = vld [vmem:[#allocation4 + $0x20] sm:$0xff] }
 0xabd   : > { %21290 = vmatmul.mubr.msk.bf16.gmra.mrb[80].mxu1 %vm384_vm5, %v16343_v52 }
 0xabe   : > { %21293 = vmatprep.mubr.msk.bf16.mxu1 %vm384_vm5, %v16344_v43 }
 0xac5   : > { %21294 = vmatmul.mubr.msk.bf16.gmra.mrb[84].mxu1 %vm384_vm5, %v16345_v54  ;;  %v16835_v54 = vld [vmem:[#allocation4 + $0x28] sm:$0xff] }
 0xac6   : > { %21297 = vmatprep.mubr.msk.bf16.mxu1 %vm384_vm5, %v16346_v42 }
 0xacd   : > { %21298 = vmatmul.mubr.msk.bf16.gmra.mrb[88].mxu1 %vm384_vm5, %v30831_v40 }
 0xace   : > { %21301 = vmatprep.mubr.msk.bf16.mxu1 %vm384_vm5, %v16348_v8 }
 0xad5   : > { %21302 = vmatmul.mubr.msk.bf16.gmra.mrb[92].mxu1 %vm384_vm5, %v16349_v0 }
 0xb50   : > { %v21259_v2 = vpop.f32.mrb[48].mxu1 }
 0xb51   : > { %v16736_v61 = vadd.f32 %v21259_v2, %v29025_v11  ;;  %v16488_v41 = vpop.f32.mrb[49].mxu1  ;;  %v30836_v2 = vld [vmem:[#allocation38_spill] sm:$0xff] }
 0xb52   : > { %v16734_v3 = vadd.f32 %v29025_v11, %v16488_v41  ;;  %v21260_v28 = vpop.f32.mrb[50].mxu1 }
 0xb53   : > { %v16784_v50 = vmax.f32 %v16736_v61, 0.0  ;;  %v16737_v9 = vadd.f32 %v21260_v28, %v29025_v11  ;;  %v16491_v27 = vpop.f32.mrb[51].mxu1 }
 0xb54   : > { %v16782_v30 = vmax.f32 %v16734_v3, 0.0  ;;  %v16735_v14 = vadd.f32 %v29025_v11, %v16491_v27 }
 0xb55   : > { %v16880_v49 = vsub.f32 %v16784_v50, %v16832_v55  ;;  %v16785_v48 = vmax.f32 %v16737_v9, 0.0  ;;  %v30837_v9 = vld [vmem:[#allocation5_spill] sm:$0xff] }
 0xb56   : > { %v16878_v7 = vsub.f32 %v16782_v30, %v16830_v26  ;;  %v16783_v46 = vmax.f32 %v16735_v14, 0.0  ;;  %v30838_v26 = vld [vmem:[#allocation37_spill] sm:$0xff] }
 0xb57   : > { %v16881_v37 = vsub.f32 %v16785_v48, %v16833_v25  ;;  %v16928_v63 = vmul.f32 %v16880_v49, %v16880_v49 }
 0xb58   : > { %v16926_v56 = vmul.f32 %v16878_v7, %v16878_v7  ;;  %v16879_v29 = vsub.f32 %v16783_v46, %v16831_v10  ;;  %v21263_v31 = vpop.f32.mrb[52].mxu1  ;;  %v16840_v7 = vld [vmem:[#allocation4 + $0x50] sm:$0xff] }
 0xb59   : > { %v16929_v38 = vmul.f32 %v16881_v37, %v16881_v37  ;;  %v16740_v60 = vadd.f32 %v21263_v31, %v29025_v11  ;;  %v16504_v34 = vpop.f32.mrb[53].mxu1  ;;  %v16976_v58 = vmul.f32 %v16928_v63, %v30833_v1  ;;  %v16838_v63 = vld [vmem:[#allocation4 + $0x40] sm:$0xff] }
 0xb5a   : > { %v16974_v15 = vmul.f32 %v16926_v56, %v30832_v59  ;;  %v16927_v6 = vmul.f32 %v16879_v29, %v16879_v29  ;;  %v16738_v36 = vadd.f32 %v29025_v11, %v16504_v34  ;;  %v21264_v62 = vpop.f32.mrb[54].mxu1  ;;  %v30839_v29 = vld [vmem:[#allocation51_spill] sm:$0xff] }
 0xb5b   : > { %v16788_v18 = vmax.f32 %v16740_v60, 0.0  ;;  %v16741_v12 = vadd.f32 %v21264_v62, %v29025_v11  ;;  %v16507_v17 = vpop.f32.mrb[55].mxu1  ;;  %v16977_v22 = vmul.f32 %v16929_v38, %v30835_v19  ;;  %v17025_v16 = vsel %vm384_vm5, %v16976_v58, 0.0 }
 0xb5c   : > { %v16975_v47 = vmul.f32 %v16927_v6, %v30834_v44  ;;  %v16786_v39 = vmax.f32 %v16738_v36, 0.0  ;;  %v16739_v20 = vadd.f32 %v29025_v11, %v16507_v17  ;;  %v17022_v32 = vsel %vm384_vm5, %v16974_v15, 0.0  ;;  %v16841_v15 = vld [vmem:[#allocation4 + $0x58] sm:$0xff]  ;;  %v16839_v17 = vld [vmem:[#allocation4 + $0x48] sm:$0xff] }
 0xb5d   : > { %v16884_v21 = vsub.f32 %v16788_v18, %v16836_v23  ;;  %v16789_v53 = vmax.f32 %v16741_v12, 0.0  ;;  %v17027_v40 = vsel %vm384_vm5, %v16977_v22, 0.0 }
 0xb5e   : > { %v17023_v4 = vsel %vm384_vm5, %v16975_v47, 0.0  ;;  %v16882_v52 = vsub.f32 %v16786_v39, %v16834_v33  ;;  %v16787_v43 = vmax.f32 %v16739_v20, 0.0  ;;  %v30840_v20 = vld [vmem:[#allocation52_spill] sm:$0xff] }
 0xb5f   : > { %v17024_v57 = vadd.f32 %v17023_v4, %v17022_v32  ;;  %v16932_v24 = vmul.f32 %v16884_v21, %v16884_v21  ;;  %v16885_v51 = vsub.f32 %v16789_v53, %v16837_v35  ;;  %v30841_v35 = vld [vmem:[#allocation54_spill] sm:$0xff] }
 0xb60   : > { %v16930_v42 = vmul.f32 %v16882_v52, %v16882_v52  ;;  %v16883_v5 = vsub.f32 %v16787_v43, %v16835_v54  ;;  %v21267_v8 = vpop.f32.mrb[56].mxu1 }
 0xb61   : > { %v17026_v13 = vadd.f32 %v17025_v16, %v17024_v57  ;;  %v16744_v45 = vadd.f32 %v21267_v8, %v29025_v11  ;;  %v16520_v0 = vpop.f32.mrb[57].mxu1  ;;  %v16933_v41 = vmul.f32 %v16885_v51, %v16885_v51  ;;  %v16980_v27 = vmul.f32 %v16932_v24, %v30837_v9  ;;  %v16844_v24 = vld [vmem:[#allocation4 + $0x70] sm:$0xff] }
 0xb62   : > { %v16978_v61 = vmul.f32 %v16930_v42, %v30836_v2  ;;  %v16931_v3 = vmul.f32 %v16883_v5, %v16883_v5  ;;  %v16742_v28 = vadd.f32 %v29025_v11, %v16520_v0  ;;  %v21268_v50 = vpop.f32.mrb[58].mxu1  ;;  %v30842_v42 = vld [vmem:[#allocation53_spill] sm:$0xff] }
 0xb63   : > { %v17028_v55 = vadd.f32 %v17027_v40, %v17026_v13  ;;  %v16792_v30 = vmax.f32 %v16744_v45, 0.0  ;;  %v16523_v14 = vpop.f32.mrb[59].mxu1  ;;  %v16745_v46 = vadd.f32 %v21268_v50, %v29025_v11  ;;  %v16981_v31 = vmul.f32 %v16933_v41, %v30839_v29  ;;  %v16842_v40 = vld [vmem:[#allocation4 + $0x60] sm:$0xff]  ;;  %v30843_v45 = vld [vmem:[#allocation55_spill] sm:$0xff] }
 0xb64   : > { %v17029_v49 = vsel %vm384_vm5, %v16978_v61, 0.0  ;;  %v16979_v48 = vmul.f32 %v16931_v3, %v30838_v26  ;;  %v16790_v25 = vmax.f32 %v16742_v28, 0.0  ;;  %v16743_v56 = vadd.f32 %v29025_v11, %v16523_v14  ;;  %v16845_v3 = vld [vmem:[#allocation4 + $0x78] sm:$0xff] }
 0xb65   : > { %v17030_v37 = vadd.f32 %v17029_v49, %v17028_v55  ;;  %v16888_v10 = vsub.f32 %v16792_v30, %v16840_v7  ;;  %v16793_v34 = vmax.f32 %v16745_v46, 0.0  ;;  %v17033_v36 = vsel %vm384_vm5, %v16980_v27, 0.0  ;;  %v16843_v30 = vld [vmem:[#allocation4 + $0x68] sm:$0xff] }
 0xb66   : > { %v17031_v38 = vsel %vm384_vm5, %v16979_v48, 0.0  ;;  %v16886_v60 = vsub.f32 %v16790_v25, %v16838_v63  ;;  %v16791_v6 = vmax.f32 %v16743_v56, 0.0  ;;  %v17035_v39 = vsel %vm384_vm5, %v16981_v31, 0.0 }
 0xb67   : > { %v17032_v59 = vadd.f32 %v17031_v38, %v17030_v37  ;;  %v16936_v62 = vmul.f32 %v16888_v10, %v16888_v10  ;;  %v16889_v12 = vsub.f32 %v16793_v34, %v16841_v15  ;;  %v30844_v37 = vld [vmem:[#allocation58_spill] sm:$0xff] }
 0xb68   : > { %v16934_v18 = vmul.f32 %v16886_v60, %v16886_v60  ;;  %v21271_v1 = vpop.f32.mrb[60].mxu1  ;;  %v16887_v44 = vsub.f32 %v16791_v6, %v16839_v17 }
 0xb69   : > { %v17034_v58 = vadd.f32 %v17033_v36, %v17032_v59  ;;  %v16748_v47 = vadd.f32 %v21271_v1, %v29025_v11  ;;  %v16536_v23 = vpop.f32.mrb[61].mxu1  ;;  %v16937_v22 = vmul.f32 %v16889_v12, %v16889_v12  ;;  %v16984_v43 = vmul.f32 %v16936_v62, %v30841_v35  ;;  %v30845_v59 = vld [vmem:[#allocation62_spill] sm:$0xff]  ;;  %v16848_v62 = vld [vmem:[#allocation4 + $0x90] sm:$0xff] }
 0xb6a   : > { %v16982_v19 = vmul.f32 %v16934_v18, %v30840_v20  ;;  %v16746_v21 = vadd.f32 %v29025_v11, %v16536_v23  ;;  %v21272_v33 = vpop.f32.mrb[62].mxu1  ;;  %v16935_v32 = vmul.f32 %v16887_v44, %v16887_v44  ;;  %v30846_v12 = vld [vmem:[#allocation59_spill] sm:$0xff]  ;;  %v16849_v20 = vld [vmem:[#allocation4 + $0x98] sm:$0xff] }
 0xb6b   : > { %v17036_v53 = vadd.f32 %v17035_v39, %v17034_v58  ;;  %v16796_v4 = vmax.f32 %v16748_v47, 0.0  ;;  %v16539_v52 = vpop.f32.mrb[63].mxu1  ;;  %v16749_v54 = vadd.f32 %v21272_v33, %v29025_v11  ;;  %v16985_v0 = vmul.f32 %v16937_v22, %v30843_v45  ;;  %v16846_v58 = vld [vmem:[#allocation4 + $0x80] sm:$0xff] }
 0xb6c   : > { %v17037_v57 = vsel %vm384_vm5, %v16982_v19, 0.0  ;;  %v16794_v51 = vmax.f32 %v16746_v21, 0.0  ;;  %v16983_v5 = vmul.f32 %v16935_v32, %v30842_v42  ;;  %v16747_v13 = vadd.f32 %v29025_v11, %v16539_v52  ;;  %v30847_v19 = vld [vmem:[#allocation63_spill] sm:$0xff]  ;;  %v16847_v52 = vld [vmem:[#allocation4 + $0x88] sm:$0xff]  ;;  %v30848_v42 = vld [vmem:[#allocation64_spill] sm:$0xff] }
 0xb6d   : > { %v17038_v16 = vadd.f32 %v17037_v57, %v17036_v53  ;;  %v16892_v8 = vsub.f32 %v16796_v4, %v16844_v24  ;;  %v16797_v61 = vmax.f32 %v16749_v54, 0.0  ;;  %v17041_v49 = vsel %vm384_vm5, %v16984_v43, 0.0 }
 0xb6e   : > { %v16890_v2 = vsub.f32 %v16794_v51, %v16842_v40  ;;  %v17039_v41 = vsel %vm384_vm5, %v16983_v5, 0.0  ;;  %v16795_v28 = vmax.f32 %v16747_v13, 0.0  ;;  %v17043_v25 = vsel %vm384_vm5, %v16985_v0, 0.0 }
 0xb6f   : > { %v17040_v50 = vadd.f32 %v17039_v41, %v17038_v16  ;;  %v16940_v9 = vmul.f32 %v16892_v8, %v16892_v8  ;;  %v16893_v55 = vsub.f32 %v16797_v61, %v16845_v3 }
 0xb70   : > { %v16938_v27 = vmul.f32 %v16890_v2, %v16890_v2  ;;  %v21275_v14 = vpop.f32.mrb[64].mxu1  ;;  %v16891_v26 = vsub.f32 %v16795_v28, %v16843_v30  ;;  %v16852_v28 = vld [vmem:[#allocation4 + $0xb0] sm:$0xff] }
 0xb71   : > { %v16752_v48 = vadd.f32 %v21275_v14, %v29025_v11  ;;  %v16552_v7 = vpop.f32.mrb[65].mxu1  ;;  %v17042_v46 = vadd.f32 %v17041_v49, %v17040_v50  ;;  %v16941_v29 = vmul.f32 %v16893_v55, %v16893_v55  ;;  %v16988_v15 = vmul.f32 %v16940_v9, %v30845_v59  ;;  %v30850_v30 = vld [vmem:[#allocation67_spill] sm:$0xff]  ;;  %v16851_v59 = vld [vmem:[#allocation4 + $0xa8] sm:$0xff] }
 0xb72   : > { %v16986_v10 = vmul.f32 %v16938_v27, %v30844_v37  ;;  %v16750_v63 = vadd.f32 %v29025_v11, %v16552_v7  ;;  %v21276_v56 = vpop.f32.mrb[66].mxu1  ;;  %v16939_v31 = vmul.f32 %v16891_v26, %v16891_v26  ;;  %v30849_v27 = vld [vmem:[#allocation68_spill] sm:$0xff]  ;;  %v16850_v26 = vld [vmem:[#allocation4 + $0xa0] sm:$0xff] }
 0xb73   : > { %v16800_v38 = vmax.f32 %v16752_v48, 0.0  ;;  %v16753_v60 = vadd.f32 %v21276_v56, %v29025_v11  ;;  %v16555_v34 = vpop.f32.mrb[67].mxu1  ;;  %v17044_v6 = vadd.f32 %v17043_v25, %v17042_v46  ;;  %v16989_v22 = vmul.f32 %v16941_v29, %v30847_v19  ;;  %v30851_v25 = vld [vmem:[#allocation70_spill] sm:$0xff]  ;;  %v16853_v56 = vld [vmem:[#allocation4 + $0xb8] sm:$0xff] }
 0xb74   : > { %v17045_v36 = vsel %vm384_vm5, %v16986_v10, 0.0  ;;  %v16798_v18 = vmax.f32 %v16750_v63, 0.0  ;;  %v16987_v17 = vmul.f32 %v16939_v31, %v30846_v12  ;;  %v16751_v47 = vadd.f32 %v29025_v11, %v16555_v34 }
 0xb75   : > { %v16896_v1 = vsub.f32 %v16800_v38, %v16848_v62  ;;  %v16801_v44 = vmax.f32 %v16753_v60, 0.0  ;;  %v17046_v23 = vadd.f32 %v17045_v36, %v17044_v6  ;;  %v17049_v43 = vsel %vm384_vm5, %v16988_v15, 0.0 }
 0xb76   : > { %v16894_v39 = vsub.f32 %v16798_v18, %v16846_v58  ;;  %v17047_v21 = vsel %vm384_vm5, %v16987_v17, 0.0  ;;  %v16799_v53 = vmax.f32 %v16751_v47, 0.0  ;;  %v17051_v45 = vsel %vm384_vm5, %v16989_v22, 0.0 }
 0xb77   : > { %v16897_v33 = vsub.f32 %v16801_v44, %v16849_v20  ;;  %v17048_v32 = vadd.f32 %v17047_v21, %v17046_v23  ;;  %v16944_v57 = vmul.f32 %v16896_v1, %v16896_v1  ;;  %v30852_v1 = vld [vmem:[#allocation27_spill] sm:$0xff] }
 0xb78   : > { %v16942_v4 = vmul.f32 %v16894_v39, %v16894_v39  ;;  %v21279_v35 = vpop.f32.mrb[68].mxu1  ;;  %v16895_v24 = vsub.f32 %v16799_v53, %v16847_v52  ;;  %v30853_v21 = vld [vmem:[#allocation75_spill] sm:$0xff] }
 0xb79   : > { %v16756_v51 = vadd.f32 %v21279_v35, %v29025_v11  ;;  %v16568_v54 = vpop.f32.mrb[69].mxu1  ;;  %v17050_v16 = vadd.f32 %v17049_v43, %v17048_v32  ;;  %v16945_v8 = vmul.f32 %v16897_v33, %v16897_v33  ;;  %v16992_v55 = vmul.f32 %v16944_v57, %v30849_v27  ;;  %v30854_v35 = vld [vmem:[#allocation72_spill] sm:$0xff] }
 0xb7a   : > { %v16990_v5 = vmul.f32 %v16942_v4, %v30848_v42  ;;  %v16754_v40 = vadd.f32 %v29025_v11, %v16568_v54  ;;  %v21280_v13 = vpop.f32.mrb[70].mxu1  ;;  %v16943_v0 = vmul.f32 %v16895_v24, %v16895_v24  ;;  %v16856_v4 = vld [vmem:[#allocation4 + $0xd0] sm:$0xff]  ;;  %v16854_v24 = vld [vmem:[#allocation4 + $0xc0] sm:$0xff] }
 0xb7b   : > { %v16804_v2 = vmax.f32 %v16756_v51, 0.0  ;;  %v16571_v61 = vpop.f32.mrb[71].mxu1  ;;  %v17052_v41 = vadd.f32 %v17051_v45, %v17050_v16  ;;  %v16757_v9 = vadd.f32 %v21280_v13, %v29025_v11  ;;  %v16993_v46 = vmul.f32 %v16945_v8, %v30851_v25  ;;  %v30855_v8 = vld [vmem:[#allocation76_spill] sm:$0xff] }
 0xb7c   : > { %v17053_v3 = vsel %vm384_vm5, %v16990_v5, 0.0  ;;  %v16802_v50 = vmax.f32 %v16754_v40, 0.0  ;;  %v16991_v14 = vmul.f32 %v16943_v0, %v30850_v30  ;;  %v16755_v48 = vadd.f32 %v29025_v11, %v16571_v61  ;;  %v16857_v5 = vld [vmem:[#allocation4 + $0xd8] sm:$0xff] }
 0xb7d   : > { %v16900_v49 = vsub.f32 %v16804_v2, %v16852_v28  ;;  %v17054_v7 = vadd.f32 %v17053_v3, %v17052_v41  ;;  %v16805_v10 = vmax.f32 %v16757_v9, 0.0  ;;  %v17057_v6 = vsel %vm384_vm5, %v16992_v55, 0.0  ;;  %v16855_v41 = vld [vmem:[#allocation4 + $0xc8] sm:$0xff] }
 0xb7e   : > { %v16898_v37 = vsub.f32 %v16802_v50, %v16850_v26  ;;  %v17055_v63 = vsel %vm384_vm5, %v16991_v14, 0.0  ;;  %v16803_v29 = vmax.f32 %v16755_v48, 0.0  ;;  %v17059_v12 = vsel %vm384_vm5, %v16993_v46, 0.0  ;;  %v30856_v14 = vld [vmem:[#allocation78_spill] sm:$0xff] }
 0xb7f   : > { %v17056_v31 = vadd.f32 %v17055_v63, %v17054_v7  ;;  %v16948_v38 = vmul.f32 %v16900_v49, %v16900_v49  ;;  %v16901_v34 = vsub.f32 %v16805_v10, %v16853_v56 }
 0xb80   : > { %v16946_v60 = vmul.f32 %v16898_v37, %v16898_v37  ;;  %v21283_v15 = vpop.f32.mrb[72].mxu1  ;;  %v16899_v36 = vsub.f32 %v16803_v29, %v16851_v59  ;;  %v16860_v29 = vld [vmem:[#allocation4 + $0xf0] sm:$0xff] }
 0xb81   : > { %v16760_v62 = vadd.f32 %v21283_v15, %v29025_v11  ;;  %v16584_v18 = vpop.f32.mrb[73].mxu1  ;;  %v17058_v17 = vadd.f32 %v17057_v6, %v17056_v31  ;;  %v16949_v23 = vmul.f32 %v16901_v34, %v16901_v34  ;;  %v16996_v33 = vmul.f32 %v16948_v38, %v30853_v21  ;;  %v30858_v59 = vld [vmem:[#allocation31_spill] sm:$0xff]  ;;  %v16859_v21 = vld [vmem:[#allocation4 + $0xe8] sm:$0xff] }
 0xb82   : > { %v16994_v58 = vmul.f32 %v16946_v60, %v30852_v1  ;;  %v16758_v44 = vadd.f32 %v29025_v11, %v16584_v18  ;;  %v21284_v47 = vpop.f32.mrb[74].mxu1  ;;  %v16947_v39 = vmul.f32 %v16899_v36, %v16899_v36  ;;  %v30857_v60 = vld [vmem:[#allocation79_spill] sm:$0xff]  ;;  %v16858_v36 = vld [vmem:[#allocation4 + $0xe0] sm:$0xff] }
 0xb83   : > { %v16808_v20 = vmax.f32 %v16760_v62, 0.0  ;;  %v16761_v19 = vadd.f32 %v21284_v47, %v29025_v11  ;;  %v16587_v22 = vpop.f32.mrb[75].mxu1  ;;  %v17060_v53 = vadd.f32 %v17059_v12, %v17058_v17  ;;  %v16997_v40 = vmul.f32 %v16949_v23, %v30855_v8  ;;  %v30859_v12 = vld [vmem:[#allocation81_spill] sm:$0xff]  ;;  %v16861_v47 = vld [vmem:[#allocation4 + $0xf8] sm:$0xff] }
 0xb84   : > { %v17061_v32 = vsel %vm384_vm5, %v16994_v58, 0.0  ;;  %v16806_v52 = vmax.f32 %v16758_v44, 0.0  ;;  %v16995_v43 = vmul.f32 %v16947_v39, %v30854_v35  ;;  %v16759_v54 = vadd.f32 %v29025_v11, %v16587_v22 }
 0xb85   : > { %v16904_v57 = vsub.f32 %v16808_v20, %v16856_v4  ;;  %v16809_v51 = vmax.f32 %v16761_v19, 0.0  ;;  %v17062_v16 = vadd.f32 %v17061_v32, %v17060_v53  ;;  %v17065_v28 = vsel %vm384_vm5, %v16996_v33, 0.0 }
 0xb86   : > { %v16902_v42 = vsub.f32 %v16806_v52, %v16854_v24  ;;  %v17063_v13 = vsel %vm384_vm5, %v16995_v43, 0.0  ;;  %v16807_v0 = vmax.f32 %v16759_v54, 0.0  ;;  %v17067_v25 = vsel %vm384_vm5, %v16997_v40, 0.0 }
 0xb87   : > { %v16905_v45 = vsub.f32 %v16809_v51, %v16857_v5  ;;  %v17064_v2 = vadd.f32 %v17063_v13, %v17062_v16  ;;  %v16952_v50 = vmul.f32 %v16904_v57, %v16904_v57  ;;  %v30860_v57 = vld [vmem:[#allocation83_spill] sm:$0xff] }
 0xb88   : > { %v16950_v61 = vmul.f32 %v16902_v42, %v16902_v42  ;;  %v21287_v3 = vpop.f32.mrb[76].mxu1  ;;  %v16903_v9 = vsub.f32 %v16807_v0, %v16855_v41  ;;  %v30861_v13 = vld [vmem:[#allocation87_spill] sm:$0xff] }
 0xb89   : > { %v16764_v27 = vadd.f32 %v21287_v3, %v29025_v11  ;;  %v16600_v55 = vpop.f32.mrb[77].mxu1  ;;  %v17066_v30 = vadd.f32 %v17065_v28, %v17064_v2  ;;  %v16953_v26 = vmul.f32 %v16905_v45, %v16905_v45  ;;  %v17000_v34 = vmul.f32 %v16952_v50, %v30857_v60  ;;  %v30862_v3 = vld [vmem:[#allocation84_spill] sm:$0xff] }
 0xb8a   : > { %v16998_v49 = vmul.f32 %v16950_v61, %v30856_v14  ;;  %v16762_v48 = vadd.f32 %v29025_v11, %v16600_v55  ;;  %v21288_v7 = vpop.f32.mrb[78].mxu1  ;;  %v16951_v46 = vmul.f32 %v16903_v9, %v16903_v9  ;;  %v16864_v61 = vld [vmem:[#allocation4 + $0x110] sm:$0xff]  ;;  %v16862_v9 = vld [vmem:[#allocation4 + $0x100] sm:$0xff] }
 0xb8b   : > { %v16812_v37 = vmax.f32 %v16764_v27, 0.0  ;;  %v16603_v10 = vpop.f32.mrb[79].mxu1  ;;  %v17068_v63 = vadd.f32 %v17067_v25, %v17066_v30  ;;  %v16765_v38 = vadd.f32 %v21288_v7, %v29025_v11  ;;  %v17001_v17 = vmul.f32 %v16953_v26, %v30859_v12  ;;  %v30863_v26 = vld [vmem:[#allocation88_spill] sm:$0xff] }
 0xb8c   : > { %v17069_v56 = vsel %vm384_vm5, %v16998_v49, 0.0  ;;  %v16810_v31 = vmax.f32 %v16762_v48, 0.0  ;;  %v16999_v15 = vmul.f32 %v16951_v46, %v30858_v59  ;;  %v16763_v62 = vadd.f32 %v29025_v11, %v16603_v10  ;;  %v16865_v49 = vld [vmem:[#allocation4 + $0x118] sm:$0xff] }
 0xb8d   : > { %v16908_v6 = vsub.f32 %v16812_v37, %v16860_v29  ;;  %v17070_v18 = vadd.f32 %v17069_v56, %v17068_v63  ;;  %v16813_v58 = vmax.f32 %v16765_v38, 0.0  ;;  %v17073_v53 = vsel %vm384_vm5, %v17000_v34, 0.0  ;;  %v16863_v63 = vld [vmem:[#allocation4 + $0x108] sm:$0xff] }
 0xb8e   : > { %v16906_v1 = vsub.f32 %v16810_v31, %v16858_v36  ;;  %v17071_v44 = vsel %vm384_vm5, %v16999_v15, 0.0  ;;  %v16811_v23 = vmax.f32 %v16763_v62, 0.0  ;;  %v17075_v35 = vsel %vm384_vm5, %v17001_v17, 0.0  ;;  %v30864_v15 = vld [vmem:[#allocation90_spill] sm:$0xff] }
 0xb8f   : > { %v17072_v39 = vadd.f32 %v17071_v44, %v17070_v18  ;;  %v16956_v20 = vmul.f32 %v16908_v6, %v16908_v6  ;;  %v16909_v22 = vsub.f32 %v16813_v58, %v16861_v47 }
 0xb90   : > { %v16954_v19 = vmul.f32 %v16906_v1, %v16906_v1  ;;  %v21291_v33 = vpop.f32.mrb[80].mxu1  ;;  %v16907_v32 = vsub.f32 %v16811_v23, %v16859_v21  ;;  %v16868_v23 = vld [vmem:[#allocation4 + $0x130] sm:$0xff]  ;;  %v30866_v21 = vld [vmem:[#allocation92_spill] sm:$0xff] }
 0xb91   : > { %v16768_v4 = vadd.f32 %v21291_v33, %v29025_v11  ;;  %v16616_v52 = vpop.f32.mrb[81].mxu1  ;;  %v17074_v43 = vadd.f32 %v17073_v53, %v17072_v39  ;;  %v16957_v16 = vmul.f32 %v16909_v22, %v16909_v22  ;;  %v17004_v45 = vmul.f32 %v16956_v20, %v30861_v13  ;;  %v16867_v13 = vld [vmem:[#allocation4 + $0x128] sm:$0xff] }
 0xb92   : > { %v17002_v24 = vmul.f32 %v16954_v19, %v30860_v57  ;;  %v16766_v51 = vadd.f32 %v29025_v11, %v16616_v52  ;;  %v21292_v54 = vpop.f32.mrb[82].mxu1  ;;  %v16955_v42 = vmul.f32 %v16907_v32, %v16907_v32  ;;  %v30865_v19 = vld [vmem:[#allocation94_spill] sm:$0xff]  ;;  %v16866_v32 = vld [vmem:[#allocation4 + $0x120] sm:$0xff] }
 0xb93   : > { %v16816_v5 = vmax.f32 %v16768_v4, 0.0  ;;  %v16769_v8 = vadd.f32 %v21292_v54, %v29025_v11  ;;  %v16619_v40 = vpop.f32.mrb[83].mxu1  ;;  %v17076_v0 = vadd.f32 %v17075_v35, %v17074_v43  ;;  %v17005_v48 = vmul.f32 %v16957_v16, %v30863_v26  ;;  %v30867_v35 = vld [vmem:[#allocation96_spill] sm:$0xff] }
 0xb94   : > { %v17077_v2 = vsel %vm384_vm5, %v17002_v24, 0.0  ;;  %v16814_v41 = vmax.f32 %v16766_v51, 0.0  ;;  %v17003_v28 = vmul.f32 %v16955_v42, %v30862_v3  ;;  %v16767_v55 = vadd.f32 %v29025_v11, %v16619_v40  ;;  %v16869_v54 = vld [vmem:[#allocation4 + $0x138] sm:$0xff] }
 0xb95   : > { %v16912_v50 = vsub.f32 %v16816_v5, %v16864_v61  ;;  %v16817_v27 = vmax.f32 %v16769_v8, 0.0  ;;  %v17078_v30 = vadd.f32 %v17077_v2, %v17076_v0  ;;  %v17081_v29 = vsel %vm384_vm5, %v17004_v45, 0.0 }
 0xb96   : > { %v16910_v14 = vsub.f32 %v16814_v41, %v16862_v9  ;;  %v17079_v7 = vsel %vm384_vm5, %v17003_v28, 0.0  ;;  %v16815_v46 = vmax.f32 %v16767_v55, 0.0  ;;  %v17083_v12 = vsel %vm384_vm5, %v17005_v48, 0.0 }
 0xb97   : > { %v16913_v25 = vsub.f32 %v16817_v27, %v16865_v49  ;;  %v17080_v37 = vadd.f32 %v17079_v7, %v17078_v30  ;;  %v16960_v31 = vmul.f32 %v16912_v50, %v16912_v50  ;;  %v30868_v50 = vld [vmem:[#allocation98_spill] sm:$0xff]  ;;  %v30869_v7 = vld [vmem:[#allocation100_spill] sm:$0xff] }
 0xb98   : > { %v16958_v10 = vmul.f32 %v16910_v14, %v16910_v14  ;;  %v21295_v56 = vpop.f32.mrb[84].mxu1  ;;  %v16911_v38 = vsub.f32 %v16815_v46, %v16863_v63 }
 0xb99   : > { %v16772_v60 = vadd.f32 %v21295_v56, %v29025_v11  ;;  %v16632_v34 = vpop.f32.mrb[85].mxu1  ;;  %v17082_v59 = vadd.f32 %v17081_v29, %v17080_v37  ;;  %v16961_v36 = vmul.f32 %v16913_v25, %v16913_v25  ;;  %v17008_v22 = vmul.f32 %v16960_v31, %v30865_v19  ;;  %v30870_v56 = vld [vmem:[#allocation99_spill] sm:$0xff] }
 0xb9a   : > { %v17006_v6 = vmul.f32 %v16958_v10, %v30864_v15  ;;  %v16770_v62 = vadd.f32 %v29025_v11, %v16632_v34  ;;  %v21296_v18 = vpop.f32.mrb[86].mxu1  ;;  %v16959_v17 = vmul.f32 %v16911_v38, %v16911_v38  ;;  %v16872_v10 = vld [vmem:[#allocation4 + $0x150] sm:$0xff]  ;;  %v16870_v38 = vld [vmem:[#allocation4 + $0x140] sm:$0xff] }
 0xb9b   : > { %v16820_v1 = vmax.f32 %v16772_v60, 0.0  ;;  %v16635_v58 = vpop.f32.mrb[87].mxu1  ;;  %v17084_v44 = vadd.f32 %v17083_v12, %v17082_v59  ;;  %v16773_v20 = vadd.f32 %v21296_v18, %v29025_v11  ;;  %v17009_v43 = vmul.f32 %v16961_v36, %v30867_v35  ;;  %v30871_v36 = vld [vmem:[#allocation101_spill] sm:$0xff] }
 0xb9c   : > { %v17085_v47 = vsel %vm384_vm5, %v17006_v6, 0.0  ;;  %v16818_v39 = vmax.f32 %v16770_v62, 0.0  ;;  %v17007_v33 = vmul.f32 %v16959_v17, %v30866_v21  ;;  %v16771_v4 = vadd.f32 %v29025_v11, %v16635_v58  ;;  %v16873_v6 = vld [vmem:[#allocation4 + $0x158] sm:$0xff] }
 0xb9d   : > { %v16916_v53 = vsub.f32 %v16820_v1, %v16868_v23  ;;  %v17086_v52 = vadd.f32 %v17085_v47, %v17084_v44  ;;  %v16821_v24 = vmax.f32 %v16773_v20, 0.0  ;;  %v17089_v0 = vsel %vm384_vm5, %v17008_v22, 0.0  ;;  %v16871_v44 = vld [vmem:[#allocation4 + $0x148] sm:$0xff] }
 0xb9e   : > { %v16914_v57 = vsub.f32 %v16818_v39, %v16866_v32  ;;  %v17087_v51 = vsel %vm384_vm5, %v17007_v33, 0.0  ;;  %v16819_v16 = vmax.f32 %v16771_v4, 0.0  ;;  %v17091_v3 = vsel %vm384_vm5, %v17009_v43, 0.0  ;;  %v30872_v33 = vld [vmem:[#allocation102_spill] sm:$0xff] }
 0xb9f   : > { %v17088_v42 = vadd.f32 %v17087_v51, %v17086_v52  ;;  %v16964_v5 = vmul.f32 %v16916_v53, %v16916_v53  ;;  %v16917_v40 = vsub.f32 %v16821_v24, %v16869_v54 }
 0xba0   : > { %v16962_v8 = vmul.f32 %v16914_v57, %v16914_v57  ;;  %v21299_v45 = vpop.f32.mrb[88].mxu1  ;;  %v16915_v2 = vsub.f32 %v16819_v16, %v16867_v13  ;;  %v16876_v16 = vld [vmem:[#allocation4 + $0x170] sm:$0xff] }
 0xba1   : > { %v16776_v61 = vadd.f32 %v21299_v45, %v29025_v11  ;;  %v16648_v41 = vpop.f32.mrb[89].mxu1  ;;  %v17090_v28 = vadd.f32 %v17089_v0, %v17088_v42  ;;  %v16965_v30 = vmul.f32 %v16917_v40, %v16917_v40  ;;  %v17012_v25 = vmul.f32 %v16964_v5, %v30869_v7  ;;  %v30874_v13 = vld [vmem:[#allocation103_spill] sm:$0xff] }
 0xba2   : > { %v17010_v9 = vmul.f32 %v16962_v8, %v30868_v50  ;;  %v16774_v27 = vadd.f32 %v29025_v11, %v16648_v41  ;;  %v21300_v55 = vpop.f32.mrb[90].mxu1  ;;  %v16963_v14 = vmul.f32 %v16915_v2, %v16915_v2  ;;  %v30873_v8 = vld [vmem:[#allocation104_spill] sm:$0xff]  ;;  %v16874_v2 = vld [vmem:[#allocation4 + $0x160] sm:$0xff]  ;;  %v30875_v50 = vld [vmem:[#allocation106_spill] sm:$0xff] }
 0xba3   : > { %v16824_v49 = vmax.f32 %v16776_v61, 0.0  ;;  %v16777_v26 = vadd.f32 %v21300_v55, %v29025_v11  ;;  %v16651_v48 = vpop.f32.mrb[91].mxu1  ;;  %v17092_v46 = vadd.f32 %v17091_v3, %v17090_v28  ;;  %v17013_v62 = vmul.f32 %v16965_v30, %v30871_v36  ;;  %v16877_v55 = vld [vmem:[#allocation4 + $0x178] sm:$0xff]  ;;  %v30879_v36 = vld [vmem:[#allocation113_spill] sm:$0xff] }
 0xba4   : > { %v17093_v37 = vsel %vm384_vm5, %v17010_v9, 0.0  ;;  %v16822_v63 = vmax.f32 %v16774_v27, 0.0  ;;  %v17011_v29 = vmul.f32 %v16963_v14, %v30870_v56  ;;  %v16775_v34 = vadd.f32 %v29025_v11, %v16651_v48  ;;  %v16875_v48 = vld [vmem:[#allocation4 + $0x168] sm:$0xff] }
 0xba5   : > { %v16920_v31 = vsub.f32 %v16824_v49, %v16872_v10  ;;  %v16825_v60 = vmax.f32 %v16777_v26, 0.0  ;;  %v17094_v59 = vadd.f32 %v17093_v37, %v17092_v46  ;;  %v17097_v23 = vsel %vm384_vm5, %v17012_v25, 0.0  ;;  %v30876_v10 = vld [vmem:[#allocation108_spill] sm:$0xff] }
 0xba6   : > { %v16918_v15 = vsub.f32 %v16822_v63, %v16870_v38  ;;  %v17095_v18 = vsel %vm384_vm5, %v17011_v29, 0.0  ;;  %v16823_v17 = vmax.f32 %v16775_v34, 0.0  ;;  %v17099_v52 = vsel %vm384_vm5, %v17013_v62, 0.0 }
 0xba7   : > { %v16921_v12 = vsub.f32 %v16825_v60, %v16873_v6  ;;  %v17096_v1 = vadd.f32 %v17095_v18, %v17094_v59  ;;  %v16968_v39 = vmul.f32 %v16920_v31, %v16920_v31  ;;  %v30877_v60 = vld [vmem:[#allocation112_spill] sm:$0xff]  ;;  %v30878_v59 = vld [vmem:[#allocation109_spill] sm:$0xff] }
 0xba8   : > { %v16966_v58 = vmul.f32 %v16918_v15, %v16918_v15  ;;  %v21303_v47 = vpop.f32.mrb[92].mxu1  ;;  %v16919_v20 = vsub.f32 %v16823_v17, %v16871_v44 }
 0xba9   : > { %v16780_v19 = vadd.f32 %v21303_v47, %v29025_v11  ;;  %v16664_v22 = vpop.f32.mrb[93].mxu1  ;;  %v17098_v21 = vadd.f32 %v17097_v23, %v17096_v1  ;;  %v16969_v35 = vmul.f32 %v16921_v12, %v16921_v12  ;;  %v17016_v40 = vmul.f32 %v16968_v39, %v30873_v8 }
 0xbaa   : > { %v17014_v53 = vmul.f32 %v16966_v58, %v30872_v33  ;;  %v16778_v32 = vadd.f32 %v29025_v11, %v16664_v22  ;;  %v21304_v4 = vpop.f32.mrb[94].mxu1  ;;  %v16967_v43 = vmul.f32 %v16919_v20, %v16919_v20 }
 0xbab   : > { %v16828_v57 = vmax.f32 %v16780_v19, 0.0  ;;  %v16667_v24 = vpop.f32.mrb[95].mxu1  ;;  %v17100_v51 = vadd.f32 %v17099_v52, %v17098_v21  ;;  %v16781_v5 = vadd.f32 %v21304_v4, %v29025_v11  ;;  %v17017_v9 = vmul.f32 %v16969_v35, %v30875_v50 }
 0xbac   : > { %v17101_v54 = vsel %vm384_vm5, %v17014_v53, 0.0  ;;  %v16826_v42 = vmax.f32 %v16778_v32, 0.0  ;;  %v17015_v45 = vmul.f32 %v16967_v43, %v30874_v13  ;;  %v16779_v61 = vadd.f32 %v29025_v11, %v16667_v24 }
 0xbad   : > { %v16924_v0 = vsub.f32 %v16828_v57, %v16876_v16  ;;  %v17102_v41 = vadd.f32 %v17101_v54, %v17100_v51  ;;  %v16829_v28 = vmax.f32 %v16781_v5, 0.0  ;;  %v17105_v7 = vsel %vm384_vm5, %v17016_v40, 0.0 }
 0xbae   : > { %v16922_v3 = vsub.f32 %v16826_v42, %v16874_v2  ;;  %v17103_v27 = vsel %vm384_vm5, %v17015_v45, 0.0  ;;  %v16827_v30 = vmax.f32 %v16779_v61, 0.0  ;;  %v17107_v63 = vsel %vm384_vm5, %v17017_v9, 0.0 }
 0xbaf   : > { %v17104_v14 = vadd.f32 %v17103_v27, %v17102_v41  ;;  %v16925_v26 = vsub.f32 %v16829_v28, %v16877_v55  ;;  %v16972_v25 = vmul.f32 %v16924_v0, %v16924_v0 }
 0xbb0   : > { %v16970_v49 = vmul.f32 %v16922_v3, %v16922_v3  ;;  %v16923_v46 = vsub.f32 %v16827_v30, %v16875_v48 }
 0xbb1   : > { %v17106_v37 = vadd.f32 %v17105_v7, %v17104_v14  ;;  %v16973_v56 = vmul.f32 %v16925_v26, %v16925_v26  ;;  %v17020_v34 = vmul.f32 %v16972_v25, %v30877_v60 }
 0xbb2   : > { %v17018_v11 = vmul.f32 %v16970_v49, %v30876_v10  ;;  %v16971_v29 = vmul.f32 %v16923_v46, %v16923_v46 }
 0xbb3   : > { %v17108_v31 = vadd.f32 %v17107_v63, %v17106_v37  ;;  %v17021_v62 = vmul.f32 %v16973_v56, %v30879_v36  ;;  %v17113_v17 = vsel %vm384_vm5, %v17020_v34, 0.0 }
 0xbb4   : > { %v17109_v38 = vsel %vm384_vm5, %v17018_v11, 0.0  ;;  %v17019_v15 = vmul.f32 %v16971_v29, %v30878_v59 }
 0xbb5   : > { %v17110_v6 = vadd.f32 %v17109_v38, %v17108_v31  ;;  %v17115_v58 = vsel %vm384_vm5, %v17021_v62, 0.0 }
 0xbb6   : > { %v17111_v18 = vsel %vm384_vm5, %v17019_v15, 0.0 }
 0xbb7   : > { %v17112_v12 = vadd.f32 %v17111_v18, %v17110_v6 }
 0xbb9   : > { %v17114_v1 = vadd.f32 %v17113_v17, %v17112_v12 }
 0xbbb   : > { %v17116_v44 = vadd.f32 %v17115_v58, %v17114_v1 }
 0xbbd   : > { %v17117_v47 = vrot.slane %v17116_v44, 4 }
 0xbbf   : > { %v17118_v23 = vadd.f32 %v17117_v47, %v17116_v44 }
 0xbc1   : > { %v17119_v39 = vrot.slane %v17118_v23, 2 }
 0xbc3   : > { %v17120_v20 = vadd.f32 %v17119_v39, %v17118_v23 }
 0xbc5   : > { %v17121_v19 = vrot.slane %v17120_v20, 1 }
 0xbc7   : > { %v17122_v22 = vadd.f32 %v17121_v19, %v17120_v20 }
 0xbc9   : > { %17124 = vst.msk [vmem:[%s321_s19] sm:$0x1] %vm17123_vm6, %v17122_v22 }
 0xbca PF: > { %s18_s27 = sadd.s32 1, %s22994_s27  }
 0xbcb   : > { %p15_p4 = scmp.ge.s32.totalorder %s18_s27, 4  }
 0xbcd   :  { %17 = sbr.rel (!%p15_p4) target bundleno = 1 (0x1), region = 102 }

</bundles_post_ra>
